<compile_context>
chip_gen: v6e
topology: v6e:2x2x1
jax: 0.10.0
libtpu: 0.0.40
codegen_flags: <defaults>
</compile_context>

<pallas_src>
import functools

import jax
import jax.numpy as jnp
from jax import lax
from jax.experimental import pallas as pl
from jax.experimental.pallas import tpu as pltpu


# ----------------------------------------------------------------------------
# Pallas kernel: matmul with fused bias (+ optional ReLU), f32 accumulation
# ----------------------------------------------------------------------------
def _matmul_bias_act_kernel(x_ref, w_ref, b_ref, o_ref, *, apply_relu):
    out = jnp.dot(x_ref[...], w_ref[...], preferred_element_type=jnp.float32)
    out = out + b_ref[...]
    if apply_relu:
        out = jnp.maximum(out, 0.0)
    o_ref[...] = out.astype(o_ref.dtype)


def matmul_bias_act(x, w, b2, *, apply_relu, out_dtype):
    """(M,K) @ (K,N) + b[1,N], optionally ReLU'd, on the MXU.

    x/w are used as bf16 (native MXU dtype), accumulation is f32, output dtype
    is `out_dtype` (bf16 for intermediate layers, f32 for the last conv).
    """
    M, K = x.shape
    K2, N = w.shape
    assert K == K2 and b2.shape == (1, N)

    x_bf = x.astype(jnp.bfloat16)
    w_bf = w.astype(jnp.bfloat16)
    b_f32 = b2.astype(jnp.float32)

    kernel = functools.partial(_matmul_bias_act_kernel, apply_relu=apply_relu)

    # Whole-operand VMEM footprint (bf16 x/w, f32 bias, out_dtype output).
    # Every Mynet conv is well under 1 MiB, so a single-block call (no grid,
    # no K accumulation, no padding, one pipeline step) is optimal on
    # v5e/v6e/v7x and stays far inside even v5e's 16 MiB scoped-VMEM default.
    out_bytes = jnp.dtype(out_dtype).itemsize
    footprint = M * K * 2 + K * N * 2 + M * N * out_bytes + N * 4
    if footprint <= 8 * 1024 * 1024:
        return pl.pallas_call(
            kernel,
            out_shape=jax.ShapeDtypeStruct((M, N), out_dtype),
        )(x_bf, w_bf, b_f32)

    # Fallback for much larger problems (never hit by Mynet shapes): tile M,
    # keep K and N whole so there is still no reduction grid axis.  VMEM is
    # capped explicitly so the grid-invariant (K,N) weight block (held and
    # double-buffered every step) cannot blow past v7x's 64 MiB physical VMEM.
    tm = 256
    return pl.pallas_call(
        kernel,
        out_shape=jax.ShapeDtypeStruct((M, N), out_dtype),
        grid_spec=pltpu.PrefetchScalarGridSpec(
            num_scalar_prefetch=0,
            grid=(pl.cdiv(M, tm),),
            in_specs=[
                pl.BlockSpec((tm, K), lambda i: (i, 0)),
                pl.BlockSpec((K, N), lambda i: (0, 0)),
                pl.BlockSpec((1, N), lambda i: (0, 0)),
            ],
            out_specs=pl.BlockSpec((tm, N), lambda i: (i, 0)),
        ),
        compiler_params=pltpu.CompilerParams(
            dimension_semantics=("parallel",),
            vmem_limit_bytes=32 * 1024 * 1024,
        ),
    )(x_bf, w_bf, b_f32)


# ----------------------------------------------------------------------------
# MaxPool(3,2): XLA tree of jnp.maximum over the 9 strided windows.
# No concat, no (9, L) stack, no extra kernel launch -- fuses with the slices.
# ----------------------------------------------------------------------------
def maxpool2d_nhwc(x, *, kernel=3, stride=2):
    N, H, W, C = x.shape
    Ho = (H - kernel) // stride + 1
    Wo = (W - kernel) // stride + 1
    out = None
    for i in range(kernel):
        for j in range(kernel):
            win = lax.slice(
                x,
                (0, i, j, 0),
                (N, i + (Ho - 1) * stride + 1, j + (Wo - 1) * stride + 1, C),
                (1, stride, stride, 1),
            )
            out = win if out is None else jnp.maximum(out, win)
    return out


# ----------------------------------------------------------------------------
# Conv2d = one-op bf16 im2col (XLA) + single-block Pallas matmul (hot path)
# ----------------------------------------------------------------------------
def conv2d_nhwc(x, wmat, b2, *, kh, kw, stride, pad, apply_relu, out_dtype):
    """x: NHWC, wmat: (Cin*KH*KW, Cout) bf16, b2: (1, Cout) f32."""
    N, H, W, Cin = x.shape
    K, Cout = wmat.shape
    assert K == Cin * kh * kw
    Ho = (H + 2 * pad - kh) // stride + 1
    Wo = (W + 2 * pad - kw) // stride + 1

    # Cast BEFORE patch extraction so the largest intermediate (the im2col
    # matrix) is materialized / DMA'd in bf16 rather than f32.
    x_bf = x.astype(jnp.bfloat16)

    # Patch feature ordering is (cin, kh, kw), cin slowest — matching the
    # weight-matrix row ordering prepared in prepare_params().
    patches = lax.conv_general_dilated_patches(
        x_bf,
        filter_shape=(kh, kw),
        window_strides=(stride, stride),
        padding=((pad, pad), (pad, pad)),
        dimension_numbers=("NHWC", "HWIO", "NHWC"),
    ).reshape(N * Ho * Wo, K)

    out = matmul_bias_act(patches, wmat, b2, apply_relu=apply_relu,
                          out_dtype=out_dtype)
    return out.reshape(N, Ho, Wo, Cout)


# ----------------------------------------------------------------------------
# Mynet: first `num_layers` layers of AlexNet.features
# ----------------------------------------------------------------------------
_FEATURES = [
    ("conv", dict(cin=3, cout=64, k=11, stride=4, pad=2)),   # 0
    ("relu", {}),                                            # 1
    ("pool", dict(k=3, stride=2)),                           # 2
    ("conv", dict(cin=64, cout=192, k=5, stride=1, pad=2)),  # 3
    ("relu", {}),                                            # 4
    ("pool", dict(k=3, stride=2)),                           # 5
    ("conv", dict(cin=192, cout=384, k=3, stride=1, pad=1)), # 6
    ("relu", {}),                                            # 7
    ("conv", dict(cin=384, cout=256, k=3, stride=1, pad=1)), # 8
    ("relu", {}),                                            # 9
    ("conv", dict(cin=256, cout=256, k=3, stride=1, pad=1)), # 10
    ("relu", {}),                                            # 11
    ("pool", dict(k=3, stride=2)),                           # 12
]


def init_params(key):
    """Deterministic synthetic weights in PyTorch (Cout, Cin, KH, KW) layout."""
    params = {}
    for idx, (kind, cfg) in enumerate(_FEATURES):
        if kind != "conv":
            continue
        key, wk, bk = jax.random.split(key, 3)
        params[idx] = {
            "w": 0.05 * jax.random.normal(
                wk, (cfg["cout"], cfg["cin"], cfg["k"], cfg["k"]), jnp.float32),
            "b": 0.05 * jax.random.normal(bk, (cfg["cout"],), jnp.float32),
        }
    return params


def prepare_params(params):
    """One-time weight prep (outside jit): (Cout,Cin,KH,KW) -> (K,Cout) bf16,
    bias -> (1,Cout) f32.  Row index varies as (cin, kh, kw), cin slowest."""
    prepared = {}
    for idx, layer in params.items():
        w = layer["w"]
        cout, cin, kh, kw = w.shape
        wmat = jnp.transpose(w, (1, 2, 3, 0)).reshape(cin * kh * kw, cout)
        prepared[idx] = {
            "wmat": wmat.astype(jnp.bfloat16),
            "b2": layer["b"].reshape(1, cout).astype(jnp.float32),
        }
    return prepared


def mynet_forward(prepared, x_nchw, num_layers):
    """Equivalent of Mynet(num_layers).forward(x); I/O in NCHW like PyTorch."""
    x = jnp.transpose(x_nchw, (0, 2, 3, 1))  # NCHW -> NHWC (internal layout)

    conv_idxs = [i for i, (k, _) in enumerate(_FEATURES[:num_layers]) if k == "conv"]
    last_conv = conv_idxs[-1] if conv_idxs else -1

    idx = 0
    while idx < num_layers:
        kind, cfg = _FEATURES[idx]
        if kind == "conv":
            # Fuse the following ReLU into the matmul kernel when it is kept.
            fuse_relu = (idx + 1 < num_layers) and _FEATURES[idx + 1][0] == "relu"
            # bf16 intermediates (pool/next-conv consumers); f32 for last conv
            # so the final network output stays f32.
            out_dtype = jnp.float32 if idx == last_conv else jnp.bfloat16
            x = conv2d_nhwc(
                x, prepared[idx]["wmat"], prepared[idx]["b2"],
                kh=cfg["k"], kw=cfg["k"], stride=cfg["stride"], pad=cfg["pad"],
                apply_relu=fuse_relu, out_dtype=out_dtype,
            )
            idx += 2 if fuse_relu else 1
        elif kind == "pool":
            x = maxpool2d_nhwc(x, kernel=cfg["k"], stride=cfg["stride"])
            idx += 1
        else:  # bare relu (unreachable for AlexNet truncations; kept for safety)
            x = jnp.maximum(x, 0.0)
            idx += 1

    return jnp.transpose(x, (0, 3, 1, 2)).astype(jnp.float32)  # NHWC -> NCHW


# ----------------------------------------------------------------------------
# Pure-XLA f32 reference (validates the (cin,kh,kw) K-axis ordering and the
# overall forward against lax.conv_general_dilated / reduce_window).
# ----------------------------------------------------------------------------
def reference_forward(params, x_nchw, num_layers):
    x = jnp.transpose(x_nchw, (0, 2, 3, 1))
    for idx in range(num_layers):
        kind, cfg = _FEATURES[idx]
        if kind == "conv":
            w_hwio = jnp.transpose(params[idx]["w"], (2, 3, 1, 0))
            x = lax.conv_general_dilated(
                x, w_hwio,
                window_strides=(cfg["stride"], cfg["stride"]),
                padding=((cfg["pad"], cfg["pad"]), (cfg["pad"], cfg["pad"])),
                dimension_numbers=("NHWC", "HWIO", "NHWC"),
            ) + params[idx]["b"]
        elif kind == "relu":
            x = jnp.maximum(x, 0.0)
        else:
            x = lax.reduce_window(
                x, -jnp.inf, lax.max,
                (1, cfg["k"], cfg["k"], 1),
                (1, cfg["stride"], cfg["stride"], 1), "VALID")
    return jnp.transpose(x, (0, 3, 1, 2))


if __name__ == "__main__":
    key = jax.random.PRNGKey(0)
    pkey, xkey = jax.random.split(key)

    params = init_params(pkey)
    prepared = prepare_params(params)   # one-time, outside the jitted forward

    # Small input consistent with AlexNet's 11x11/s4 stem: (2, 3, 63, 63)
    x = jax.random.normal(xkey, (2, 3, 63, 63), jnp.float32)

    num_layers = 13  # Mynet(13) -> full .features
    fwd = jax.jit(functools.partial(mynet_forward, num_layers=num_layers))
    out = jax.block_until_ready(fwd(prepared, x))
    assert out.shape == (2, 256, 1, 1), out.shape

    # Loose numeric check vs. pure-XLA f32 reference (bf16 compute inside).
    ref = jax.block_until_ready(
        jax.jit(functools.partial(reference_forward, num_layers=num_layers))(params, x))
    num = jnp.sqrt(jnp.sum((out.astype(jnp.float32) - ref.astype(jnp.float32)) ** 2))
    den = jnp.sqrt(jnp.sum(ref.astype(jnp.float32) ** 2)) + 1e-6
    rel = float(num / den)
    assert rel < 0.05, f"relative error too large: {rel}"

    print("KERNEL_OK")
</pallas_src>

<mosaic_0001>
module attributes {stable_mosaic.version = 11 : i64} {
  func.func @_matmul_bias_act_kernel(%arg0: memref<450x363xbf16, #tpu.memory_space<vmem>>, %arg1: memref<363x64xbf16, #tpu.memory_space<vmem>>, %arg2: memref<1x64xf32, #tpu.memory_space<vmem>>, %arg3: memref<450x64xbf16, #tpu.memory_space<vmem>>) attributes {dimension_semantics = [], scalar_prefetch = 0 : i64, scratch_operands = 0 : i64, tpu.core_type = #tpu.core_type<tc>} {
    %c0 = arith.constant 0 : index
    %c0_0 = arith.constant 0 : index
    %0 = vector.load %arg0[%c0, %c0_0] : memref<450x363xbf16, #tpu.memory_space<vmem>>, vector<450x363xbf16>
    %c0_1 = arith.constant 0 : index
    %c0_2 = arith.constant 0 : index
    %1 = vector.load %arg1[%c0_1, %c0_2] : memref<363x64xbf16, #tpu.memory_space<vmem>>, vector<363x64xbf16>
    %cst = arith.constant dense<0.000000e+00> : vector<450x64xf32>
    %2 = tpu.matmul %0, %1, %cst {dimension_numbers = #tpu.dot_dimension_numbers<[1], [0], [0], [1], [0, 0, 1, 1], [], []>} : vector<450x363xbf16>, vector<363x64xbf16>, vector<450x64xf32> -> vector<450x64xf32>
    %c0_3 = arith.constant 0 : index
    %c0_4 = arith.constant 0 : index
    %3 = vector.load %arg2[%c0_3, %c0_4] : memref<1x64xf32, #tpu.memory_space<vmem>>, vector<1x64xf32>
    %4 = vector.broadcast %3 : vector<1x64xf32> to vector<450x64xf32>
    %5 = arith.addf %2, %4 : vector<450x64xf32>
    %cst_5 = arith.constant 0.000000e+00 : f32
    %6 = vector.broadcast %cst_5 : f32 to vector<450x64xf32>
    %7 = arith.maximumf %5, %6 : vector<450x64xf32>
    %8 = arith.truncf %7 : vector<450x64xf32> to vector<450x64xbf16>
    %c0_6 = arith.constant 0 : index
    %c0_7 = arith.constant 0 : index
    %9 = vector.load %arg3[%c0_6, %c0_7] : memref<450x64xbf16, #tpu.memory_space<vmem>>, vector<450x64xbf16>
    tpu.vector_store %arg3[%c0_6, %c0_7], %8 {strides = array<i32>} : memref<450x64xbf16, #tpu.memory_space<vmem>>, vector<450x64xbf16>,
    return
  }
}

module attributes {stable_mosaic.version = 11 : i64} {
  func.func @_matmul_bias_act_kernel(%arg0: memref<98x1600xbf16, #tpu.memory_space<vmem>>, %arg1: memref<1600x192xbf16, #tpu.memory_space<vmem>>, %arg2: memref<1x192xf32, #tpu.memory_space<vmem>>, %arg3: memref<98x192xbf16, #tpu.memory_space<vmem>>) attributes {dimension_semantics = [], scalar_prefetch = 0 : i64, scratch_operands = 0 : i64, tpu.core_type = #tpu.core_type<tc>} {
    %c0 = arith.constant 0 : index
    %c0_0 = arith.constant 0 : index
    %0 = vector.load %arg0[%c0, %c0_0] : memref<98x1600xbf16, #tpu.memory_space<vmem>>, vector<98x1600xbf16>
    %c0_1 = arith.constant 0 : index
    %c0_2 = arith.constant 0 : index
    %1 = vector.load %arg1[%c0_1, %c0_2] : memref<1600x192xbf16, #tpu.memory_space<vmem>>, vector<1600x192xbf16>
    %cst = arith.constant dense<0.000000e+00> : vector<98x192xf32>
    %2 = tpu.matmul %0, %1, %cst {dimension_numbers = #tpu.dot_dimension_numbers<[1], [0], [0], [1], [0, 0, 1, 1], [], []>} : vector<98x1600xbf16>, vector<1600x192xbf16>, vector<98x192xf32> -> vector<98x192xf32>
    %c0_3 = arith.constant 0 : index
    %c0_4 = arith.constant 0 : index
    %3 = vector.load %arg2[%c0_3, %c0_4] : memref<1x192xf32, #tpu.memory_space<vmem>>, vector<1x192xf32>
    %4 = vector.broadcast %3 : vector<1x192xf32> to vector<98x192xf32>
    %5 = arith.addf %2, %4 : vector<98x192xf32>
    %cst_5 = arith.constant 0.000000e+00 : f32
    %6 = vector.broadcast %cst_5 : f32 to vector<98x192xf32>
    %7 = arith.maximumf %5, %6 : vector<98x192xf32>
    %8 = arith.truncf %7 : vector<98x192xf32> to vector<98x192xbf16>
    %c0_6 = arith.constant 0 : index
    %c0_7 = arith.constant 0 : index
    %9 = vector.load %arg3[%c0_6, %c0_7] : memref<98x192xbf16, #tpu.memory_space<vmem>>, vector<98x192xbf16>
    tpu.vector_store %arg3[%c0_6, %c0_7], %8 {strides = array<i32>} : memref<98x192xbf16, #tpu.memory_space<vmem>>, vector<98x192xbf16>,
    return
  }
}

module attributes {stable_mosaic.version = 11 : i64} {
  func.func @_matmul_bias_act_kernel(%arg0: memref<18x1728xbf16, #tpu.memory_space<vmem>>, %arg1: memref<1728x384xbf16, #tpu.memory_space<vmem>>, %arg2: memref<1x384xf32, #tpu.memory_space<vmem>>, %arg3: memref<18x384xbf16, #tpu.memory_space<vmem>>) attributes {dimension_semantics = [], scalar_prefetch = 0 : i64, scratch_operands = 0 : i64, tpu.core_type = #tpu.core_type<tc>} {
    %c0 = arith.constant 0 : index
    %c0_0 = arith.constant 0 : index
    %0 = vector.load %arg0[%c0, %c0_0] : memref<18x1728xbf16, #tpu.memory_space<vmem>>, vector<18x1728xbf16>
    %c0_1 = arith.constant 0 : index
    %c0_2 = arith.constant 0 : index
    %1 = vector.load %arg1[%c0_1, %c0_2] : memref<1728x384xbf16, #tpu.memory_space<vmem>>, vector<1728x384xbf16>
    %cst = arith.constant dense<0.000000e+00> : vector<18x384xf32>
    %2 = tpu.matmul %0, %1, %cst {dimension_numbers = #tpu.dot_dimension_numbers<[1], [0], [0], [1], [0, 0, 1, 1], [], []>} : vector<18x1728xbf16>, vector<1728x384xbf16>, vector<18x384xf32> -> vector<18x384xf32>
    %c0_3 = arith.constant 0 : index
    %c0_4 = arith.constant 0 : index
    %3 = vector.load %arg2[%c0_3, %c0_4] : memref<1x384xf32, #tpu.memory_space<vmem>>, vector<1x384xf32>
    %4 = vector.broadcast %3 : vector<1x384xf32> to vector<18x384xf32>
    %5 = arith.addf %2, %4 : vector<18x384xf32>
    %cst_5 = arith.constant 0.000000e+00 : f32
    %6 = vector.broadcast %cst_5 : f32 to vector<18x384xf32>
    %7 = arith.maximumf %5, %6 : vector<18x384xf32>
    %8 = arith.truncf %7 : vector<18x384xf32> to vector<18x384xbf16>
    %c0_6 = arith.constant 0 : index
    %c0_7 = arith.constant 0 : index
    %9 = vector.load %arg3[%c0_6, %c0_7] : memref<18x384xbf16, #tpu.memory_space<vmem>>, vector<18x384xbf16>
    tpu.vector_store %arg3[%c0_6, %c0_7], %8 {strides = array<i32>} : memref<18x384xbf16, #tpu.memory_space<vmem>>, vector<18x384xbf16>,
    return
  }
}

module attributes {stable_mosaic.version = 11 : i64} {
  func.func @_matmul_bias_act_kernel(%arg0: memref<18x3456xbf16, #tpu.memory_space<vmem>>, %arg1: memref<3456x256xbf16, #tpu.memory_space<vmem>>, %arg2: memref<1x256xf32, #tpu.memory_space<vmem>>, %arg3: memref<18x256xbf16, #tpu.memory_space<vmem>>) attributes {dimension_semantics = [], scalar_prefetch = 0 : i64, scratch_operands = 0 : i64, tpu.core_type = #tpu.core_type<tc>} {
    %c0 = arith.constant 0 : index
    %c0_0 = arith.constant 0 : index
    %0 = vector.load %arg0[%c0, %c0_0] : memref<18x3456xbf16, #tpu.memory_space<vmem>>, vector<18x3456xbf16>
    %c0_1 = arith.constant 0 : index
    %c0_2 = arith.constant 0 : index
    %1 = vector.load %arg1[%c0_1, %c0_2] : memref<3456x256xbf16, #tpu.memory_space<vmem>>, vector<3456x256xbf16>
    %cst = arith.constant dense<0.000000e+00> : vector<18x256xf32>
    %2 = tpu.matmul %0, %1, %cst {dimension_numbers = #tpu.dot_dimension_numbers<[1], [0], [0], [1], [0, 0, 1, 1], [], []>} : vector<18x3456xbf16>, vector<3456x256xbf16>, vector<18x256xf32> -> vector<18x256xf32>
    %c0_3 = arith.constant 0 : index
    %c0_4 = arith.constant 0 : index
    %3 = vector.load %arg2[%c0_3, %c0_4] : memref<1x256xf32, #tpu.memory_space<vmem>>, vector<1x256xf32>
    %4 = vector.broadcast %3 : vector<1x256xf32> to vector<18x256xf32>
    %5 = arith.addf %2, %4 : vector<18x256xf32>
    %cst_5 = arith.constant 0.000000e+00 : f32
    %6 = vector.broadcast %cst_5 : f32 to vector<18x256xf32>
    %7 = arith.maximumf %5, %6 : vector<18x256xf32>
    %8 = arith.truncf %7 : vector<18x256xf32> to vector<18x256xbf16>
    %c0_6 = arith.constant 0 : index
    %c0_7 = arith.constant 0 : index
    %9 = vector.load %arg3[%c0_6, %c0_7] : memref<18x256xbf16, #tpu.memory_space<vmem>>, vector<18x256xbf16>
    tpu.vector_store %arg3[%c0_6, %c0_7], %8 {strides = array<i32>} : memref<18x256xbf16, #tpu.memory_space<vmem>>, vector<18x256xbf16>,
    return
  }
}

module attributes {stable_mosaic.version = 11 : i64} {
  func.func @_matmul_bias_act_kernel(%arg0: memref<18x2304xbf16, #tpu.memory_space<vmem>>, %arg1: memref<2304x256xbf16, #tpu.memory_space<vmem>>, %arg2: memref<1x256xf32, #tpu.memory_space<vmem>>, %arg3: memref<18x256xf32, #tpu.memory_space<vmem>>) attributes {dimension_semantics = [], scalar_prefetch = 0 : i64, scratch_operands = 0 : i64, tpu.core_type = #tpu.core_type<tc>} {
    %c0 = arith.constant 0 : index
    %c0_0 = arith.constant 0 : index
    %0 = vector.load %arg0[%c0, %c0_0] : memref<18x2304xbf16, #tpu.memory_space<vmem>>, vector<18x2304xbf16>
    %c0_1 = arith.constant 0 : index
    %c0_2 = arith.constant 0 : index
    %1 = vector.load %arg1[%c0_1, %c0_2] : memref<2304x256xbf16, #tpu.memory_space<vmem>>, vector<2304x256xbf16>
    %cst = arith.constant dense<0.000000e+00> : vector<18x256xf32>
    %2 = tpu.matmul %0, %1, %cst {dimension_numbers = #tpu.dot_dimension_numbers<[1], [0], [0], [1], [0, 0, 1, 1], [], []>} : vector<18x2304xbf16>, vector<2304x256xbf16>, vector<18x256xf32> -> vector<18x256xf32>
    %c0_3 = arith.constant 0 : index
    %c0_4 = arith.constant 0 : index
    %3 = vector.load %arg2[%c0_3, %c0_4] : memref<1x256xf32, #tpu.memory_space<vmem>>, vector<1x256xf32>
    %4 = vector.broadcast %3 : vector<1x256xf32> to vector<18x256xf32>
    %5 = arith.addf %2, %4 : vector<18x256xf32>
    %cst_5 = arith.constant 0.000000e+00 : f32
    %6 = vector.broadcast %cst_5 : f32 to vector<18x256xf32>
    %7 = arith.maximumf %5, %6 : vector<18x256xf32>
    %c0_6 = arith.constant 0 : index
    %c0_7 = arith.constant 0 : index
    %8 = vector.load %arg3[%c0_6, %c0_7] : memref<18x256xf32, #tpu.memory_space<vmem>>, vector<18x256xf32>
    tpu.vector_store %arg3[%c0_6, %c0_7], %7 {strides = array<i32>} : memref<18x256xf32, #tpu.memory_space<vmem>>, vector<18x256xf32>,
    return
  }
}

</mosaic_0001>

<bundles_post_ra>
// kernel: mynet_forward.5
= control target key start
LH: loop header
LB: loop body
LE: loop exit
PB: predicated region body
PF: predicated region fallthrough
CT: control target
= control target key end

     0   :  { %v2280_v0 = vmov 0   ;;  %v2281_v2 = vmov 0.0   ;;  %vm837_vm0 = vcmask 1044480   ;;  %vm2282_vm1 = vmmov 0   ;;  %s3082_s1 = inlined_call_operand.vmem [shape: bf16[363,64], index: 1, kind: input, shape index: {}]   ;;  %s3083_s0 = inlined_call_operand.vmem [shape: bf16[450,363], index: 0, kind: input, shape index: {}]   ;;  %s3084_s2 = inlined_call_operand.vmem [shape: f32[1,64], index: 2, kind: input, shape index: {}]   ;;  %s3085_s3 = inlined_call_operand.vmem [shape: bf16[450,64], index: 3, kind: output, shape index: {}]  }
   0x1   :  { %844 = vmatprep.subr.bf16.mxu0 %v2280_v0  ;;  %v2145_v1 = vld [vmem:[%s3082_s1 + $0x38] sm:$0xff]   ;;  %2011 = vmatprep.subr.bf16.mxu1 %v2281_v2  ;;  %v2146_v3 = vld [vmem:[%s3082_s1 + $0x30] sm:$0xff]   ;;  %vm838_vm2 = vcmask 1045504   ;;  %v2283_v4 = vmov 65535   ;;  %v2147_v6 = vld [vmem:[%s3082_s1 + $0x28] sm:$0xff]   ;;  %vm749_vm3 = vcmask 875520  }
   0x2   :  { %845 = vmatpush1.bf16.msra.mxu0 %v2145_v1  ;;  %2025 = vmatprep.mubr.msk.bf16.mxu1 %vm2282_vm1, %v2281_v2  ;;  %v839_v5 = vsel %vm837_vm0, 4294967295, %v2283_v4  ;;  %v2154_v8 = vld [vmem:[%s3082_s1 + $0xb0] sm:$0x3f]   ;;  %v2148_v9 = vld [vmem:[%s3082_s1 + $0x20] sm:$0xff]   ;;  %v2156_v11 = vld [vmem:[%s3082_s1 + $0xa8] sm:$0xff]   ;;  %vm1658_vm4 = vcmask 519168  }
   0x3   :  { %846 = vmatprep.subr.bf16.mxu0 %v2280_v0  ;;  %v840_v7 = vsel %vm838_vm2, %v839_v5, 0  ;;  %v2149_v12 = vld [vmem:[%s3082_s1 + $0x18] sm:$0xff]   ;;  %v2158_v13 = vld [vmem:[%s3082_s1 + $0xa0] sm:$0xff]   ;;  %v2150_v14 = vld [vmem:[%s3082_s1 + $0x10] sm:$0xff]   ;;  %vm1715_vm5 = vcmask 516096  }
   0x4   :  { %v842_v10 = vand.u32 %v2154_v8, %v840_v7  ;;  %v2160_v15 = vld [vmem:[%s3082_s1 + $0x98] sm:$0xff]   ;;  %v2151_v16 = vld [vmem:[%s3082_s1 + $0x8] sm:$0xff]   ;;  %v2162_v17 = vld [vmem:[%s3082_s1 + $0x90] sm:$0xff]  }
   0x5   :  { %v2171_v18 = vld [vmem:[%s3083_s0 + $0x4] ss:$12 sps:$4 sm:$0xff]   ;;  %v2164_v20 = vld [vmem:[%s3082_s1 + $0x88] sm:$0xff]   ;;  %v2153_v21 = vld [vmem:[%s3082_s1 + $0x78] sm:$0xff]  }
   0x6   :  { %847 = vmatpush1.bf16.msra.mxu0 %v2146_v3  ;;  %2012 = vmatpush3.bf16.msra.mxu1 %v842_v10  ;;  %v2152_v19 = vld [vmem:[%s3082_s1] sm:$0xff]   ;;  %v2155_v23 = vld [vmem:[%s3082_s1 + $0x70] sm:$0xff]   ;;  %v2157_v25 = vld [vmem:[%s3082_s1 + $0x68] sm:$0xff]  }
   0x7   :  { %848 = vmatprep.subr.bf16.mxu0 %v2280_v0  ;;  %2013 = vmatprep.subr.bf16.mxu1 %v2281_v2  ;;  %v2166_v22 = vld [vmem:[%s3082_s1 + $0x80] sm:$0xff]   ;;  %v2167_v24 = vld [vmem:[%s3083_s0 + $0x8] ss:$12 sps:$4 sm:$0xff]   ;;  %v2161_v28 = vld [vmem:[%s3082_s1 + $0x58] sm:$0xff]  }
   0x8   :  { %876 = vmatprep.mubr.bf16.mxu0 %v2171_v18  ;;  %v2159_v26 = vld [vmem:[%s3082_s1 + $0x60] sm:$0xff]   ;;  %v2163_v29 = vld [vmem:[%s3082_s1 + $0x50] sm:$0xff]   ;;  %v2165_v31 = vld [vmem:[%s3082_s1 + $0x48] sm:$0xff]  }
   0x9   :  { %v2172_v27 = vld [vmem:[%s3083_s0 + $0x20] ss:$12 sps:$4 sm:$0xff]   ;;  %v2176_v30 = vld [vmem:[%s3083_s0 + $0x38] ss:$12 sps:$4 sm:$0xff]   ;;  %v2180_v33 = vld [vmem:[%s3083_s0 + $0x50] ss:$12 sps:$4 sm:$0xff]  }
   0xa   :  { %849 = vmatpush1.bf16.msra.mxu0 %v2147_v6  ;;  %2014 = vmatpush3.bf16.msra.mxu1 %v2156_v11  ;;  %v2168_v32 = vld [vmem:[%s3082_s1 + $0x40] sm:$0xff]   ;;  %v2173_v35 = vld [vmem:[%s3083_s0 + $0x1c] ss:$12 sps:$4 sm:$0xff]   ;;  %v2181_v41 = vld [vmem:[%s3083_s0 + $0x4c] ss:$12 sps:$4 sm:$0xff]  }
   0xb   :  { %850 = vmatprep.subr.bf16.mxu0 %v2280_v0  ;;  %2015 = vmatprep.subr.bf16.mxu1 %v2281_v2  ;;  %v2169_v34 = vld [vmem:[%s3083_s0] ss:$12 sps:$4 sm:$0xff]   ;;  %v2184_v36 = vld [vmem:[%s3083_s0 + $0x68] ss:$12 sps:$4 sm:$0xff]   ;;  %v2175_v37 = vld [vmem:[%s3083_s0 + $0x18] ss:$12 sps:$4 sm:$0xff]  }
   0xc   :  { %v2177_v38 = vld [vmem:[%s3083_s0 + $0x34] ss:$12 sps:$4 sm:$0xff]   ;;  %v2179_v40 = vld [vmem:[%s3083_s0 + $0x30] ss:$12 sps:$4 sm:$0xff]   ;;  %v2192_v42 = vld [vmem:[%s3083_s0 + $0x98] ss:$12 sps:$4 sm:$0xff]  }
   0xd   :  { %v2188_v39 = vld [vmem:[%s3083_s0 + $0x80] ss:$12 sps:$4 sm:$0xff]   ;;  %v2183_v43 = vld [vmem:[%s3083_s0 + $0x48] ss:$12 sps:$4 sm:$0xff]   ;;  %v2185_v44 = vld [vmem:[%s3083_s0 + $0x64] ss:$12 sps:$4 sm:$0xff]  }
   0xe   :  { %851 = vmatpush1.bf16.msra.mxu0 %v2148_v9  ;;  %2016 = vmatpush3.bf16.msra.mxu1 %v2158_v13  ;;  %v2196_v45 = vld [vmem:[%s3083_s0 + $0xb0] ss:$12 sps:$4 sm:$0xff]   ;;  %v2187_v46 = vld [vmem:[%s3083_s0 + $0x60] ss:$12 sps:$4 sm:$0xff]   ;;  %v2200_v48 = vld [vmem:[%s3083_s0 + $0xc8] ss:$12 sps:$4 sm:$0xff]  }
   0xf   :  { %852 = vmatprep.subr.bf16.mxu0 %v2280_v0  ;;  %2017 = vmatprep.subr.bf16.mxu1 %v2281_v2  ;;  %v2189_v47 = vld [vmem:[%s3083_s0 + $0x7c] ss:$12 sps:$4 sm:$0xff]   ;;  %v2191_v49 = vld [vmem:[%s3083_s0 + $0x78] ss:$12 sps:$4 sm:$0xff]   ;;  %v2193_v50 = vld [vmem:[%s3083_s0 + $0x94] ss:$12 sps:$4 sm:$0xff]  }
  0x10   :  { %v2204_v51 = vld [vmem:[%s3083_s0 + $0xe0] ss:$12 sps:$4 sm:$0xff]   ;;  %v2195_v52 = vld [vmem:[%s3083_s0 + $0x90] ss:$12 sps:$4 sm:$0xff]   ;;  %v2208_v54 = vld [vmem:[%s3083_s0 + $0xf8] ss:$12 sps:$4 sm:$0xff]  }
  0x11   :  { %v2197_v53 = vld [vmem:[%s3083_s0 + $0xac] ss:$12 sps:$4 sm:$0xff]   ;;  %v2199_v55 = vld [vmem:[%s3083_s0 + $0xa8] ss:$12 sps:$4 sm:$0xff]   ;;  %v2201_v56 = vld [vmem:[%s3083_s0 + $0xc4] ss:$12 sps:$4 sm:$0xff]  }
  0x12   :  { %853 = vmatpush1.bf16.msra.mxu0 %v2149_v12  ;;  %2018 = vmatpush3.bf16.msra.mxu1 %v2160_v15  ;;  %v2212_v57 = vld [vmem:[%s3083_s0 + $0x110] ss:$12 sps:$4 sm:$0xff]   ;;  %v2203_v58 = vld [vmem:[%s3083_s0 + $0xc0] ss:$12 sps:$4 sm:$0xff]   ;;  %v2216_v60 = vld [vmem:[%s3083_s0 + $0x128] ss:$12 sps:$4 sm:$0xff]  }
  0x13   :  { %854 = vmatprep.subr.bf16.mxu0 %v2280_v0  ;;  %2019 = vmatprep.subr.bf16.mxu1 %v2281_v2  ;;  %v2205_v59 = vld [vmem:[%s3083_s0 + $0xdc] ss:$12 sps:$4 sm:$0xff]   ;;  %v2207_v61 = vld [vmem:[%s3083_s0 + $0xd8] ss:$12 sps:$4 sm:$0xff]   ;;  %v2209_v62 = vld [vmem:[%s3083_s0 + $0xf4] ss:$12 sps:$4 sm:$0xff]  }
  0x14   :  { %v2220_v63 = vld [vmem:[%s3083_s0 + $0x140] ss:$12 sps:$4 sm:$0xff]   ;;  %v2224_v3 = vld [vmem:[%s3083_s0 + $0x158] ss:$12 sps:$4 sm:$0xff]   ;;  %v2215_v4 = vld [vmem:[%s3083_s0 + $0x108] ss:$12 sps:$4 sm:$0xff]  }
  0x15   :  { %v2213_v1 = vld [vmem:[%s3083_s0 + $0x10c] ss:$12 sps:$4 sm:$0xff]   ;;  %v2217_v5 = vld [vmem:[%s3083_s0 + $0x124] ss:$12 sps:$4 sm:$0xff]   ;;  %v2221_v8 = vld [vmem:[%s3083_s0 + $0x13c] ss:$12 sps:$4 sm:$0xff]  }
  0x16   :  { %855 = vmatpush1.bf16.msra.mxu0 %v2150_v14  ;;  %2020 = vmatpush3.bf16.msra.mxu1 %v2162_v17  ;;  %v2228_v6 = vld [vmem:[%s3083_s0 + $0x170] ss:$12 sps:$4 sm:$0xff]   ;;  %v2219_v7 = vld [vmem:[%s3083_s0 + $0x120] ss:$12 sps:$4 sm:$0xff]   ;;  %v2232_v9 = vld [vmem:[%s3083_s0 + $0x188] ss:$12 sps:$4 sm:$0xff]  }
  0x17   :  { %856 = vmatprep.subr.bf16.mxu0 %v2280_v0  ;;  %2021 = vmatprep.subr.bf16.mxu1 %v2281_v2  ;;  %v2223_v10 = vld [vmem:[%s3083_s0 + $0x138] ss:$12 sps:$4 sm:$0xff]   ;;  %v2225_v11 = vld [vmem:[%s3083_s0 + $0x154] ss:$12 sps:$4 sm:$0xff]   ;;  %v2227_v13 = vld [vmem:[%s3083_s0 + $0x150] ss:$12 sps:$4 sm:$0xff]  }
  0x18   :  { %v2236_v12 = vld [vmem:[%s3083_s0 + $0x1a0] ss:$12 sps:$4 sm:$0xff]   ;;  %v2240_v15 = vld [vmem:[%s3083_s0 + $0x1b8] ss:$12 sps:$4 sm:$0xff]   ;;  %v2244_v18 = vld [vmem:[%s3083_s0 + $0x1d0] ss:$12 sps:$4 sm:$0xff]  }
  0x19   :  { %v2229_v14 = vld [vmem:[%s3083_s0 + $0x16c] ss:$12 sps:$4 sm:$0xff]   ;;  %v2233_v17 = vld [vmem:[%s3083_s0 + $0x184] ss:$12 sps:$4 sm:$0xff]  }
  0x1a   :  { %857 = vmatpush1.bf16.msra.mxu0 %v2151_v16  ;;  %2022 = vmatpush3.bf16.msra.mxu1 %v2164_v20  ;;  %v2231_v16 = vld [vmem:[%s3083_s0 + $0x168] ss:$12 sps:$4 sm:$0xff]  }
  0x1b   :  { %858 = vmatprep.subr.bf16.mxu0 %v2280_v0  ;;  %2023 = vmatprep.subr.bf16.mxu1 %v2281_v2  ;;  %v2237_v20 = vld [vmem:[%s3083_s0 + $0x19c] ss:$12 sps:$4 sm:$0xff]  }
  0x1e   :  { %859 = vmatpush1.bf16.msra.mxu0 %v2152_v19  ;;  %2024 = vmatpush3.bf16.msra.mxu1 %v2166_v22  ;;  %v2235_v19 = vld [vmem:[%s3083_s0 + $0x180] ss:$12 sps:$4 sm:$0xff]   ;;  %v2239_v22 = vld [vmem:[%s3083_s0 + $0x198] ss:$12 sps:$4 sm:$0xff]  }
  0x1f   :  { %860 = vmatprep.subr.bf16.mxu0 %v2280_v0 }
  0x21   :  { %2026 = vmatmul.mubr.msk.bf16.vlgmr.msra.gmra.mxu1 %vm749_vm3, %v2167_v24  ;;  %v2252_v24 = vld [vmem:[%s3083_s0 + $0x200] ss:$12 sps:$4 sm:$0xff]  }
  0x22   :  { %861 = vmatpush2.bf16.msra.mxu0 %v2153_v21  ;;  %2029 = vmatprep.mubr.msk.bf16.mxu1 %vm2282_vm1, %v2281_v2  ;;  %v2248_v21 = vld [vmem:[%s3083_s0 + $0x1e8] ss:$12 sps:$4 sm:$0xff]  }
  0x23   :  { %862 = vmatprep.subr.bf16.mxu0 %v2280_v0 }
  0x26   :  { %863 = vmatpush2.bf16.msra.mxu0 %v2155_v23  ;;  %v2241_v23 = vld [vmem:[%s3083_s0 + $0x1b4] ss:$12 sps:$4 sm:$0xff]  }
  0x27   :  { %864 = vmatprep.subr.bf16.mxu0 %v2280_v0 }
  0x29   :  { %2030 = vmatmul.mubr.msk.bf16.gmra.mxu1 %vm749_vm3, %v2172_v27  ;;  %v2256_v27 = vld [vmem:[%s3083_s0 + $0x218] ss:$12 sps:$4 sm:$0xff]  }
  0x2a   :  { %865 = vmatpush2.bf16.msra.mxu0 %v2157_v25  ;;  %2033 = vmatprep.mubr.msk.bf16.mxu1 %vm2282_vm1, %v2281_v2  ;;  %v2243_v25 = vld [vmem:[%s3083_s0 + $0x1b0] ss:$12 sps:$4 sm:$0xff]  }
  0x2b   :  { %866 = vmatprep.subr.bf16.mxu0 %v2280_v0 }
  0x2e   :  { %867 = vmatpush2.bf16.msra.mxu0 %v2159_v26  ;;  %v2245_v26 = vld [vmem:[%s3083_s0 + $0x1cc] ss:$12 sps:$4 sm:$0xff]  }
  0x2f   :  { %868 = vmatprep.subr.bf16.mxu0 %v2280_v0 }
  0x31   :  { %2034 = vmatmul.mubr.msk.bf16.gmra.mxu1 %vm749_vm3, %v2176_v30  ;;  %v2260_v30 = vld [vmem:[%s3083_s0 + $0x230] ss:$12 sps:$4 sm:$0xff]  }
  0x32   :  { %869 = vmatpush2.bf16.msra.mxu0 %v2161_v28  ;;  %2037 = vmatprep.mubr.msk.bf16.mxu1 %vm2282_vm1, %v2281_v2  ;;  %v2247_v28 = vld [vmem:[%s3083_s0 + $0x1c8] ss:$12 sps:$4 sm:$0xff]  }
  0x33   :  { %870 = vmatprep.subr.bf16.mxu0 %v2280_v0 }
  0x36   :  { %871 = vmatpush2.bf16.msra.mxu0 %v2163_v29  ;;  %v2249_v29 = vld [vmem:[%s3083_s0 + $0x1e4] ss:$12 sps:$4 sm:$0xff]  }
  0x37   :  { %872 = vmatprep.subr.bf16.mxu0 %v2280_v0 }
  0x39   :  { %2038 = vmatmul.mubr.msk.bf16.gmra.mxu1 %vm749_vm3, %v2180_v33  ;;  %v2264_v33 = vld [vmem:[%s3083_s0 + $0x248] ss:$12 sps:$4 sm:$0xff]  }
  0x3a   :  { %873 = vmatpush2.bf16.msra.mxu0 %v2165_v31  ;;  %2041 = vmatprep.mubr.msk.bf16.mxu1 %vm2282_vm1, %v2281_v2  ;;  %v2251_v31 = vld [vmem:[%s3083_s0 + $0x1e0] ss:$12 sps:$4 sm:$0xff]  }
  0x3b   :  { %874 = vmatprep.subr.bf16.mxu0 %v2280_v0  ;;  %v2211_v0 = vld [vmem:[%s3083_s0 + $0xf0] ss:$12 sps:$4 sm:$0xff]  }
  0x3e   :  { %875 = vmatpush2.bf16.msra.mxu0 %v2168_v32  ;;  %v2253_v32 = vld [vmem:[%s3083_s0 + $0x1fc] ss:$12 sps:$4 sm:$0xff]  }
  0x41   :  { %877 = vmatmul.mubr.bf16.vlgmr.msra.gmra.mxu0 %v2169_v34  ;;  %2042 = vmatmul.mubr.msk.bf16.gmra.mxu1 %vm749_vm3, %v2184_v36  ;;  %v2255_v34 = vld [vmem:[%s3083_s0 + $0x1f8] ss:$12 sps:$4 sm:$0xff]  }
  0x42   :  { %884 = vmatprep.mubr.bf16.mxu0 %v2173_v35  ;;  %2045 = vmatprep.mubr.msk.bf16.mxu1 %vm2282_vm1, %v2281_v2  ;;  %v2257_v35 = vld [vmem:[%s3083_s0 + $0x214] ss:$12 sps:$4 sm:$0xff]  }
  0x49   :  { %885 = vmatmul.mubr.bf16.gmra.mxu0 %v2175_v37  ;;  %2046 = vmatmul.mubr.msk.bf16.gmra.mxu1 %vm749_vm3, %v2188_v39  ;;  %v2267_v39 = vld [vmem:[%s3083_s0 + $0x260] ss:$12 sps:$4 sm:$0xff]  }
  0x4a   :  { %892 = vmatprep.mubr.bf16.mxu0 %v2177_v38  ;;  %2049 = vmatprep.mubr.msk.bf16.mxu1 %vm2282_vm1, %v2281_v2 }
  0x51   :  { %893 = vmatmul.mubr.bf16.gmra.mxu0 %v2179_v40  ;;  %2050 = vmatmul.mubr.msk.bf16.gmra.mxu1 %vm749_vm3, %v2192_v42  ;;  %v2259_v40 = vld [vmem:[%s3083_s0 + $0x210] ss:$12 sps:$4 sm:$0xff]  }
  0x52   :  { %900 = vmatprep.mubr.bf16.mxu0 %v2181_v41  ;;  %2053 = vmatprep.mubr.msk.bf16.mxu1 %vm2282_vm1, %v2281_v2  ;;  %v2261_v41 = vld [vmem:[%s3083_s0 + $0x22c] ss:$12 sps:$4 sm:$0xff]  }
  0x59   :  { %901 = vmatmul.mubr.bf16.gmra.mxu0 %v2183_v43  ;;  %2054 = vmatmul.mubr.msk.bf16.gmra.mxu1 %vm749_vm3, %v2196_v45 }
  0x5a   :  { %908 = vmatprep.mubr.bf16.mxu0 %v2185_v44  ;;  %2057 = vmatprep.mubr.msk.bf16.mxu1 %vm2282_vm1, %v2281_v2 }
  0x61   :  { %909 = vmatmul.mubr.bf16.gmra.mxu0 %v2187_v46  ;;  %2058 = vmatmul.mubr.msk.bf16.gmra.mxu1 %vm749_vm3, %v2200_v48  ;;  %v2270_v46 = vld [vmem:[%s3083_s0 + $0x278] ss:$12 sps:$4 sm:$0xff]  }
  0x62   :  { %916 = vmatprep.mubr.bf16.mxu0 %v2189_v47  ;;  %2061 = vmatprep.mubr.msk.bf16.mxu1 %vm2282_vm1, %v2281_v2  ;;  %v2263_v47 = vld [vmem:[%s3083_s0 + $0x228] ss:$12 sps:$4 sm:$0xff]   ;;  %v2265_v48 = vld [vmem:[%s3083_s0 + $0x244] ss:$12 sps:$4 sm:$0xff]  }
  0x69   :  { %917 = vmatmul.mubr.bf16.gmra.mxu0 %v2191_v49  ;;  %2062 = vmatmul.mubr.msk.bf16.gmra.mxu1 %vm749_vm3, %v2204_v51  ;;  %v111_v51 = vld [vmem:[%s3083_s0 + $0x240] sm:$0xff] }
  0x6a   :  { %924 = vmatprep.mubr.bf16.mxu0 %v2193_v50  ;;  %2065 = vmatprep.mubr.msk.bf16.mxu1 %vm2282_vm1, %v2281_v2 }
  0x71   :  { %925 = vmatmul.mubr.bf16.gmra.mxu0 %v2195_v52  ;;  %2066 = vmatmul.mubr.msk.bf16.gmra.mxu1 %vm749_vm3, %v2208_v54  ;;  %v113_v52 = vld [vmem:[%s3083_s0 + $0x24c] sm:$0xff] }
  0x72   :  { %932 = vmatprep.mubr.bf16.mxu0 %v2197_v53  ;;  %2069 = vmatprep.mubr.msk.bf16.mxu1 %vm2282_vm1, %v2281_v2 }
  0x79   :  { %933 = vmatmul.mubr.bf16.gmra.mxu0 %v2199_v55  ;;  %2070 = vmatmul.mubr.msk.bf16.gmra.mxu1 %vm749_vm3, %v2212_v57  ;;  %v2273_v55 = vld [vmem:[%s3083_s0 + $0x290] ss:$12 sps:$4 sm:$0xff]  }
  0x7a   :  { %940 = vmatprep.mubr.bf16.mxu0 %v2201_v56  ;;  %2073 = vmatprep.mubr.msk.bf16.mxu1 %vm2282_vm1, %v2281_v2  ;;  %v1794_v56 = vcombine.low %v111_v51, %v113_v52  ;;  %v2268_v57 = vld [vmem:[%s3083_s0 + $0x25c] ss:$12 sps:$4 sm:$0xff]  }
  0x81   :  { %941 = vmatmul.mubr.bf16.gmra.mxu0 %v2203_v58  ;;  %2074 = vmatmul.mubr.msk.bf16.gmra.mxu1 %vm749_vm3, %v2216_v60 }
  0x82   :  { %948 = vmatprep.mubr.bf16.mxu0 %v2205_v59  ;;  %2077 = vmatprep.mubr.msk.bf16.mxu1 %vm2282_vm1, %v2281_v2  ;;  %v2730_v59 = vld [vmem:[%s3084_s2] ss:$0 sm:$0xff] }
  0x89   :  { %949 = vmatmul.mubr.bf16.gmra.mxu0 %v2207_v61  ;;  %2078 = vmatmul.mubr.msk.bf16.gmra.mxu1 %vm749_vm3, %v2220_v63  ;;  %v115_v63 = vld [vmem:[%s3083_s0 + $0x258] sm:$0xff] }
  0x8a   :  { %956 = vmatprep.mubr.bf16.mxu0 %v2209_v62  ;;  %2081 = vmatprep.mubr.msk.bf16.mxu1 %vm2282_vm1, %v2281_v2 }
  0x91   :  { %957 = vmatmul.mubr.bf16.gmra.mxu0 %v2211_v0  ;;  %2082 = vmatmul.mubr.msk.bf16.gmra.mxu1 %vm749_vm3, %v2224_v3  ;;  %v117_v0 = vld [vmem:[%s3083_s0 + $0x264] sm:$0xff] }
  0x92   :  { %964 = vmatprep.mubr.bf16.mxu0 %v2213_v1  ;;  %2085 = vmatprep.mubr.msk.bf16.mxu1 %vm2282_vm1, %v2281_v2 }
  0x99   :  { %965 = vmatmul.mubr.bf16.gmra.mxu0 %v2215_v4  ;;  %2086 = vmatmul.mubr.msk.bf16.gmra.mxu1 %vm749_vm3, %v2228_v6 }
  0x9a   :  { %972 = vmatprep.mubr.bf16.mxu0 %v2217_v5  ;;  %2089 = vmatprep.mubr.msk.bf16.mxu1 %vm2282_vm1, %v2281_v2 }
  0xa1   :  { %973 = vmatmul.mubr.bf16.gmra.mxu0 %v2219_v7  ;;  %2090 = vmatmul.mubr.msk.bf16.gmra.mxu1 %vm749_vm3, %v2232_v9  ;;  %v1797_v7 = vcombine.low %v115_v63, %v117_v0 }
  0xa2   :  { %980 = vmatprep.mubr.bf16.mxu0 %v2221_v8  ;;  %2093 = vmatprep.mubr.msk.bf16.mxu1 %vm2282_vm1, %v2281_v2 }
  0xa9   :  { %981 = vmatmul.mubr.bf16.gmra.mxu0 %v2223_v10  ;;  %2094 = vmatmul.mubr.msk.bf16.gmra.mxu1 %vm749_vm3, %v2236_v12  ;;  %v2271_v10 = vld [vmem:[%s3083_s0 + $0x274] ss:$12 sps:$4 sm:$0xff]  }
  0xaa   :  { %988 = vmatprep.mubr.bf16.mxu0 %v2225_v11  ;;  %2097 = vmatprep.mubr.msk.bf16.mxu1 %vm2282_vm1, %v2281_v2 }
  0xb1   :  { %989 = vmatmul.mubr.bf16.gmra.mxu0 %v2227_v13  ;;  %2098 = vmatmul.mubr.msk.bf16.gmra.mxu1 %vm749_vm3, %v2240_v15 }
  0xb2   :  { %996 = vmatprep.mubr.bf16.mxu0 %v2229_v14  ;;  %2101 = vmatprep.mubr.msk.bf16.mxu1 %vm2282_vm1, %v2281_v2 }
  0xb9   :  { %997 = vmatmul.mubr.bf16.gmra.mxu0 %v2231_v16  ;;  %2102 = vmatmul.mubr.msk.bf16.gmra.mxu1 %vm749_vm3, %v2244_v18 }
  0xba   :  { %1004 = vmatprep.mubr.bf16.mxu0 %v2233_v17  ;;  %2105 = vmatprep.mubr.msk.bf16.mxu1 %vm2282_vm1, %v2281_v2 }
  0xc1   :  { %1005 = vmatmul.mubr.bf16.gmra.mxu0 %v2235_v19  ;;  %2106 = vmatmul.mubr.msk.bf16.gmra.mxu1 %vm749_vm3, %v2248_v21  ;;  %v119_v19 = vld [vmem:[%s3083_s0 + $0x270] sm:$0xff] }
  0xc2   :  { %1012 = vmatprep.mubr.bf16.mxu0 %v2237_v20  ;;  %2109 = vmatprep.mubr.msk.bf16.mxu1 %vm2282_vm1, %v2281_v2  ;;  %v121_v20 = vld [vmem:[%s3083_s0 + $0x27c] sm:$0xff] }
  0xc9   :  { %1013 = vmatmul.mubr.bf16.gmra.mxu0 %v2239_v22  ;;  %2110 = vmatmul.mubr.msk.bf16.gmra.mxu1 %vm749_vm3, %v2252_v24 }
  0xca   :  { %1020 = vmatprep.mubr.bf16.mxu0 %v2241_v23  ;;  %2113 = vmatprep.mubr.msk.bf16.mxu1 %vm2282_vm1, %v2281_v2 }
  0xd1   :  { %1021 = vmatmul.mubr.bf16.gmra.mxu0 %v2243_v25  ;;  %2114 = vmatmul.mubr.msk.bf16.gmra.mxu1 %vm749_vm3, %v2256_v27  ;;  %v1800_v27 = vcombine.low %v119_v19, %v121_v20 }
  0xd2   :  { %1028 = vmatprep.mubr.bf16.mxu0 %v2245_v26  ;;  %2117 = vmatprep.mubr.msk.bf16.mxu1 %vm2282_vm1, %v2281_v2 }
  0xd9   :  { %1029 = vmatmul.mubr.bf16.gmra.mxu0 %v2247_v28  ;;  %2118 = vmatmul.mubr.msk.bf16.gmra.mxu1 %vm749_vm3, %v2260_v30  ;;  %v2274_v30 = vld [vmem:[%s3083_s0 + $0x28c] ss:$12 sps:$4 sm:$0xff]  }
  0xda   :  { %1036 = vmatprep.mubr.bf16.mxu0 %v2249_v29  ;;  %2121 = vmatprep.mubr.msk.bf16.mxu1 %vm2282_vm1, %v2281_v2 }
  0xe1   :  { %1037 = vmatmul.mubr.bf16.gmra.mxu0 %v2251_v31  ;;  %v1142_v36 = vpop.f32.mrf.mxu1  ;;  %2122 = vmatmul.mubr.msk.bf16.gmra.mxu1 %vm749_vm3, %v2264_v33 }
  0xe2   :  { %1044 = vmatprep.mubr.bf16.mxu0 %v2253_v32  ;;  %2125 = vmatprep.mubr.msk.bf16.mxu1 %vm2282_vm1, %v2281_v2 }
  0xe3   :  { %v2027_v37 = vpop.f32.mrf.mxu1 }
  0xe5   :  { %v1145_v38 = vpop.f32.mrf.mxu1 }
  0xe7   :  { %v2028_v42 = vpop.f32.mrf.mxu1 }
  0xe9   :  { %1045 = vmatmul.mubr.bf16.gmra.mxu0 %v2255_v34  ;;  %v2692_v43 = vpop.f32.mrf.mxu1  ;;  %2126 = vmatmul.mubr.msk.bf16.gmra.mxu1 %vm749_vm3, %v2267_v39  ;;  %v123_v39 = vld [vmem:[%s3083_s0 + $0x288] sm:$0xff] }
  0xea   :  { %1052 = vmatprep.mubr.bf16.mxu0 %v2257_v35  ;;  %2129 = vmatprep.mubr.msk.bf16.mxu1 %vm2282_vm1, %v2281_v2 }
  0xeb   :  { %v2031_v44 = vpop.f32.mrf.mxu1 }
  0xed   :  { %v2697_v45 = vpop.f32.mrf.mxu1 }
  0xef   :  { %v2032_v49 = vpop.f32.mrf.mxu1 }
  0xf1   :  { %1053 = vmatmul.mubr.bf16.gmra.mxu0 %v2259_v40  ;;  %v2708_v50 = vpop.f32.mrf.mxu1  ;;  %2130 = vmatmul.mubr.msk.bf16.gmra.mxu1 %vm749_vm3, %v2270_v46  ;;  %v125_v40 = vld [vmem:[%s3083_s0 + $0x294] sm:$0xff] }
  0xf2   :  { %1060 = vmatprep.mubr.bf16.mxu0 %v2261_v41  ;;  %2133 = vmatprep.mubr.msk.bf16.mxu1 %vm2282_vm1, %v2281_v2 }
  0xf3   :  { %v2035_v53 = vpop.f32.mrf.mxu1 }
  0xf5   :  { %v2719_v54 = vpop.f32.mrf.mxu1 }
  0xf7   :  { %v2036_v58 = vpop.f32.mrf.mxu1 }
  0xf9   :  { %1061 = vmatmul.mubr.bf16.gmra.mxu0 %v2263_v47  ;;  %v2732_v60 = vpop.f32.mrf.mxu1  ;;  %2134 = vmatmul.mubr.msk.bf16.gmra.mxu1 %vm749_vm3, %v2273_v55 }
  0xfa   :  { %1068 = vmatprep.mubr.bf16.mxu0 %v2265_v48  ;;  %2137 = vmatprep.mubr.msk.bf16.mxu1 %vm2282_vm1, %v2281_v2  ;;  %v2276_v2 = vld [vmem:[%s3083_s0 + $0x2a8] ss:$0 sps:$4 sm:$0x11]   ;;  %v1803_v48 = vcombine.low %v123_v39, %v125_v40 }
  0xfb   :  { %v2039_v1 = vpop.f32.mrf.mxu1 }
  0xfd   :  { %v2744_v5 = vpop.f32.mrf.mxu1 }
  0xff   :  { %v2040_v11 = vpop.f32.mrf.mxu1 }
 0x101   :  { %v878_v61 = vpop.f32.mrf.mxu0  ;;  %1069 = vmatmul.mubr.bf16.gmra.mxu0 %v1794_v56  ;;  %v2753_v15 = vpop.f32.mrf.mxu1  ;;  %2138 = vmatmul.mubr.msk.bf16.gmra.mxu1 %vm749_vm3, %v2276_v2 }
 0x102   :  { %v879_v62 = vadd.f32 %v2730_v59, %v878_v61  ;;  %1076 = vmatprep.mubr.bf16.mxu0 %v2268_v57 }
 0x103   :  { %v880_v3 = vpop.f32.mrf.mxu0  ;;  %v2043_v21 = vpop.f32.mrf.mxu1 }
 0x104   :  { %v1143_v4 = vadd.f32 %v1142_v36, %v879_v62 }
 0x105   :  { %v881_v6 = vpop.f32.mrf.mxu0  ;;  %v2768_v25 = vpop.f32.mrf.mxu1 }
 0x106   :  { %v1372_v8 = vmax.f32 %v1143_v4, 0.0  ;;  %v882_v9 = vadd.f32 %v2730_v59, %v881_v6 }
 0x107   :  { %v883_v12 = vpop.f32.mrf.mxu0  ;;  %v2044_v31 = vpop.f32.mrf.mxu1 }
 0x108   :  { %v1918_v13 = vpack.c.bf16 %v1372_v8, %v1372_v8  ;;  %v1146_v14 = vadd.f32 %v1145_v38, %v882_v9 }
 0x109   :  { %v886_v16 = vpop.f32.mrf.mxu0  ;;  %1077 = vmatmul.mubr.bf16.gmra.mxu0 %v1797_v7  ;;  %v2779_v35 = vpop.f32.mrf.mxu1 }
 0x10a   :  { %1659 = vst.msk [vmem:[%s3085_s3] sm:$0xf] %vm1658_vm4, %v1918_v13  ;;  %v1373_v17 = vmax.f32 %v1146_v14, 0.0  ;;  %v887_v18 = vadd.f32 %v2730_v59, %v886_v16  ;;  %1084 = vmatprep.mubr.bf16.mxu0 %v2271_v10 }
 0x10b   :  { %v888_v22 = vpop.f32.mrf.mxu0  ;;  %v2047_v41 = vpop.f32.mrf.mxu1 }
 0x10c   :  { %v1919_v23 = vpack.c.bf16 %v1373_v17, %v1373_v17  ;;  %v1151_v24 = vadd.f32 %v2692_v43, %v887_v18  ;;  %v127_v43 = vld [vmem:[%s3083_s0 + $0x2a0] sm:$0x11] }
 0x10d   :  { %v889_v26 = vpop.f32.mrf.mxu0  ;;  %v2796_v46 = vpop.f32.mrf.mxu1  ;;  %v1807_v52 = vcombine.high %v127_v43, %v127_v43  ;;  %v1806_v2 = vcombine.low %v127_v43, %v127_v43 }
 0x10e   :  { %1660 = vst.msk [vmem:[%s3085_s3 + $0x4] sm:$0xf] %vm1658_vm4, %v1919_v23  ;;  %v1374_v28 = vmax.f32 %v1151_v24, 0.0  ;;  %v890_v29 = vadd.f32 %v2730_v59, %v889_v26 }
 0x10f   :  { %v891_v32 = vpop.f32.mrf.mxu0  ;;  %v2048_v53 = vpop.f32.mrf.mxu1 }
 0x110   :  { %v1920_v33 = vpack.c.bf16 %v1374_v28, %v1374_v28  ;;  %v1154_v34 = vadd.f32 %v2697_v45, %v890_v29 }
 0x111   :  { %v894_v36 = vpop.f32.mrf.mxu0  ;;  %1085 = vmatmul.mubr.bf16.gmra.mxu0 %v1800_v27  ;;  %v2804_v58 = vpop.f32.mrf.mxu1 }
 0x112   :  { %1661 = vst.msk [vmem:[%s3085_s3 + $0x8] sm:$0xf] %vm1658_vm4, %v1920_v33  ;;  %v1375_v37 = vmax.f32 %v1154_v34, 0.0  ;;  %v895_v38 = vadd.f32 %v2730_v59, %v894_v36  ;;  %1092 = vmatprep.mubr.bf16.mxu0 %v2274_v30 }
 0x113   :  { %v896_v42 = vpop.f32.mrf.mxu0  ;;  %v2051_v63 = vpop.f32.mrf.mxu1 }
 0x114   :  { %v1921_v44 = vpack.c.bf16 %v1375_v37, %v1375_v37  ;;  %v1159_v45 = vadd.f32 %v2708_v50, %v895_v38 }
 0x115   :  { %v897_v47 = vpop.f32.mrf.mxu0  ;;  %v2812_v4 = vpop.f32.mrf.mxu1 }
 0x116   :  { %1662 = vst.msk [vmem:[%s3085_s3 + $0xc] sm:$0xf] %vm1658_vm4, %v1921_v44  ;;  %v1376_v49 = vmax.f32 %v1159_v45, 0.0  ;;  %v898_v51 = vadd.f32 %v2730_v59, %v897_v47 }
 0x117   :  { %v899_v55 = vpop.f32.mrf.mxu0  ;;  %v2052_v8 = vpop.f32.mrf.mxu1 }
 0x118   :  { %v1922_v56 = vpack.c.bf16 %v1376_v49, %v1376_v49  ;;  %v1162_v57 = vadd.f32 %v2719_v54, %v898_v51 }
 0x119   :  { %v902_v50 = vpop.f32.mrf.mxu0  ;;  %1093 = vmatmul.mubr.bf16.gmra.mxu0 %v1803_v48  ;;  %v2820_v12 = vpop.f32.mrf.mxu1 }
 0x11a   :  { %1663 = vst.msk [vmem:[%s3085_s3 + $0x10] sm:$0xf] %vm1658_vm4, %v1922_v56  ;;  %v1377_v61 = vmax.f32 %v1162_v57, 0.0  ;;  %v903_v62 = vadd.f32 %v2730_v59, %v902_v50  ;;  %1100 = vmatprep.mubr.bf16.mxu0 %v1807_v52 }
 0x11b   :  { %v904_v0 = vpop.f32.mrf.mxu0  ;;  %v2055_v16 = vpop.f32.mrf.mxu1 }
 0x11c   :  { %v1923_v1 = vpack.c.bf16 %v1377_v61, %v1377_v61  ;;  %v1167_v3 = vadd.f32 %v2732_v60, %v903_v62 }
 0x11d   :  { %v905_v54 = vpop.f32.mrf.mxu0  ;;  %v1201_v20 = vpop.f32.mrf.mxu1 }
 0x11e   :  { %1664 = vst.msk [vmem:[%s3085_s3 + $0x14] sm:$0xf] %vm1658_vm4, %v1923_v1  ;;  %v1378_v6 = vmax.f32 %v1167_v3, 0.0  ;;  %v906_v7 = vadd.f32 %v2730_v59, %v905_v54 }
 0x11f   :  { %v907_v9 = vpop.f32.mrf.mxu0  ;;  %v2056_v23 = vpop.f32.mrf.mxu1 }
 0x120   :  { %v1924_v10 = vpack.c.bf16 %v1378_v6, %v1378_v6  ;;  %v1170_v11 = vadd.f32 %v2744_v5, %v906_v7 }
 0x121   :  { %v910_v60 = vpop.f32.mrf.mxu0  ;;  %1101 = vmatmul.mubr.bf16.gmra.mxu0 %v1806_v2  ;;  %v1206_v28 = vpop.f32.mrf.mxu1 }
 0x122   :  { %1665 = vst.msk [vmem:[%s3085_s3 + $0x18] sm:$0xf] %vm1658_vm4, %v1924_v10  ;;  %v1379_v13 = vmax.f32 %v1170_v11, 0.0  ;;  %v911_v14 = vadd.f32 %v2730_v59, %v910_v60 }
 0x123   :  { %v912_v17 = vpop.f32.mrf.mxu0  ;;  %v2059_v31 = vpop.f32.mrf.mxu1 }
 0x124   :  { %v1925_v18 = vpack.c.bf16 %v1379_v13, %v1379_v13  ;;  %v1175_v19 = vadd.f32 %v2753_v15, %v911_v14 }
 0x125   :  { %v913_v21 = vpop.f32.mrf.mxu0  ;;  %v1209_v36 = vpop.f32.mrf.mxu1 }
 0x126   :  { %1666 = vst.msk [vmem:[%s3085_s3 + $0x1c] sm:$0xf] %vm1658_vm4, %v1925_v18  ;;  %v1380_v5 = vmax.f32 %v1175_v19, 0.0  ;;  %v914_v22 = vadd.f32 %v2730_v59, %v913_v21 }
 0x127   :  { %v915_v24 = vpop.f32.mrf.mxu0  ;;  %v2060_v39 = vpop.f32.mrf.mxu1 }
 0x128   :  { %v1926_v26 = vpack.c.bf16 %v1380_v5, %v1380_v5  ;;  %v1178_v27 = vadd.f32 %v2768_v25, %v914_v22 }
 0x129   :  { %v918_v29 = vpop.f32.mrf.mxu0  ;;  %v1214_v43 = vpop.f32.mrf.mxu1 }
 0x12a   :  { %1667 = vst.msk [vmem:[%s3085_s3 + $0x20] sm:$0xf] %vm1658_vm4, %v1926_v26  ;;  %v1381_v15 = vmax.f32 %v1178_v27, 0.0  ;;  %v919_v30 = vadd.f32 %v2730_v59, %v918_v29 }
 0x12b   :  { %v920_v32 = vpop.f32.mrf.mxu0  ;;  %v2063_v47 = vpop.f32.mrf.mxu1 }
 0x12c   :  { %v1927_v33 = vpack.c.bf16 %v1381_v15, %v1381_v15  ;;  %v1183_v34 = vadd.f32 %v2779_v35, %v919_v30 }
 0x12d   :  { %v921_v37 = vpop.f32.mrf.mxu0  ;;  %v1217_v52 = vpop.f32.mrf.mxu1 }
 0x12e   :  { %1668 = vst.msk [vmem:[%s3085_s3 + $0x24] sm:$0xf] %vm1658_vm4, %v1927_v33  ;;  %v1382_v25 = vmax.f32 %v1183_v34, 0.0  ;;  %v922_v38 = vadd.f32 %v2730_v59, %v921_v37 }
 0x12f   :  { %v923_v40 = vpop.f32.mrf.mxu0  ;;  %v2064_v56 = vpop.f32.mrf.mxu1 }
 0x130   :  { %v1928_v41 = vpack.c.bf16 %v1382_v25, %v1382_v25  ;;  %v1186_v42 = vadd.f32 %v2796_v46, %v922_v38 }
 0x131   :  { %v926_v44 = vpop.f32.mrf.mxu0  ;;  %v1222_v62 = vpop.f32.mrf.mxu1 }
 0x132   :  { %1669 = vst.msk [vmem:[%s3085_s3 + $0x28] sm:$0xf] %vm1658_vm4, %v1928_v41  ;;  %v1383_v35 = vmax.f32 %v1186_v42, 0.0  ;;  %v927_v45 = vadd.f32 %v2730_v59, %v926_v44 }
 0x133   :  { %v928_v48 = vpop.f32.mrf.mxu0  ;;  %v2067_v1 = vpop.f32.mrf.mxu1 }
 0x134   :  { %v1929_v49 = vpack.c.bf16 %v1383_v35, %v1383_v35  ;;  %v1191_v51 = vadd.f32 %v2804_v58, %v927_v45 }
 0x135   :  { %v929_v53 = vpop.f32.mrf.mxu0  ;;  %v1225_v6 = vpop.f32.mrf.mxu1 }
 0x136   :  { %1670 = vst.msk [vmem:[%s3085_s3 + $0x2c] sm:$0xf] %vm1658_vm4, %v1929_v49  ;;  %v1384_v46 = vmax.f32 %v1191_v51, 0.0  ;;  %v930_v55 = vadd.f32 %v2730_v59, %v929_v53 }
 0x137   :  { %v931_v57 = vpop.f32.mrf.mxu0  ;;  %v2068_v9 = vpop.f32.mrf.mxu1 }
 0x138   :  { %v1930_v50 = vpack.c.bf16 %v1384_v46, %v1384_v46  ;;  %v1194_v61 = vadd.f32 %v2812_v4, %v930_v55 }
 0x139   :  { %v934_v63 = vpop.f32.mrf.mxu0  ;;  %v1230_v13 = vpop.f32.mrf.mxu1 }
 0x13a   :  { %1671 = vst.msk [vmem:[%s3085_s3 + $0x30] sm:$0xf] %vm1658_vm4, %v1930_v50  ;;  %v1385_v58 = vmax.f32 %v1194_v61, 0.0  ;;  %v935_v0 = vadd.f32 %v2730_v59, %v934_v63 }
 0x13b   :  { %v936_v3 = vpop.f32.mrf.mxu0  ;;  %v2071_v17 = vpop.f32.mrf.mxu1 }
 0x13c   :  { %v1931_v54 = vpack.c.bf16 %v1385_v58, %v1385_v58  ;;  %v1199_v2 = vadd.f32 %v2820_v12, %v935_v0 }
 0x13d   :  { %v937_v7 = vpop.f32.mrf.mxu0  ;;  %v1233_v5 = vpop.f32.mrf.mxu1 }
 0x13e   :  { %1672 = vst.msk [vmem:[%s3085_s3 + $0x34] sm:$0xf] %vm1658_vm4, %v1931_v54  ;;  %v1386_v4 = vmax.f32 %v1199_v2, 0.0  ;;  %v938_v8 = vadd.f32 %v2730_v59, %v937_v7 }
 0x13f   :  { %v939_v10 = vpop.f32.mrf.mxu0  ;;  %v2072_v24 = vpop.f32.mrf.mxu1 }
 0x140   :  { %v1932_v11 = vpack.c.bf16 %v1386_v4, %v1386_v4  ;;  %v1202_v60 = vadd.f32 %v1201_v20, %v938_v8 }
 0x141   :  { %v942_v14 = vpop.f32.mrf.mxu0  ;;  %v1238_v15 = vpop.f32.mrf.mxu1 }
 0x142   :  { %1673 = vst.msk [vmem:[%s3085_s3 + $0x38] sm:$0xf] %vm1658_vm4, %v1932_v11  ;;  %v1387_v12 = vmax.f32 %v1202_v60, 0.0  ;;  %v943_v16 = vadd.f32 %v2730_v59, %v942_v14 }
 0x143   :  { %v944_v18 = vpop.f32.mrf.mxu0  ;;  %v2075_v32 = vpop.f32.mrf.mxu1 }
 0x144   :  { %v1933_v19 = vpack.c.bf16 %v1387_v12, %v1387_v12  ;;  %v1207_v21 = vadd.f32 %v1206_v28, %v943_v16 }
 0x145   :  { %v945_v22 = vpop.f32.mrf.mxu0  ;;  %v1241_v25 = vpop.f32.mrf.mxu1 }
 0x146   :  { %1674 = vst.msk [vmem:[%s3085_s3 + $0x3c] sm:$0xf] %vm1658_vm4, %v1933_v19  ;;  %v1388_v20 = vmax.f32 %v1207_v21, 0.0  ;;  %v946_v23 = vadd.f32 %v2730_v59, %v945_v22 }
 0x147   :  { %v947_v26 = vpop.f32.mrf.mxu0  ;;  %v2076_v40 = vpop.f32.mrf.mxu1 }
 0x148   :  { %v1934_v27 = vpack.c.bf16 %v1388_v20, %v1388_v20  ;;  %v1210_v29 = vadd.f32 %v1209_v36, %v946_v23 }
 0x149   :  { %v950_v30 = vpop.f32.mrf.mxu0  ;;  %v1246_v35 = vpop.f32.mrf.mxu1 }
 0x14a   :  { %1675 = vst.msk [vmem:[%s3085_s3 + $0x40] sm:$0xf] %vm1658_vm4, %v1934_v27  ;;  %v1389_v28 = vmax.f32 %v1210_v29, 0.0  ;;  %v951_v31 = vadd.f32 %v2730_v59, %v950_v30 }
 0x14b   :  { %v952_v33 = vpop.f32.mrf.mxu0  ;;  %v2079_v48 = vpop.f32.mrf.mxu1 }
 0x14c   :  { %v1935_v34 = vpack.c.bf16 %v1389_v28, %v1389_v28  ;;  %v1215_v37 = vadd.f32 %v1214_v43, %v951_v31 }
 0x14d   :  { %v953_v38 = vpop.f32.mrf.mxu0  ;;  %v1249_v46 = vpop.f32.mrf.mxu1 }
 0x14e   :  { %1676 = vst.msk [vmem:[%s3085_s3 + $0x44] sm:$0xf] %vm1658_vm4, %v1935_v34  ;;  %v1390_v36 = vmax.f32 %v1215_v37, 0.0  ;;  %v954_v39 = vadd.f32 %v2730_v59, %v953_v38 }
 0x14f   :  { %v955_v41 = vpop.f32.mrf.mxu0  ;;  %v2080_v57 = vpop.f32.mrf.mxu1 }
 0x150   :  { %v1936_v42 = vpack.c.bf16 %v1390_v36, %v1390_v36  ;;  %v1218_v44 = vadd.f32 %v1217_v52, %v954_v39 }
 0x151   :  { %v958_v45 = vpop.f32.mrf.mxu0  ;;  %v1254_v58 = vpop.f32.mrf.mxu1 }
 0x152   :  { %1677 = vst.msk [vmem:[%s3085_s3 + $0x48] sm:$0xf] %vm1658_vm4, %v1936_v42  ;;  %v1391_v43 = vmax.f32 %v1218_v44, 0.0  ;;  %v959_v47 = vadd.f32 %v2730_v59, %v958_v45 }
 0x153   :  { %v960_v49 = vpop.f32.mrf.mxu0  ;;  %v2083_v3 = vpop.f32.mrf.mxu1 }
 0x154   :  { %v1937_v51 = vpack.c.bf16 %v1391_v43, %v1391_v43  ;;  %v1223_v53 = vadd.f32 %v1222_v62, %v959_v47 }
 0x155   :  { %v961_v55 = vpop.f32.mrf.mxu0  ;;  %v1257_v4 = vpop.f32.mrf.mxu1 }
 0x156   :  { %1678 = vst.msk [vmem:[%s3085_s3 + $0x4c] sm:$0xf] %vm1658_vm4, %v1937_v51  ;;  %v1392_v52 = vmax.f32 %v1223_v53, 0.0  ;;  %v962_v56 = vadd.f32 %v2730_v59, %v961_v55 }
 0x157   :  { %v963_v50 = vpop.f32.mrf.mxu0  ;;  %v2084_v10 = vpop.f32.mrf.mxu1 }
 0x158   :  { %v1938_v61 = vpack.c.bf16 %v1392_v52, %v1392_v52  ;;  %v1226_v63 = vadd.f32 %v1225_v6, %v962_v56 }
 0x159   :  { %v966_v0 = vpop.f32.mrf.mxu0  ;;  %v1262_v12 = vpop.f32.mrf.mxu1 }
 0x15a   :  { %1679 = vst.msk [vmem:[%s3085_s3 + $0x50] sm:$0xf] %vm1658_vm4, %v1938_v61  ;;  %v1393_v62 = vmax.f32 %v1226_v63, 0.0  ;;  %v967_v1 = vadd.f32 %v2730_v59, %v966_v0 }
 0x15b   :  { %v968_v54 = vpop.f32.mrf.mxu0  ;;  %v2087_v18 = vpop.f32.mrf.mxu1 }
 0x15c   :  { %v1939_v2 = vpack.c.bf16 %v1393_v62, %v1393_v62  ;;  %v1231_v7 = vadd.f32 %v1230_v13, %v967_v1 }
 0x15d   :  { %v969_v8 = vpop.f32.mrf.mxu0  ;;  %v1265_v20 = vpop.f32.mrf.mxu1 }
 0x15e   :  { %1680 = vst.msk [vmem:[%s3085_s3 + $0x54] sm:$0xf] %vm1658_vm4, %v1939_v2  ;;  %v1394_v6 = vmax.f32 %v1231_v7, 0.0  ;;  %v970_v9 = vadd.f32 %v2730_v59, %v969_v8 }
 0x15f   :  { %v971_v11 = vpop.f32.mrf.mxu0  ;;  %v2088_v26 = vpop.f32.mrf.mxu1 }
 0x160   :  { %v1940_v60 = vpack.c.bf16 %v1394_v6, %v1394_v6  ;;  %v1234_v14 = vadd.f32 %v1233_v5, %v970_v9 }
 0x161   :  { %v974_v16 = vpop.f32.mrf.mxu0  ;;  %v1270_v28 = vpop.f32.mrf.mxu1 }
 0x162   :  { %1681 = vst.msk [vmem:[%s3085_s3 + $0x58] sm:$0xf] %vm1658_vm4, %v1940_v60  ;;  %v1395_v13 = vmax.f32 %v1234_v14, 0.0  ;;  %v975_v17 = vadd.f32 %v2730_v59, %v974_v16 }
 0x163   :  { %v976_v19 = vpop.f32.mrf.mxu0  ;;  %v2091_v33 = vpop.f32.mrf.mxu1 }
 0x164   :  { %v1941_v21 = vpack.c.bf16 %v1395_v13, %v1395_v13  ;;  %v1239_v22 = vadd.f32 %v1238_v15, %v975_v17 }
 0x165   :  { %v977_v23 = vpop.f32.mrf.mxu0  ;;  %v1273_v36 = vpop.f32.mrf.mxu1 }
 0x166   :  { %1682 = vst.msk [vmem:[%s3085_s3 + $0x5c] sm:$0xf] %vm1658_vm4, %v1941_v21  ;;  %v1396_v5 = vmax.f32 %v1239_v22, 0.0  ;;  %v978_v24 = vadd.f32 %v2730_v59, %v977_v23 }
 0x167   :  { %v979_v27 = vpop.f32.mrf.mxu0  ;;  %v2092_v41 = vpop.f32.mrf.mxu1 }
 0x168   :  { %v1942_v29 = vpack.c.bf16 %v1396_v5, %v1396_v5  ;;  %v1242_v30 = vadd.f32 %v1241_v25, %v978_v24 }
 0x169   :  { %v982_v31 = vpop.f32.mrf.mxu0  ;;  %v1278_v43 = vpop.f32.mrf.mxu1 }
 0x16a   :  { %1683 = vst.msk [vmem:[%s3085_s3 + $0x60] sm:$0xf] %vm1658_vm4, %v1942_v29  ;;  %v1397_v15 = vmax.f32 %v1242_v30, 0.0  ;;  %v983_v32 = vadd.f32 %v2730_v59, %v982_v31 }
 0x16b   :  { %v984_v34 = vpop.f32.mrf.mxu0  ;;  %v2095_v49 = vpop.f32.mrf.mxu1 }
 0x16c   :  { %v1943_v37 = vpack.c.bf16 %v1397_v15, %v1397_v15  ;;  %v1247_v38 = vadd.f32 %v1246_v35, %v983_v32 }
 0x16d   :  { %v985_v39 = vpop.f32.mrf.mxu0  ;;  %v1281_v52 = vpop.f32.mrf.mxu1 }
 0x16e   :  { %1684 = vst.msk [vmem:[%s3085_s3 + $0x64] sm:$0xf] %vm1658_vm4, %v1943_v37  ;;  %v1398_v25 = vmax.f32 %v1247_v38, 0.0  ;;  %v986_v40 = vadd.f32 %v2730_v59, %v985_v39 }
 0x16f   :  { %v987_v42 = vpop.f32.mrf.mxu0  ;;  %v2096_v50 = vpop.f32.mrf.mxu1 }
 0x170   :  { %v1944_v44 = vpack.c.bf16 %v1398_v25, %v1398_v25  ;;  %v1250_v45 = vadd.f32 %v1249_v46, %v986_v40 }
 0x171   :  { %v990_v47 = vpop.f32.mrf.mxu0  ;;  %v1286_v62 = vpop.f32.mrf.mxu1 }
 0x172   :  { %1685 = vst.msk [vmem:[%s3085_s3 + $0x68] sm:$0xf] %vm1658_vm4, %v1944_v44  ;;  %v1399_v35 = vmax.f32 %v1250_v45, 0.0  ;;  %v991_v48 = vadd.f32 %v2730_v59, %v990_v47 }
 0x173   :  { %v992_v51 = vpop.f32.mrf.mxu0  ;;  %v2099_v54 = vpop.f32.mrf.mxu1 }
 0x174   :  { %v1945_v53 = vpack.c.bf16 %v1399_v35, %v1399_v35  ;;  %v1255_v55 = vadd.f32 %v1254_v58, %v991_v48 }
 0x175   :  { %v993_v56 = vpop.f32.mrf.mxu0  ;;  %v1289_v6 = vpop.f32.mrf.mxu1 }
 0x176   :  { %1686 = vst.msk [vmem:[%s3085_s3 + $0x6c] sm:$0xf] %vm1658_vm4, %v1945_v53  ;;  %v1400_v46 = vmax.f32 %v1255_v55, 0.0  ;;  %v994_v57 = vadd.f32 %v2730_v59, %v993_v56 }
 0x177   :  { %v995_v61 = vpop.f32.mrf.mxu0  ;;  %v2100_v11 = vpop.f32.mrf.mxu1 }
 0x178   :  { %v1946_v63 = vpack.c.bf16 %v1400_v46, %v1400_v46  ;;  %v1258_v0 = vadd.f32 %v1257_v4, %v994_v57 }
 0x179   :  { %v998_v1 = vpop.f32.mrf.mxu0  ;;  %v1294_v13 = vpop.f32.mrf.mxu1 }
 0x17a   :  { %1687 = vst.msk [vmem:[%s3085_s3 + $0x70] sm:$0xf] %vm1658_vm4, %v1946_v63  ;;  %v1401_v58 = vmax.f32 %v1258_v0, 0.0  ;;  %v999_v3 = vadd.f32 %v2730_v59, %v998_v1 }
 0x17b   :  { %v1000_v2 = vpop.f32.mrf.mxu0  ;;  %v2103_v19 = vpop.f32.mrf.mxu1 }
 0x17c   :  { %v1947_v7 = vpack.c.bf16 %v1401_v58, %v1401_v58  ;;  %v1263_v8 = vadd.f32 %v1262_v12, %v999_v3 }
 0x17d   :  { %v1001_v9 = vpop.f32.mrf.mxu0  ;;  %v1297_v5 = vpop.f32.mrf.mxu1 }
 0x17e   :  { %1688 = vst.msk [vmem:[%s3085_s3 + $0x74] sm:$0xf] %vm1658_vm4, %v1947_v7  ;;  %v1402_v4 = vmax.f32 %v1263_v8, 0.0  ;;  %v1002_v10 = vadd.f32 %v2730_v59, %v1001_v9 }
 0x17f   :  { %v1003_v60 = vpop.f32.mrf.mxu0  ;;  %v2104_v27 = vpop.f32.mrf.mxu1 }
 0x180   :  { %v1948_v14 = vpack.c.bf16 %v1402_v4, %v1402_v4  ;;  %v1266_v16 = vadd.f32 %v1265_v20, %v1002_v10 }
 0x181   :  { %v1006_v17 = vpop.f32.mrf.mxu0  ;;  %v1302_v15 = vpop.f32.mrf.mxu1 }
 0x182   :  { %1689 = vst.msk [vmem:[%s3085_s3 + $0x78] sm:$0xf] %vm1658_vm4, %v1948_v14  ;;  %v1403_v12 = vmax.f32 %v1266_v16, 0.0  ;;  %v1007_v18 = vadd.f32 %v2730_v59, %v1006_v17 }
 0x183   :  { %v1008_v21 = vpop.f32.mrf.mxu0  ;;  %v2107_v34 = vpop.f32.mrf.mxu1 }
 0x184   :  { %v1949_v22 = vpack.c.bf16 %v1403_v12, %v1403_v12  ;;  %v1271_v23 = vadd.f32 %v1270_v28, %v1007_v18 }
 0x185   :  { %v1009_v24 = vpop.f32.mrf.mxu0  ;;  %v1305_v25 = vpop.f32.mrf.mxu1 }
 0x186   :  { %1690 = vst.msk [vmem:[%s3085_s3 + $0x7c] sm:$0xf] %vm1658_vm4, %v1949_v22  ;;  %v1404_v20 = vmax.f32 %v1271_v23, 0.0  ;;  %v1010_v26 = vadd.f32 %v2730_v59, %v1009_v24 }
 0x187   :  { %v1011_v29 = vpop.f32.mrf.mxu0  ;;  %v2108_v42 = vpop.f32.mrf.mxu1 }
 0x188   :  { %v1950_v30 = vpack.c.bf16 %v1404_v20, %v1404_v20  ;;  %v1274_v31 = vadd.f32 %v1273_v36, %v1010_v26 }
 0x189   :  { %v1014_v32 = vpop.f32.mrf.mxu0  ;;  %v1310_v35 = vpop.f32.mrf.mxu1 }
 0x18a   :  { %1691 = vst.msk [vmem:[%s3085_s3 + $0x80] sm:$0xf] %vm1658_vm4, %v1950_v30  ;;  %v1405_v28 = vmax.f32 %v1274_v31, 0.0  ;;  %v1015_v33 = vadd.f32 %v2730_v59, %v1014_v32 }
 0x18b   :  { %v1016_v37 = vpop.f32.mrf.mxu0  ;;  %v2111_v51 = vpop.f32.mrf.mxu1 }
 0x18c   :  { %v1951_v38 = vpack.c.bf16 %v1405_v28, %v1405_v28  ;;  %v1279_v39 = vadd.f32 %v1278_v43, %v1015_v33 }
 0x18d   :  { %v1017_v40 = vpop.f32.mrf.mxu0  ;;  %v1313_v46 = vpop.f32.mrf.mxu1 }
 0x18e   :  { %1692 = vst.msk [vmem:[%s3085_s3 + $0x84] sm:$0xf] %vm1658_vm4, %v1951_v38  ;;  %v1406_v36 = vmax.f32 %v1279_v39, 0.0  ;;  %v1018_v41 = vadd.f32 %v2730_v59, %v1017_v40 }
 0x18f   :  { %v1019_v44 = vpop.f32.mrf.mxu0  ;;  %v2112_v61 = vpop.f32.mrf.mxu1 }
 0x190   :  { %v1952_v45 = vpack.c.bf16 %v1406_v36, %v1406_v36  ;;  %v1282_v47 = vadd.f32 %v1281_v52, %v1018_v41 }
 0x191   :  { %v1022_v48 = vpop.f32.mrf.mxu0  ;;  %v1318_v58 = vpop.f32.mrf.mxu1 }
 0x192   :  { %1693 = vst.msk [vmem:[%s3085_s3 + $0x88] sm:$0xf] %vm1658_vm4, %v1952_v45  ;;  %v1407_v43 = vmax.f32 %v1282_v47, 0.0  ;;  %v1023_v49 = vadd.f32 %v2730_v59, %v1022_v48 }
 0x193   :  { %v1024_v53 = vpop.f32.mrf.mxu0  ;;  %v2115_v2 = vpop.f32.mrf.mxu1 }
 0x194   :  { %v1953_v55 = vpack.c.bf16 %v1407_v43, %v1407_v43  ;;  %v1287_v56 = vadd.f32 %v1286_v62, %v1023_v49 }
 0x195   :  { %v1025_v57 = vpop.f32.mrf.mxu0  ;;  %v1321_v4 = vpop.f32.mrf.mxu1 }
 0x196   :  { %1694 = vst.msk [vmem:[%s3085_s3 + $0x8c] sm:$0xf] %vm1658_vm4, %v1953_v55  ;;  %v1408_v52 = vmax.f32 %v1287_v56, 0.0  ;;  %v1026_v50 = vadd.f32 %v2730_v59, %v1025_v57 }
 0x197   :  { %v1027_v63 = vpop.f32.mrf.mxu0  ;;  %v2116_v60 = vpop.f32.mrf.mxu1 }
 0x198   :  { %v1954_v0 = vpack.c.bf16 %v1408_v52, %v1408_v52  ;;  %v1290_v1 = vadd.f32 %v1289_v6, %v1026_v50 }
 0x199   :  { %v1030_v3 = vpop.f32.mrf.mxu0  ;;  %v1326_v12 = vpop.f32.mrf.mxu1 }
 0x19a   :  { %1695 = vst.msk [vmem:[%s3085_s3 + $0x90] sm:$0xf] %vm1658_vm4, %v1954_v0  ;;  %v1409_v62 = vmax.f32 %v1290_v1, 0.0  ;;  %v1031_v54 = vadd.f32 %v2730_v59, %v1030_v3 }
 0x19b   :  { %v1032_v7 = vpop.f32.mrf.mxu0  ;;  %v2119_v21 = vpop.f32.mrf.mxu1 }
 0x19c   :  { %v1955_v8 = vpack.c.bf16 %v1409_v62, %v1409_v62  ;;  %v1295_v9 = vadd.f32 %v1294_v13, %v1031_v54 }
 0x19d   :  { %v1033_v10 = vpop.f32.mrf.mxu0  ;;  %v1329_v20 = vpop.f32.mrf.mxu1 }
 0x19e   :  { %1696 = vst.msk [vmem:[%s3085_s3 + $0x94] sm:$0xf] %vm1658_vm4, %v1955_v8  ;;  %v1410_v6 = vmax.f32 %v1295_v9, 0.0  ;;  %v1034_v11 = vadd.f32 %v2730_v59, %v1033_v10 }
 0x19f   :  { %v1035_v14 = vpop.f32.mrf.mxu0  ;;  %v2120_v29 = vpop.f32.mrf.mxu1 }
 0x1a0   :  { %v1956_v16 = vpack.c.bf16 %v1410_v6, %v1410_v6  ;;  %v1298_v17 = vadd.f32 %v1297_v5, %v1034_v11 }
 0x1a1   :  { %v1038_v18 = vpop.f32.mrf.mxu0  ;;  %v1334_v28 = vpop.f32.mrf.mxu1 }
 0x1a2   :  { %1697 = vst.msk [vmem:[%s3085_s3 + $0x98] sm:$0xf] %vm1658_vm4, %v1956_v16  ;;  %v1411_v13 = vmax.f32 %v1298_v17, 0.0  ;;  %v1039_v19 = vadd.f32 %v2730_v59, %v1038_v18 }
 0x1a3   :  { %v1040_v22 = vpop.f32.mrf.mxu0  ;;  %v2123_v37 = vpop.f32.mrf.mxu1 }
 0x1a4   :  { %v1957_v23 = vpack.c.bf16 %v1411_v13, %v1411_v13  ;;  %v1303_v24 = vadd.f32 %v1302_v15, %v1039_v19 }
 0x1a5   :  { %v1041_v26 = vpop.f32.mrf.mxu0  ;;  %v1337_v36 = vpop.f32.mrf.mxu1 }
 0x1a6   :  { %1698 = vst.msk [vmem:[%s3085_s3 + $0x9c] sm:$0xf] %vm1658_vm4, %v1957_v23  ;;  %v1412_v5 = vmax.f32 %v1303_v24, 0.0  ;;  %v1042_v27 = vadd.f32 %v2730_v59, %v1041_v26 }
 0x1a7   :  { %v1043_v30 = vpop.f32.mrf.mxu0  ;;  %v2124_v44 = vpop.f32.mrf.mxu1 }
 0x1a8   :  { %v1958_v31 = vpack.c.bf16 %v1412_v5, %v1412_v5  ;;  %v1306_v32 = vadd.f32 %v1305_v25, %v1042_v27 }
 0x1a9   :  { %v1046_v33 = vpop.f32.mrf.mxu0  ;;  %v1342_v43 = vpop.f32.mrf.mxu1 }
 0x1aa   :  { %1699 = vst.msk [vmem:[%s3085_s3 + $0xa0] sm:$0xf] %vm1658_vm4, %v1958_v31  ;;  %v1413_v15 = vmax.f32 %v1306_v32, 0.0  ;;  %v1047_v34 = vadd.f32 %v2730_v59, %v1046_v33 }
 0x1ab   :  { %v1048_v38 = vpop.f32.mrf.mxu0  ;;  %v2127_v53 = vpop.f32.mrf.mxu1 }
 0x1ac   :  { %v1959_v39 = vpack.c.bf16 %v1413_v15, %v1413_v15  ;;  %v1311_v40 = vadd.f32 %v1310_v35, %v1047_v34 }
 0x1ad   :  { %v1049_v41 = vpop.f32.mrf.mxu0  ;;  %v1345_v52 = vpop.f32.mrf.mxu1 }
 0x1ae   :  { %1700 = vst.msk [vmem:[%s3085_s3 + $0xa4] sm:$0xf] %vm1658_vm4, %v1959_v39  ;;  %v1414_v25 = vmax.f32 %v1311_v40, 0.0  ;;  %v1050_v42 = vadd.f32 %v2730_v59, %v1049_v41 }
 0x1af   :  { %v1051_v45 = vpop.f32.mrf.mxu0  ;;  %v2128_v63 = vpop.f32.mrf.mxu1 }
 0x1b0   :  { %v1960_v47 = vpack.c.bf16 %v1414_v25, %v1414_v25  ;;  %v1314_v48 = vadd.f32 %v1313_v46, %v1050_v42 }
 0x1b1   :  { %v1054_v49 = vpop.f32.mrf.mxu0  ;;  %v1350_v62 = vpop.f32.mrf.mxu1 }
 0x1b2   :  { %1701 = vst.msk [vmem:[%s3085_s3 + $0xa8] sm:$0xf] %vm1658_vm4, %v1960_v47  ;;  %v1415_v35 = vmax.f32 %v1314_v48, 0.0  ;;  %v1055_v51 = vadd.f32 %v2730_v59, %v1054_v49 }
 0x1b3   :  { %v1056_v55 = vpop.f32.mrf.mxu0  ;;  %v2131_v7 = vpop.f32.mrf.mxu1 }
 0x1b4   :  { %v1961_v56 = vpack.c.bf16 %v1415_v35, %v1415_v35  ;;  %v1319_v57 = vadd.f32 %v1318_v58, %v1055_v51 }
 0x1b5   :  { %v1057_v50 = vpop.f32.mrf.mxu0  ;;  %v1353_v6 = vpop.f32.mrf.mxu1 }
 0x1b6   :  { %1702 = vst.msk [vmem:[%s3085_s3 + $0xac] sm:$0xf] %vm1658_vm4, %v1961_v56  ;;  %v1416_v46 = vmax.f32 %v1319_v57, 0.0  ;;  %v1058_v61 = vadd.f32 %v2730_v59, %v1057_v50 }
 0x1b7   :  { %v1059_v0 = vpop.f32.mrf.mxu0  ;;  %v2132_v14 = vpop.f32.mrf.mxu1 }
 0x1b8   :  { %v1962_v1 = vpack.c.bf16 %v1416_v46, %v1416_v46  ;;  %v1322_v3 = vadd.f32 %v1321_v4, %v1058_v61 }
 0x1b9   :  { %v1062_v54 = vpop.f32.mrf.mxu0  ;;  %v1358_v13 = vpop.f32.mrf.mxu1 }
 0x1ba   :  { %1703 = vst.msk [vmem:[%s3085_s3 + $0xb0] sm:$0xf] %vm1658_vm4, %v1962_v1  ;;  %v1417_v58 = vmax.f32 %v1322_v3, 0.0  ;;  %v1063_v2 = vadd.f32 %v2730_v59, %v1062_v54 }
 0x1bb   :  { %v1064_v8 = vpop.f32.mrf.mxu0  ;;  %v2135_v22 = vpop.f32.mrf.mxu1 }
 0x1bc   :  { %v1963_v9 = vpack.c.bf16 %v1417_v58, %v1417_v58  ;;  %v1327_v10 = vadd.f32 %v1326_v12, %v1063_v2  ;;  %v2279_v8 = vld [vmem:[%s3084_s2] ss:$0 sm:$0xff] }
 0x1bd   :  { %v1065_v11 = vpop.f32.mrf.mxu0  ;;  %v1361_v5 = vpop.f32.mrf.mxu1 }
 0x1be   :  { %1704 = vst.msk [vmem:[%s3085_s3 + $0xb4] sm:$0xf] %vm1658_vm4, %v1963_v9  ;;  %v1418_v4 = vmax.f32 %v1327_v10, 0.0  ;;  %v1066_v60 = vadd.f32 %v2730_v59, %v1065_v11 }
 0x1bf   :  { %v1067_v16 = vpop.f32.mrf.mxu0  ;;  %v2136_v30 = vpop.f32.mrf.mxu1 }
 0x1c0   :  { %v1964_v17 = vpack.c.bf16 %v1418_v4, %v1418_v4  ;;  %v1330_v18 = vadd.f32 %v1329_v20, %v1066_v60 }
 0x1c1   :  { %v1070_v19 = vpop.f32.mrf.mxu0  ;;  %v1366_v15 = vpop.f32.mrf.mxu1 }
 0x1c2   :  { %1705 = vst.msk [vmem:[%s3085_s3 + $0xb8] sm:$0xf] %vm1658_vm4, %v1964_v17  ;;  %v1419_v12 = vmax.f32 %v1330_v18, 0.0  ;;  %v1071_v21 = vadd.f32 %v2730_v59, %v1070_v19 }
 0x1c3   :  { %v1072_v23 = vpop.f32.mrf.mxu0  ;;  %v2139_v38 = vpop.f32.mrf.mxu1 }
 0x1c4   :  { %v1965_v24 = vpack.c.bf16 %v1419_v12, %v1419_v12  ;;  %v1335_v26 = vadd.f32 %v1334_v28, %v1071_v21 }
 0x1c5   :  { %v1073_v27 = vpop.f32.mrf.mxu0  ;;  %v1369_v25 = vpop.f32.mrf.mxu1 }
 0x1c6   :  { %1706 = vst.msk [vmem:[%s3085_s3 + $0xbc] sm:$0xf] %vm1658_vm4, %v1965_v24  ;;  %v1420_v20 = vmax.f32 %v1335_v26, 0.0  ;;  %v1074_v29 = vadd.f32 %v2730_v59, %v1073_v27 }
 0x1c7   :  { %v1075_v31 = vpop.f32.mrf.mxu0  ;;  %v2140_v45 = vpop.f32.mrf.mxu1 }
 0x1c8   :  { %v1966_v32 = vpack.c.bf16 %v1420_v20, %v1420_v20  ;;  %v1338_v33 = vadd.f32 %v1337_v36, %v1074_v29 }
 0x1c9   :  { %v1078_v34 = vpop.f32.mrf.mxu0 }
 0x1ca   :  { %1707 = vst.msk [vmem:[%s3085_s3 + $0xc0] sm:$0xf] %vm1658_vm4, %v1966_v32  ;;  %v1421_v28 = vmax.f32 %v1338_v33, 0.0  ;;  %v1079_v37 = vadd.f32 %v2730_v59, %v1078_v34 }
 0x1cb   :  { %v1080_v39 = vpop.f32.mrf.mxu0 }
 0x1cc   :  { %v1967_v40 = vpack.c.bf16 %v1421_v28, %v1421_v28  ;;  %v1343_v41 = vadd.f32 %v1342_v43, %v1079_v37 }
 0x1cd   :  { %v1081_v42 = vpop.f32.mrf.mxu0 }
 0x1ce   :  { %1708 = vst.msk [vmem:[%s3085_s3 + $0xc4] sm:$0xf] %vm1658_vm4, %v1967_v40  ;;  %v1422_v36 = vmax.f32 %v1343_v41, 0.0  ;;  %v1082_v44 = vadd.f32 %v2730_v59, %v1081_v42 }
 0x1cf   :  { %v1083_v47 = vpop.f32.mrf.mxu0 }
 0x1d0   :  { %v1968_v48 = vpack.c.bf16 %v1422_v36, %v1422_v36  ;;  %v1346_v49 = vadd.f32 %v1345_v52, %v1082_v44 }
 0x1d1   :  { %v1086_v35 = vpop.f32.mrf.mxu0 }
 0x1d2   :  { %1709 = vst.msk [vmem:[%s3085_s3 + $0xc8] sm:$0xf] %vm1658_vm4, %v1968_v48  ;;  %v1423_v43 = vmax.f32 %v1346_v49, 0.0  ;;  %v1087_v51 = vadd.f32 %v2730_v59, %v1086_v35 }
 0x1d3   :  { %v1088_v53 = vpop.f32.mrf.mxu0 }
 0x1d4   :  { %v1969_v55 = vpack.c.bf16 %v1423_v43, %v1423_v43  ;;  %v1351_v56 = vadd.f32 %v1350_v62, %v1087_v51 }
 0x1d5   :  { %v1089_v57 = vpop.f32.mrf.mxu0 }
 0x1d6   :  { %1710 = vst.msk [vmem:[%s3085_s3 + $0xcc] sm:$0xf] %vm1658_vm4, %v1969_v55  ;;  %v1424_v50 = vmax.f32 %v1351_v56, 0.0  ;;  %v1090_v52 = vadd.f32 %v2730_v59, %v1089_v57 }
 0x1d7   :  { %v1091_v46 = vpop.f32.mrf.mxu0 }
 0x1d8   :  { %v1970_v61 = vpack.c.bf16 %v1424_v50, %v1424_v50  ;;  %v1354_v63 = vadd.f32 %v1353_v6, %v1090_v52 }
 0x1d9   :  { %v1094_v0 = vpop.f32.mrf.mxu0 }
 0x1da   :  { %1711 = vst.msk [vmem:[%s3085_s3 + $0xd0] sm:$0xf] %vm1658_vm4, %v1970_v61  ;;  %v1425_v1 = vmax.f32 %v1354_v63, 0.0  ;;  %v1095_v3 = vadd.f32 %v2730_v59, %v1094_v0 }
 0x1db   :  { %v1096_v62 = vpop.f32.mrf.mxu0 }
 0x1dc   :  { %v1971_v54 = vpack.c.bf16 %v1425_v1, %v1425_v1  ;;  %v1359_v58 = vadd.f32 %v1358_v13, %v1095_v3 }
 0x1dd   :  { %v1097_v2 = vpop.f32.mrf.mxu0 }
 0x1de   :  { %1712 = vst.msk [vmem:[%s3085_s3 + $0xd4] sm:$0xf] %vm1658_vm4, %v1971_v54  ;;  %v1426_v7 = vmax.f32 %v1359_v58, 0.0  ;;  %v1098_v9 = vadd.f32 %v2279_v8, %v1097_v2 }
 0x1df   :  { %v1099_v10 = vpop.f32.mrf.mxu0 }
 0x1e0   :  { %v1972_v6 = vpack.c.bf16 %v1426_v7, %v1426_v7  ;;  %v1362_v11 = vadd.f32 %v1361_v5, %v1098_v9 }
 0x1e1   :  { %v1102_v4 = vpop.f32.mrf.mxu0 }
 0x1e2   :  { %1713 = vst.msk [vmem:[%s3085_s3 + $0xd8] sm:$0xf] %vm1658_vm4, %v1972_v6  ;;  %v1427_v59 = vmax.f32 %v1362_v11, 0.0  ;;  %v1103_v60 = vadd.f32 %v2279_v8, %v1102_v4 }
 0x1e3   :  { %v1104_v14 = vpop.f32.mrf.mxu0 }
 0x1e4   :  { %v1973_v16 = vpack.c.bf16 %v1427_v59, %v1427_v59  ;;  %v1367_v17 = vadd.f32 %v1366_v15, %v1103_v60 }
 0x1e5   :  { %v1105_v18 = vpop.f32.mrf.mxu0 }
 0x1e6   :  { %1714 = vst.msk [vmem:[%s3085_s3 + $0xdc] sm:$0xf] %vm1658_vm4, %v1973_v16  ;;  %v1428_v13 = vmax.f32 %v1367_v17, 0.0 }
 0x1e7   :  { %v1106_v19 = vpop.f32.mrf.mxu0 }
 0x1e8   :  { %v1974_v12 = vpack.c.bf16 %v1428_v13, %v1428_v13 }
 0x1ea   :  { %1716 = vst.msk [vmem:[%s3085_s3 + $0xe0] sm:$0x1] %vm1715_vm5, %v1974_v12 }

// kernel: mynet_forward.6
= control target key start
LH: loop header
LB: loop body
LE: loop exit
PB: predicated region body
PF: predicated region fallthrough
CT: control target
= control target key end

     0   :  { %vm1753_vm0 = vcmask 523264   ;;  %vm2588_vm1 = vcmask 1043456   ;;  %vm2589_vm2 = vcmask 523268   ;;  %vm2603_vm4 = vcmask 1040384   ;;  %s4619_s1 = inlined_call_operand.vmem [shape: bf16[1600,192], index: 1, kind: input, shape index: {}]   ;;  %s4620_s0 = inlined_call_operand.vmem [shape: bf16[98,1600], index: 0, kind: input, shape index: {}]   ;;  %s4621_s2 = inlined_call_operand.vmem [shape: f32[1,192], index: 2, kind: input, shape index: {}]   ;;  %s4622_s3 = inlined_call_operand.vmem [shape: bf16[98,192], index: 3, kind: output, shape index: {}]  }
   0x1   :  { %v2944_v0 = vld [vmem:[%s4619_s1 + $0x74] ss:$8 sps:$4 sm:$0xff]   ;;  %v2948_v2 = vld [vmem:[%s4619_s1 + $0x70] ss:$8 sps:$4 sm:$0xff]   ;;  %v2950_v4 = vld [vmem:[%s4619_s1 + $0x64] ss:$8 sps:$4 sm:$0xff]  }
   0x2   :  { %v2946_v1 = vld [vmem:[%s4619_s1 + $0x174] ss:$8 sps:$4 sm:$0xff]   ;;  %1775 = vmatprep.subr.bf16.mxu0 %v2944_v0  ;;  %v2949_v3 = vld [vmem:[%s4619_s1 + $0x170] ss:$8 sps:$4 sm:$0xff]   ;;  %v2952_v5 = vld [vmem:[%s4619_s1 + $0x164] ss:$8 sps:$4 sm:$0xff]  }
   0x3   :  { %1876 = vmatprep.subr.bf16.mxu1 %v2946_v1  ;;  %1776 = vmatpush1.bf16.msra.mxu0 %v2948_v2  ;;  %v2954_v6 = vld [vmem:[%s4619_s1 + $0x60] ss:$8 sps:$4 sm:$0xff]   ;;  %v2956_v8 = vld [vmem:[%s4619_s1 + $0x54] ss:$8 sps:$4 sm:$0xff]   ;;  %v2960_v10 = vld [vmem:[%s4619_s1 + $0x50] ss:$8 sps:$4 sm:$0xff]  }
   0x4   :  { %1877 = vmatpush1.bf16.msra.mxu1 %v2949_v3  ;;  %1777 = vmatprep.subr.bf16.mxu0 %v2950_v4  ;;  %v2955_v7 = vld [vmem:[%s4619_s1 + $0x160] ss:$8 sps:$4 sm:$0xff]   ;;  %v2958_v9 = vld [vmem:[%s4619_s1 + $0x154] ss:$8 sps:$4 sm:$0xff]   ;;  %v2961_v11 = vld [vmem:[%s4619_s1 + $0x150] ss:$8 sps:$4 sm:$0xff]  }
   0x5   :  { %1878 = vmatprep.subr.bf16.mxu1 %v2952_v5  ;;  %v2962_v12 = vld [vmem:[%s4619_s1 + $0x44] ss:$8 sps:$4 sm:$0xff]   ;;  %v2966_v14 = vld [vmem:[%s4619_s1 + $0x40] ss:$8 sps:$4 sm:$0xff]   ;;  %v2968_v16 = vld [vmem:[%s4619_s1 + $0x34] ss:$8 sps:$4 sm:$0xff]  }
   0x6   :  { %v2964_v13 = vld [vmem:[%s4619_s1 + $0x144] ss:$8 sps:$4 sm:$0xff]   ;;  %v2967_v15 = vld [vmem:[%s4619_s1 + $0x140] ss:$8 sps:$4 sm:$0xff]   ;;  %v2970_v17 = vld [vmem:[%s4619_s1 + $0x134] ss:$8 sps:$4 sm:$0xff]  }
   0x7   :  { %1778 = vmatpush1.bf16.msra.mxu0 %v2954_v6  ;;  %v2972_v18 = vld [vmem:[%s4619_s1 + $0x30] ss:$8 sps:$4 sm:$0xff]   ;;  %v2974_v20 = vld [vmem:[%s4619_s1 + $0x24] ss:$8 sps:$4 sm:$0xff]   ;;  %v2978_v22 = vld [vmem:[%s4619_s1 + $0x20] ss:$8 sps:$4 sm:$0xff]  }
   0x8   :  { %1879 = vmatpush1.bf16.msra.mxu1 %v2955_v7  ;;  %1779 = vmatprep.subr.bf16.mxu0 %v2956_v8  ;;  %v2973_v19 = vld [vmem:[%s4619_s1 + $0x130] ss:$8 sps:$4 sm:$0xff]   ;;  %v2976_v21 = vld [vmem:[%s4619_s1 + $0x124] ss:$8 sps:$4 sm:$0xff]   ;;  %v2979_v23 = vld [vmem:[%s4619_s1 + $0x120] ss:$8 sps:$4 sm:$0xff]  }
   0x9   :  { %1880 = vmatprep.subr.bf16.mxu1 %v2958_v9  ;;  %v2980_v24 = vld [vmem:[%s4619_s1 + $0x14] ss:$8 sps:$4 sm:$0xff]   ;;  %v2984_v26 = vld [vmem:[%s4619_s1 + $0x10] ss:$8 sps:$4 sm:$0xff]   ;;  %v2986_v28 = vld [vmem:[%s4619_s1 + $0x4] ss:$8 sps:$4 sm:$0xff]  }
   0xa   :  { %v2982_v25 = vld [vmem:[%s4619_s1 + $0x114] ss:$8 sps:$4 sm:$0xff]   ;;  %v2985_v27 = vld [vmem:[%s4619_s1 + $0x110] ss:$8 sps:$4 sm:$0xff]   ;;  %v2988_v29 = vld [vmem:[%s4619_s1 + $0x104] ss:$8 sps:$4 sm:$0xff]  }
   0xb   :  { %1780 = vmatpush1.bf16.msra.mxu0 %v2960_v10  ;;  %v2990_v30 = vld [vmem:[%s4619_s1] ss:$8 sps:$4 sm:$0xff]   ;;  %v2992_v32 = vld [vmem:[%s4619_s1 + $0xf4] ss:$8 sps:$4 sm:$0xff]   ;;  %v2996_v34 = vld [vmem:[%s4619_s1 + $0xf0] ss:$8 sps:$4 sm:$0xff]  }
   0xc   :  { %1881 = vmatpush1.bf16.msra.mxu1 %v2961_v11  ;;  %1781 = vmatprep.subr.bf16.mxu0 %v2962_v12  ;;  %v2991_v31 = vld [vmem:[%s4619_s1 + $0x100] ss:$8 sps:$4 sm:$0xff]   ;;  %v2994_v33 = vld [vmem:[%s4619_s1 + $0x1f4] ss:$8 sps:$4 sm:$0xff]   ;;  %v2997_v35 = vld [vmem:[%s4619_s1 + $0x1f0] ss:$8 sps:$4 sm:$0xff]  }
   0xd   :  { %1882 = vmatprep.subr.bf16.mxu1 %v2964_v13  ;;  %v2998_v36 = vld [vmem:[%s4619_s1 + $0xe4] ss:$8 sps:$4 sm:$0xff]   ;;  %v3002_v38 = vld [vmem:[%s4619_s1 + $0xe0] ss:$8 sps:$4 sm:$0xff]   ;;  %v3004_v40 = vld [vmem:[%s4619_s1 + $0xd4] ss:$8 sps:$4 sm:$0xff]  }
   0xe   :  { %v3000_v37 = vld [vmem:[%s4619_s1 + $0x1e4] ss:$8 sps:$4 sm:$0xff]   ;;  %v3003_v39 = vld [vmem:[%s4619_s1 + $0x1e0] ss:$8 sps:$4 sm:$0xff]   ;;  %v3006_v41 = vld [vmem:[%s4619_s1 + $0x1d4] ss:$8 sps:$4 sm:$0xff]  }
   0xf   :  { %1782 = vmatpush1.bf16.msra.mxu0 %v2966_v14  ;;  %v3008_v42 = vld [vmem:[%s4619_s1 + $0xd0] ss:$8 sps:$4 sm:$0xff]   ;;  %v3010_v44 = vld [vmem:[%s4619_s1 + $0xc4] ss:$8 sps:$4 sm:$0xff]   ;;  %v3014_v46 = vld [vmem:[%s4619_s1 + $0xc0] ss:$8 sps:$4 sm:$0xff]  }
  0x10   :  { %1883 = vmatpush1.bf16.msra.mxu1 %v2967_v15  ;;  %1783 = vmatprep.subr.bf16.mxu0 %v2968_v16  ;;  %v3009_v43 = vld [vmem:[%s4619_s1 + $0x1d0] ss:$8 sps:$4 sm:$0xff]   ;;  %v3012_v45 = vld [vmem:[%s4619_s1 + $0x1c4] ss:$8 sps:$4 sm:$0xff]   ;;  %v3015_v47 = vld [vmem:[%s4619_s1 + $0x1c0] ss:$8 sps:$4 sm:$0xff]  }
  0x11   :  { %1884 = vmatprep.subr.bf16.mxu1 %v2970_v17  ;;  %v3016_v48 = vld [vmem:[%s4619_s1 + $0xb4] ss:$8 sps:$4 sm:$0xff]   ;;  %v3042_v49 = vld [vmem:[%s4620_s0 + $0x4] ss:$52 sps:$4 sm:$0xff]   ;;  %v3045_v51 = vld [vmem:[%s4620_s0 + $0xc] ss:$52 sps:$4 sm:$0xff]  }
  0x12   :  { %v3018_v50 = vld [vmem:[%s4619_s1 + $0x1b4] ss:$8 sps:$4 sm:$0xff]   ;;  %1807 = vmatprep.mubr.bf16.mxu0 %v3042_v49  ;;  %v3020_v52 = vld [vmem:[%s4619_s1 + $0xb0] ss:$8 sps:$4 sm:$0xff]   ;;  %1908 = vmatprep.mubr.bf16.mxu1 %v3045_v51  ;;  %v3022_v54 = vld [vmem:[%s4619_s1 + $0xa4] ss:$8 sps:$4 sm:$0xff]  }
  0x13   :  { %1784 = vmatpush1.bf16.msra.mxu0 %v2972_v18  ;;  %v3021_v53 = vld [vmem:[%s4619_s1 + $0x1b0] ss:$8 sps:$4 sm:$0xff]   ;;  %v3024_v55 = vld [vmem:[%s4619_s1 + $0x1a4] ss:$8 sps:$4 sm:$0xff]   ;;  %v3026_v56 = vld [vmem:[%s4619_s1 + $0xa0] ss:$8 sps:$4 sm:$0xff]  }
  0x14   :  { %1885 = vmatpush1.bf16.msra.mxu1 %v2973_v19  ;;  %1785 = vmatprep.subr.bf16.mxu0 %v2974_v20  ;;  %v3027_v57 = vld [vmem:[%s4619_s1 + $0x1a0] ss:$8 sps:$4 sm:$0xff]   ;;  %v3028_v58 = vld [vmem:[%s4619_s1 + $0x94] ss:$8 sps:$4 sm:$0xff]   ;;  %v3032_v60 = vld [vmem:[%s4619_s1 + $0x90] ss:$8 sps:$4 sm:$0xff]  }
  0x15   :  { %1886 = vmatprep.subr.bf16.mxu1 %v2976_v21  ;;  %v3030_v59 = vld [vmem:[%s4619_s1 + $0x194] ss:$8 sps:$4 sm:$0xff]   ;;  %v3033_v61 = vld [vmem:[%s4619_s1 + $0x190] ss:$8 sps:$4 sm:$0xff]   ;;  %v3034_v62 = vld [vmem:[%s4619_s1 + $0x84] ss:$8 sps:$4 sm:$0xff]  }
  0x16   :  { %v3036_v63 = vld [vmem:[%s4619_s1 + $0x184] ss:$8 sps:$4 sm:$0xff]   ;;  %v3038_v0 = vld [vmem:[%s4619_s1 + $0x80] ss:$8 sps:$4 sm:$0xff]   ;;  %v3048_v2 = vld [vmem:[%s4619_s1 + $0x274] ss:$8 sps:$4 sm:$0xff]  }
  0x17   :  { %1786 = vmatpush1.bf16.msra.mxu0 %v2978_v22  ;;  %v3039_v1 = vld [vmem:[%s4619_s1 + $0x180] ss:$8 sps:$4 sm:$0xff]   ;;  %v3051_v3 = vld [vmem:[%s4619_s1 + $0x374] ss:$8 sps:$4 sm:$0xff]   ;;  %v3046_v6 = vld [vmem:[%s4619_s1 + $0x270] ss:$8 sps:$4 sm:$0xff]  }
  0x18   :  { %1887 = vmatpush1.bf16.msra.mxu1 %v2979_v23  ;;  %1787 = vmatprep.subr.bf16.mxu0 %v2980_v24  ;;  %v3040_v4 = vld [vmem:[%s4620_s0] ss:$52 sps:$4 sm:$0xff]   ;;  %v3043_v5 = vld [vmem:[%s4620_s0 + $0x8] ss:$52 sps:$4 sm:$0xff]   ;;  %v3049_v7 = vld [vmem:[%s4619_s1 + $0x370] ss:$8 sps:$4 sm:$0xff]  }
  0x19   :  { %1888 = vmatprep.subr.bf16.mxu1 %v2982_v25  ;;  %v3054_v8 = vld [vmem:[%s4619_s1 + $0x264] ss:$8 sps:$4 sm:$0xff]   ;;  %v3067_v11 = vld [vmem:[%s4620_s0 + $0x74] ss:$52 sps:$4 sm:$0xff]   ;;  %v3058_v16 = vld [vmem:[%s4619_s1 + $0x250] ss:$8 sps:$4 sm:$0xff]  }
  0x1a   :  { %v3057_v9 = vld [vmem:[%s4619_s1 + $0x364] ss:$8 sps:$4 sm:$0xff]   ;;  %v3052_v12 = vld [vmem:[%s4619_s1 + $0x260] ss:$8 sps:$4 sm:$0xff]   ;;  %v3060_v14 = vld [vmem:[%s4619_s1 + $0x254] ss:$8 sps:$4 sm:$0xff]  }
  0x1b   :  { %1788 = vmatpush1.bf16.msra.mxu0 %v2984_v26  ;;  %v3064_v10 = vld [vmem:[%s4620_s0 + $0x6c] ss:$52 sps:$4 sm:$0xff]   ;;  %v3063_v15 = vld [vmem:[%s4619_s1 + $0x354] ss:$8 sps:$4 sm:$0xff]   ;;  %v3075_v18 = vld [vmem:[%s4620_s0 + $0x70] ss:$52 sps:$4 sm:$0xff]  }
  0x1c   :  { %1889 = vmatpush1.bf16.msra.mxu1 %v2985_v27  ;;  %1789 = vmatprep.subr.bf16.mxu0 %v2986_v28  ;;  %v3055_v13 = vld [vmem:[%s4619_s1 + $0x360] ss:$8 sps:$4 sm:$0xff]   ;;  %v3061_v19 = vld [vmem:[%s4619_s1 + $0x350] ss:$8 sps:$4 sm:$0xff]   ;;  %v3071_v20 = vld [vmem:[%s4619_s1 + $0x244] ss:$8 sps:$4 sm:$0xff]  }
  0x1d   :  { %1890 = vmatprep.subr.bf16.mxu1 %v2988_v29  ;;  %v3066_v17 = vld [vmem:[%s4620_s0 + $0x68] ss:$52 sps:$4 sm:$0xff]   ;;  %v3074_v21 = vld [vmem:[%s4619_s1 + $0x344] ss:$8 sps:$4 sm:$0xff]   ;;  %v3076_v28 = vld [vmem:[%s4619_s1 + $0x230] ss:$8 sps:$4 sm:$0xff]  }
  0x1e   :  { %v3082_v22 = vld [vmem:[%s4620_s0 + $0xd4] ss:$52 sps:$4 sm:$0xff]   ;;  %v3085_v23 = vld [vmem:[%s4620_s0 + $0xdc] ss:$52 sps:$4 sm:$0xff]   ;;  %vm4513_vm3 = vmor %vm2589_vm2, %vm2588_vm1  ;;  %vm2604_vm5 = vcmask 520196  }
  0x1f   :  { %1790 = vmatpush1.bf16.msra.mxu0 %v2990_v30  ;;  %v3069_v24 = vld [vmem:[%s4619_s1 + $0x240] ss:$8 sps:$4 sm:$0xff]   ;;  %v3078_v26 = vld [vmem:[%s4619_s1 + $0x234] ss:$8 sps:$4 sm:$0xff]   ;;  %v3084_v29 = vld [vmem:[%s4620_s0 + $0xd0] ss:$52 sps:$4 sm:$0xff]  }
  0x20   :  { %1891 = vmatpush1.bf16.msra.mxu1 %v2991_v31  ;;  %1791 = vmatprep.subr.bf16.mxu0 %v2992_v32  ;;  %v3072_v25 = vld [vmem:[%s4619_s1 + $0x340] ss:$8 sps:$4 sm:$0xff]   ;;  %v3081_v27 = vld [vmem:[%s4619_s1 + $0x334] ss:$8 sps:$4 sm:$0xff]   ;;  %v3093_v30 = vld [vmem:[%s4620_s0 + $0xd8] ss:$52 sps:$4 sm:$0xff]  }
  0x21   :  { %1892 = vmatprep.subr.bf16.mxu1 %v2994_v33  ;;  %v3079_v31 = vld [vmem:[%s4619_s1 + $0x330] ss:$8 sps:$4 sm:$0xff]   ;;  %v3089_v32 = vld [vmem:[%s4619_s1 + $0x224] ss:$8 sps:$4 sm:$0xff]   ;;  %v3108_v49 = vld [vmem:[%s4619_s1 + $0x300] ss:$8 sps:$4 sm:$0xff]  }
  0x22   :  { %v3092_v33 = vld [vmem:[%s4619_s1 + $0x324] ss:$8 sps:$4 sm:$0xff]   ;;  %v3117_v51 = vld [vmem:[%s4619_s1 + $0x3f4] ss:$8 sps:$4 sm:$0xff]   ;;  %vm2605_vm6 = vmor %vm2604_vm5, %vm2603_vm4 }
  0x23   :  { %1792 = vmatpush2.bf16.msra.mxu0 %v2996_v34  ;;  %v3100_v34 = vld [vmem:[%s4620_s0 + $0x13c] ss:$52 sps:$4 sm:$0xff]  }
  0x24   :  { %1893 = vmatpush2.bf16.msra.mxu1 %v2997_v35  ;;  %1793 = vmatprep.subr.bf16.mxu0 %v2998_v36  ;;  %v3103_v35 = vld [vmem:[%s4620_s0 + $0x144] ss:$52 sps:$4 sm:$0xff]   ;;  %v3087_v36 = vld [vmem:[%s4619_s1 + $0x220] ss:$8 sps:$4 sm:$0xff]  }
  0x25   :  { %1894 = vmatprep.subr.bf16.mxu1 %v3000_v37  ;;  %v3090_v37 = vld [vmem:[%s4619_s1 + $0x320] ss:$8 sps:$4 sm:$0xff]  }
  0x27   :  { %1794 = vmatpush2.bf16.msra.mxu0 %v3002_v38  ;;  %v3096_v38 = vld [vmem:[%s4619_s1 + $0x214] ss:$8 sps:$4 sm:$0xff]  }
  0x28   :  { %1895 = vmatpush2.bf16.msra.mxu1 %v3003_v39  ;;  %1795 = vmatprep.subr.bf16.mxu0 %v3004_v40  ;;  %v3099_v39 = vld [vmem:[%s4619_s1 + $0x314] ss:$8 sps:$4 sm:$0xff]   ;;  %v3094_v40 = vld [vmem:[%s4619_s1 + $0x210] ss:$8 sps:$4 sm:$0xff]  }
  0x29   :  { %1896 = vmatprep.subr.bf16.mxu1 %v3006_v41  ;;  %v3102_v41 = vld [vmem:[%s4620_s0 + $0x138] ss:$52 sps:$4 sm:$0xff]  }
  0x2b   :  { %1796 = vmatpush2.bf16.msra.mxu0 %v3008_v42  ;;  %v3111_v42 = vld [vmem:[%s4620_s0 + $0x140] ss:$52 sps:$4 sm:$0xff]  }
  0x2c   :  { %1897 = vmatpush2.bf16.msra.mxu1 %v3009_v43  ;;  %1797 = vmatprep.subr.bf16.mxu0 %v3010_v44  ;;  %v3097_v43 = vld [vmem:[%s4619_s1 + $0x310] ss:$8 sps:$4 sm:$0xff]   ;;  %v3107_v44 = vld [vmem:[%s4619_s1 + $0x204] ss:$8 sps:$4 sm:$0xff]  }
  0x2d   :  { %1898 = vmatprep.subr.bf16.mxu1 %v3012_v45  ;;  %v3110_v45 = vld [vmem:[%s4619_s1 + $0x304] ss:$8 sps:$4 sm:$0xff]  }
  0x2f   :  { %1798 = vmatpush2.bf16.msra.mxu0 %v3014_v46  ;;  %v3118_v46 = vld [vmem:[%s4620_s0 + $0x1a4] ss:$52 sps:$4 sm:$0xff]  }
  0x30   :  { %1899 = vmatpush2.bf16.msra.mxu1 %v3015_v47  ;;  %1799 = vmatprep.subr.bf16.mxu0 %v3016_v48  ;;  %v3121_v47 = vld [vmem:[%s4620_s0 + $0x1ac] ss:$52 sps:$4 sm:$0xff]  }
  0x31   :  { %1900 = vmatprep.subr.bf16.mxu1 %v3018_v50  ;;  %v3105_v48 = vld [vmem:[%s4619_s1 + $0x200] ss:$8 sps:$4 sm:$0xff]   ;;  %v3114_v50 = vld [vmem:[%s4619_s1 + $0x2f4] ss:$8 sps:$4 sm:$0xff]  }
  0x33   :  { %1800 = vmatpush2.bf16.msra.mxu0 %v3020_v52  ;;  %v3112_v52 = vld [vmem:[%s4619_s1 + $0x2f0] ss:$8 sps:$4 sm:$0xff]  }
  0x34   :  { %1901 = vmatpush2.bf16.msra.mxu1 %v3021_v53  ;;  %1801 = vmatprep.subr.bf16.mxu0 %v3022_v54  ;;  %v3120_v53 = vld [vmem:[%s4620_s0 + $0x1a0] ss:$52 sps:$4 sm:$0xff]   ;;  %v3129_v54 = vld [vmem:[%s4620_s0 + $0x1a8] ss:$52 sps:$4 sm:$0xff]  }
  0x35   :  { %1902 = vmatprep.subr.bf16.mxu1 %v3024_v55  ;;  %v3115_v55 = vld [vmem:[%s4619_s1 + $0x3f0] ss:$8 sps:$4 sm:$0xff]  }
  0x37   :  { %1802 = vmatpush2.bf16.msra.mxu0 %v3026_v56  ;;  %v3125_v56 = vld [vmem:[%s4619_s1 + $0x2e4] ss:$8 sps:$4 sm:$0xff]  }
  0x38   :  { %1903 = vmatpush2.bf16.msra.mxu1 %v3027_v57  ;;  %1803 = vmatprep.subr.bf16.mxu0 %v3028_v58  ;;  %v3128_v57 = vld [vmem:[%s4619_s1 + $0x3e4] ss:$8 sps:$4 sm:$0xff]  }
  0x39   :  { %1904 = vmatprep.subr.bf16.mxu1 %v3030_v59  ;;  %v3136_v58 = vld [vmem:[%s4620_s0 + $0x20c] ss:$52 sps:$4 sm:$0xff]  }
  0x3a   :  { %v3123_v59 = vld [vmem:[%s4619_s1 + $0x2e0] ss:$8 sps:$4 sm:$0xff]  }
  0x3b   :  { %1804 = vmatpush2.bf16.msra.mxu0 %v3032_v60  ;;  %v3139_v60 = vld [vmem:[%s4620_s0 + $0x214] ss:$52 sps:$4 sm:$0xff]  }
  0x3c   :  { %1905 = vmatpush2.bf16.msra.mxu1 %v3033_v61  ;;  %1805 = vmatprep.subr.bf16.mxu0 %v3034_v62  ;;  %v3126_v61 = vld [vmem:[%s4619_s1 + $0x3e0] ss:$8 sps:$4 sm:$0xff]   ;;  %v3132_v62 = vld [vmem:[%s4619_s1 + $0x2d4] ss:$8 sps:$4 sm:$0xff]  }
  0x3d   :  { %1906 = vmatprep.subr.bf16.mxu1 %v3036_v63  ;;  %v3135_v63 = vld [vmem:[%s4619_s1 + $0x3d4] ss:$8 sps:$4 sm:$0xff]  }
  0x3f   :  { %1806 = vmatpush2.bf16.msra.mxu0 %v3038_v0  ;;  %v3138_v0 = vld [vmem:[%s4620_s0 + $0x208] ss:$52 sps:$4 sm:$0xff]  }
  0x40   :  { %1907 = vmatpush2.bf16.msra.mxu1 %v3039_v1  ;;  %1977 = vmatprep.subr.bf16.mxu0 %v3048_v2  ;;  %v3147_v1 = vld [vmem:[%s4620_s0 + $0x210] ss:$52 sps:$4 sm:$0xff]  }
  0x41   :  { %2078 = vmatprep.subr.bf16.mxu1 %v3051_v3  ;;  %v99_v2 = vld [vmem:[%s4620_s0 + $0x270] sm:$0x11]  ;;  %v100_v3 = vld [vmem:[%s4620_s0 + $0x278] sm:$0x11] }
  0x42   :  { %1808 = vmatmul.mubr.bf16.vlgmr.msra.gmra.mxu0 %v3040_v4  ;;  %v3130_v4 = vld [vmem:[%s4619_s1 + $0x2d0] ss:$8 sps:$4 sm:$0xff]  }
  0x43   :  { %1909 = vmatmul.mubr.bf16.vlgmr.msra.gmra.mxu1 %v3043_v5  ;;  %1978 = vmatpush1.bf16.msra.mxu0 %v3046_v6  ;;  %v3133_v5 = vld [vmem:[%s4619_s1 + $0x3d0] ss:$8 sps:$4 sm:$0xff]   ;;  %v3143_v6 = vld [vmem:[%s4619_s1 + $0x2c4] ss:$8 sps:$4 sm:$0xff]  }
  0x44   :  { %2079 = vmatpush1.bf16.msra.mxu1 %v3049_v7  ;;  %1979 = vmatprep.subr.bf16.mxu0 %v3054_v8  ;;  %v3146_v7 = vld [vmem:[%s4619_s1 + $0x3c4] ss:$8 sps:$4 sm:$0xff]   ;;  %v2690_v8 = vcombine.high %v99_v2, %v99_v2 }
  0x45   :  { %2080 = vmatprep.subr.bf16.mxu1 %v3057_v9  ;;  %1817 = vmatprep.mubr.bf16.mxu0 %v3064_v10  ;;  %v2692_v9 = vcombine.high %v100_v3, %v100_v3  ;;  %v3141_v10 = vld [vmem:[%s4619_s1 + $0x2c0] ss:$8 sps:$4 sm:$0xff]  }
  0x46   :  { %1918 = vmatprep.mubr.bf16.mxu1 %v3067_v11  ;;  %v3144_v11 = vld [vmem:[%s4619_s1 + $0x3c0] ss:$8 sps:$4 sm:$0xff]  }
  0x47   :  { %1980 = vmatpush1.bf16.msra.mxu0 %v3052_v12  ;;  %v3150_v12 = vld [vmem:[%s4619_s1 + $0x2b4] ss:$8 sps:$4 sm:$0xff]  }
  0x48   :  { %2081 = vmatpush1.bf16.msra.mxu1 %v3055_v13  ;;  %1981 = vmatprep.subr.bf16.mxu0 %v3060_v14  ;;  %v3153_v13 = vld [vmem:[%s4619_s1 + $0x3b4] ss:$8 sps:$4 sm:$0xff]   ;;  %v3148_v14 = vld [vmem:[%s4619_s1 + $0x2b0] ss:$8 sps:$4 sm:$0xff]  }
  0x49   :  { %2082 = vmatprep.subr.bf16.mxu1 %v3063_v15  ;;  %v2689_v15 = vcombine.low %v99_v2, %v99_v2  ;;  %v3224_v2 = vld [vmem:[%s4619_s1 + $0x420] ss:$8 sps:$4 sm:$0xff]  }
  0x4a   :  { %1818 = vmatmul.mubr.bf16.gmra.mxu0 %v3066_v17  ;;  %v3151_v17 = vld [vmem:[%s4619_s1 + $0x3b0] ss:$8 sps:$4 sm:$0xff]  }
  0x4b   :  { %1919 = vmatmul.mubr.bf16.gmra.mxu1 %v3075_v18  ;;  %1982 = vmatpush1.bf16.msra.mxu0 %v3058_v16  ;;  %v2691_v16 = vcombine.low %v100_v3, %v100_v3  ;;  %v3158_v18 = vld [vmem:[%s4619_s1 + $0x2a4] ss:$8 sps:$4 sm:$0xff]   ;;  %v3227_v3 = vld [vmem:[%s4619_s1 + $0x520] ss:$8 sps:$4 sm:$0xff]  }
  0x4c   :  { %2083 = vmatpush1.bf16.msra.mxu1 %v3061_v19  ;;  %1983 = vmatprep.subr.bf16.mxu0 %v3071_v20  ;;  %v3161_v19 = vld [vmem:[%s4619_s1 + $0x3a4] ss:$8 sps:$4 sm:$0xff]   ;;  %v3178_v20 = vld [vmem:[%s4620_s0 + $0x14] ss:$52 sps:$4 sm:$0xff]  }
  0x4d   :  { %2084 = vmatprep.subr.bf16.mxu1 %v3074_v21  ;;  %1827 = vmatprep.mubr.bf16.mxu0 %v3082_v22  ;;  %v3181_v21 = vld [vmem:[%s4620_s0 + $0x1c] ss:$52 sps:$4 sm:$0xff]   ;;  %v3156_v22 = vld [vmem:[%s4619_s1 + $0x2a0] ss:$8 sps:$4 sm:$0xff]  }
  0x4e   :  { %1928 = vmatprep.mubr.bf16.mxu1 %v3085_v23  ;;  %v3159_v23 = vld [vmem:[%s4619_s1 + $0x3a0] ss:$8 sps:$4 sm:$0xff]  }
  0x4f   :  { %1984 = vmatpush1.bf16.msra.mxu0 %v3069_v24  ;;  %v3165_v24 = vld [vmem:[%s4619_s1 + $0x294] ss:$8 sps:$4 sm:$0xff]  }
  0x50   :  { %2085 = vmatpush1.bf16.msra.mxu1 %v3072_v25  ;;  %1985 = vmatprep.subr.bf16.mxu0 %v3078_v26  ;;  %v3168_v25 = vld [vmem:[%s4619_s1 + $0x394] ss:$8 sps:$4 sm:$0xff]   ;;  %v3163_v26 = vld [vmem:[%s4619_s1 + $0x290] ss:$8 sps:$4 sm:$0xff]  }
  0x51   :  { %2086 = vmatprep.subr.bf16.mxu1 %v3081_v27  ;;  %v3166_v27 = vld [vmem:[%s4619_s1 + $0x390] ss:$8 sps:$4 sm:$0xff]  }
  0x52   :  { %1828 = vmatmul.mubr.bf16.gmra.mxu0 %v3084_v29  ;;  %v3175_v29 = vld [vmem:[%s4619_s1 + $0x384] ss:$8 sps:$4 sm:$0xff]  }
  0x53   :  { %1929 = vmatmul.mubr.bf16.gmra.mxu1 %v3093_v30  ;;  %1986 = vmatpush1.bf16.msra.mxu0 %v3076_v28  ;;  %v3172_v28 = vld [vmem:[%s4619_s1 + $0x284] ss:$8 sps:$4 sm:$0xff]   ;;  %v3170_v30 = vld [vmem:[%s4619_s1 + $0x280] ss:$8 sps:$4 sm:$0xff]  }
  0x54   :  { %2087 = vmatpush1.bf16.msra.mxu1 %v3079_v31  ;;  %1987 = vmatprep.subr.bf16.mxu0 %v3089_v32  ;;  %v3173_v31 = vld [vmem:[%s4619_s1 + $0x380] ss:$8 sps:$4 sm:$0xff]   ;;  %v3176_v32 = vld [vmem:[%s4620_s0 + $0x10] ss:$52 sps:$4 sm:$0xff]  }
  0x55   :  { %2088 = vmatprep.subr.bf16.mxu1 %v3092_v33  ;;  %1837 = vmatprep.mubr.bf16.mxu0 %v3100_v34  ;;  %v3184_v33 = vld [vmem:[%s4619_s1 + $0x474] ss:$8 sps:$4 sm:$0xff]  }
  0x56   :  { %1938 = vmatprep.mubr.bf16.mxu1 %v3103_v35  ;;  %v3187_v34 = vld [vmem:[%s4619_s1 + $0x574] ss:$8 sps:$4 sm:$0xff]   ;;  %v3179_v35 = vld [vmem:[%s4620_s0 + $0x18] ss:$52 sps:$4 sm:$0xff]  }
  0x57   :  { %1988 = vmatpush1.bf16.msra.mxu0 %v3087_v36  ;;  %v3182_v36 = vld [vmem:[%s4619_s1 + $0x470] ss:$8 sps:$4 sm:$0xff]  }
  0x58   :  { %2089 = vmatpush1.bf16.msra.mxu1 %v3090_v37  ;;  %1989 = vmatprep.subr.bf16.mxu0 %v3096_v38  ;;  %v3185_v37 = vld [vmem:[%s4619_s1 + $0x570] ss:$8 sps:$4 sm:$0xff]   ;;  %v3190_v38 = vld [vmem:[%s4619_s1 + $0x464] ss:$8 sps:$4 sm:$0xff]  }
  0x59   :  { %2090 = vmatprep.subr.bf16.mxu1 %v3099_v39  ;;  %v3193_v39 = vld [vmem:[%s4619_s1 + $0x564] ss:$8 sps:$4 sm:$0xff]  }
  0x5a   :  { %1838 = vmatmul.mubr.bf16.gmra.mxu0 %v3102_v41  ;;  %v3203_v41 = vld [vmem:[%s4620_s0 + $0x84] ss:$52 sps:$4 sm:$0xff]  }
  0x5b   :  { %1939 = vmatmul.mubr.bf16.gmra.mxu1 %v3111_v42  ;;  %1990 = vmatpush1.bf16.msra.mxu0 %v3094_v40  ;;  %v3194_v40 = vld [vmem:[%s4620_s0 + $0x7c] ss:$52 sps:$4 sm:$0xff]   ;;  %v3188_v42 = vld [vmem:[%s4619_s1 + $0x460] ss:$8 sps:$4 sm:$0xff]  }
  0x5c   :  { %2091 = vmatpush1.bf16.msra.mxu1 %v3097_v43  ;;  %1991 = vmatprep.subr.bf16.mxu0 %v3107_v44  ;;  %v3191_v43 = vld [vmem:[%s4619_s1 + $0x560] ss:$8 sps:$4 sm:$0xff]   ;;  %v3196_v44 = vld [vmem:[%s4620_s0 + $0x78] ss:$52 sps:$4 sm:$0xff]  }
  0x5d   :  { %2092 = vmatprep.subr.bf16.mxu1 %v3110_v45  ;;  %1847 = vmatprep.mubr.bf16.mxu0 %v3118_v46  ;;  %v3199_v45 = vld [vmem:[%s4619_s1 + $0x454] ss:$8 sps:$4 sm:$0xff]  }
  0x5e   :  { %1948 = vmatprep.mubr.bf16.mxu1 %v3121_v47  ;;  %v3202_v46 = vld [vmem:[%s4619_s1 + $0x554] ss:$8 sps:$4 sm:$0xff]   ;;  %v3197_v47 = vld [vmem:[%s4619_s1 + $0x450] ss:$8 sps:$4 sm:$0xff]  }
  0x5f   :  { %1992 = vmatpush1.bf16.msra.mxu0 %v3105_v48  ;;  %v3205_v48 = vld [vmem:[%s4620_s0 + $0x80] ss:$52 sps:$4 sm:$0xff]  }
  0x60   :  { %2093 = vmatpush1.bf16.msra.mxu1 %v3108_v49  ;;  %1993 = vmatprep.subr.bf16.mxu0 %v3114_v50  ;;  %v3200_v49 = vld [vmem:[%s4619_s1 + $0x550] ss:$8 sps:$4 sm:$0xff]   ;;  %v3208_v50 = vld [vmem:[%s4619_s1 + $0x444] ss:$8 sps:$4 sm:$0xff]  }
  0x61   :  { %2094 = vmatprep.subr.bf16.mxu1 %v3117_v51  ;;  %v3211_v51 = vld [vmem:[%s4619_s1 + $0x544] ss:$8 sps:$4 sm:$0xff]  }
  0x62   :  { %1848 = vmatmul.mubr.bf16.gmra.mxu0 %v3120_v53  ;;  %v3221_v53 = vld [vmem:[%s4620_s0 + $0xec] ss:$52 sps:$4 sm:$0xff]  }
  0x63   :  { %1949 = vmatmul.mubr.bf16.gmra.mxu1 %v3129_v54  ;;  %1994 = vmatpush2.bf16.msra.mxu0 %v3112_v52  ;;  %v3212_v52 = vld [vmem:[%s4620_s0 + $0xe4] ss:$52 sps:$4 sm:$0xff]   ;;  %v3206_v54 = vld [vmem:[%s4619_s1 + $0x440] ss:$8 sps:$4 sm:$0xff]  }
  0x64   :  { %2095 = vmatpush2.bf16.msra.mxu1 %v3115_v55  ;;  %1995 = vmatprep.subr.bf16.mxu0 %v3125_v56  ;;  %v3209_v55 = vld [vmem:[%s4619_s1 + $0x540] ss:$8 sps:$4 sm:$0xff]  }
  0x65   :  { %2096 = vmatprep.subr.bf16.mxu1 %v3128_v57  ;;  %1857 = vmatprep.mubr.bf16.mxu0 %v3136_v58  ;;  %v3214_v56 = vld [vmem:[%s4620_s0 + $0xe0] ss:$52 sps:$4 sm:$0xff]  }
  0x66   :  { %1958 = vmatprep.mubr.bf16.mxu1 %v3139_v60  ;;  %v3217_v57 = vld [vmem:[%s4619_s1 + $0x434] ss:$8 sps:$4 sm:$0xff]  }
  0x67   :  { %1996 = vmatpush2.bf16.msra.mxu0 %v3123_v59  ;;  %v3220_v58 = vld [vmem:[%s4619_s1 + $0x534] ss:$8 sps:$4 sm:$0xff]   ;;  %v3215_v59 = vld [vmem:[%s4619_s1 + $0x430] ss:$8 sps:$4 sm:$0xff]  }
  0x68   :  { %2097 = vmatpush2.bf16.msra.mxu1 %v3126_v61  ;;  %1997 = vmatprep.subr.bf16.mxu0 %v3132_v62  ;;  %v3223_v60 = vld [vmem:[%s4620_s0 + $0xe8] ss:$52 sps:$4 sm:$0xff]   ;;  %v3218_v61 = vld [vmem:[%s4619_s1 + $0x530] ss:$8 sps:$4 sm:$0xff]   ;;  %v3226_v62 = vld [vmem:[%s4619_s1 + $0x424] ss:$8 sps:$4 sm:$0xff]  }
  0x69   :  { %2098 = vmatprep.subr.bf16.mxu1 %v3135_v63  ;;  %v3229_v63 = vld [vmem:[%s4619_s1 + $0x524] ss:$8 sps:$4 sm:$0xff]  }
  0x6a   :  { %1858 = vmatmul.mubr.bf16.gmra.mxu0 %v3138_v0  ;;  %v3230_v0 = vld [vmem:[%s4620_s0 + $0x14c] ss:$52 sps:$4 sm:$0xff]  }
  0x6b   :  { %1959 = vmatmul.mubr.bf16.gmra.mxu1 %v3147_v1  ;;  %1998 = vmatpush2.bf16.msra.mxu0 %v3130_v4  ;;  %v3239_v1 = vld [vmem:[%s4620_s0 + $0x154] ss:$52 sps:$4 sm:$0xff]  }
  0x6c   :  { %2099 = vmatpush2.bf16.msra.mxu1 %v3133_v5  ;;  %1999 = vmatprep.subr.bf16.mxu0 %v3143_v6  ;;  %v3235_v4 = vld [vmem:[%s4619_s1 + $0x414] ss:$8 sps:$4 sm:$0xff]  }
  0x6d   :  { %2100 = vmatprep.subr.bf16.mxu1 %v3146_v7  ;;  %1867 = vmatprep.mubr.bf16.mxu0 %v2690_v8  ;;  %v3238_v5 = vld [vmem:[%s4619_s1 + $0x514] ss:$8 sps:$4 sm:$0xff]   ;;  %v3233_v7 = vld [vmem:[%s4619_s1 + $0x410] ss:$8 sps:$4 sm:$0xff]  }
  0x6e   :  { %1968 = vmatprep.mubr.bf16.mxu1 %v2692_v9  ;;  %v3232_v6 = vld [vmem:[%s4620_s0 + $0x148] ss:$52 sps:$4 sm:$0xff]   ;;  %v3241_v8 = vld [vmem:[%s4620_s0 + $0x150] ss:$52 sps:$4 sm:$0xff]  }
  0x6f   :  { %2000 = vmatpush2.bf16.msra.mxu0 %v3141_v10  ;;  %v3236_v9 = vld [vmem:[%s4619_s1 + $0x510] ss:$8 sps:$4 sm:$0xff]   ;;  %v3244_v10 = vld [vmem:[%s4619_s1 + $0x404] ss:$8 sps:$4 sm:$0xff]  }
  0x70   :  { %2101 = vmatpush2.bf16.msra.mxu1 %v3144_v11  ;;  %2001 = vmatprep.subr.bf16.mxu0 %v3150_v12  ;;  %v3247_v11 = vld [vmem:[%s4619_s1 + $0x504] ss:$8 sps:$4 sm:$0xff]   ;;  %v3248_v12 = vld [vmem:[%s4620_s0 + $0x1b4] ss:$52 sps:$4 sm:$0xff]  }
  0x71   :  { %2102 = vmatprep.subr.bf16.mxu1 %v3153_v13  ;;  %v3257_v13 = vld [vmem:[%s4620_s0 + $0x1bc] ss:$52 sps:$4 sm:$0xff]  }
  0x72   :  { %1868 = vmatmul.mubr.bf16.gmra.mxu0 %v2689_v15  ;;  %v3245_v15 = vld [vmem:[%s4619_s1 + $0x500] ss:$8 sps:$4 sm:$0xff]  }
  0x73   :  { %1969 = vmatmul.mubr.bf16.gmra.mxu1 %v2691_v16  ;;  %2002 = vmatpush2.bf16.msra.mxu0 %v3148_v14  ;;  %v3242_v14 = vld [vmem:[%s4619_s1 + $0x400] ss:$8 sps:$4 sm:$0xff]   ;;  %v3253_v16 = vld [vmem:[%s4619_s1 + $0x4f4] ss:$8 sps:$4 sm:$0xff]  }
  0x74   :  { %2103 = vmatpush2.bf16.msra.mxu1 %v3151_v17  ;;  %2003 = vmatprep.subr.bf16.mxu0 %v3158_v18  ;;  %v3256_v17 = vld [vmem:[%s4619_s1 + $0x5f4] ss:$8 sps:$4 sm:$0xff]   ;;  %v3250_v18 = vld [vmem:[%s4620_s0 + $0x1b0] ss:$52 sps:$4 sm:$0xff]  }
  0x75   :  { %2104 = vmatprep.subr.bf16.mxu1 %v3161_v19  ;;  %2009 = vmatprep.mubr.bf16.mxu0 %v3178_v20  ;;  %v3251_v19 = vld [vmem:[%s4619_s1 + $0x4f0] ss:$8 sps:$4 sm:$0xff]  }
  0x76   :  { %2110 = vmatprep.mubr.bf16.mxu1 %v3181_v21  ;;  %v3254_v20 = vld [vmem:[%s4619_s1 + $0x5f0] ss:$8 sps:$4 sm:$0xff]  }
  0x77   :  { %2004 = vmatpush2.bf16.msra.mxu0 %v3156_v22  ;;  %v3259_v21 = vld [vmem:[%s4620_s0 + $0x1b8] ss:$52 sps:$4 sm:$0xff]  }
  0x78   :  { %2105 = vmatpush2.bf16.msra.mxu1 %v3159_v23  ;;  %2005 = vmatprep.subr.bf16.mxu0 %v3165_v24  ;;  %v3262_v22 = vld [vmem:[%s4619_s1 + $0x4e4] ss:$8 sps:$4 sm:$0xff]   ;;  %v3266_v24 = vld [vmem:[%s4620_s0 + $0x21c] ss:$52 sps:$4 sm:$0xff]  }
  0x79   :  { %2106 = vmatprep.subr.bf16.mxu1 %v3168_v25  ;;  %v3265_v23 = vld [vmem:[%s4619_s1 + $0x5e4] ss:$8 sps:$4 sm:$0xff]  }
  0x7a   :  { %v3275_v25 = vld [vmem:[%s4620_s0 + $0x224] ss:$52 sps:$4 sm:$0xff]  }
  0x7b   :  { %2006 = vmatpush2.bf16.msra.mxu0 %v3163_v26  ;;  %v3260_v26 = vld [vmem:[%s4619_s1 + $0x4e0] ss:$8 sps:$4 sm:$0xff]  }
  0x7c   :  { %2107 = vmatpush2.bf16.msra.mxu1 %v3166_v27  ;;  %2007 = vmatprep.subr.bf16.mxu0 %v3172_v28  ;;  %v3263_v27 = vld [vmem:[%s4619_s1 + $0x5e0] ss:$8 sps:$4 sm:$0xff]   ;;  %v3271_v28 = vld [vmem:[%s4619_s1 + $0x4d4] ss:$8 sps:$4 sm:$0xff]  }
  0x7d   :  { %2108 = vmatprep.subr.bf16.mxu1 %v3175_v29  ;;  %v3268_v29 = vld [vmem:[%s4620_s0 + $0x218] ss:$52 sps:$4 sm:$0xff]  }
  0x7f   :  { %2008 = vmatpush2.bf16.msra.mxu0 %v3170_v30  ;;  %v3274_v30 = vld [vmem:[%s4619_s1 + $0x5d4] ss:$8 sps:$4 sm:$0xff]  }
  0x80   :  { %2109 = vmatpush2.bf16.msra.mxu1 %v3173_v31  ;;  %2179 = vmatprep.subr.bf16.mxu0 %v3184_v33  ;;  %v3269_v31 = vld [vmem:[%s4619_s1 + $0x4d0] ss:$8 sps:$4 sm:$0xff]   ;;  %v3277_v33 = vld [vmem:[%s4620_s0 + $0x220] ss:$52 sps:$4 sm:$0xff]  }
  0x81   :  { %2280 = vmatprep.subr.bf16.mxu1 %v3187_v34  ;;  %v101_v34 = vld [vmem:[%s4620_s0 + $0x280] sm:$0x11] }
  0x82   :  { %2010 = vmatmul.mubr.bf16.vlgmr.msra.gmra.mxu0 %v3176_v32  ;;  %v3272_v32 = vld [vmem:[%s4619_s1 + $0x5d0] ss:$8 sps:$4 sm:$0xff]  }
  0x83   :  { %2111 = vmatmul.mubr.bf16.vlgmr.msra.gmra.mxu1 %v3179_v35  ;;  %2180 = vmatpush1.bf16.msra.mxu0 %v3182_v36  ;;  %v102_v35 = vld [vmem:[%s4620_s0 + $0x288] sm:$0x11] }
  0x84   :  { %2281 = vmatpush1.bf16.msra.mxu1 %v3185_v37  ;;  %2181 = vmatprep.subr.bf16.mxu0 %v3190_v38  ;;  %v3280_v36 = vld [vmem:[%s4619_s1 + $0x4c4] ss:$8 sps:$4 sm:$0xff]   ;;  %v2694_v38 = vcombine.high %v101_v34, %v101_v34 }
  0x85   :  { %2282 = vmatprep.subr.bf16.mxu1 %v3193_v39  ;;  %2019 = vmatprep.mubr.bf16.mxu0 %v3194_v40  ;;  %v3283_v37 = vld [vmem:[%s4619_s1 + $0x5c4] ss:$8 sps:$4 sm:$0xff]   ;;  %v2696_v39 = vcombine.high %v102_v35, %v102_v35  ;;  %v3278_v40 = vld [vmem:[%s4619_s1 + $0x4c0] ss:$8 sps:$4 sm:$0xff]  }
  0x86   :  { %2120 = vmatprep.mubr.bf16.mxu1 %v3203_v41  ;;  %v3281_v41 = vld [vmem:[%s4619_s1 + $0x5c0] ss:$8 sps:$4 sm:$0xff]  }
  0x87   :  { %2182 = vmatpush1.bf16.msra.mxu0 %v3188_v42  ;;  %v3288_v42 = vld [vmem:[%s4619_s1 + $0x4b4] ss:$8 sps:$4 sm:$0xff]  }
  0x88   :  { %2283 = vmatpush1.bf16.msra.mxu1 %v3191_v43  ;;  %2183 = vmatprep.subr.bf16.mxu0 %v3199_v45  ;;  %v3291_v43 = vld [vmem:[%s4619_s1 + $0x5b4] ss:$8 sps:$4 sm:$0xff]   ;;  %v3286_v45 = vld [vmem:[%s4619_s1 + $0x4b0] ss:$8 sps:$4 sm:$0xff]  }
  0x89   :  { %2284 = vmatprep.subr.bf16.mxu1 %v3202_v46  ;;  %v3289_v46 = vld [vmem:[%s4619_s1 + $0x5b0] ss:$8 sps:$4 sm:$0xff]  }
  0x8a   :  { %2020 = vmatmul.mubr.bf16.gmra.mxu0 %v3196_v44  ;;  %v2693_v44 = vcombine.low %v101_v34, %v101_v34  ;;  %v3371_v34 = vmov 0  }
  0x8b   :  { %2121 = vmatmul.mubr.bf16.gmra.mxu1 %v3205_v48  ;;  %2184 = vmatpush1.bf16.msra.mxu0 %v3197_v47  ;;  %v2695_v47 = vcombine.low %v102_v35, %v102_v35  ;;  %v3296_v48 = vld [vmem:[%s4619_s1 + $0x4a4] ss:$8 sps:$4 sm:$0xff]   ;;  %v308_v35 = vlaneseq }
  0x8c   :  { %2285 = vmatpush1.bf16.msra.mxu1 %v3200_v49  ;;  %2185 = vmatprep.subr.bf16.mxu0 %v3208_v50  ;;  %v3299_v49 = vld [vmem:[%s4619_s1 + $0x5a4] ss:$8 sps:$4 sm:$0xff]  }
  0x8d   :  { %2286 = vmatprep.subr.bf16.mxu1 %v3211_v51  ;;  %2029 = vmatprep.mubr.bf16.mxu0 %v3212_v52  ;;  %v3314_v50 = vld [vmem:[%s4620_s0 + $0x24] ss:$52 sps:$4 sm:$0xff]   ;;  %v3317_v51 = vld [vmem:[%s4620_s0 + $0x2c] ss:$52 sps:$4 sm:$0xff]  }
  0x8e   :  { %2130 = vmatprep.mubr.bf16.mxu1 %v3221_v53  ;;  %v3294_v52 = vld [vmem:[%s4619_s1 + $0x4a0] ss:$8 sps:$4 sm:$0xff]  }
  0x8f   :  { %2186 = vmatpush1.bf16.msra.mxu0 %v3206_v54  ;;  %v3297_v53 = vld [vmem:[%s4619_s1 + $0x5a0] ss:$8 sps:$4 sm:$0xff]   ;;  %v3302_v54 = vld [vmem:[%s4619_s1 + $0x494] ss:$8 sps:$4 sm:$0xff]  }
  0x90   :  { %2287 = vmatpush1.bf16.msra.mxu1 %v3209_v55  ;;  %2187 = vmatprep.subr.bf16.mxu0 %v3217_v57  ;;  %v3305_v55 = vld [vmem:[%s4619_s1 + $0x594] ss:$8 sps:$4 sm:$0xff]   ;;  %v3303_v57 = vld [vmem:[%s4619_s1 + $0x590] ss:$8 sps:$4 sm:$0xff]  }
  0x91   :  { %2288 = vmatprep.subr.bf16.mxu1 %v3220_v58  ;;  %v3308_v58 = vld [vmem:[%s4619_s1 + $0x484] ss:$8 sps:$4 sm:$0xff]  }
  0x92   :  { %2030 = vmatmul.mubr.bf16.gmra.mxu0 %v3214_v56  ;;  %v3300_v56 = vld [vmem:[%s4619_s1 + $0x490] ss:$8 sps:$4 sm:$0xff]  }
  0x93   :  { %2131 = vmatmul.mubr.bf16.gmra.mxu1 %v3223_v60  ;;  %2188 = vmatpush1.bf16.msra.mxu0 %v3215_v59  ;;  %v3311_v59 = vld [vmem:[%s4619_s1 + $0x584] ss:$8 sps:$4 sm:$0xff]   ;;  %v3306_v60 = vld [vmem:[%s4619_s1 + $0x480] ss:$8 sps:$4 sm:$0xff]  }
  0x94   :  { %2289 = vmatpush1.bf16.msra.mxu1 %v3218_v61  ;;  %2189 = vmatprep.subr.bf16.mxu0 %v3226_v62  ;;  %v3309_v61 = vld [vmem:[%s4619_s1 + $0x580] ss:$8 sps:$4 sm:$0xff]   ;;  %v3320_v62 = vld [vmem:[%s4619_s1 + $0x634] ss:$8 sps:$4 sm:$0xff]  }
  0x95   :  { %2290 = vmatprep.subr.bf16.mxu1 %v3229_v63  ;;  %2039 = vmatprep.mubr.bf16.mxu0 %v3230_v0  ;;  %v3312_v63 = vld [vmem:[%s4620_s0 + $0x20] ss:$52 sps:$4 sm:$0xff]   ;;  %v3315_v0 = vld [vmem:[%s4620_s0 + $0x28] ss:$52 sps:$4 sm:$0xff]  }
  0x96   :  { %2140 = vmatprep.mubr.bf16.mxu1 %v3239_v1  ;;  %v3318_v1 = vld [vmem:[%s4619_s1 + $0x630] ss:$8 sps:$4 sm:$0xff]  }
  0x97   :  { %2190 = vmatpush1.bf16.msra.mxu0 %v3224_v2  ;;  %v3321_v2 = vld [vmem:[%s4620_s0 + $0x8c] ss:$52 sps:$4 sm:$0xff]  }
  0x98   :  { %2291 = vmatpush1.bf16.msra.mxu1 %v3227_v3  ;;  %2191 = vmatprep.subr.bf16.mxu0 %v3235_v4  ;;  %v3323_v3 = vld [vmem:[%s4620_s0 + $0x94] ss:$52 sps:$4 sm:$0xff]   ;;  %v3329_v4 = vld [vmem:[%s4619_s1 + $0x624] ss:$8 sps:$4 sm:$0xff]  }
  0x99   :  { %2292 = vmatprep.subr.bf16.mxu1 %v3238_v5  ;;  %v3327_v5 = vld [vmem:[%s4619_s1 + $0x620] ss:$8 sps:$4 sm:$0xff]  }
  0x9a   :  { %2040 = vmatmul.mubr.bf16.gmra.mxu0 %v3232_v6  ;;  %v3344_v6 = vld [vmem:[%s4619_s1 + $0x614] ss:$8 sps:$4 sm:$0xff]  }
  0x9b   :  { %2141 = vmatmul.mubr.bf16.gmra.mxu1 %v3241_v8  ;;  %2192 = vmatpush1.bf16.msra.mxu0 %v3233_v7  ;;  %v3325_v7 = vld [vmem:[%s4620_s0 + $0x88] ss:$52 sps:$4 sm:$0xff]   ;;  %v3326_v8 = vld [vmem:[%s4620_s0 + $0x90] ss:$52 sps:$4 sm:$0xff]  }
  0x9c   :  { %2293 = vmatpush1.bf16.msra.mxu1 %v3236_v9  ;;  %2193 = vmatprep.subr.bf16.mxu0 %v3244_v10  ;;  %v3330_v9 = vld [vmem:[%s4620_s0 + $0xf4] ss:$52 sps:$4 sm:$0xff]   ;;  %v3332_v10 = vld [vmem:[%s4620_s0 + $0xfc] ss:$52 sps:$4 sm:$0xff]  }
  0x9d   :  { %2294 = vmatprep.subr.bf16.mxu1 %v3247_v11  ;;  %2049 = vmatprep.mubr.bf16.mxu0 %v3248_v12  ;;  %v3342_v11 = vld [vmem:[%s4619_s1 + $0x610] ss:$8 sps:$4 sm:$0xff]   ;;  %v3359_v12 = vld [vmem:[%s4619_s1 + $0x604] ss:$8 sps:$4 sm:$0xff]  }
  0x9e   :  { %2150 = vmatprep.mubr.bf16.mxu1 %v3257_v13  ;;  %v3357_v13 = vld [vmem:[%s4619_s1 + $0x600] ss:$8 sps:$4 sm:$0xff]  }
  0x9f   :  { %2194 = vmatpush1.bf16.msra.mxu0 %v3242_v14  ;;  %v3334_v14 = vld [vmem:[%s4620_s0 + $0xf0] ss:$52 sps:$4 sm:$0xff]  }
  0xa0   :  { %2295 = vmatpush1.bf16.msra.mxu1 %v3245_v15  ;;  %2195 = vmatprep.subr.bf16.mxu0 %v3253_v16  ;;  %v3335_v15 = vld [vmem:[%s4620_s0 + $0xf8] ss:$52 sps:$4 sm:$0xff]   ;;  %v3336_v16 = vld [vmem:[%s4620_s0 + $0x15c] ss:$52 sps:$4 sm:$0xff]  }
  0xa1   :  { %2296 = vmatprep.subr.bf16.mxu1 %v3256_v17  ;;  %v3338_v17 = vld [vmem:[%s4620_s0 + $0x164] ss:$52 sps:$4 sm:$0xff]  }
  0xa2   :  { %2050 = vmatmul.mubr.bf16.gmra.mxu0 %v3250_v18  ;;  %v3340_v18 = vld [vmem:[%s4620_s0 + $0x158] ss:$52 sps:$4 sm:$0xff]  }
  0xa3   :  { %2151 = vmatmul.mubr.bf16.gmra.mxu1 %v3259_v21  ;;  %2196 = vmatpush2.bf16.msra.mxu0 %v3251_v19  ;;  %v3341_v19 = vld [vmem:[%s4620_s0 + $0x160] ss:$52 sps:$4 sm:$0xff]  }
  0xa4   :  { %2297 = vmatpush2.bf16.msra.mxu1 %v3254_v20  ;;  %2197 = vmatprep.subr.bf16.mxu0 %v3262_v22  ;;  %v3345_v20 = vld [vmem:[%s4620_s0 + $0x1c4] ss:$52 sps:$4 sm:$0xff]   ;;  %v3347_v21 = vld [vmem:[%s4620_s0 + $0x1cc] ss:$52 sps:$4 sm:$0xff]  }
  0xa5   :  { %2298 = vmatprep.subr.bf16.mxu1 %v3265_v23  ;;  %2059 = vmatprep.mubr.bf16.mxu0 %v3266_v24  ;;  %v3349_v22 = vld [vmem:[%s4620_s0 + $0x1c0] ss:$52 sps:$4 sm:$0xff]   ;;  %v3350_v23 = vld [vmem:[%s4620_s0 + $0x1c8] ss:$52 sps:$4 sm:$0xff]  }
  0xa6   :  { %2160 = vmatprep.mubr.bf16.mxu1 %v3275_v25  ;;  %v3351_v24 = vld [vmem:[%s4620_s0 + $0x22c] ss:$52 sps:$4 sm:$0xff]   ;;  %v3353_v25 = vld [vmem:[%s4620_s0 + $0x234] ss:$52 sps:$4 sm:$0xff]  }
  0xa7   :  { %2198 = vmatpush2.bf16.msra.mxu0 %v3260_v26  ;;  %v103_v26 = vld [vmem:[%s4620_s0 + $0x290] sm:$0x11] }
  0xa8   :  { %2299 = vmatpush2.bf16.msra.mxu1 %v3263_v27  ;;  %2199 = vmatprep.subr.bf16.mxu0 %v3271_v28  ;;  %v104_v27 = vld [vmem:[%s4620_s0 + $0x298] sm:$0x11] }
  0xa9   :  { %2300 = vmatprep.subr.bf16.mxu1 %v3274_v30  ;;  %v3355_v28 = vld [vmem:[%s4620_s0 + $0x228] ss:$52 sps:$4 sm:$0xff]   ;;  %v2698_v30 = vcombine.high %v103_v26, %v103_v26 }
  0xaa   :  { %2060 = vmatmul.mubr.bf16.gmra.mxu0 %v3268_v29  ;;  %v3356_v29 = vld [vmem:[%s4620_s0 + $0x230] ss:$52 sps:$4 sm:$0xff]  }
  0xab   :  { %2161 = vmatmul.mubr.bf16.gmra.mxu1 %v3277_v33  ;;  %2200 = vmatpush2.bf16.msra.mxu0 %v3269_v31  ;;  %v2700_v31 = vcombine.high %v104_v27, %v104_v27  ;;  %v2699_v33 = vcombine.low %v104_v27, %v104_v27 }
  0xac   :  { %2301 = vmatpush2.bf16.msra.mxu1 %v3272_v32  ;;  %2201 = vmatprep.subr.bf16.mxu0 %v3280_v36  ;;  %v2697_v32 = vcombine.low %v103_v26, %v103_v26  ;;  %v3364_v36 = vld [vmem:[%s4620_s0 + $0x30] ss:$52 sps:$4 sm:$0xff]  }
  0xad   :  { %2302 = vmatprep.subr.bf16.mxu1 %v3283_v37  ;;  %2069 = vmatprep.mubr.bf16.mxu0 %v2694_v38  ;;  %v3365_v37 = vld [vmem:[%s4620_s0 + $0x1d0] ss:$52 sps:$4 sm:$0xff]   ;;  %v309_v38 = vshrl.u32 %v308_v35, 7 }
  0xae   :  { %2170 = vmatprep.mubr.bf16.mxu1 %v2696_v39 }
  0xaf   :  { %2202 = vmatpush2.bf16.msra.mxu0 %v3278_v40  ;;  %v310_v39 = vsub.s32 0, %v309_v38  ;;  %v306_v40 = vld [vmem:[%s4621_s2] sm:$0x3] }
  0xb0   :  { %2303 = vmatpush2.bf16.msra.mxu1 %v3281_v41  ;;  %2203 = vmatprep.subr.bf16.mxu0 %v3288_v42  ;;  %v314_v41 = vsub.s32 1, %v309_v38  ;;  %v3366_v42 = vld [vmem:[%s4620_s0 + $0x98] ss:$52 sps:$4 sm:$0xff]  }
  0xb1   :  { %2304 = vmatprep.subr.bf16.mxu1 %v3291_v43  ;;  %v3367_v43 = vld [vmem:[%s4620_s0 + $0x238] ss:$52 sps:$4 sm:$0xff]  }
  0xb2   :  { %2070 = vmatmul.mubr.bf16.gmra.mxu0 %v2693_v44  ;;  %v4243_v44 = vrot.slane %v306_v40, %v310_v39 }
  0xb3   :  { %2171 = vmatmul.mubr.bf16.gmra.mxu1 %v2695_v47  ;;  %2204 = vmatpush2.bf16.msra.mxu0 %v3286_v45  ;;  %v4245_v45 = vrot.slane %v306_v40, %v314_v41 }
  0xb4   :  { %2305 = vmatpush2.bf16.msra.mxu1 %v3289_v46  ;;  %2205 = vmatprep.subr.bf16.mxu0 %v3296_v48 }
  0xb5   :  { %2306 = vmatprep.subr.bf16.mxu1 %v3299_v49  ;;  %2211 = vmatprep.mubr.bf16.mxu0 %v3314_v50 }
  0xb6   :  { %2312 = vmatprep.mubr.bf16.mxu1 %v3317_v51 }
  0xb7   :  { %2206 = vmatpush2.bf16.msra.mxu0 %v3294_v52 }
  0xb8   :  { %2307 = vmatpush2.bf16.msra.mxu1 %v3297_v53  ;;  %2207 = vmatprep.subr.bf16.mxu0 %v3302_v54 }
  0xb9   :  { %2308 = vmatprep.subr.bf16.mxu1 %v3305_v55  ;;  %v3368_v55 = vld [vmem:[%s4620_s0 + $0x100] ss:$52 sps:$4 sm:$0xff]  }
  0xbb   :  { %2208 = vmatpush2.bf16.msra.mxu0 %v3300_v56  ;;  %v3369_v56 = vld [vmem:[%s4620_s0 + $0x2a0] ss:$0 sps:$4 sm:$0x11]  }
  0xbc   :  { %2309 = vmatpush2.bf16.msra.mxu1 %v3303_v57  ;;  %2209 = vmatprep.subr.bf16.mxu0 %v3308_v58 }
  0xbd   :  { %2310 = vmatprep.subr.bf16.mxu1 %v3311_v59 }
  0xbf   :  { %2210 = vmatpush2.bf16.msra.mxu0 %v3306_v60 }
  0xc0   :  { %2311 = vmatpush2.bf16.msra.mxu1 %v3309_v61  ;;  %2389 = vmatprep.subr.bf16.mxu0 %v3320_v62 }
  0xc1   :  { %2935 = vmatprep.subr.bf16.mxu1 %v3320_v62 }
  0xc2   :  { %2212 = vmatmul.mubr.bf16.vlgmr.msra.gmra.mxu0 %v3312_v63 }
  0xc3   :  { %2313 = vmatmul.mubr.bf16.vlgmr.msra.gmra.mxu1 %v3315_v0  ;;  %2390 = vmatpush1.bf16.msra.mxu0 %v3318_v1 }
  0xc4   :  { %2221 = vmatprep.mubr.bf16.mxu0 %v3321_v2  ;;  %2322 = vmatprep.mubr.bf16.mxu1 %v3323_v3 }
  0xc5   :  { %2939 = vmatpush1.bf16.msra.mxu1 %v3318_v1  ;;  %2391 = vmatprep.subr.bf16.mxu0 %v3329_v4 }
  0xc6   :  { %2936 = vmatprep.subr.bf16.mxu1 %v3329_v4 }
  0xc7   :  { %2392 = vmatpush1.bf16.msra.mxu0 %v3327_v5 }
  0xc8   :  { %2393 = vmatprep.subr.bf16.mxu0 %v3344_v6 }
  0xc9   :  { %2940 = vmatpush1.bf16.msra.mxu1 %v3327_v5 }
  0xca   :  { %2937 = vmatprep.subr.bf16.mxu1 %v3344_v6  ;;  %2222 = vmatmul.mubr.bf16.gmra.mxu0 %v3325_v7 }
  0xcb   :  { %2323 = vmatmul.mubr.bf16.gmra.mxu1 %v3326_v8  ;;  %2231 = vmatprep.mubr.bf16.mxu0 %v3330_v9  ;;  %v3370_v8 = vld [vmem:[%s4620_s0 + $0x168] ss:$52 sps:$4 sm:$0xff]  }
  0xcc   :  { %2332 = vmatprep.mubr.bf16.mxu1 %v3332_v10  ;;  %2394 = vmatpush1.bf16.msra.mxu0 %v3342_v11 }
  0xcd   :  { %2941 = vmatpush1.bf16.msra.mxu1 %v3342_v11  ;;  %2395 = vmatprep.subr.bf16.mxu0 %v3359_v12 }
  0xce   :  { %2938 = vmatprep.subr.bf16.mxu1 %v3359_v12 }
  0xd0   :  { %2396 = vmatpush1.bf16.msra.mxu0 %v3357_v13 }
  0xd1   :  { %2942 = vmatpush1.bf16.msra.mxu1 %v3357_v13 }
  0xd2   :  { %2232 = vmatmul.mubr.bf16.gmra.mxu0 %v3334_v14 }
  0xd3   :  { %2333 = vmatmul.mubr.bf16.gmra.mxu1 %v3335_v15  ;;  %2241 = vmatprep.mubr.bf16.mxu0 %v3336_v16 }
  0xd4   :  { %2342 = vmatprep.mubr.bf16.mxu1 %v3338_v17 }
  0xda   :  { %2242 = vmatmul.mubr.bf16.gmra.mxu0 %v3340_v18 }
  0xdb   :  { %2343 = vmatmul.mubr.bf16.gmra.mxu1 %v3341_v19  ;;  %2251 = vmatprep.mubr.bf16.mxu0 %v3345_v20 }
  0xdc   :  { %2352 = vmatprep.mubr.bf16.mxu1 %v3347_v21 }
  0xe2   :  { %2252 = vmatmul.mubr.bf16.gmra.mxu0 %v3349_v22 }
  0xe3   :  { %2353 = vmatmul.mubr.bf16.gmra.mxu1 %v3350_v23  ;;  %2261 = vmatprep.mubr.bf16.mxu0 %v3351_v24 }
  0xe4   :  { %2362 = vmatprep.mubr.bf16.mxu1 %v3353_v25 }
  0xea   :  { %2262 = vmatmul.mubr.bf16.gmra.mxu0 %v3355_v28 }
  0xeb   :  { %2363 = vmatmul.mubr.bf16.gmra.mxu1 %v3356_v29  ;;  %2271 = vmatprep.mubr.bf16.mxu0 %v2698_v30 }
  0xec   :  { %2372 = vmatprep.mubr.bf16.mxu1 %v2700_v31 }
  0xf2   :  { %2272 = vmatmul.mubr.bf16.gmra.mxu0 %v2697_v32 }
  0xf3   :  { %2373 = vmatmul.mubr.bf16.gmra.mxu1 %v2699_v33  ;;  %2413 = vmatprep.mubr.bf16.mxu0 %v3371_v34 }
  0xf4   :  { %2453 = vmatprep.mubr.bf16.mxu1 %v3371_v34 }
  0xfa   :  { %2902 = vmatmul.mubr.msk.bf16.vlgmr.msra.gmra.mxu0 %vm1753_vm0, %v3364_v36 }
  0xfb   :  { %2906 = vmatmul.mubr.msk.bf16.vlgmr.msra.gmra.mxu1 %vm1753_vm0, %v3365_v37  ;;  %2423 = vmatprep.mubr.bf16.mxu0 %v3371_v34 }
  0xfc   :  { %2463 = vmatprep.mubr.bf16.mxu1 %v3371_v34 }
 0x102   :  { %v1809_v46 = vpop.f32.mrf.mxu0  ;;  %2903 = vmatmul.mubr.msk.bf16.gmra.mxu0 %vm1753_vm0, %v3366_v42 }
 0x103   :  { %2907 = vmatmul.mubr.msk.bf16.gmra.mxu1 %vm1753_vm0, %v3367_v43  ;;  %v1910_v47 = vpop.f32.mrf.mxu1  ;;  %v1810_v48 = vadd.f32 %v1809_v46, %v4243_v44  ;;  %2433 = vmatprep.mubr.bf16.mxu0 %v3371_v34 }
 0x104   :  { %2473 = vmatprep.mubr.bf16.mxu1 %v3371_v34  ;;  %v1811_v49 = vpop.f32.mrf.mxu0 }
 0x105   :  { %v1912_v50 = vpop.f32.mrf.mxu1  ;;  %v1812_v51 = vadd.f32 %v1811_v49, %v4245_v45  ;;  %v4251_v52 = vadd.f32 %v1910_v47, %v1810_v48 }
 0x106   :  { %v1813_v53 = vpop.f32.mrf.mxu0 }
 0x107   :  { %v1914_v54 = vpop.f32.mrf.mxu1  ;;  %v1814_v57 = vadd.f32 %v1813_v53, %v4243_v44  ;;  %v4260_v58 = vadd.f32 %v1912_v50, %v1812_v51 }
 0x108   :  { %v1815_v59 = vpop.f32.mrf.mxu0 }
 0x109   :  { %v1916_v60 = vpop.f32.mrf.mxu1  ;;  %v1816_v61 = vadd.f32 %v1815_v59, %v4245_v45  ;;  %v4263_v62 = vadd.f32 %v1914_v54, %v1814_v57 }
 0x10a   :  { %2904 = vmatmul.mubr.msk.bf16.gmra.mxu0 %vm1753_vm0, %v3368_v55  ;;  %v1819_v63 = vpop.f32.mrf.mxu0 }
 0x10b   :  { %2908 = vmatmul.mubr.msk.bf16.gmra.mxu1 %vm1753_vm0, %v3369_v56  ;;  %v1920_v0 = vpop.f32.mrf.mxu1  ;;  %v4267_v1 = vadd.f32 %v1916_v60, %v1816_v61  ;;  %v1820_v2 = vadd.f32 %v1819_v63, %v4243_v44  ;;  %2443 = vmatprep.mubr.bf16.mxu0 %v3371_v34 }
 0x10c   :  { %v1821_v3 = vpop.f32.mrf.mxu0 }
 0x10d   :  { %v1922_v4 = vpop.f32.mrf.mxu1  ;;  %v1822_v5 = vadd.f32 %v1821_v3, %v4245_v45  ;;  %v4271_v6 = vadd.f32 %v1920_v0, %v1820_v2 }
 0x10e   :  { %v1823_v7 = vpop.f32.mrf.mxu0 }
 0x10f   :  { %v1924_v9 = vpop.f32.mrf.mxu1  ;;  %v1824_v10 = vadd.f32 %v1823_v7, %v4243_v44  ;;  %v4277_v11 = vadd.f32 %v1922_v4, %v1822_v5 }
 0x110   :  { %v1825_v12 = vpop.f32.mrf.mxu0 }
 0x111   :  { %v1926_v13 = vpop.f32.mrf.mxu1  ;;  %v1826_v14 = vadd.f32 %v1825_v12, %v4245_v45  ;;  %v4280_v15 = vadd.f32 %v1924_v9, %v1824_v10 }
 0x112   :  { %2905 = vmatmul.mubr.msk.bf16.gmra.mxu0 %vm1753_vm0, %v3370_v8  ;;  %v1829_v16 = vpop.f32.mrf.mxu0 }
 0x113   :  { %v1930_v17 = vpop.f32.mrf.mxu1  ;;  %v1830_v18 = vadd.f32 %v1829_v16, %v4243_v44  ;;  %v4284_v19 = vadd.f32 %v1926_v13, %v1826_v14 }
 0x114   :  { %v1831_v20 = vpop.f32.mrf.mxu0 }
 0x115   :  { %v1932_v21 = vpop.f32.mrf.mxu1  ;;  %v1832_v22 = vadd.f32 %v1831_v20, %v4245_v45  ;;  %v4287_v23 = vadd.f32 %v1930_v17, %v1830_v18 }
 0x116   :  { %v1833_v24 = vpop.f32.mrf.mxu0 }
 0x117   :  { %v1934_v25 = vpop.f32.mrf.mxu1  ;;  %v1834_v26 = vadd.f32 %v1833_v24, %v4243_v44  ;;  %v4290_v27 = vadd.f32 %v1932_v21, %v1832_v22 }
 0x118   :  { %v1835_v28 = vpop.f32.mrf.mxu0 }
 0x119   :  { %v1936_v29 = vpop.f32.mrf.mxu1  ;;  %v1836_v30 = vadd.f32 %v1835_v28, %v4245_v45  ;;  %v4293_v31 = vadd.f32 %v1934_v25, %v1834_v26 }
 0x11a   :  { %v1839_v32 = vpop.f32.mrf.mxu0 }
 0x11b   :  { %v1940_v33 = vpop.f32.mrf.mxu1  ;;  %v1840_v34 = vadd.f32 %v1839_v32, %v4243_v44  ;;  %v4296_v35 = vadd.f32 %v1936_v29, %v1836_v30 }
 0x11c   :  { %v1841_v36 = vpop.f32.mrf.mxu0 }
 0x11d   :  { %v1942_v37 = vpop.f32.mrf.mxu1  ;;  %v1842_v38 = vadd.f32 %v1841_v36, %v4245_v45  ;;  %v4299_v39 = vadd.f32 %v1940_v33, %v1840_v34 }
 0x11e   :  { %v1843_v40 = vpop.f32.mrf.mxu0 }
 0x11f   :  { %v1944_v41 = vpop.f32.mrf.mxu1  ;;  %v1844_v42 = vadd.f32 %v1843_v40, %v4243_v44  ;;  %v4302_v43 = vadd.f32 %v1942_v37, %v1842_v38 }
 0x120   :  { %v1845_v46 = vpop.f32.mrf.mxu0 }
 0x121   :  { %v1946_v47 = vpop.f32.mrf.mxu1  ;;  %v1846_v48 = vadd.f32 %v1845_v46, %v4245_v45  ;;  %v4305_v49 = vadd.f32 %v1944_v41, %v1844_v42 }
 0x122   :  { %v1849_v50 = vpop.f32.mrf.mxu0 }
 0x123   :  { %v1950_v51 = vpop.f32.mrf.mxu1  ;;  %v1850_v53 = vadd.f32 %v1849_v50, %v4243_v44  ;;  %v4308_v54 = vadd.f32 %v1946_v47, %v1846_v48 }
 0x124   :  { %v1851_v55 = vpop.f32.mrf.mxu0 }
 0x125   :  { %v1952_v56 = vpop.f32.mrf.mxu1  ;;  %v1852_v57 = vadd.f32 %v1851_v55, %v4245_v45  ;;  %v4311_v59 = vadd.f32 %v1950_v51, %v1850_v53 }
 0x126   :  { %v1853_v60 = vpop.f32.mrf.mxu0 }
 0x127   :  { %v1954_v61 = vpop.f32.mrf.mxu1  ;;  %v1854_v63 = vadd.f32 %v1853_v60, %v4243_v44  ;;  %v4314_v0 = vadd.f32 %v1952_v56, %v1852_v57 }
 0x128   :  { %v1855_v2 = vpop.f32.mrf.mxu0 }
 0x129   :  { %v1956_v3 = vpop.f32.mrf.mxu1  ;;  %v1856_v4 = vadd.f32 %v1855_v2, %v4245_v45  ;;  %v4317_v5 = vadd.f32 %v1954_v61, %v1854_v63 }
 0x12a   :  { %v1859_v7 = vpop.f32.mrf.mxu0 }
 0x12b   :  { %v1960_v8 = vpop.f32.mrf.mxu1  ;;  %v1860_v9 = vadd.f32 %v1859_v7, %v4243_v44  ;;  %v4320_v10 = vadd.f32 %v1956_v3, %v1856_v4 }
 0x12c   :  { %v1861_v12 = vpop.f32.mrf.mxu0 }
 0x12d   :  { %v1962_v13 = vpop.f32.mrf.mxu1  ;;  %v1862_v14 = vadd.f32 %v1861_v12, %v4245_v45  ;;  %v4323_v16 = vadd.f32 %v1960_v8, %v1860_v9 }
 0x12e   :  { %v1863_v17 = vpop.f32.mrf.mxu0 }
 0x12f   :  { %v1964_v18 = vpop.f32.mrf.mxu1  ;;  %v1864_v20 = vadd.f32 %v1863_v17, %v4243_v44  ;;  %v4326_v21 = vadd.f32 %v1962_v13, %v1862_v14 }
 0x130   :  { %v1865_v22 = vpop.f32.mrf.mxu0 }
 0x131   :  { %v1966_v24 = vpop.f32.mrf.mxu1  ;;  %v1866_v25 = vadd.f32 %v1865_v22, %v4245_v45  ;;  %v4329_v26 = vadd.f32 %v1964_v18, %v1864_v20 }
 0x132   :  { %v1869_v28 = vpop.f32.mrf.mxu0 }
 0x133   :  { %v1970_v29 = vpop.f32.mrf.mxu1  ;;  %v1870_v30 = vadd.f32 %v1869_v28, %v4243_v44  ;;  %v4332_v32 = vadd.f32 %v1966_v24, %v1866_v25 }
 0x134   :  { %v1871_v33 = vpop.f32.mrf.mxu0 }
 0x135   :  { %v1972_v34 = vpop.f32.mrf.mxu1  ;;  %v1872_v36 = vadd.f32 %v1871_v33, %v4245_v45  ;;  %v4335_v37 = vadd.f32 %v1970_v29, %v1870_v30 }
 0x136   :  { %v1873_v38 = vpop.f32.mrf.mxu0 }
 0x137   :  { %v1974_v40 = vpop.f32.mrf.mxu1  ;;  %v4337_v41 = vadd.f32 %v1972_v34, %v1872_v36 }
 0x138   :  { %v1874_v42 = vpop.f32.mrf.mxu0 }
 0x139   :  { %v1975_v46 = vpop.f32.mrf.mxu1 }
 0x142   :  { %v2011_v47 = vpop.f32.mrf.mxu0 }
 0x143   :  { %v2112_v48 = vpop.f32.mrf.mxu1  ;;  %v2012_v50 = vadd.f32 %v2011_v47, %v4251_v52 }
 0x144   :  { %v2013_v51 = vpop.f32.mrf.mxu0 }
 0x145   :  { %v2114_v44 = vpop.f32.mrf.mxu1  ;;  %v2014_v53 = vadd.f32 %v2013_v51, %v4260_v58  ;;  %v4341_v55 = vadd.f32 %v2112_v48, %v2012_v50 }
 0x146   :  { %v2015_v56 = vpop.f32.mrf.mxu0 }
 0x147   :  { %v2116_v45 = vpop.f32.mrf.mxu1  ;;  %v2016_v57 = vadd.f32 %v2015_v56, %v4263_v62  ;;  %v4344_v60 = vadd.f32 %v2114_v44, %v2014_v53 }
 0x148   :  { %v2017_v61 = vpop.f32.mrf.mxu0 }
 0x149   :  { %v2118_v63 = vpop.f32.mrf.mxu1  ;;  %v2018_v2 = vadd.f32 %v2017_v61, %v4267_v1  ;;  %v4347_v3 = vadd.f32 %v2116_v45, %v2016_v57 }
 0x14a   :  { %v2021_v4 = vpop.f32.mrf.mxu0 }
 0x14b   :  { %v2122_v52 = vpop.f32.mrf.mxu1  ;;  %v2022_v7 = vadd.f32 %v2021_v4, %v4271_v6  ;;  %v4350_v8 = vadd.f32 %v2118_v63, %v2018_v2 }
 0x14c   :  { %v2023_v58 = vpop.f32.mrf.mxu0 }
 0x14d   :  { %v2124_v9 = vpop.f32.mrf.mxu1  ;;  %v2024_v12 = vadd.f32 %v2023_v58, %v4277_v11  ;;  %v4353_v13 = vadd.f32 %v2122_v52, %v2022_v7 }
 0x14e   :  { %v2025_v62 = vpop.f32.mrf.mxu0 }
 0x14f   :  { %v2126_v14 = vpop.f32.mrf.mxu1  ;;  %v2026_v17 = vadd.f32 %v2025_v62, %v4280_v15  ;;  %v4356_v18 = vadd.f32 %v2124_v9, %v2024_v12 }
 0x150   :  { %v2027_v1 = vpop.f32.mrf.mxu0 }
 0x151   :  { %v2128_v20 = vpop.f32.mrf.mxu1  ;;  %v2028_v22 = vadd.f32 %v2027_v1, %v4284_v19  ;;  %v4359_v24 = vadd.f32 %v2126_v14, %v2026_v17 }
 0x152   :  { %v2031_v6 = vpop.f32.mrf.mxu0 }
 0x153   :  { %v2132_v25 = vpop.f32.mrf.mxu1  ;;  %v2032_v28 = vadd.f32 %v2031_v6, %v4287_v23  ;;  %v4362_v29 = vadd.f32 %v2128_v20, %v2028_v22 }
 0x154   :  { %v2033_v11 = vpop.f32.mrf.mxu0 }
 0x155   :  { %v2134_v30 = vpop.f32.mrf.mxu1  ;;  %v2034_v33 = vadd.f32 %v2033_v11, %v4290_v27  ;;  %v4365_v34 = vadd.f32 %v2132_v25, %v2032_v28 }
 0x156   :  { %v2035_v15 = vpop.f32.mrf.mxu0 }
 0x157   :  { %v2136_v36 = vpop.f32.mrf.mxu1  ;;  %v2036_v38 = vadd.f32 %v2035_v15, %v4293_v31  ;;  %v4368_v40 = vadd.f32 %v2134_v30, %v2034_v33 }
 0x158   :  { %v2037_v19 = vpop.f32.mrf.mxu0 }
 0x159   :  { %v2138_v42 = vpop.f32.mrf.mxu1  ;;  %v2038_v46 = vadd.f32 %v2037_v19, %v4296_v35  ;;  %v4371_v47 = vadd.f32 %v2136_v36, %v2036_v38 }
 0x15a   :  { %v2041_v23 = vpop.f32.mrf.mxu0 }
 0x15b   :  { %4623 = vst [vmem:[#allocation2_spill] sm:$0xff] %v4371_v47  ;;  %v2142_v48 = vpop.f32.mrf.mxu1  ;;  %v2042_v50 = vadd.f32 %v2041_v23, %v4299_v39  ;;  %v4374_v51 = vadd.f32 %v2138_v42, %v2038_v46 }
 0x15c   :  { %v2043_v27 = vpop.f32.mrf.mxu0 }
 0x15d   :  { %4624 = vst [vmem:[#allocation3_spill] sm:$0xff] %v4374_v51  ;;  %v2144_v44 = vpop.f32.mrf.mxu1  ;;  %v2044_v53 = vadd.f32 %v2043_v27, %v4302_v43  ;;  %v4377_v56 = vadd.f32 %v2142_v48, %v2042_v50 }
 0x15e   :  { %v2045_v31 = vpop.f32.mrf.mxu0 }
 0x15f   :  { %4625 = vst [vmem:[#allocation4_spill] sm:$0xff] %v4377_v56  ;;  %v2146_v45 = vpop.f32.mrf.mxu1  ;;  %v2046_v57 = vadd.f32 %v2045_v31, %v4305_v49  ;;  %v4380_v61 = vadd.f32 %v2144_v44, %v2044_v53 }
 0x160   :  { %v2047_v35 = vpop.f32.mrf.mxu0 }
 0x161   :  { %4626 = vst [vmem:[#allocation5_spill] sm:$0xff] %v4380_v61  ;;  %v2148_v63 = vpop.f32.mrf.mxu1  ;;  %v2048_v2 = vadd.f32 %v2047_v35, %v4308_v54  ;;  %v4383_v4 = vadd.f32 %v2146_v45, %v2046_v57 }
 0x162   :  { %v2051_v39 = vpop.f32.mrf.mxu0 }
 0x163   :  { %4627 = vst [vmem:[#allocation6_spill] sm:$0xff] %v4383_v4  ;;  %v2152_v52 = vpop.f32.mrf.mxu1  ;;  %v2052_v7 = vadd.f32 %v2051_v39, %v4311_v59  ;;  %v4386_v58 = vadd.f32 %v2148_v63, %v2048_v2 }
 0x164   :  { %v2053_v43 = vpop.f32.mrf.mxu0 }
 0x165   :  { %4628 = vst [vmem:[#allocation7_spill] sm:$0xff] %v4386_v58  ;;  %v2154_v9 = vpop.f32.mrf.mxu1  ;;  %v2054_v12 = vadd.f32 %v2053_v43, %v4314_v0  ;;  %v4389_v62 = vadd.f32 %v2152_v52, %v2052_v7 }
 0x166   :  { %v2055_v49 = vpop.f32.mrf.mxu0 }
 0x167   :  { %v2156_v14 = vpop.f32.mrf.mxu1  ;;  %v2056_v17 = vadd.f32 %v2055_v49, %v4317_v5  ;;  %v4392_v1 = vadd.f32 %v2154_v9, %v2054_v12 }
 0x168   :  { %v2057_v54 = vpop.f32.mrf.mxu0 }
 0x169   :  { %v2158_v20 = vpop.f32.mrf.mxu1  ;;  %v2058_v22 = vadd.f32 %v2057_v54, %v4320_v10  ;;  %v4395_v6 = vadd.f32 %v2156_v14, %v2056_v17 }
 0x16a   :  { %v2061_v59 = vpop.f32.mrf.mxu0 }
 0x16b   :  { %v2162_v25 = vpop.f32.mrf.mxu1  ;;  %v2062_v28 = vadd.f32 %v2061_v59, %v4323_v16  ;;  %v4398_v11 = vadd.f32 %v2158_v20, %v2058_v22 }
 0x16c   :  { %v2063_v0 = vpop.f32.mrf.mxu0 }
 0x16d   :  { %v2164_v30 = vpop.f32.mrf.mxu1  ;;  %v2064_v33 = vadd.f32 %v2063_v0, %v4326_v21  ;;  %v4401_v15 = vadd.f32 %v2162_v25, %v2062_v28 }
 0x16e   :  { %v2065_v5 = vpop.f32.mrf.mxu0 }
 0x16f   :  { %v2166_v36 = vpop.f32.mrf.mxu1  ;;  %v2066_v38 = vadd.f32 %v2065_v5, %v4329_v26  ;;  %v4404_v19 = vadd.f32 %v2164_v30, %v2064_v33 }
 0x170   :  { %v2067_v10 = vpop.f32.mrf.mxu0 }
 0x171   :  { %v2168_v42 = vpop.f32.mrf.mxu1  ;;  %v2068_v46 = vadd.f32 %v2067_v10, %v4332_v32  ;;  %v4407_v23 = vadd.f32 %v2166_v36, %v2066_v38 }
 0x172   :  { %v2071_v16 = vpop.f32.mrf.mxu0 }
 0x173   :  { %v2172_v48 = vpop.f32.mrf.mxu1  ;;  %v2072_v50 = vadd.f32 %v2071_v16, %v4335_v37  ;;  %v4410_v27 = vadd.f32 %v2168_v42, %v2068_v46 }
 0x174   :  { %v2073_v21 = vpop.f32.mrf.mxu0 }
 0x175   :  { %v2174_v44 = vpop.f32.mrf.mxu1  ;;  %v2074_v53 = vadd.f32 %v2073_v21, %v4337_v41  ;;  %v4413_v31 = vadd.f32 %v2172_v48, %v2072_v50 }
 0x176   :  { %v2075_v26 = vpop.f32.mrf.mxu0 }
 0x177   :  { %4629 = vst [vmem:[#allocation8_spill] sm:$0xff] %v4413_v31  ;;  %v2176_v45 = vpop.f32.mrf.mxu1  ;;  %v4415_v57 = vadd.f32 %v2174_v44, %v2074_v53 }
 0x178   :  { %v2076_v35 = vpop.f32.mrf.mxu0 }
 0x179   :  { %4630 = vst [vmem:[#allocation9_spill] sm:$0xff] %v4415_v57  ;;  %v2177_v32 = vpop.f32.mrf.mxu1 }
 0x182   :  { %v2213_v63 = vpop.f32.mrf.mxu0 }
 0x183   :  { %v2314_v2 = vpop.f32.mrf.mxu1 }
 0x184   :  { %v2215_v39 = vpop.f32.mrf.mxu0 }
 0x185   :  { %v4417_v52 = vpop.f32.mrf.mxu1  ;;  %v2216_v51 = vadd.f32 %v2215_v39, %v4344_v60 }
 0x186   :  { %v2217_v37 = vpop.f32.mrf.mxu0 }
 0x187   :  { %v4419_v7 = vpop.f32.mrf.mxu1  ;;  %v2218_v57 = vadd.f32 %v2217_v37, %v4347_v3 }
 0x188   :  { %v2219_v43 = vpop.f32.mrf.mxu0 }
 0x189   :  { %v4421_v9 = vpop.f32.mrf.mxu1  ;;  %v2319_v3 = vadd.f32 %v4419_v7, %v2218_v57 }
 0x18a   :  { %v2223_v41 = vpop.f32.mrf.mxu0 }
 0x18b   :  { %v4423_v12 = vpop.f32.mrf.mxu1 }
 0x18c   :  { %v2225_v49 = vpop.f32.mrf.mxu0 }
 0x18d   :  { %v4425_v14 = vpop.f32.mrf.mxu1 }
 0x18e   :  { %v4427_v17 = vpop.f32.mrf.mxu0 }
 0x18f   :  { %v4429_v54 = vpop.f32.mrf.mxu1  ;;  %v2228_v37 = vadd.f32 %v4427_v17, %v4359_v24 }
 0x190   :  { %v4431_v20 = vpop.f32.mrf.mxu0 }
 0x191   :  { %v4433_v22 = vpop.f32.mrf.mxu1 }
 0x192   :  { %v4435_v59 = vpop.f32.mrf.mxu0 }
 0x193   :  { %v4437_v25 = vpop.f32.mrf.mxu1 }
 0x194   :  { %v4439_v28 = vpop.f32.mrf.mxu0 }
 0x195   :  { %v4441_v0 = vpop.f32.mrf.mxu1 }
 0x196   :  { %4631 = vst [vmem:[#allocation10_spill] sm:$0xff] %v4441_v0  ;;  %v4443_v30 = vpop.f32.mrf.mxu0  ;;  %v2214_v0 = vadd.f32 %v2213_v63, %v4341_v55  ;;  %v2317_v55 = vadd.f32 %v4417_v52, %v2216_v51 }
 0x197   :  { %4632 = vst [vmem:[#allocation11_spill] sm:$0xff] %v4443_v30  ;;  %v4445_v33 = vpop.f32.mrf.mxu1 }
 0x198   :  { %4633 = vst [vmem:[#allocation12_spill] sm:$0xff] %v4445_v33  ;;  %v4447_v5 = vpop.f32.mrf.mxu0  ;;  %v2315_v31 = vadd.f32 %v2314_v2, %v2214_v0 }
 0x199   :  { %4634 = vst [vmem:[#allocation13_spill] sm:$0xff] %v4447_v5  ;;  %v4449_v36 = vpop.f32.mrf.mxu1 }
 0x19a   :  { %4635 = vst [vmem:[#allocation14_spill] sm:$0xff] %v4449_v36  ;;  %v4451_v38 = vpop.f32.mrf.mxu0 }
 0x19b   :  { %4636 = vst [vmem:[#allocation15_spill] sm:$0xff] %v4451_v38  ;;  %v4453_v10 = vpop.f32.mrf.mxu1 }
 0x19c   :  { %4637 = vst [vmem:[#allocation16_spill] sm:$0xff] %v4453_v10  ;;  %v4455_v42 = vpop.f32.mrf.mxu0 }
 0x19d   :  { %4638 = vst [vmem:[#allocation17_spill] sm:$0xff] %v4455_v42  ;;  %v4457_v46 = vpop.f32.mrf.mxu1 }
 0x19e   :  { %4639 = vst [vmem:[#allocation18_spill] sm:$0xff] %v4457_v46  ;;  %v4459_v16 = vpop.f32.mrf.mxu0 }
 0x19f   :  { %4640 = vst [vmem:[#allocation19_spill] sm:$0xff] %v4459_v16  ;;  %v4461_v48 = vpop.f32.mrf.mxu1 }
 0x1a0   :  { %4641 = vst [vmem:[#allocation20_spill] sm:$0xff] %v4461_v48  ;;  %v4463_v50 = vpop.f32.mrf.mxu0 }
 0x1a1   :  { %4642 = vst [vmem:[#allocation21_spill] sm:$0xff] %v4463_v50  ;;  %v4465_v21 = vpop.f32.mrf.mxu1 }
 0x1a2   :  { %4643 = vst [vmem:[#allocation22_spill] sm:$0xff] %v4465_v21  ;;  %v2253_v44 = vpop.f32.mrf.mxu0 }
 0x1a3   :  { %v2354_v53 = vpop.f32.mrf.mxu1  ;;  %v2254_v5 = vadd.f32 %v2253_v44, %v4389_v62  ;;  %v2226_v62 = vadd.f32 %v2225_v49, %v4356_v18 }
 0x1a4   :  { %v2255_v26 = vpop.f32.mrf.mxu0 }
 0x1a5   :  { %v2356_v45 = vpop.f32.mrf.mxu1 }
 0x1a6   :  { %v2257_v35 = vpop.f32.mrf.mxu0 }
 0x1a7   :  { %v2358_v32 = vpop.f32.mrf.mxu1  ;;  %v2258_v60 = vadd.f32 %v2257_v35, %v4395_v6  ;;  %v2230_v6 = vadd.f32 %v4431_v20, %v4362_v29  ;;  %v2329_v29 = vadd.f32 %v4429_v54, %v2228_v37 }
 0x1a8   :  { %v2259_v58 = vpop.f32.mrf.mxu0 }
 0x1a9   :  { %v2360_v4 = vpop.f32.mrf.mxu1  ;;  %v2260_v51 = vadd.f32 %v2259_v58, %v4398_v11 }
 0x1aa   :  { %v2263_v10 = vpop.f32.mrf.mxu0 }
 0x1ab   :  { %v4467_v42 = vpop.f32.mrf.mxu1  ;;  %v2361_v20 = vadd.f32 %v2360_v4, %v2260_v51 }
 0x1ac   :  { %v2265_v46 = vpop.f32.mrf.mxu0 }
 0x1ad   :  { %v4469_v61 = vpop.f32.mrf.mxu1 }
 0x1ae   :  { %v4471_v16 = vpop.f32.mrf.mxu0 }
 0x1af   :  { %v4473_v48 = vpop.f32.mrf.mxu1  ;;  %v2268_v4 = vadd.f32 %v4471_v16, %v4407_v23 }
 0x1b0   :  { %4644 = vst [vmem:[#allocation23_spill] sm:$0xff] %v4473_v48  ;;  %v4475_v50 = vpop.f32.mrf.mxu0  ;;  %v2220_v48 = vadd.f32 %v2219_v43, %v4350_v8  ;;  %v2264_v43 = vadd.f32 %v2263_v10, %v4401_v15 }
 0x1b1   :  { %v4477_v21 = vpop.f32.mrf.mxu1 }
 0x1b2   :  { %4645 = vst [vmem:[#allocation24_spill] sm:$0xff] %v4477_v21  ;;  %v4479_v36 = vpop.f32.mrf.mxu0  ;;  %v2256_v21 = vadd.f32 %v2255_v26, %v4392_v1 }
 0x1b3   :  { %4646 = vst [vmem:[#allocation25_spill] sm:$0xff] %v4479_v36  ;;  %v4481_v33 = vpop.f32.mrf.mxu1 }
 0x1b4   :  { %4647 = vst [vmem:[#allocation26_spill] sm:$0xff] %v4481_v33  ;;  %v4483_v38 = vpop.f32.mrf.mxu0  ;;  %v2224_v33 = vadd.f32 %v2223_v41, %v4353_v13  ;;  %v2357_v1 = vadd.f32 %v2356_v45, %v2256_v21  ;;  %v2321_v13 = vadd.f32 %v4421_v9, %v2220_v48  ;;  %v2359_v9 = vadd.f32 %v2358_v32, %v2258_v60  ;;  %v4655_v60 = vld [vmem:[#allocation9_spill] sm:$0xff] }
 0x1b5   :  { %4648 = vst [vmem:[#allocation27_spill] sm:$0xff] %v4483_v38  ;;  %v4485_v56 = vpop.f32.mrf.mxu1  ;;  %v2266_v41 = vadd.f32 %v2265_v46, %v4404_v19  ;;  %v2331_v19 = vadd.f32 %v4433_v22, %v2230_v6  ;;  %v2270_v21 = vadd.f32 %v4475_v50, %v4410_v27  ;;  %v2236_v50 = vadd.f32 %v4439_v28, %v4368_v40  ;;  %v4657_v40 = vld [vmem:[#allocation2_spill] sm:$0xff]  ;;  %v4658_v28 = vld [vmem:[#allocation11_spill] sm:$0xff] }
 0x1b6   :  { %4649 = vst [vmem:[#allocation28_spill] sm:$0xff] %v4485_v56  ;;  %v2277_v30 = vpop.f32.mrf.mxu0  ;;  %v2355_v56 = vadd.f32 %v2354_v53, %v2254_v5  ;;  %v2325_v2 = vadd.f32 %v4423_v12, %v2224_v33  ;;  %v4652_v53 = vld [vmem:[#allocation8_spill] sm:$0xff] }
 0x1b7   :  { %v2378_v47 = vpop.f32.mrf.mxu1  ;;  %v2365_v30 = vadd.f32 %v4467_v42, %v2264_v43  ;;  %v2367_v48 = vadd.f32 %v4469_v61, %v2266_v41 }
 0x1b8   :  { %v2278_v36 = vpop.f32.mrf.mxu0 }
 0x1b9   :  { %v2379_v38 = vpop.f32.mrf.mxu1 }
 0x1ba   :  { %v2415_v47 = vpop.f32.mrf.mxu0  ;;  %v4653_v26 = vld [vmem:[#allocation25_spill] sm:$0xff] }
 0x1bb   :  { %v2455_v63 = vpop.f32.mrf.mxu1  ;;  %v2416_v8 = vadd.f32 %v2415_v47, %v2315_v31  ;;  %v2234_v31 = vadd.f32 %v4435_v59, %v4365_v34  ;;  %v2274_v45 = vadd.f32 %v4653_v26, %v4652_v53 }
 0x1bc   :  { %v2456_v39 = vadd.f32 %v2455_v63, %v2355_v56  ;;  %v2417_v18 = vpop.f32.mrf.mxu0  ;;  %v2327_v56 = vadd.f32 %v4425_v14, %v2226_v62  ;;  %v4656_v47 = vld [vmem:[#allocation27_spill] sm:$0xff] }
 0x1bd   :  { %v2457_v52 = vpop.f32.mrf.mxu1  ;;  %v2418_v57 = vadd.f32 %v2417_v18, %v2317_v55  ;;  %v2482_v58 = vmax.f32 %v2416_v8, 0.0  ;;  %v2335_v36 = vadd.f32 %v4437_v25, %v2234_v31  ;;  %v4654_v55 = vld [vmem:[#allocation23_spill] sm:$0xff]  ;;  %v2276_v63 = vadd.f32 %v4656_v47, %v4655_v60  ;;  %v4671_v47 = vld [vmem:[#allocation16_spill] sm:$0xff] }
 0x1be   :  { %v2458_v7 = vadd.f32 %v2457_v52, %v2357_v1  ;;  %v2419_v24 = vpop.f32.mrf.mxu0  ;;  %v2498_v11 = vmax.f32 %v2456_v39, 0.0  ;;  %v2369_v62 = vadd.f32 %v4654_v55, %v2268_v4  ;;  %v2238_v18 = vadd.f32 %v4658_v28, %v4657_v40  ;;  %v4659_v52 = vld [vmem:[#allocation24_spill] sm:$0xff]  ;;  %v4660_v31 = vld [vmem:[#allocation3_spill] sm:$0xff]  ;;  %v4674_v40 = vld [vmem:[#allocation18_spill] sm:$0xff] }
 0x1bf   :  { %v2459_v12 = vpop.f32.mrf.mxu1  ;;  %v2483_v49 = vmax.f32 %v2418_v57, 0.0  ;;  %v2420_v14 = vadd.f32 %v2419_v24, %v2319_v3  ;;  %v2371_v6 = vadd.f32 %v4659_v52, %v2270_v21  ;;  %v4662_v24 = vld [vmem:[#allocation26_spill] sm:$0xff]  ;;  %v4675_v52 = vld [vmem:[#allocation7_spill] sm:$0xff] }
 0x1c0   :  { %v2499_v17 = vmax.f32 %v2458_v7, 0.0  ;;  %v2460_v34 = vadd.f32 %v2459_v12, %v2359_v9  ;;  %v2421_v59 = vpop.f32.mrf.mxu0  ;;  %v4661_v9 = vld [vmem:[#allocation13_spill] sm:$0xff]  ;;  %v2375_v12 = vadd.f32 %v4662_v24, %v2274_v45 }
 0x1c1   :  { %v2461_v0 = vpop.f32.mrf.mxu1  ;;  %v2922_v33 = vpack.c.bf16 %v2483_v49, %v2482_v58  ;;  %v2422_v54 = vadd.f32 %v2421_v59, %v2321_v13  ;;  %v2484_v25 = vmax.f32 %v2420_v14, 0.0  ;;  %v2240_v41 = vadd.f32 %v4661_v9, %v4660_v31  ;;  %v4663_v49 = vld [vmem:[#allocation10_spill] sm:$0xff]  ;;  %v4677_v9 = vld [vmem:[#allocation20_spill] sm:$0xff] }
 0x1c2   :  { %v2930_v5 = vpack.c.bf16 %v2499_v17, %v2498_v11  ;;  %v2462_v38 = vadd.f32 %v2461_v0, %v2361_v20  ;;  %v2425_v10 = vpop.f32.mrf.mxu0  ;;  %v2500_v42 = vmax.f32 %v2460_v34, 0.0  ;;  %v2337_v17 = vadd.f32 %v4663_v49, %v2236_v50  ;;  %v4664_v0 = vld [vmem:[#allocation4_spill] sm:$0xff] }
 0x1c3   :  { %v2465_v46 = vpop.f32.mrf.mxu1  ;;  %2591 = vst.msk [vmem:[%s4622_s3] sm:$0xff] %vm4513_vm3, %v2922_v33  ;;  %v2426_v23 = vadd.f32 %v2425_v10, %v2325_v2  ;;  %v2485_v61 = vmax.f32 %v2422_v54, 0.0  ;;  %v4666_v33 = vld [vmem:[#allocation28_spill] sm:$0xff] }
 0x1c4   :  { %2599 = vst.msk [vmem:[%s4622_s3 + $0x40] sm:$0xff] %vm4513_vm3, %v2930_v5  ;;  %v2466_v22 = vadd.f32 %v2465_v46, %v2365_v30  ;;  %v2501_v16 = vmax.f32 %v2462_v38, 0.0  ;;  %v2427_v44 = vpop.f32.mrf.mxu0  ;;  %v4665_v30 = vld [vmem:[#allocation15_spill] sm:$0xff]  ;;  %v2377_v5 = vadd.f32 %v4666_v33, %v2276_v63 }
 0x1c5   :  { %v2467_v27 = vpop.f32.mrf.mxu1  ;;  %v2428_v35 = vadd.f32 %v2427_v44, %v2327_v56  ;;  %v2923_v3 = vpack.c.bf16 %v2485_v61, %v2484_v25  ;;  %v2486_v13 = vmax.f32 %v2426_v23, 0.0  ;;  %v4667_v23 = vld [vmem:[#allocation12_spill] sm:$0xff]  ;;  %v4668_v25 = vld [vmem:[#allocation14_spill] sm:$0xff]  ;;  %v4669_v44 = vld [vmem:[#allocation5_spill] sm:$0xff] }
 0x1c6   :  { %v2468_v32 = vadd.f32 %v2467_v27, %v2367_v48  ;;  %v2931_v1 = vpack.c.bf16 %v2501_v16, %v2500_v42  ;;  %v2429_v8 = vpop.f32.mrf.mxu0  ;;  %v2502_v2 = vmax.f32 %v2466_v22, 0.0  ;;  %v2339_v22 = vadd.f32 %v4667_v23, %v2238_v18  ;;  %v4670_v27 = vld [vmem:[#allocation17_spill] sm:$0xff] }
 0x1c7   :  { %v2469_v39 = vpop.f32.mrf.mxu1  ;;  %v2487_v37 = vmax.f32 %v2428_v35, 0.0  ;;  %2592 = vst.msk [vmem:[%s4622_s3 + $0x8] sm:$0xff] %vm4513_vm3, %v2923_v3  ;;  %v2430_v43 = vadd.f32 %v2429_v8, %v2329_v29  ;;  %v2244_v29 = vadd.f32 %v4665_v30, %v4664_v0  ;;  %v2341_v42 = vadd.f32 %v4668_v25, %v2240_v41  ;;  %v4672_v8 = vld [vmem:[#allocation6_spill] sm:$0xff] }
 0x1c8   :  { %v2503_v51 = vmax.f32 %v2468_v32, 0.0  ;;  %2600 = vst.msk [vmem:[%s4622_s3 + $0x48] sm:$0xff] %vm4513_vm3, %v2931_v1  ;;  %v2470_v57 = vadd.f32 %v2469_v39, %v2369_v62  ;;  %v2431_v7 = vpop.f32.mrf.mxu0  ;;  %v2246_v50 = vadd.f32 %v4670_v27, %v4669_v44  ;;  %v4673_v39 = vld [vmem:[#allocation19_spill] sm:$0xff] }
 0x1c9   :  { %v2471_v56 = vpop.f32.mrf.mxu1  ;;  %v2924_v58 = vpack.c.bf16 %v2487_v37, %v2486_v13  ;;  %v2432_v20 = vadd.f32 %v2431_v7, %v2331_v19  ;;  %v2488_v54 = vmax.f32 %v2430_v43, 0.0  ;;  %v2345_v63 = vadd.f32 %v4671_v47, %v2244_v29 }
 0x1ca   :  { %v2932_v11 = vpack.c.bf16 %v2503_v51, %v2502_v2  ;;  %v2472_v14 = vadd.f32 %v2471_v56, %v2371_v6  ;;  %v2435_v34 = vpop.f32.mrf.mxu0  ;;  %v2504_v38 = vmax.f32 %v2470_v57, 0.0  ;;  %v2248_v13 = vadd.f32 %v4673_v39, %v4672_v8  ;;  %v4676_v6 = vld [vmem:[#allocation21_spill] sm:$0xff] }
 0x1cb   :  { %v2475_v59 = vpop.f32.mrf.mxu1  ;;  %2593 = vst.msk [vmem:[%s4622_s3 + $0x10] sm:$0xff] %vm4513_vm3, %v2924_v58  ;;  %v2436_v19 = vadd.f32 %v2435_v34, %v2335_v36  ;;  %v2489_v10 = vmax.f32 %v2432_v20, 0.0  ;;  %v2347_v28 = vadd.f32 %v4674_v40, %v2246_v50  ;;  %v2250_v43 = vadd.f32 %v4676_v6, %v4675_v52 }
 0x1cc   :  { %2601 = vst.msk [vmem:[%s4622_s3 + $0x50] sm:$0xff] %vm4513_vm3, %v2932_v11  ;;  %v2476_v4 = vadd.f32 %v2475_v59, %v2375_v12  ;;  %v2505_v46 = vmax.f32 %v2472_v14, 0.0  ;;  %v2437_v48 = vpop.f32.mrf.mxu0  ;;  %v2349_v41 = vadd.f32 %v4677_v9, %v2248_v13  ;;  %v4678_v11 = vld [vmem:[#allocation22_spill] sm:$0xff] }
 0x1cd   :  { %v2477_v21 = vpop.f32.mrf.mxu1  ;;  %v2438_v61 = vadd.f32 %v2437_v48, %v2337_v17  ;;  %v2925_v53 = vpack.c.bf16 %v2489_v10, %v2488_v54  ;;  %v2490_v45 = vmax.f32 %v2436_v19, 0.0  ;;  %v2351_v49 = vadd.f32 %v4678_v11, %v2250_v43 }
 0x1ce   :  { %v2478_v16 = vadd.f32 %v2477_v21, %v2377_v5  ;;  %v2933_v26 = vpack.c.bf16 %v2505_v46, %v2504_v38  ;;  %v2439_v36 = vpop.f32.mrf.mxu0  ;;  %v2506_v32 = vmax.f32 %v2476_v4, 0.0 }
 0x1cf   :  { %v2479_v35 = vpop.f32.mrf.mxu1  ;;  %v2491_v55 = vmax.f32 %v2438_v61, 0.0  ;;  %v2440_v60 = vadd.f32 %v2439_v36, %v2339_v22  ;;  %2594 = vst.msk [vmem:[%s4622_s3 + $0x18] sm:$0xff] %vm4513_vm3, %v2925_v53 }
 0x1d0   :  { %v2507_v62 = vmax.f32 %v2478_v16, 0.0  ;;  %2602 = vst.msk [vmem:[%s4622_s3 + $0x58] sm:$0xff] %vm4513_vm3, %v2933_v26  ;;  %v2441_v3 = vpop.f32.mrf.mxu0 }
 0x1d1   :  { %v2480_v1 = vpop.f32.mrf.mxu1  ;;  %v2926_v2 = vpack.c.bf16 %v2491_v55, %v2490_v45  ;;  %v2442_v51 = vadd.f32 %v2441_v3, %v2341_v42  ;;  %v2492_v57 = vmax.f32 %v2440_v60, 0.0 }
 0x1d2   :  { %v2934_v37 = vpack.c.bf16 %v2507_v62, %v2506_v32  ;;  %v2445_v18 = vpop.f32.mrf.mxu0 }
 0x1d3   :  { %2595 = vst.msk [vmem:[%s4622_s3 + $0x20] sm:$0xff] %vm4513_vm3, %v2926_v2  ;;  %v2493_v7 = vmax.f32 %v2442_v51, 0.0  ;;  %v2446_v56 = vadd.f32 %v2445_v18, %v2345_v63 }
 0x1d4   :  { %2606 = vst.msk [vmem:[%s4622_s3 + $0x60] sm:$0x11] %vm2605_vm6, %v2934_v37  ;;  %v2447_v31 = vpop.f32.mrf.mxu0 }
 0x1d5   :  { %v2927_v24 = vpack.c.bf16 %v2493_v7, %v2492_v57  ;;  %v2448_v12 = vadd.f32 %v2447_v31, %v2347_v28  ;;  %v2494_v17 = vmax.f32 %v2446_v56, 0.0 }
 0x1d6   :  { %v2449_v58 = vpop.f32.mrf.mxu0 }
 0x1d7   :  { %2596 = vst.msk [vmem:[%s4622_s3 + $0x28] sm:$0xff] %vm4513_vm3, %v2927_v24  ;;  %v2495_v20 = vmax.f32 %v2448_v12, 0.0  ;;  %v2450_v14 = vadd.f32 %v2449_v58, %v2349_v41 }
 0x1d8   :  { %v2451_v34 = vpop.f32.mrf.mxu0 }
 0x1d9   :  { %v2928_v59 = vpack.c.bf16 %v2495_v20, %v2494_v17  ;;  %v2452_v0 = vadd.f32 %v2451_v34, %v2351_v49  ;;  %v2496_v30 = vmax.f32 %v2450_v14, 0.0 }
 0x1db   :  { %2597 = vst.msk [vmem:[%s4622_s3 + $0x30] sm:$0xff] %vm4513_vm3, %v2928_v59  ;;  %v2497_v29 = vmax.f32 %v2452_v0, 0.0 }
 0x1dd   :  { %v2929_v33 = vpack.c.bf16 %v2497_v29, %v2496_v30 }
 0x1df   :  { %2598 = vst.msk [vmem:[%s4622_s3 + $0x38] sm:$0xff] %vm4513_vm3, %v2929_v33 }

// kernel: mynet_forward.7
= control target key start
LH: loop header
LB: loop body
LE: loop exit
PB: predicated region body
PF: predicated region fallthrough
CT: control target
= control target key end

     0   :  { %vm2330_vm0 = vcmask 523264   ;;  %s5342_s1 = inlined_call_operand.vmem [shape: bf16[1728,384], index: 1, kind: input, shape index: {}]   ;;  %s5343_s0 = inlined_call_operand.vmem [shape: bf16[18,1728], index: 0, kind: input, shape index: {}]   ;;  %s5344_s2 = inlined_call_operand.vmem [shape: f32[1,384], index: 2, kind: input, shape index: {}]   ;;  %s5345_s3 = inlined_call_operand.vmem [shape: bf16[18,384], index: 3, kind: output, shape index: {}]  }
   0x1   :  { %v3619_v0 = vld [vmem:[%s5342_s1 + $0xac] ss:$12 sps:$4 sm:$0xff]   ;;  %v3623_v2 = vld [vmem:[%s5342_s1 + $0xa8] ss:$12 sps:$4 sm:$0xff]   ;;  %v3629_v6 = vld [vmem:[%s5342_s1 + $0x90] ss:$12 sps:$4 sm:$0xff]  }
   0x2   :  { %v3621_v1 = vld [vmem:[%s5342_s1 + $0x22c] ss:$12 sps:$4 sm:$0xff]   ;;  %2337 = vmatprep.subr.bf16.mxu0 %v3619_v0  ;;  %v3624_v3 = vld [vmem:[%s5342_s1 + $0x228] ss:$12 sps:$4 sm:$0xff]   ;;  %v3630_v7 = vld [vmem:[%s5342_s1 + $0x210] ss:$12 sps:$4 sm:$0xff]  }
   0x3   :  { %2388 = vmatprep.subr.bf16.mxu1 %v3621_v1  ;;  %v3625_v4 = vld [vmem:[%s5342_s1 + $0x94] ss:$12 sps:$4 sm:$0xff]   ;;  %2338 = vmatpush1.bf16.msra.mxu0 %v3623_v2  ;;  %v3631_v8 = vld [vmem:[%s5342_s1 + $0x7c] ss:$12 sps:$4 sm:$0xff]   ;;  %v3635_v10 = vld [vmem:[%s5342_s1 + $0x78] ss:$12 sps:$4 sm:$0xff]  }
   0x4   :  { %2389 = vmatpush1.bf16.msra.mxu1 %v3624_v3  ;;  %v3627_v5 = vld [vmem:[%s5342_s1 + $0x214] ss:$12 sps:$4 sm:$0xff]   ;;  %2339 = vmatprep.subr.bf16.mxu0 %v3625_v4  ;;  %v3633_v9 = vld [vmem:[%s5342_s1 + $0x1fc] ss:$12 sps:$4 sm:$0xff]   ;;  %v3636_v11 = vld [vmem:[%s5342_s1 + $0x1f8] ss:$12 sps:$4 sm:$0xff]  }
   0x5   :  { %2390 = vmatprep.subr.bf16.mxu1 %v3627_v5  ;;  %v3637_v12 = vld [vmem:[%s5342_s1 + $0x64] ss:$12 sps:$4 sm:$0xff]   ;;  %v3641_v14 = vld [vmem:[%s5342_s1 + $0x60] ss:$12 sps:$4 sm:$0xff]   ;;  %v3647_v18 = vld [vmem:[%s5342_s1 + $0x48] ss:$12 sps:$4 sm:$0xff]  }
   0x6   :  { %v3639_v13 = vld [vmem:[%s5342_s1 + $0x1e4] ss:$12 sps:$4 sm:$0xff]   ;;  %v3642_v15 = vld [vmem:[%s5342_s1 + $0x1e0] ss:$12 sps:$4 sm:$0xff]   ;;  %v3648_v19 = vld [vmem:[%s5342_s1 + $0x1c8] ss:$12 sps:$4 sm:$0xff]  }
   0x7   :  { %2340 = vmatpush1.bf16.msra.mxu0 %v3629_v6  ;;  %v3643_v16 = vld [vmem:[%s5342_s1 + $0x4c] ss:$12 sps:$4 sm:$0xff]   ;;  %v3649_v20 = vld [vmem:[%s5342_s1 + $0x34] ss:$12 sps:$4 sm:$0xff]   ;;  %v3653_v22 = vld [vmem:[%s5342_s1 + $0x30] ss:$12 sps:$4 sm:$0xff]  }
   0x8   :  { %2391 = vmatpush1.bf16.msra.mxu1 %v3630_v7  ;;  %2341 = vmatprep.subr.bf16.mxu0 %v3631_v8  ;;  %v3645_v17 = vld [vmem:[%s5342_s1 + $0x1cc] ss:$12 sps:$4 sm:$0xff]   ;;  %v3651_v21 = vld [vmem:[%s5342_s1 + $0x1b4] ss:$12 sps:$4 sm:$0xff]   ;;  %v3654_v23 = vld [vmem:[%s5342_s1 + $0x1b0] ss:$12 sps:$4 sm:$0xff]  }
   0x9   :  { %2392 = vmatprep.subr.bf16.mxu1 %v3633_v9  ;;  %v3655_v24 = vld [vmem:[%s5342_s1 + $0x1c] ss:$12 sps:$4 sm:$0xff]   ;;  %v3659_v26 = vld [vmem:[%s5342_s1 + $0x18] ss:$12 sps:$4 sm:$0xff]   ;;  %v3665_v30 = vld [vmem:[%s5342_s1] ss:$12 sps:$4 sm:$0xff]  }
   0xa   :  { %v3657_v25 = vld [vmem:[%s5342_s1 + $0x19c] ss:$12 sps:$4 sm:$0xff]   ;;  %v3660_v27 = vld [vmem:[%s5342_s1 + $0x198] ss:$12 sps:$4 sm:$0xff]   ;;  %v3666_v31 = vld [vmem:[%s5342_s1 + $0x180] ss:$12 sps:$4 sm:$0xff]  }
   0xb   :  { %2342 = vmatpush1.bf16.msra.mxu0 %v3635_v10  ;;  %v3661_v28 = vld [vmem:[%s5342_s1 + $0x4] ss:$12 sps:$4 sm:$0xff]   ;;  %v3667_v32 = vld [vmem:[%s5342_s1 + $0x16c] ss:$12 sps:$4 sm:$0xff]   ;;  %v3671_v34 = vld [vmem:[%s5342_s1 + $0x168] ss:$12 sps:$4 sm:$0xff]  }
   0xc   :  { %2393 = vmatpush1.bf16.msra.mxu1 %v3636_v11  ;;  %2343 = vmatprep.subr.bf16.mxu0 %v3637_v12  ;;  %v3663_v29 = vld [vmem:[%s5342_s1 + $0x184] ss:$12 sps:$4 sm:$0xff]   ;;  %v3669_v33 = vld [vmem:[%s5342_s1 + $0x2ec] ss:$12 sps:$4 sm:$0xff]   ;;  %v3672_v35 = vld [vmem:[%s5342_s1 + $0x2e8] ss:$12 sps:$4 sm:$0xff]  }
   0xd   :  { %2394 = vmatprep.subr.bf16.mxu1 %v3639_v13  ;;  %v3673_v36 = vld [vmem:[%s5342_s1 + $0x154] ss:$12 sps:$4 sm:$0xff]   ;;  %v3677_v38 = vld [vmem:[%s5342_s1 + $0x150] ss:$12 sps:$4 sm:$0xff]   ;;  %v3683_v42 = vld [vmem:[%s5342_s1 + $0x138] ss:$12 sps:$4 sm:$0xff]  }
   0xe   :  { %v3675_v37 = vld [vmem:[%s5342_s1 + $0x2d4] ss:$12 sps:$4 sm:$0xff]   ;;  %v3678_v39 = vld [vmem:[%s5342_s1 + $0x2d0] ss:$12 sps:$4 sm:$0xff]   ;;  %v3684_v43 = vld [vmem:[%s5342_s1 + $0x2b8] ss:$12 sps:$4 sm:$0xff]  }
   0xf   :  { %2344 = vmatpush1.bf16.msra.mxu0 %v3641_v14  ;;  %v3679_v40 = vld [vmem:[%s5342_s1 + $0x13c] ss:$12 sps:$4 sm:$0xff]   ;;  %v3685_v44 = vld [vmem:[%s5342_s1 + $0x124] ss:$12 sps:$4 sm:$0xff]   ;;  %v3689_v46 = vld [vmem:[%s5342_s1 + $0x120] ss:$12 sps:$4 sm:$0xff]  }
  0x10   :  { %2395 = vmatpush1.bf16.msra.mxu1 %v3642_v15  ;;  %2345 = vmatprep.subr.bf16.mxu0 %v3643_v16  ;;  %v3681_v41 = vld [vmem:[%s5342_s1 + $0x2bc] ss:$12 sps:$4 sm:$0xff]   ;;  %v3687_v45 = vld [vmem:[%s5342_s1 + $0x2a4] ss:$12 sps:$4 sm:$0xff]   ;;  %v3690_v47 = vld [vmem:[%s5342_s1 + $0x2a0] ss:$12 sps:$4 sm:$0xff]  }
  0x11   :  { %2396 = vmatprep.subr.bf16.mxu1 %v3645_v17  ;;  %v3691_v48 = vld [vmem:[%s5342_s1 + $0x10c] ss:$12 sps:$4 sm:$0xff]   ;;  %v3717_v49 = vld [vmem:[%s5343_s0 + $0x4] ss:$56 sps:$4 sm:$0xff]   ;;  %v3695_v52 = vld [vmem:[%s5342_s1 + $0x108] ss:$12 sps:$4 sm:$0xff]  }
  0x12   :  { %v3693_v50 = vld [vmem:[%s5342_s1 + $0x28c] ss:$12 sps:$4 sm:$0xff]   ;;  %2369 = vmatprep.mubr.bf16.mxu0 %v3717_v49  ;;  %v3696_v53 = vld [vmem:[%s5342_s1 + $0x288] ss:$12 sps:$4 sm:$0xff]   ;;  %v3701_v56 = vld [vmem:[%s5342_s1 + $0xf0] ss:$12 sps:$4 sm:$0xff]  }
  0x13   :  { %2346 = vmatpush1.bf16.msra.mxu0 %v3647_v18  ;;  %v3720_v51 = vld [vmem:[%s5343_s0 + $0xc] ss:$56 sps:$4 sm:$0xff]   ;;  %v3697_v54 = vld [vmem:[%s5342_s1 + $0xf4] ss:$12 sps:$4 sm:$0xff]   ;;  %v3702_v57 = vld [vmem:[%s5342_s1 + $0x270] ss:$12 sps:$4 sm:$0xff]  }
  0x14   :  { %2397 = vmatpush1.bf16.msra.mxu1 %v3648_v19  ;;  %2347 = vmatprep.subr.bf16.mxu0 %v3649_v20  ;;  %v3699_v55 = vld [vmem:[%s5342_s1 + $0x274] ss:$12 sps:$4 sm:$0xff]   ;;  %v3703_v58 = vld [vmem:[%s5342_s1 + $0xdc] ss:$12 sps:$4 sm:$0xff]   ;;  %v3707_v60 = vld [vmem:[%s5342_s1 + $0xd8] ss:$12 sps:$4 sm:$0xff]  }
  0x15   :  { %2398 = vmatprep.subr.bf16.mxu1 %v3651_v21  ;;  %2420 = vmatprep.mubr.bf16.mxu1 %v3720_v51  ;;  %v3705_v59 = vld [vmem:[%s5342_s1 + $0x25c] ss:$12 sps:$4 sm:$0xff]   ;;  %v3708_v61 = vld [vmem:[%s5342_s1 + $0x258] ss:$12 sps:$4 sm:$0xff]   ;;  %v3713_v0 = vld [vmem:[%s5342_s1 + $0xc0] ss:$12 sps:$4 sm:$0xff]  }
  0x16   :  { %v3709_v62 = vld [vmem:[%s5342_s1 + $0xc4] ss:$12 sps:$4 sm:$0xff]   ;;  %v3714_v1 = vld [vmem:[%s5342_s1 + $0x240] ss:$12 sps:$4 sm:$0xff]   ;;  %v3721_v6 = vld [vmem:[%s5342_s1 + $0x3a8] ss:$12 sps:$4 sm:$0xff]  }
  0x17   :  { %2348 = vmatpush1.bf16.msra.mxu0 %v3653_v22  ;;  %v3711_v63 = vld [vmem:[%s5342_s1 + $0x244] ss:$12 sps:$4 sm:$0xff]   ;;  %v3723_v2 = vld [vmem:[%s5342_s1 + $0x3ac] ss:$12 sps:$4 sm:$0xff]   ;;  %v3718_v5 = vld [vmem:[%s5343_s0 + $0x8] ss:$56 sps:$4 sm:$0xff]  }
  0x18   :  { %2399 = vmatpush1.bf16.msra.mxu1 %v3654_v23  ;;  %2349 = vmatprep.subr.bf16.mxu0 %v3655_v24  ;;  %v3726_v3 = vld [vmem:[%s5342_s1 + $0x52c] ss:$12 sps:$4 sm:$0xff]   ;;  %v3724_v7 = vld [vmem:[%s5342_s1 + $0x528] ss:$12 sps:$4 sm:$0xff]   ;;  %v3727_v10 = vld [vmem:[%s5342_s1 + $0x390] ss:$12 sps:$4 sm:$0xff]  }
  0x19   :  { %2400 = vmatprep.subr.bf16.mxu1 %v3657_v25  ;;  %v3715_v4 = vld [vmem:[%s5343_s0] ss:$56 sps:$4 sm:$0xff]   ;;  %v3730_v11 = vld [vmem:[%s5342_s1 + $0x510] ss:$12 sps:$4 sm:$0xff]   ;;  %v3745_v22 = vld [vmem:[%s5342_s1 + $0x348] ss:$12 sps:$4 sm:$0xff]  }
  0x1a   :  { %v3729_v8 = vld [vmem:[%s5342_s1 + $0x394] ss:$12 sps:$4 sm:$0xff]   ;;  %v3735_v12 = vld [vmem:[%s5342_s1 + $0x37c] ss:$12 sps:$4 sm:$0xff]   ;;  %v3733_v14 = vld [vmem:[%s5342_s1 + $0x378] ss:$12 sps:$4 sm:$0xff]  }
  0x1b   :  { %2350 = vmatpush1.bf16.msra.mxu0 %v3659_v26  ;;  %v3732_v9 = vld [vmem:[%s5342_s1 + $0x514] ss:$12 sps:$4 sm:$0xff]   ;;  %v3738_v13 = vld [vmem:[%s5342_s1 + $0x4fc] ss:$12 sps:$4 sm:$0xff]   ;;  %v3736_v15 = vld [vmem:[%s5342_s1 + $0x4f8] ss:$12 sps:$4 sm:$0xff]  }
  0x1c   :  { %2401 = vmatpush1.bf16.msra.mxu1 %v3660_v27  ;;  %2351 = vmatprep.subr.bf16.mxu0 %v3661_v28  ;;  %v3741_v16 = vld [vmem:[%s5342_s1 + $0x364] ss:$12 sps:$4 sm:$0xff]   ;;  %v3739_v18 = vld [vmem:[%s5342_s1 + $0x360] ss:$12 sps:$4 sm:$0xff]   ;;  %v3748_v23 = vld [vmem:[%s5342_s1 + $0x4c8] ss:$12 sps:$4 sm:$0xff]  }
  0x1d   :  { %2402 = vmatprep.subr.bf16.mxu1 %v3663_v29  ;;  %v3744_v17 = vld [vmem:[%s5342_s1 + $0x4e4] ss:$12 sps:$4 sm:$0xff]   ;;  %v3742_v19 = vld [vmem:[%s5342_s1 + $0x4e0] ss:$12 sps:$4 sm:$0xff]   ;;  %v30_v29 = vld [vmem:[%s5343_s0 + $0x78] sm:$0x11] }
  0x1e   :  { %v3747_v20 = vld [vmem:[%s5342_s1 + $0x34c] ss:$12 sps:$4 sm:$0xff]   ;;  %v29_v24 = vld [vmem:[%s5343_s0 + $0x70] sm:$0x11] }
  0x1f   :  { %2352 = vmatpush1.bf16.msra.mxu0 %v3665_v30  ;;  %v3750_v21 = vld [vmem:[%s5342_s1 + $0x4cc] ss:$12 sps:$4 sm:$0xff]   ;;  %v3753_v25 = vld [vmem:[%s5342_s1 + $0x334] ss:$12 sps:$4 sm:$0xff]   ;;  %v4390_v27 = vcombine.high %v29_v24, %v29_v24  ;;  %v4392_v28 = vcombine.low %v29_v24, %v29_v24  ;;  %v3751_v30 = vld [vmem:[%s5342_s1 + $0x330] ss:$12 sps:$4 sm:$0xff]  }
  0x20   :  { %2403 = vmatpush1.bf16.msra.mxu1 %v3666_v31  ;;  %2353 = vmatprep.subr.bf16.mxu0 %v3667_v32  ;;  %v3756_v26 = vld [vmem:[%s5342_s1 + $0x4b4] ss:$12 sps:$4 sm:$0xff]   ;;  %v3754_v31 = vld [vmem:[%s5342_s1 + $0x4b0] ss:$12 sps:$4 sm:$0xff]   ;;  %v4404_v32 = vcombine.high %v30_v29, %v30_v29 }
  0x21   :  { %2404 = vmatprep.subr.bf16.mxu1 %v3669_v33  ;;  %v4406_v33 = vcombine.low %v30_v29, %v30_v29  ;;  %v3780_v49 = vld [vmem:[%s5342_s1 + $0x5d4] ss:$12 sps:$4 sm:$0xff]   ;;  %v3778_v51 = vld [vmem:[%s5342_s1 + $0x5d0] ss:$12 sps:$4 sm:$0xff]  }
  0x22   :  { %v3833_v24 = vld [vmem:[%s5342_s1 + $0x690] ss:$12 sps:$4 sm:$0xff]  }
  0x23   :  { %2354 = vmatpush2.bf16.msra.mxu0 %v3671_v34  ;;  %v3759_v34 = vld [vmem:[%s5342_s1 + $0x31c] ss:$12 sps:$4 sm:$0xff]  }
  0x24   :  { %2405 = vmatpush2.bf16.msra.mxu1 %v3672_v35  ;;  %2355 = vmatprep.subr.bf16.mxu0 %v3673_v36  ;;  %v3762_v35 = vld [vmem:[%s5342_s1 + $0x49c] ss:$12 sps:$4 sm:$0xff]   ;;  %v3757_v36 = vld [vmem:[%s5342_s1 + $0x318] ss:$12 sps:$4 sm:$0xff]  }
  0x25   :  { %2406 = vmatprep.subr.bf16.mxu1 %v3675_v37  ;;  %v3760_v37 = vld [vmem:[%s5342_s1 + $0x498] ss:$12 sps:$4 sm:$0xff]   ;;  %v3846_v29 = vld [vmem:[%s5342_s1 + $0x7fc] ss:$12 sps:$4 sm:$0xff]  }
  0x27   :  { %2356 = vmatpush2.bf16.msra.mxu0 %v3677_v38  ;;  %v3765_v38 = vld [vmem:[%s5342_s1 + $0x304] ss:$12 sps:$4 sm:$0xff]  }
  0x28   :  { %2407 = vmatpush2.bf16.msra.mxu1 %v3678_v39  ;;  %2357 = vmatprep.subr.bf16.mxu0 %v3679_v40  ;;  %v3768_v39 = vld [vmem:[%s5342_s1 + $0x484] ss:$12 sps:$4 sm:$0xff]   ;;  %v3823_v40 = vld [vmem:[%s5343_s0 + $0x14] ss:$56 sps:$4 sm:$0xff]  }
  0x29   :  { %2408 = vmatprep.subr.bf16.mxu1 %v3681_v41  ;;  %v3826_v41 = vld [vmem:[%s5343_s0 + $0x1c] ss:$56 sps:$4 sm:$0xff]  }
  0x2b   :  { %2358 = vmatpush2.bf16.msra.mxu0 %v3683_v42  ;;  %v3763_v42 = vld [vmem:[%s5342_s1 + $0x300] ss:$12 sps:$4 sm:$0xff]  }
  0x2c   :  { %2409 = vmatpush2.bf16.msra.mxu1 %v3684_v43  ;;  %2359 = vmatprep.subr.bf16.mxu0 %v3685_v44  ;;  %v3766_v43 = vld [vmem:[%s5342_s1 + $0x480] ss:$12 sps:$4 sm:$0xff]  }
  0x2d   :  { %2410 = vmatprep.subr.bf16.mxu1 %v3687_v45  ;;  %v3771_v44 = vld [vmem:[%s5342_s1 + $0x46c] ss:$12 sps:$4 sm:$0xff]  }
  0x2e   :  { %v3774_v45 = vld [vmem:[%s5342_s1 + $0x5ec] ss:$12 sps:$4 sm:$0xff]  }
  0x2f   :  { %2360 = vmatpush2.bf16.msra.mxu0 %v3689_v46  ;;  %v3769_v46 = vld [vmem:[%s5342_s1 + $0x468] ss:$12 sps:$4 sm:$0xff]  }
  0x30   :  { %2411 = vmatpush2.bf16.msra.mxu1 %v3690_v47  ;;  %2361 = vmatprep.subr.bf16.mxu0 %v3691_v48  ;;  %v3772_v47 = vld [vmem:[%s5342_s1 + $0x5e8] ss:$12 sps:$4 sm:$0xff]  }
  0x31   :  { %2412 = vmatprep.subr.bf16.mxu1 %v3693_v50  ;;  %v3777_v48 = vld [vmem:[%s5342_s1 + $0x454] ss:$12 sps:$4 sm:$0xff]   ;;  %v3775_v50 = vld [vmem:[%s5342_s1 + $0x450] ss:$12 sps:$4 sm:$0xff]  }
  0x33   :  { %2362 = vmatpush2.bf16.msra.mxu0 %v3695_v52  ;;  %v3783_v52 = vld [vmem:[%s5342_s1 + $0x43c] ss:$12 sps:$4 sm:$0xff]  }
  0x34   :  { %2413 = vmatpush2.bf16.msra.mxu1 %v3696_v53  ;;  %2363 = vmatprep.subr.bf16.mxu0 %v3697_v54  ;;  %v3786_v53 = vld [vmem:[%s5342_s1 + $0x5bc] ss:$12 sps:$4 sm:$0xff]   ;;  %v3781_v54 = vld [vmem:[%s5342_s1 + $0x438] ss:$12 sps:$4 sm:$0xff]  }
  0x35   :  { %2414 = vmatprep.subr.bf16.mxu1 %v3699_v55  ;;  %v3784_v55 = vld [vmem:[%s5342_s1 + $0x5b8] ss:$12 sps:$4 sm:$0xff]  }
  0x37   :  { %2364 = vmatpush2.bf16.msra.mxu0 %v3701_v56  ;;  %v3789_v56 = vld [vmem:[%s5342_s1 + $0x424] ss:$12 sps:$4 sm:$0xff]  }
  0x38   :  { %2415 = vmatpush2.bf16.msra.mxu1 %v3702_v57  ;;  %2365 = vmatprep.subr.bf16.mxu0 %v3703_v58  ;;  %v3792_v57 = vld [vmem:[%s5342_s1 + $0x5a4] ss:$12 sps:$4 sm:$0xff]   ;;  %v3787_v58 = vld [vmem:[%s5342_s1 + $0x420] ss:$12 sps:$4 sm:$0xff]  }
  0x39   :  { %2416 = vmatprep.subr.bf16.mxu1 %v3705_v59  ;;  %v3790_v59 = vld [vmem:[%s5342_s1 + $0x5a0] ss:$12 sps:$4 sm:$0xff]  }
  0x3b   :  { %2366 = vmatpush2.bf16.msra.mxu0 %v3707_v60  ;;  %v3795_v60 = vld [vmem:[%s5342_s1 + $0x40c] ss:$12 sps:$4 sm:$0xff]  }
  0x3c   :  { %2417 = vmatpush2.bf16.msra.mxu1 %v3708_v61  ;;  %2367 = vmatprep.subr.bf16.mxu0 %v3709_v62  ;;  %v3798_v61 = vld [vmem:[%s5342_s1 + $0x58c] ss:$12 sps:$4 sm:$0xff]   ;;  %v3793_v62 = vld [vmem:[%s5342_s1 + $0x408] ss:$12 sps:$4 sm:$0xff]  }
  0x3d   :  { %2418 = vmatprep.subr.bf16.mxu1 %v3711_v63  ;;  %v3796_v63 = vld [vmem:[%s5342_s1 + $0x588] ss:$12 sps:$4 sm:$0xff]  }
  0x3f   :  { %2368 = vmatpush2.bf16.msra.mxu0 %v3713_v0  ;;  %v3803_v0 = vld [vmem:[%s5342_s1 + $0x3f4] ss:$12 sps:$4 sm:$0xff]  }
  0x40   :  { %2419 = vmatpush2.bf16.msra.mxu1 %v3714_v1  ;;  %2439 = vmatprep.subr.bf16.mxu0 %v3723_v2  ;;  %v3806_v1 = vld [vmem:[%s5342_s1 + $0x574] ss:$12 sps:$4 sm:$0xff]   ;;  %v3801_v2 = vld [vmem:[%s5342_s1 + $0x3f0] ss:$12 sps:$4 sm:$0xff]  }
  0x41   :  { %2490 = vmatprep.subr.bf16.mxu1 %v3726_v3  ;;  %v3804_v3 = vld [vmem:[%s5342_s1 + $0x570] ss:$12 sps:$4 sm:$0xff]  }
  0x42   :  { %2370 = vmatmul.mubr.bf16.vlgmr.msra.gmra.mxu0 %v3715_v4  ;;  %v3810_v4 = vld [vmem:[%s5342_s1 + $0x3dc] ss:$12 sps:$4 sm:$0xff]  }
  0x43   :  { %2421 = vmatmul.mubr.bf16.vlgmr.msra.gmra.mxu1 %v3718_v5  ;;  %2440 = vmatpush1.bf16.msra.mxu0 %v3721_v6  ;;  %v3813_v5 = vld [vmem:[%s5342_s1 + $0x55c] ss:$12 sps:$4 sm:$0xff]   ;;  %v3808_v6 = vld [vmem:[%s5342_s1 + $0x3d8] ss:$12 sps:$4 sm:$0xff]  }
  0x44   :  { %2491 = vmatpush1.bf16.msra.mxu1 %v3724_v7  ;;  %2441 = vmatprep.subr.bf16.mxu0 %v3729_v8  ;;  %v3811_v7 = vld [vmem:[%s5342_s1 + $0x558] ss:$12 sps:$4 sm:$0xff]  }
  0x45   :  { %2492 = vmatprep.subr.bf16.mxu1 %v3732_v9  ;;  %2379 = vmatprep.mubr.bf16.mxu0 %v4390_v27  ;;  %v3817_v8 = vld [vmem:[%s5342_s1 + $0x3c4] ss:$12 sps:$4 sm:$0xff]  }
  0x46   :  { %2430 = vmatprep.mubr.bf16.mxu1 %v4404_v32  ;;  %v3820_v9 = vld [vmem:[%s5342_s1 + $0x544] ss:$12 sps:$4 sm:$0xff]  }
  0x47   :  { %2442 = vmatpush1.bf16.msra.mxu0 %v3727_v10  ;;  %v3815_v10 = vld [vmem:[%s5342_s1 + $0x3c0] ss:$12 sps:$4 sm:$0xff]  }
  0x48   :  { %2493 = vmatpush1.bf16.msra.mxu1 %v3730_v11  ;;  %2443 = vmatprep.subr.bf16.mxu0 %v3735_v12  ;;  %v3818_v11 = vld [vmem:[%s5342_s1 + $0x540] ss:$12 sps:$4 sm:$0xff]  }
  0x49   :  { %2494 = vmatprep.subr.bf16.mxu1 %v3738_v13  ;;  %v3829_v12 = vld [vmem:[%s5342_s1 + $0x6ac] ss:$12 sps:$4 sm:$0xff]   ;;  %v3821_v13 = vld [vmem:[%s5343_s0 + $0x10] ss:$56 sps:$4 sm:$0xff]  }
  0x4a   :  { %2380 = vmatmul.mubr.bf16.gmra.mxu0 %v4392_v28 }
  0x4b   :  { %2444 = vmatpush1.bf16.msra.mxu0 %v3733_v14  ;;  %2431 = vmatmul.mubr.bf16.gmra.mxu1 %v4406_v33  ;;  %v3824_v14 = vld [vmem:[%s5343_s0 + $0x18] ss:$56 sps:$4 sm:$0xff]  }
  0x4c   :  { %2495 = vmatpush1.bf16.msra.mxu1 %v3736_v15  ;;  %2445 = vmatprep.subr.bf16.mxu0 %v3741_v16  ;;  %v3832_v15 = vld [vmem:[%s5342_s1 + $0x82c] ss:$12 sps:$4 sm:$0xff]   ;;  %v3827_v16 = vld [vmem:[%s5342_s1 + $0x6a8] ss:$12 sps:$4 sm:$0xff]  }
  0x4d   :  { %2496 = vmatprep.subr.bf16.mxu1 %v3744_v17  ;;  %2471 = vmatprep.mubr.bf16.mxu0 %v3823_v40  ;;  %v3830_v17 = vld [vmem:[%s5342_s1 + $0x828] ss:$12 sps:$4 sm:$0xff]   ;;  %v3849_v40 = vld [vmem:[%s5342_s1 + $0x660] ss:$12 sps:$4 sm:$0xff]  }
  0x4e   :  { %2522 = vmatprep.mubr.bf16.mxu1 %v3826_v41  ;;  %v3852_v41 = vld [vmem:[%s5342_s1 + $0x7e0] ss:$12 sps:$4 sm:$0xff]  }
  0x4f   :  { %2446 = vmatpush1.bf16.msra.mxu0 %v3739_v18  ;;  %v31_v18 = vld [vmem:[%s5343_s0 + $0x80] sm:$0x11] }
  0x50   :  { %2497 = vmatpush1.bf16.msra.mxu1 %v3742_v19  ;;  %2447 = vmatprep.subr.bf16.mxu0 %v3747_v20  ;;  %v32_v19 = vld [vmem:[%s5343_s0 + $0x88] sm:$0x11]  ;;  %v3835_v20 = vld [vmem:[%s5342_s1 + $0x694] ss:$12 sps:$4 sm:$0xff]  }
  0x51   :  { %2498 = vmatprep.subr.bf16.mxu1 %v3750_v21  ;;  %v3838_v21 = vld [vmem:[%s5342_s1 + $0x814] ss:$12 sps:$4 sm:$0xff]  }
  0x53   :  { %2448 = vmatpush1.bf16.msra.mxu0 %v3745_v22  ;;  %v4567_v22 = vcombine.high %v31_v18, %v31_v18 }
  0x54   :  { %2499 = vmatpush1.bf16.msra.mxu1 %v3748_v23  ;;  %2449 = vmatprep.subr.bf16.mxu0 %v3753_v25  ;;  %v4569_v23 = vcombine.high %v32_v19, %v32_v19  ;;  %v3836_v25 = vld [vmem:[%s5342_s1 + $0x810] ss:$12 sps:$4 sm:$0xff]  }
  0x55   :  { %2500 = vmatprep.subr.bf16.mxu1 %v3756_v26  ;;  %v3843_v26 = vld [vmem:[%s5342_s1 + $0x67c] ss:$12 sps:$4 sm:$0xff]  }
  0x57   :  { %2450 = vmatpush1.bf16.msra.mxu0 %v3751_v30  ;;  %v4585_v30 = vcombine.low %v31_v18, %v31_v18  ;;  %v3917_v18 = vld [vmem:[%s5342_s1 + $0x6dc] ss:$12 sps:$4 sm:$0xff]  }
  0x58   :  { %2501 = vmatpush1.bf16.msra.mxu1 %v3754_v31  ;;  %2451 = vmatprep.subr.bf16.mxu0 %v3759_v34  ;;  %v3841_v31 = vld [vmem:[%s5342_s1 + $0x678] ss:$12 sps:$4 sm:$0xff]  }
  0x59   :  { %2502 = vmatprep.subr.bf16.mxu1 %v3762_v35  ;;  %v3844_v34 = vld [vmem:[%s5342_s1 + $0x7f8] ss:$12 sps:$4 sm:$0xff]   ;;  %v4593_v35 = vcombine.low %v32_v19, %v32_v19  ;;  %v3920_v19 = vld [vmem:[%s5342_s1 + $0x85c] ss:$12 sps:$4 sm:$0xff]  }
  0x5b   :  { %2452 = vmatpush1.bf16.msra.mxu0 %v3757_v36  ;;  %v3851_v36 = vld [vmem:[%s5342_s1 + $0x664] ss:$12 sps:$4 sm:$0xff]  }
  0x5c   :  { %2503 = vmatpush1.bf16.msra.mxu1 %v3760_v37  ;;  %2453 = vmatprep.subr.bf16.mxu0 %v3765_v38  ;;  %v3854_v37 = vld [vmem:[%s5342_s1 + $0x7e4] ss:$12 sps:$4 sm:$0xff]  }
  0x5d   :  { %2504 = vmatprep.subr.bf16.mxu1 %v3768_v39  ;;  %v3929_v38 = vld [vmem:[%s5343_s0 + $0x24] ss:$56 sps:$4 sm:$0xff]  }
  0x5e   :  { %v3932_v39 = vld [vmem:[%s5343_s0 + $0x2c] ss:$56 sps:$4 sm:$0xff]  }
  0x5f   :  { %2454 = vmatpush1.bf16.msra.mxu0 %v3763_v42  ;;  %v3857_v42 = vld [vmem:[%s5342_s1 + $0x64c] ss:$12 sps:$4 sm:$0xff]  }
  0x60   :  { %2505 = vmatpush1.bf16.msra.mxu1 %v3766_v43  ;;  %2455 = vmatprep.subr.bf16.mxu0 %v3771_v44  ;;  %v3860_v43 = vld [vmem:[%s5342_s1 + $0x7cc] ss:$12 sps:$4 sm:$0xff]   ;;  %v3855_v44 = vld [vmem:[%s5342_s1 + $0x648] ss:$12 sps:$4 sm:$0xff]  }
  0x61   :  { %2506 = vmatprep.subr.bf16.mxu1 %v3774_v45  ;;  %v3858_v45 = vld [vmem:[%s5342_s1 + $0x7c8] ss:$12 sps:$4 sm:$0xff]  }
  0x63   :  { %2456 = vmatpush2.bf16.msra.mxu0 %v3769_v46  ;;  %v3863_v46 = vld [vmem:[%s5342_s1 + $0x634] ss:$12 sps:$4 sm:$0xff]  }
  0x64   :  { %2507 = vmatpush2.bf16.msra.mxu1 %v3772_v47  ;;  %2457 = vmatprep.subr.bf16.mxu0 %v3777_v48  ;;  %v3866_v47 = vld [vmem:[%s5342_s1 + $0x7b4] ss:$12 sps:$4 sm:$0xff]   ;;  %v3861_v48 = vld [vmem:[%s5342_s1 + $0x630] ss:$12 sps:$4 sm:$0xff]  }
  0x65   :  { %2508 = vmatprep.subr.bf16.mxu1 %v3780_v49  ;;  %v3864_v49 = vld [vmem:[%s5342_s1 + $0x7b0] ss:$12 sps:$4 sm:$0xff]  }
  0x67   :  { %2458 = vmatpush2.bf16.msra.mxu0 %v3775_v50  ;;  %v3869_v50 = vld [vmem:[%s5342_s1 + $0x61c] ss:$12 sps:$4 sm:$0xff]  }
  0x68   :  { %2509 = vmatpush2.bf16.msra.mxu1 %v3778_v51  ;;  %2459 = vmatprep.subr.bf16.mxu0 %v3783_v52  ;;  %v3872_v51 = vld [vmem:[%s5342_s1 + $0x79c] ss:$12 sps:$4 sm:$0xff]   ;;  %v3867_v52 = vld [vmem:[%s5342_s1 + $0x618] ss:$12 sps:$4 sm:$0xff]  }
  0x69   :  { %2510 = vmatprep.subr.bf16.mxu1 %v3786_v53  ;;  %v3870_v53 = vld [vmem:[%s5342_s1 + $0x798] ss:$12 sps:$4 sm:$0xff]  }
  0x6b   :  { %2460 = vmatpush2.bf16.msra.mxu0 %v3781_v54  ;;  %v3875_v54 = vld [vmem:[%s5342_s1 + $0x604] ss:$12 sps:$4 sm:$0xff]  }
  0x6c   :  { %2511 = vmatpush2.bf16.msra.mxu1 %v3784_v55  ;;  %2461 = vmatprep.subr.bf16.mxu0 %v3789_v56  ;;  %v3878_v55 = vld [vmem:[%s5342_s1 + $0x784] ss:$12 sps:$4 sm:$0xff]   ;;  %v3873_v56 = vld [vmem:[%s5342_s1 + $0x600] ss:$12 sps:$4 sm:$0xff]  }
  0x6d   :  { %2512 = vmatprep.subr.bf16.mxu1 %v3792_v57  ;;  %v3876_v57 = vld [vmem:[%s5342_s1 + $0x780] ss:$12 sps:$4 sm:$0xff]  }
  0x6f   :  { %2462 = vmatpush2.bf16.msra.mxu0 %v3787_v58  ;;  %v3881_v58 = vld [vmem:[%s5342_s1 + $0x76c] ss:$12 sps:$4 sm:$0xff]  }
  0x70   :  { %2513 = vmatpush2.bf16.msra.mxu1 %v3790_v59  ;;  %2463 = vmatprep.subr.bf16.mxu0 %v3795_v60  ;;  %v3884_v59 = vld [vmem:[%s5342_s1 + $0x8ec] ss:$12 sps:$4 sm:$0xff]   ;;  %v3879_v60 = vld [vmem:[%s5342_s1 + $0x768] ss:$12 sps:$4 sm:$0xff]  }
  0x71   :  { %2514 = vmatprep.subr.bf16.mxu1 %v3798_v61  ;;  %v3882_v61 = vld [vmem:[%s5342_s1 + $0x8e8] ss:$12 sps:$4 sm:$0xff]  }
  0x73   :  { %2464 = vmatpush2.bf16.msra.mxu0 %v3793_v62  ;;  %v3887_v62 = vld [vmem:[%s5342_s1 + $0x754] ss:$12 sps:$4 sm:$0xff]  }
  0x74   :  { %2515 = vmatpush2.bf16.msra.mxu1 %v3796_v63  ;;  %2465 = vmatprep.subr.bf16.mxu0 %v3803_v0  ;;  %v3890_v63 = vld [vmem:[%s5342_s1 + $0x8d4] ss:$12 sps:$4 sm:$0xff]   ;;  %v3885_v0 = vld [vmem:[%s5342_s1 + $0x750] ss:$12 sps:$4 sm:$0xff]  }
  0x75   :  { %2516 = vmatprep.subr.bf16.mxu1 %v3806_v1  ;;  %v3888_v1 = vld [vmem:[%s5342_s1 + $0x8d0] ss:$12 sps:$4 sm:$0xff]  }
  0x77   :  { %2466 = vmatpush2.bf16.msra.mxu0 %v3801_v2  ;;  %v3893_v2 = vld [vmem:[%s5342_s1 + $0x73c] ss:$12 sps:$4 sm:$0xff]  }
  0x78   :  { %2517 = vmatpush2.bf16.msra.mxu1 %v3804_v3  ;;  %2467 = vmatprep.subr.bf16.mxu0 %v3810_v4  ;;  %v3896_v3 = vld [vmem:[%s5342_s1 + $0x8bc] ss:$12 sps:$4 sm:$0xff]   ;;  %v3891_v4 = vld [vmem:[%s5342_s1 + $0x738] ss:$12 sps:$4 sm:$0xff]  }
  0x79   :  { %2518 = vmatprep.subr.bf16.mxu1 %v3813_v5  ;;  %v3894_v5 = vld [vmem:[%s5342_s1 + $0x8b8] ss:$12 sps:$4 sm:$0xff]  }
  0x7b   :  { %2468 = vmatpush2.bf16.msra.mxu0 %v3808_v6  ;;  %v3899_v6 = vld [vmem:[%s5342_s1 + $0x724] ss:$12 sps:$4 sm:$0xff]  }
  0x7c   :  { %2519 = vmatpush2.bf16.msra.mxu1 %v3811_v7  ;;  %2469 = vmatprep.subr.bf16.mxu0 %v3817_v8  ;;  %v3902_v7 = vld [vmem:[%s5342_s1 + $0x8a4] ss:$12 sps:$4 sm:$0xff]   ;;  %v3897_v8 = vld [vmem:[%s5342_s1 + $0x720] ss:$12 sps:$4 sm:$0xff]  }
  0x7d   :  { %2520 = vmatprep.subr.bf16.mxu1 %v3820_v9  ;;  %v3900_v9 = vld [vmem:[%s5342_s1 + $0x8a0] ss:$12 sps:$4 sm:$0xff]  }
  0x7f   :  { %2470 = vmatpush2.bf16.msra.mxu0 %v3815_v10  ;;  %v3905_v10 = vld [vmem:[%s5342_s1 + $0x70c] ss:$12 sps:$4 sm:$0xff]  }
  0x80   :  { %2521 = vmatpush2.bf16.msra.mxu1 %v3818_v11  ;;  %2541 = vmatprep.subr.bf16.mxu0 %v3829_v12  ;;  %v3908_v11 = vld [vmem:[%s5342_s1 + $0x88c] ss:$12 sps:$4 sm:$0xff]   ;;  %v3903_v12 = vld [vmem:[%s5342_s1 + $0x708] ss:$12 sps:$4 sm:$0xff]  }
  0x81   :  { %2592 = vmatprep.subr.bf16.mxu1 %v3832_v15  ;;  %v3914_v15 = vld [vmem:[%s5342_s1 + $0x874] ss:$12 sps:$4 sm:$0xff]  }
  0x82   :  { %2472 = vmatmul.mubr.bf16.vlgmr.msra.gmra.mxu0 %v3821_v13  ;;  %v3906_v13 = vld [vmem:[%s5342_s1 + $0x888] ss:$12 sps:$4 sm:$0xff]  }
  0x83   :  { %2523 = vmatmul.mubr.bf16.vlgmr.msra.gmra.mxu1 %v3824_v14  ;;  %2542 = vmatpush1.bf16.msra.mxu0 %v3827_v16  ;;  %v3911_v14 = vld [vmem:[%s5342_s1 + $0x6f4] ss:$12 sps:$4 sm:$0xff]   ;;  %v3909_v16 = vld [vmem:[%s5342_s1 + $0x6f0] ss:$12 sps:$4 sm:$0xff]  }
  0x84   :  { %2593 = vmatpush1.bf16.msra.mxu1 %v3830_v17  ;;  %2543 = vmatprep.subr.bf16.mxu0 %v3835_v20  ;;  %v3912_v17 = vld [vmem:[%s5342_s1 + $0x870] ss:$12 sps:$4 sm:$0xff]   ;;  %v3915_v20 = vld [vmem:[%s5342_s1 + $0x6d8] ss:$12 sps:$4 sm:$0xff]  }
  0x85   :  { %2594 = vmatprep.subr.bf16.mxu1 %v3838_v21  ;;  %2481 = vmatprep.mubr.bf16.mxu0 %v4567_v22  ;;  %v470_v21 = vlaneseq }
  0x86   :  { %2532 = vmatprep.mubr.bf16.mxu1 %v4569_v23 }
  0x87   :  { %2544 = vmatpush1.bf16.msra.mxu0 %v3833_v24  ;;  %v3918_v24 = vld [vmem:[%s5342_s1 + $0x858] ss:$12 sps:$4 sm:$0xff]  }
  0x88   :  { %2595 = vmatpush1.bf16.msra.mxu1 %v3836_v25  ;;  %2545 = vmatprep.subr.bf16.mxu0 %v3843_v26  ;;  %v3923_v25 = vld [vmem:[%s5342_s1 + $0x6c4] ss:$12 sps:$4 sm:$0xff]  }
  0x89   :  { %2596 = vmatprep.subr.bf16.mxu1 %v3846_v29  ;;  %v3926_v26 = vld [vmem:[%s5342_s1 + $0x844] ss:$12 sps:$4 sm:$0xff]   ;;  %v4753_v29 = vshrl.u32 %v470_v21, 7 }
  0x8a   :  { %2482 = vmatmul.mubr.bf16.gmra.mxu0 %v4585_v30  ;;  %v3985_v21 = vld [vmem:[%s5342_s1 + $0x2d8] ss:$12 sps:$4 sm:$0xff]  }
  0x8b   :  { %2533 = vmatmul.mubr.bf16.gmra.mxu1 %v4593_v35  ;;  %2546 = vmatpush1.bf16.msra.mxu0 %v3841_v31  ;;  %v3921_v31 = vld [vmem:[%s5342_s1 + $0x6c0] ss:$12 sps:$4 sm:$0xff]  }
  0x8c   :  { %2597 = vmatpush1.bf16.msra.mxu1 %v3844_v34  ;;  %2547 = vmatprep.subr.bf16.mxu0 %v3851_v36  ;;  %v3924_v34 = vld [vmem:[%s5342_s1 + $0x840] ss:$12 sps:$4 sm:$0xff]  }
  0x8d   :  { %2598 = vmatprep.subr.bf16.mxu1 %v3854_v37  ;;  %2573 = vmatprep.mubr.bf16.mxu0 %v3929_v38  ;;  %v3935_v36 = vld [vmem:[%s5342_s1 + $0x9ac] ss:$12 sps:$4 sm:$0xff]   ;;  %v4772_v38 = vld [vmem:[%s5343_s0 + $0x28] ss:$56 sps:$4 sm:$0xff]  }
  0x8e   :  { %2624 = vmatprep.mubr.bf16.mxu1 %v3932_v39  ;;  %v4767_v37 = vld [vmem:[%s5343_s0 + $0x20] ss:$56 sps:$4 sm:$0xff]   ;;  %v3936_v39 = vld [vmem:[%s5342_s1 + $0x170] ss:$12 sps:$4 sm:$0xff]  }
  0x8f   :  { %2548 = vmatpush1.bf16.msra.mxu0 %v3849_v40  ;;  %v3933_v40 = vld [vmem:[%s5342_s1 + $0x9a8] ss:$12 sps:$4 sm:$0xff]  }
  0x90   :  { %2599 = vmatpush1.bf16.msra.mxu1 %v3852_v41  ;;  %2549 = vmatprep.subr.bf16.mxu0 %v3857_v42  ;;  %v3937_v41 = vld [vmem:[%s5342_s1 + $0xb0] ss:$12 sps:$4 sm:$0xff]  }
  0x91   :  { %2600 = vmatprep.subr.bf16.mxu1 %v3860_v43  ;;  %v33_v42 = vld [vmem:[%s5343_s0 + $0x90] sm:$0x11]  ;;  %v34_v43 = vld [vmem:[%s5343_s0 + $0x98] sm:$0x11] }
  0x93   :  { %2550 = vmatpush1.bf16.msra.mxu0 %v3855_v44  ;;  %v3940_v44 = vld [vmem:[%s5342_s1 + $0x994] ss:$12 sps:$4 sm:$0xff]  }
  0x94   :  { %2601 = vmatpush1.bf16.msra.mxu1 %v3858_v45  ;;  %2551 = vmatprep.subr.bf16.mxu0 %v3863_v46  ;;  %v3941_v45 = vld [vmem:[%s5342_s1 + $0x158] ss:$12 sps:$4 sm:$0xff]   ;;  %v4795_v46 = vcombine.high %v33_v42, %v33_v42 }
  0x95   :  { %2602 = vmatprep.subr.bf16.mxu1 %v3866_v47  ;;  %v4797_v47 = vcombine.high %v34_v43, %v34_v43 }
  0x97   :  { %2552 = vmatpush1.bf16.msra.mxu0 %v3861_v48  ;;  %v472_v48 = vsub.s32 0, %v4753_v29 }
  0x98   :  { %2603 = vmatpush1.bf16.msra.mxu1 %v3864_v49  ;;  %2553 = vmatprep.subr.bf16.mxu0 %v3869_v50  ;;  %v476_v49 = vsub.s32 1, %v4753_v29  ;;  %v3938_v50 = vld [vmem:[%s5342_s1 + $0x990] ss:$12 sps:$4 sm:$0xff]  }
  0x99   :  { %2604 = vmatprep.subr.bf16.mxu1 %v3872_v51  ;;  %v3942_v51 = vld [vmem:[%s5342_s1 + $0x98] ss:$12 sps:$4 sm:$0xff]  }
  0x9b   :  { %2554 = vmatpush1.bf16.msra.mxu0 %v3867_v52  ;;  %v3947_v52 = vld [vmem:[%s5342_s1 + $0x97c] ss:$12 sps:$4 sm:$0xff]  }
  0x9c   :  { %2605 = vmatpush1.bf16.msra.mxu1 %v3870_v53  ;;  %2555 = vmatprep.subr.bf16.mxu0 %v3875_v54  ;;  %v3948_v53 = vld [vmem:[%s5342_s1 + $0x140] ss:$12 sps:$4 sm:$0xff]   ;;  %v3945_v54 = vld [vmem:[%s5342_s1 + $0x978] ss:$12 sps:$4 sm:$0xff]  }
  0x9d   :  { %2606 = vmatprep.subr.bf16.mxu1 %v3878_v55  ;;  %v4820_v55 = vcombine.low %v33_v42, %v33_v42  ;;  %v3996_v42 = vld [vmem:[%s5342_s1 + $0x1e8] ss:$12 sps:$4 sm:$0xff]  }
  0x9f   :  { %2556 = vmatpush1.bf16.msra.mxu0 %v3873_v56  ;;  %v3950_v56 = vld [vmem:[%s5342_s1 + $0x80] ss:$12 sps:$4 sm:$0xff]  }
  0xa0   :  { %2607 = vmatpush1.bf16.msra.mxu1 %v3876_v57  ;;  %2557 = vmatprep.subr.bf16.mxu0 %v3881_v58  ;;  %v4825_v57 = vcombine.low %v34_v43, %v34_v43  ;;  %v3954_v58 = vld [vmem:[%s5342_s1 + $0x964] ss:$12 sps:$4 sm:$0xff]  }
  0xa1   :  { %2608 = vmatprep.subr.bf16.mxu1 %v3884_v59  ;;  %v3955_v59 = vld [vmem:[%s5342_s1 + $0x128] ss:$12 sps:$4 sm:$0xff]   ;;  %v4000_v43 = vld [vmem:[%s5342_s1 + $0x290] ss:$12 sps:$4 sm:$0xff]  }
  0xa3   :  { %2558 = vmatpush2.bf16.msra.mxu0 %v3879_v60  ;;  %v3952_v60 = vld [vmem:[%s5342_s1 + $0x960] ss:$12 sps:$4 sm:$0xff]  }
  0xa4   :  { %2609 = vmatpush2.bf16.msra.mxu1 %v3882_v61  ;;  %2559 = vmatprep.subr.bf16.mxu0 %v3887_v62  ;;  %v4839_v61 = vld [vmem:[%s5343_s0 + $0x34] ss:$56 sps:$4 sm:$0xff]  }
  0xa5   :  { %2610 = vmatprep.subr.bf16.mxu1 %v3890_v63  ;;  %v3956_v62 = vld [vmem:[%s5342_s1 + $0x68] ss:$12 sps:$4 sm:$0xff]   ;;  %v3959_v63 = vld [vmem:[%s5342_s1 + $0x94c] ss:$12 sps:$4 sm:$0xff]  }
  0xa7   :  { %2560 = vmatpush2.bf16.msra.mxu0 %v3885_v0  ;;  %v3960_v0 = vld [vmem:[%s5342_s1 + $0x110] ss:$12 sps:$4 sm:$0xff]  }
  0xa8   :  { %2611 = vmatpush2.bf16.msra.mxu1 %v3888_v1  ;;  %2561 = vmatprep.subr.bf16.mxu0 %v3893_v2  ;;  %v3957_v1 = vld [vmem:[%s5342_s1 + $0x948] ss:$12 sps:$4 sm:$0xff]   ;;  %v4086_v2 = vld [vmem:[%s5343_s0 + $0x4] ss:$56 sps:$4 sm:$0xff]  }
  0xa9   :  { %2612 = vmatprep.subr.bf16.mxu1 %v3896_v3  ;;  %v3961_v3 = vld [vmem:[%s5342_s1 + $0x50] ss:$12 sps:$4 sm:$0xff]  }
  0xab   :  { %2562 = vmatpush2.bf16.msra.mxu0 %v3891_v4  ;;  %v3964_v4 = vld [vmem:[%s5342_s1 + $0x934] ss:$12 sps:$4 sm:$0xff]  }
  0xac   :  { %2613 = vmatpush2.bf16.msra.mxu1 %v3894_v5  ;;  %2563 = vmatprep.subr.bf16.mxu0 %v3899_v6  ;;  %v3965_v5 = vld [vmem:[%s5342_s1 + $0xf8] ss:$12 sps:$4 sm:$0xff]   ;;  %v3962_v6 = vld [vmem:[%s5342_s1 + $0x930] ss:$12 sps:$4 sm:$0xff]  }
  0xad   :  { %2614 = vmatprep.subr.bf16.mxu1 %v3902_v7  ;;  %v3966_v7 = vld [vmem:[%s5342_s1 + $0x38] ss:$12 sps:$4 sm:$0xff]  }
  0xaf   :  { %2564 = vmatpush2.bf16.msra.mxu0 %v3897_v8  ;;  %v3969_v8 = vld [vmem:[%s5342_s1 + $0x91c] ss:$12 sps:$4 sm:$0xff]  }
  0xb0   :  { %2615 = vmatpush2.bf16.msra.mxu1 %v3900_v9  ;;  %2565 = vmatprep.subr.bf16.mxu0 %v3905_v10  ;;  %v3970_v9 = vld [vmem:[%s5342_s1 + $0xe0] ss:$12 sps:$4 sm:$0xff]   ;;  %v3967_v10 = vld [vmem:[%s5342_s1 + $0x918] ss:$12 sps:$4 sm:$0xff]  }
  0xb1   :  { %2616 = vmatprep.subr.bf16.mxu1 %v3908_v11  ;;  %v3971_v11 = vld [vmem:[%s5342_s1 + $0x20] ss:$12 sps:$4 sm:$0xff]  }
  0xb3   :  { %2566 = vmatpush2.bf16.msra.mxu0 %v3903_v12  ;;  %v3974_v12 = vld [vmem:[%s5342_s1 + $0x904] ss:$12 sps:$4 sm:$0xff]  }
  0xb4   :  { %2617 = vmatpush2.bf16.msra.mxu1 %v3906_v13  ;;  %2567 = vmatprep.subr.bf16.mxu0 %v3911_v14  ;;  %v3975_v13 = vld [vmem:[%s5342_s1 + $0xc8] ss:$12 sps:$4 sm:$0xff]   ;;  %v3972_v14 = vld [vmem:[%s5342_s1 + $0x900] ss:$12 sps:$4 sm:$0xff]  }
  0xb5   :  { %2618 = vmatprep.subr.bf16.mxu1 %v3914_v15  ;;  %v3976_v15 = vld [vmem:[%s5342_s1 + $0x8] ss:$12 sps:$4 sm:$0xff]  }
  0xb7   :  { %2568 = vmatpush2.bf16.msra.mxu0 %v3909_v16  ;;  %v3979_v16 = vld [vmem:[%s5342_s1 + $0xa0c] ss:$12 sps:$4 sm:$0xff]  }
  0xb8   :  { %2619 = vmatpush2.bf16.msra.mxu1 %v3912_v17  ;;  %2569 = vmatprep.subr.bf16.mxu0 %v3917_v18  ;;  %v3980_v17 = vld [vmem:[%s5342_s1 + $0x2f0] ss:$12 sps:$4 sm:$0xff]   ;;  %v3977_v18 = vld [vmem:[%s5342_s1 + $0xa08] ss:$12 sps:$4 sm:$0xff]  }
  0xb9   :  { %2620 = vmatprep.subr.bf16.mxu1 %v3920_v19  ;;  %v3981_v19 = vld [vmem:[%s5342_s1 + $0x230] ss:$12 sps:$4 sm:$0xff]  }
  0xbb   :  { %2570 = vmatpush2.bf16.msra.mxu0 %v3915_v20  ;;  %v3984_v20 = vld [vmem:[%s5342_s1 + $0x9f4] ss:$12 sps:$4 sm:$0xff]  }
  0xbc   :  { %2621 = vmatpush2.bf16.msra.mxu1 %v3918_v24  ;;  %2571 = vmatprep.subr.bf16.mxu0 %v3923_v25  ;;  %v3982_v24 = vld [vmem:[%s5342_s1 + $0x9f0] ss:$12 sps:$4 sm:$0xff]   ;;  %v4087_v25 = vld [vmem:[%s5343_s0] ss:$56 sps:$4 sm:$0xff]  }
  0xbd   :  { %2622 = vmatprep.subr.bf16.mxu1 %v3926_v26  ;;  %v3986_v26 = vld [vmem:[%s5342_s1 + $0x218] ss:$12 sps:$4 sm:$0xff]  }
  0xbf   :  { %2572 = vmatpush2.bf16.msra.mxu0 %v3921_v31  ;;  %v3989_v31 = vld [vmem:[%s5342_s1 + $0x9dc] ss:$12 sps:$4 sm:$0xff]  }
  0xc0   :  { %2623 = vmatpush2.bf16.msra.mxu1 %v3924_v34  ;;  %2643 = vmatprep.subr.bf16.mxu0 %v3935_v36  ;;  %v3990_v34 = vld [vmem:[%s5342_s1 + $0x2c0] ss:$12 sps:$4 sm:$0xff]   ;;  %v3987_v36 = vld [vmem:[%s5342_s1 + $0x9d8] ss:$12 sps:$4 sm:$0xff]  }
  0xc1   :  { %3450 = vmatprep.subr.bf16.mxu1 %v3936_v39  ;;  %v3991_v39 = vld [vmem:[%s5342_s1 + $0x200] ss:$12 sps:$4 sm:$0xff]  }
  0xc2   :  { %2574 = vmatmul.mubr.bf16.vlgmr.msra.gmra.mxu0 %v4767_v37 }
  0xc3   :  { %2625 = vmatmul.mubr.bf16.vlgmr.msra.gmra.mxu1 %v4772_v38  ;;  %2644 = vmatpush1.bf16.msra.mxu0 %v3933_v40  ;;  %v3994_v40 = vld [vmem:[%s5342_s1 + $0x9c4] ss:$12 sps:$4 sm:$0xff]  }
  0xc4   :  { %3451 = vmatpush3.bf16.msra.mxu1 %v3937_v41  ;;  %2645 = vmatprep.subr.bf16.mxu0 %v3940_v44  ;;  %v3995_v41 = vld [vmem:[%s5342_s1 + $0x2a8] ss:$12 sps:$4 sm:$0xff]  }
  0xc5   :  { %3452 = vmatprep.subr.bf16.mxu1 %v3941_v45  ;;  %2583 = vmatprep.mubr.bf16.mxu0 %v4795_v46  ;;  %v4958_v44 = vld [vmem:[%s5343_s0 + $0x30] ss:$56 sps:$4 sm:$0xff]  }
  0xc6   :  { %2634 = vmatprep.mubr.bf16.mxu1 %v4797_v47  ;;  %v4001_v45 = vld [vmem:[%s5342_s1 + $0x470] ss:$12 sps:$4 sm:$0xff]  }
  0xc7   :  { %2646 = vmatpush1.bf16.msra.mxu0 %v3938_v50  ;;  %v4003_v50 = vld [vmem:[%s5342_s1 + $0x3b0] ss:$12 sps:$4 sm:$0xff]  }
  0xc8   :  { %3453 = vmatpush3.bf16.msra.mxu1 %v3942_v51  ;;  %2647 = vmatprep.subr.bf16.mxu0 %v3947_v52  ;;  %v4088_v51 = vld [vmem:[%s5343_s0 + $0xc] ss:$56 sps:$4 sm:$0xff]  }
  0xc9   :  { %3454 = vmatprep.subr.bf16.mxu1 %v3948_v53  ;;  %v35_v52 = vld [vmem:[%s5343_s0 + $0xa0] sm:$0x11] }
  0xca   :  { %2584 = vmatmul.mubr.bf16.gmra.mxu0 %v4820_v55  ;;  %v4004_v53 = vld [vmem:[%s5342_s1 + $0x278] ss:$12 sps:$4 sm:$0xff]  }
  0xcb   :  { %2635 = vmatmul.mubr.bf16.gmra.mxu1 %v4825_v57  ;;  %2648 = vmatpush1.bf16.msra.mxu0 %v3945_v54  ;;  %v4005_v54 = vld [vmem:[%s5342_s1 + $0x458] ss:$12 sps:$4 sm:$0xff]  }
  0xcc   :  { %3455 = vmatpush3.bf16.msra.mxu1 %v3950_v56  ;;  %2649 = vmatprep.subr.bf16.mxu0 %v3954_v58  ;;  %v4006_v56 = vld [vmem:[%s5342_s1 + $0x1b8] ss:$12 sps:$4 sm:$0xff]   ;;  %v4984_v58 = vcombine.high %v35_v52, %v35_v52 }
  0xcd   :  { %3456 = vmatprep.subr.bf16.mxu1 %v3955_v59  ;;  %2726 = vmatprep.mubr.bf16.mxu1 %v4086_v2  ;;  %v4007_v59 = vld [vmem:[%s5342_s1 + $0x398] ss:$12 sps:$4 sm:$0xff]   ;;  %v4014_v2 = vld [vmem:[%s5342_s1 + $0x248] ss:$12 sps:$4 sm:$0xff]  }
  0xce   :  { %3434 = vmatprep.mubr.msk.bf16.mxu0 %vm2330_vm0, %v4839_v61 }
  0xcf   :  { %2650 = vmatpush1.bf16.msra.mxu0 %v3952_v60  ;;  %v4010_v60 = vld [vmem:[%s5342_s1 + $0x260] ss:$12 sps:$4 sm:$0xff]  }
  0xd0   :  { %3457 = vmatpush3.bf16.msra.mxu1 %v3956_v62  ;;  %2651 = vmatprep.subr.bf16.mxu0 %v3959_v63  ;;  %v4011_v62 = vld [vmem:[%s5342_s1 + $0x440] ss:$12 sps:$4 sm:$0xff]  }
  0xd1   :  { %3458 = vmatprep.subr.bf16.mxu1 %v3960_v0  ;;  %v4012_v63 = vld [vmem:[%s5342_s1 + $0x1a0] ss:$12 sps:$4 sm:$0xff]   ;;  %v5001_v0 = vcombine.low %v35_v52, %v35_v52  ;;  %v4032_v52 = vld [vmem:[%s5342_s1 + $0x308] ss:$12 sps:$4 sm:$0xff]  }
  0xd3   :  { %2652 = vmatpush1.bf16.msra.mxu0 %v3957_v1  ;;  %v4013_v1 = vld [vmem:[%s5342_s1 + $0x380] ss:$12 sps:$4 sm:$0xff]  }
  0xd4   :  { %3459 = vmatpush3.bf16.msra.mxu1 %v3961_v3  ;;  %2653 = vmatprep.subr.bf16.mxu0 %v3964_v4  ;;  %v4015_v3 = vld [vmem:[%s5342_s1 + $0x428] ss:$12 sps:$4 sm:$0xff]  }
  0xd5   :  { %3460 = vmatprep.subr.bf16.mxu1 %v3965_v5  ;;  %v4016_v4 = vld [vmem:[%s5342_s1 + $0x188] ss:$12 sps:$4 sm:$0xff]  }
  0xd6   :  { %v4017_v5 = vld [vmem:[%s5342_s1 + $0x368] ss:$12 sps:$4 sm:$0xff]  }
  0xd7   :  { %2654 = vmatpush1.bf16.msra.mxu0 %v3962_v6  ;;  %v5022_v6 = vld [vmem:[%s5344_s2] sm:$0x7] }
  0xd8   :  { %3461 = vmatpush3.bf16.msra.mxu1 %v3966_v7  ;;  %2655 = vmatprep.subr.bf16.mxu0 %v3969_v8  ;;  %v4018_v7 = vld [vmem:[%s5342_s1 + $0x410] ss:$12 sps:$4 sm:$0xff]  }
  0xd9   :  { %3462 = vmatprep.subr.bf16.mxu1 %v3970_v9  ;;  %v4019_v8 = vld [vmem:[%s5342_s1 + $0x5f0] ss:$12 sps:$4 sm:$0xff]  }
  0xda   :  { %v4020_v9 = vld [vmem:[%s5342_s1 + $0x350] ss:$12 sps:$4 sm:$0xff]  }
  0xdb   :  { %2656 = vmatpush1.bf16.msra.mxu0 %v3967_v10  ;;  %v4089_v10 = vld [vmem:[%s5343_s0 + $0x14] ss:$56 sps:$4 sm:$0xff]  }
  0xdc   :  { %3463 = vmatpush3.bf16.msra.mxu1 %v3971_v11  ;;  %2657 = vmatprep.subr.bf16.mxu0 %v3974_v12  ;;  %v4021_v11 = vld [vmem:[%s5342_s1 + $0x530] ss:$12 sps:$4 sm:$0xff]   ;;  %v5042_v12 = vrot.slane %v5022_v6, %v472_v48  ;;  %v4024_v48 = vld [vmem:[%s5342_s1 + $0x338] ss:$12 sps:$4 sm:$0xff]  }
  0xdd   :  { %3464 = vmatprep.subr.bf16.mxu1 %v3975_v13  ;;  %v4022_v13 = vld [vmem:[%s5342_s1 + $0x3f8] ss:$12 sps:$4 sm:$0xff]  }
  0xdf   :  { %2658 = vmatpush1.bf16.msra.mxu0 %v3972_v14  ;;  %v4023_v14 = vld [vmem:[%s5342_s1 + $0x5d8] ss:$12 sps:$4 sm:$0xff]  }
  0xe0   :  { %3465 = vmatpush3.bf16.msra.mxu1 %v3976_v15  ;;  %2667 = vmatprep.subr.bf16.mxu0 %v3979_v16  ;;  %v5053_v15 = vrot.slane %v5022_v6, %v476_v49  ;;  %v4026_v49 = vld [vmem:[%s5342_s1 + $0x3e0] ss:$12 sps:$4 sm:$0xff]  }
  0xe1   :  { %3478 = vmatprep.subr.bf16.mxu1 %v3980_v17  ;;  %v4090_v17 = vld [vmem:[%s5343_s0 + $0x8] ss:$56 sps:$4 sm:$0xff]  }
  0xe3   :  { %2727 = vmatmul.mubr.bf16.vlgmr.msra.gmra.mxu1 %v4087_v25  ;;  %2668 = vmatpush2.bf16.msra.mxu0 %v3977_v18  ;;  %v4027_v25 = vld [vmem:[%s5342_s1 + $0x5c0] ss:$12 sps:$4 sm:$0xff]  }
  0xe4   :  { %3479 = vmatpush3.bf16.msra.mxu1 %v3981_v19  ;;  %2669 = vmatprep.subr.bf16.mxu0 %v3984_v20  ;;  %v4025_v19 = vld [vmem:[%s5342_s1 + $0x518] ss:$12 sps:$4 sm:$0xff]  }
  0xe5   :  { %3480 = vmatprep.subr.bf16.mxu1 %v3985_v21  ;;  %2734 = vmatprep.mubr.bf16.mxu1 %v4390_v27  ;;  %v3992_v27 = vld [vmem:[%s5342_s1 + $0x9c0] ss:$12 sps:$4 sm:$0xff]  }
  0xe7   :  { %2670 = vmatpush2.bf16.msra.mxu0 %v3982_v24 }
  0xe8   :  { %3481 = vmatpush3.bf16.msra.mxu1 %v3986_v26  ;;  %2671 = vmatprep.subr.bf16.mxu0 %v3989_v31 }
  0xe9   :  { %3482 = vmatprep.subr.bf16.mxu1 %v3990_v34 }
  0xeb   :  { %2735 = vmatmul.mubr.bf16.gmra.mxu1 %v4392_v28  ;;  %2672 = vmatpush2.bf16.msra.mxu0 %v3987_v36  ;;  %v4002_v28 = vld [vmem:[%s5342_s1 + $0x1d0] ss:$12 sps:$4 sm:$0xff]  }
  0xec   :  { %3483 = vmatpush3.bf16.msra.mxu1 %v3991_v39  ;;  %2673 = vmatprep.subr.bf16.mxu0 %v3994_v40 }
  0xed   :  { %3484 = vmatprep.subr.bf16.mxu1 %v3995_v41  ;;  %2774 = vmatprep.mubr.bf16.mxu1 %v4088_v51  ;;  %v4028_v41 = vld [vmem:[%s5342_s1 + $0x320] ss:$12 sps:$4 sm:$0xff]  }
  0xef   :  { %2674 = vmatpush2.bf16.msra.mxu0 %v3992_v27  ;;  %v4029_v27 = vld [vmem:[%s5342_s1 + $0x500] ss:$12 sps:$4 sm:$0xff]  }
  0xf0   :  { %3485 = vmatpush3.bf16.msra.mxu1 %v3996_v42  ;;  %3506 = vmatprep.subr.bf16.mxu0 %v4001_v45  ;;  %v4031_v45 = vld [vmem:[%s5342_s1 + $0x5a8] ss:$12 sps:$4 sm:$0xff]  }
  0xf1   :  { %3486 = vmatprep.subr.bf16.mxu1 %v4000_v43 }
  0xf2   :  { %2676 = vmatmul.mubr.bf16.vlgmr.msra.gmra.mxu0 %v4958_v44 }
  0xf3   :  { %3507 = vmatpush3.bf16.msra.mxu0 %v4003_v50  ;;  %3435 = vmatprep.mubr.msk.bf16.mxu0 %vm2330_vm0, %v4984_v58 }
  0xf4   :  { %3487 = vmatpush3.bf16.msra.mxu1 %v4002_v28  ;;  %3508 = vmatprep.subr.bf16.mxu0 %v4005_v54  ;;  %v4034_v54 = vld [vmem:[%s5342_s1 + $0x590] ss:$12 sps:$4 sm:$0xff]  }
  0xf5   :  { %3488 = vmatprep.subr.bf16.mxu1 %v4004_v53  ;;  %v4033_v53 = vld [vmem:[%s5342_s1 + $0x4e8] ss:$12 sps:$4 sm:$0xff]  }
  0xf7   :  { %3509 = vmatpush3.bf16.msra.mxu0 %v4007_v59  ;;  %v4036_v59 = vld [vmem:[%s5342_s1 + $0x4d0] ss:$12 sps:$4 sm:$0xff]  }
  0xf8   :  { %3489 = vmatpush3.bf16.msra.mxu1 %v4006_v56  ;;  %3510 = vmatprep.subr.bf16.mxu0 %v4011_v62  ;;  %v4091_v56 = vld [vmem:[%s5343_s0 + $0x1c] ss:$56 sps:$4 sm:$0xff]   ;;  %v4038_v62 = vld [vmem:[%s5342_s1 + $0x578] ss:$12 sps:$4 sm:$0xff]  }
  0xf9   :  { %3490 = vmatprep.subr.bf16.mxu1 %v4010_v60  ;;  %v4037_v60 = vld [vmem:[%s5342_s1 + $0x6b0] ss:$12 sps:$4 sm:$0xff]  }
  0xfa   :  { %2686 = vmatmul.mubr.bf16.gmra.mxu0 %v5001_v0 }
  0xfb   :  { %3511 = vmatpush3.bf16.msra.mxu0 %v4013_v1  ;;  %2822 = vmatprep.mubr.bf16.mxu0 %v4089_v10  ;;  %v4092_v1 = vld [vmem:[%s5343_s0 + $0x10] ss:$56 sps:$4 sm:$0xff]   ;;  %v4044_v10 = vld [vmem:[%s5342_s1 + $0x4a0] ss:$12 sps:$4 sm:$0xff]  }
  0xfc   :  { %3491 = vmatpush3.bf16.msra.mxu1 %v4012_v63  ;;  %3512 = vmatprep.subr.bf16.mxu0 %v4015_v3  ;;  %v4039_v63 = vld [vmem:[%s5342_s1 + $0x758] ss:$12 sps:$4 sm:$0xff]  }
  0xfd   :  { %3492 = vmatprep.subr.bf16.mxu1 %v4014_v2  ;;  %v4040_v2 = vld [vmem:[%s5342_s1 + $0x4b8] ss:$12 sps:$4 sm:$0xff]  }
  0xfe   :  { %v4041_v3 = vld [vmem:[%s5342_s1 + $0x698] ss:$12 sps:$4 sm:$0xff]  }
  0xff   :  { %3513 = vmatpush3.bf16.msra.mxu0 %v4017_v5  ;;  %v4043_v5 = vld [vmem:[%s5342_s1 + $0x740] ss:$12 sps:$4 sm:$0xff]  }
 0x100   :  { %3493 = vmatpush3.bf16.msra.mxu1 %v4016_v4  ;;  %3514 = vmatprep.subr.bf16.mxu0 %v4018_v7  ;;  %v4042_v4 = vld [vmem:[%s5342_s1 + $0x560] ss:$12 sps:$4 sm:$0xff]  }
 0x101   :  { %3534 = vmatprep.subr.bf16.mxu1 %v4019_v8 }
 0x102   :  { %v2371_v16 = vpop.f32.mrf.mxu0 }
 0x103   :  { %2775 = vmatmul.mubr.bf16.vlgmr.msra.gmra.mxu1 %v4090_v17  ;;  %v2422_v18 = vpop.f32.mrf.mxu1  ;;  %v2372_v20 = vadd.f32 %v2371_v16, %v5042_v12  ;;  %3515 = vmatpush3.bf16.msra.mxu0 %v4020_v9 }
 0x104   :  { %3535 = vmatpush3.bf16.msra.mxu1 %v4021_v11  ;;  %v2373_v21 = vpop.f32.mrf.mxu0  ;;  %3516 = vmatprep.subr.bf16.mxu0 %v4022_v13  ;;  %v4045_v11 = vld [vmem:[%s5342_s1 + $0x680] ss:$12 sps:$4 sm:$0xff]  }
 0x105   :  { %v2424_v24 = vpop.f32.mrf.mxu1  ;;  %3536 = vmatprep.subr.bf16.mxu1 %v4023_v14  ;;  %v2374_v26 = vadd.f32 %v2373_v21, %v5053_v15  ;;  %v5072_v31 = vadd.f32 %v2422_v18, %v2372_v20  ;;  %2782 = vmatprep.mubr.bf16.mxu1 %v4404_v32  ;;  %v4030_v32 = vld [vmem:[%s5342_s1 + $0x3c8] ss:$12 sps:$4 sm:$0xff]   ;;  %v4051_v21 = vld [vmem:[%s5342_s1 + $0x8f0] ss:$12 sps:$4 sm:$0xff]  }
 0x106   :  { %v2375_v34 = vpop.f32.mrf.mxu0  ;;  %v4048_v20 = vld [vmem:[%s5342_s1 + $0x488] ss:$12 sps:$4 sm:$0xff]  }
 0x107   :  { %v2426_v36 = vpop.f32.mrf.mxu1  ;;  %v2376_v39 = vadd.f32 %v2375_v34, %v5042_v12  ;;  %v5076_v40 = vadd.f32 %v2424_v24, %v2374_v26  ;;  %3517 = vmatpush3.bf16.msra.mxu0 %v4024_v48  ;;  %v4052_v26 = vld [vmem:[%s5342_s1 + $0x650] ss:$12 sps:$4 sm:$0xff]  }
 0x108   :  { %3537 = vmatpush3.bf16.msra.mxu1 %v4025_v19  ;;  %v2377_v42 = vpop.f32.mrf.mxu0  ;;  %3518 = vmatprep.subr.bf16.mxu0 %v4026_v49  ;;  %v4049_v49 = vld [vmem:[%s5342_s1 + $0x668] ss:$12 sps:$4 sm:$0xff]   ;;  %v4053_v34 = vld [vmem:[%s5342_s1 + $0x830] ss:$12 sps:$4 sm:$0xff]  }
 0x109   :  { %v2428_v43 = vpop.f32.mrf.mxu1  ;;  %3538 = vmatprep.subr.bf16.mxu1 %v4027_v25  ;;  %v2378_v28 = vadd.f32 %v2377_v42, %v5053_v15  ;;  %v5091_v50 = vadd.f32 %v2426_v36, %v2376_v39  ;;  %v4093_v25 = vld [vmem:[%s5343_s0 + $0x24] ss:$56 sps:$4 sm:$0xff]  }
 0x10a   :  { %v2381_v7 = vpop.f32.mrf.mxu0  ;;  %v4054_v36 = vld [vmem:[%s5342_s1 + $0x6f8] ss:$12 sps:$4 sm:$0xff]  }
 0x10b   :  { %2783 = vmatmul.mubr.bf16.gmra.mxu1 %v4406_v33  ;;  %v5094_v51 = vadd.f32 %v2428_v43, %v2378_v28  ;;  %3519 = vmatpush3.bf16.msra.mxu0 %v4028_v41  ;;  %v4035_v33 = vld [vmem:[%s5342_s1 + $0x770] ss:$12 sps:$4 sm:$0xff]   ;;  %v2382_v8 = vadd.f32 %v2381_v7, %v5042_v12  ;;  %v2432_v9 = vpop.f32.mrf.mxu1  ;;  %v4047_v12 = vld [vmem:[%s5342_s1 + $0x728] ss:$12 sps:$4 sm:$0xff]   ;;  %v4055_v39 = vld [vmem:[%s5342_s1 + $0x8d8] ss:$12 sps:$4 sm:$0xff]  }
 0x10c   :  { %3539 = vmatpush3.bf16.msra.mxu1 %v4029_v27  ;;  %3520 = vmatprep.subr.bf16.mxu0 %v4030_v32  ;;  %v2383_v13 = vpop.f32.mrf.mxu0  ;;  %v4094_v41 = vld [vmem:[%s5343_s0 + $0x18] ss:$56 sps:$4 sm:$0xff]   ;;  %v4058_v43 = vld [vmem:[%s5342_s1 + $0x6e0] ss:$12 sps:$4 sm:$0xff]  }
 0x10d   :  { %3540 = vmatprep.subr.bf16.mxu1 %v4031_v45  ;;  %2870 = vmatprep.mubr.bf16.mxu1 %v4091_v56  ;;  %v2384_v14 = vadd.f32 %v2383_v13, %v5053_v15  ;;  %v5153_v48 = vadd.f32 %v2432_v9, %v2382_v8  ;;  %v2434_v16 = vpop.f32.mrf.mxu1  ;;  %v4056_v27 = vld [vmem:[%s5342_s1 + $0x638] ss:$12 sps:$4 sm:$0xff]   ;;  %v4059_v32 = vld [vmem:[%s5342_s1 + $0x8c0] ss:$12 sps:$4 sm:$0xff]   ;;  %v4067_v56 = vld [vmem:[%s5342_s1 + $0x7d0] ss:$12 sps:$4 sm:$0xff]  }
 0x10e   :  { %v2385_v17 = vpop.f32.mrf.mxu0  ;;  %v4057_v42 = vld [vmem:[%s5342_s1 + $0x818] ss:$12 sps:$4 sm:$0xff]   ;;  %v4060_v45 = vld [vmem:[%s5342_s1 + $0x620] ss:$12 sps:$4 sm:$0xff]  }
 0x10f   :  { %3521 = vmatpush3.bf16.msra.mxu0 %v4032_v52  ;;  %v5156_v18 = vadd.f32 %v2434_v16, %v2384_v14  ;;  %v2436_v19 = vpop.f32.mrf.mxu1  ;;  %v4061_v28 = vld [vmem:[%s5342_s1 + $0x800] ss:$12 sps:$4 sm:$0xff]   ;;  %v4062_v52 = vld [vmem:[%s5342_s1 + $0x6c8] ss:$12 sps:$4 sm:$0xff]  }
 0x110   :  { %3541 = vmatpush3.bf16.msra.mxu1 %v4033_v53  ;;  %3562 = vmatprep.subr.bf16.mxu0 %v4035_v33  ;;  %v2386_v15 = vpop.f32.mrf.mxu0  ;;  %v4064_v53 = vld [vmem:[%s5342_s1 + $0x608] ss:$12 sps:$4 sm:$0xff]   ;;  %v4066_v33 = vld [vmem:[%s5342_s1 + $0x890] ss:$12 sps:$4 sm:$0xff]   ;;  %v4080_v16 = vld [vmem:[%s5342_s1 + $0x920] ss:$12 sps:$4 sm:$0xff]  }
 0x111   :  { %3542 = vmatprep.subr.bf16.mxu1 %v4034_v54  ;;  %v2437_v24 = vpop.f32.mrf.mxu1  ;;  %v4065_v54 = vld [vmem:[%s5342_s1 + $0x7e8] ss:$12 sps:$4 sm:$0xff]  }
 0x112   :  { %2823 = vmatmul.mubr.bf16.vlgmr.msra.gmra.mxu0 %v4092_v1  ;;  %v4071_v1 = vld [vmem:[%s5342_s1 + $0x998] ss:$12 sps:$4 sm:$0xff]  }
 0x113   :  { %3563 = vmatpush3.bf16.msra.mxu0 %v4037_v60  ;;  %2830 = vmatprep.mubr.bf16.mxu0 %v4567_v22  ;;  %v4046_v22 = vld [vmem:[%s5342_s1 + $0x548] ss:$12 sps:$4 sm:$0xff]   ;;  %v4096_v60 = vmov 0  }
 0x114   :  { %3543 = vmatpush3.bf16.msra.mxu1 %v4036_v59  ;;  %3564 = vmatprep.subr.bf16.mxu0 %v4039_v63  ;;  %v4068_v59 = vld [vmem:[%s5342_s1 + $0x9b0] ss:$12 sps:$4 sm:$0xff]   ;;  %v4070_v63 = vld [vmem:[%s5342_s1 + $0x7b8] ss:$12 sps:$4 sm:$0xff]  }
 0x115   :  { %3544 = vmatprep.subr.bf16.mxu1 %v4038_v62  ;;  %v4069_v62 = vld [vmem:[%s5342_s1 + $0x878] ss:$12 sps:$4 sm:$0xff]  }
 0x117   :  { %3565 = vmatpush3.bf16.msra.mxu0 %v4041_v3  ;;  %v4074_v3 = vld [vmem:[%s5342_s1 + $0x980] ss:$12 sps:$4 sm:$0xff]  }
 0x118   :  { %3545 = vmatpush3.bf16.msra.mxu1 %v4040_v2  ;;  %3566 = vmatprep.subr.bf16.mxu0 %v4043_v5  ;;  %v4072_v2 = vld [vmem:[%s5342_s1 + $0x860] ss:$12 sps:$4 sm:$0xff]   ;;  %v4077_v5 = vld [vmem:[%s5342_s1 + $0x968] ss:$12 sps:$4 sm:$0xff]  }
 0x119   :  { %3546 = vmatprep.subr.bf16.mxu1 %v4042_v4  ;;  %v4075_v4 = vld [vmem:[%s5342_s1 + $0x848] ss:$12 sps:$4 sm:$0xff]  }
 0x11a   :  { %2831 = vmatmul.mubr.bf16.gmra.mxu0 %v4585_v30  ;;  %v4050_v30 = vld [vmem:[%s5342_s1 + $0x710] ss:$12 sps:$4 sm:$0xff]  }
 0x11b   :  { %3567 = vmatpush3.bf16.msra.mxu0 %v4045_v11  ;;  %2918 = vmatprep.mubr.bf16.mxu0 %v4093_v25 }
 0x11c   :  { %3547 = vmatpush3.bf16.msra.mxu1 %v4044_v10  ;;  %3568 = vmatprep.subr.bf16.mxu0 %v4047_v12  ;;  %v4079_v10 = vld [vmem:[%s5342_s1 + $0x938] ss:$12 sps:$4 sm:$0xff]  }
 0x11d   :  { %3548 = vmatprep.subr.bf16.mxu1 %v4046_v22 }
 0x11f   :  { %3569 = vmatpush3.bf16.msra.mxu0 %v4049_v49 }
 0x120   :  { %3549 = vmatpush3.bf16.msra.mxu1 %v4048_v20  ;;  %3570 = vmatprep.subr.bf16.mxu0 %v4050_v30  ;;  %v4081_v30 = vld [vmem:[%s5342_s1 + $0x908] ss:$12 sps:$4 sm:$0xff]  }
 0x121   :  { %3590 = vmatprep.subr.bf16.mxu1 %v4051_v21 }
 0x123   :  { %2871 = vmatmul.mubr.bf16.vlgmr.msra.gmra.mxu1 %v4094_v41  ;;  %3571 = vmatpush3.bf16.msra.mxu0 %v4052_v26  ;;  %v4083_v41 = vld [vmem:[%s5342_s1 + $0x9f8] ss:$12 sps:$4 sm:$0xff]  }
 0x124   :  { %3591 = vmatpush3.bf16.msra.mxu1 %v4053_v34  ;;  %3572 = vmatprep.subr.bf16.mxu0 %v4054_v36 }
 0x125   :  { %3592 = vmatprep.subr.bf16.mxu1 %v4055_v39  ;;  %2878 = vmatprep.mubr.bf16.mxu1 %v4569_v23  ;;  %v4063_v23 = vld [vmem:[%s5342_s1 + $0x8a8] ss:$12 sps:$4 sm:$0xff]  }
 0x127   :  { %3573 = vmatpush3.bf16.msra.mxu0 %v4056_v27  ;;  %v4085_v27 = vld [vmem:[%s5342_s1 + $0x9c8] ss:$12 sps:$4 sm:$0xff]  }
 0x128   :  { %3593 = vmatpush3.bf16.msra.mxu1 %v4057_v42  ;;  %3574 = vmatprep.subr.bf16.mxu0 %v4058_v43 }
 0x129   :  { %3594 = vmatprep.subr.bf16.mxu1 %v4059_v32 }
 0x12b   :  { %2879 = vmatmul.mubr.bf16.gmra.mxu1 %v4593_v35  ;;  %3575 = vmatpush3.bf16.msra.mxu0 %v4060_v45  ;;  %v4095_v35 = vld [vmem:[%s5343_s0 + $0x2c] ss:$56 sps:$4 sm:$0xff]  }
 0x12c   :  { %3595 = vmatpush3.bf16.msra.mxu1 %v4061_v28  ;;  %3576 = vmatprep.subr.bf16.mxu0 %v4062_v52 }
 0x12d   :  { %3596 = vmatprep.subr.bf16.mxu1 %v4063_v23  ;;  %2966 = vmatprep.mubr.bf16.mxu1 %v4095_v35 }
 0x12f   :  { %3577 = vmatpush3.bf16.msra.mxu0 %v4064_v53 }
 0x130   :  { %3597 = vmatpush3.bf16.msra.mxu1 %v4065_v54  ;;  %2982 = vmatprep.subr.bf16.mxu0 %v4096_v60 }
 0x131   :  { %3598 = vmatprep.subr.bf16.mxu1 %v4066_v33 }
 0x132   :  { %2919 = vmatmul.mubr.bf16.vlgmr.msra.gmra.mxu0 %v4767_v37  ;;  %v4073_v37 = vld [vmem:[%s5342_s1 + $0x7a0] ss:$12 sps:$4 sm:$0xff]  }
 0x133   :  { %2983 = vmatpush1.bf16.msra.mxu0 %v4068_v59  ;;  %2926 = vmatprep.mubr.bf16.mxu0 %v4795_v46  ;;  %v4076_v46 = vld [vmem:[%s5342_s1 + $0x788] ss:$12 sps:$4 sm:$0xff]  }
 0x134   :  { %3599 = vmatpush3.bf16.msra.mxu1 %v4067_v56  ;;  %2984 = vmatprep.subr.bf16.mxu0 %v4096_v60 }
 0x135   :  { %3600 = vmatprep.subr.bf16.mxu1 %v4069_v62 }
 0x137   :  { %2985 = vmatpush1.bf16.msra.mxu0 %v4071_v1 }
 0x138   :  { %3601 = vmatpush3.bf16.msra.mxu1 %v4070_v63  ;;  %2986 = vmatprep.subr.bf16.mxu0 %v4096_v60 }
 0x139   :  { %3602 = vmatprep.subr.bf16.mxu1 %v4072_v2 }
 0x13a   :  { %2927 = vmatmul.mubr.bf16.gmra.mxu0 %v4820_v55  ;;  %v4078_v55 = vld [vmem:[%s5342_s1 + $0x950] ss:$12 sps:$4 sm:$0xff]  }
 0x13b   :  { %2987 = vmatpush1.bf16.msra.mxu0 %v4074_v3  ;;  %3436 = vmatprep.mubr.msk.bf16.mxu0 %vm2330_vm0, %v4839_v61 }
 0x13c   :  { %3603 = vmatpush3.bf16.msra.mxu1 %v4073_v37  ;;  %2988 = vmatprep.subr.bf16.mxu0 %v4096_v60 }
 0x13d   :  { %3604 = vmatprep.subr.bf16.mxu1 %v4075_v4 }
 0x13f   :  { %2989 = vmatpush1.bf16.msra.mxu0 %v4077_v5 }
 0x140   :  { %3605 = vmatpush3.bf16.msra.mxu1 %v4076_v46  ;;  %2990 = vmatprep.subr.bf16.mxu0 %v4096_v60 }
 0x142   :  { %v2473_v7 = vpop.f32.mrf.mxu0 }
 0x143   :  { %2967 = vmatmul.mubr.bf16.vlgmr.msra.gmra.mxu1 %v4772_v38  ;;  %v2524_v8 = vpop.f32.mrf.mxu1  ;;  %v2474_v9 = vadd.f32 %v2473_v7, %v5072_v31  ;;  %2991 = vmatpush1.bf16.msra.mxu0 %v4078_v55 }
 0x144   :  { %2974 = vmatprep.mubr.bf16.mxu1 %v4797_v47  ;;  %v2475_v61 = vpop.f32.mrf.mxu0  ;;  %2992 = vmatprep.subr.bf16.mxu0 %v4096_v60 }
 0x145   :  { %v2526_v11 = vpop.f32.mrf.mxu1  ;;  %v2476_v13 = vadd.f32 %v2475_v61, %v5076_v40  ;;  %v5280_v22 = vadd.f32 %v2524_v8, %v2474_v9 }
 0x146   :  { %v2477_v12 = vpop.f32.mrf.mxu0 }
 0x147   :  { %v2528_v38 = vpop.f32.mrf.mxu1  ;;  %v2478_v14 = vadd.f32 %v2477_v12, %v5091_v50  ;;  %v5283_v31 = vadd.f32 %v2526_v11, %v2476_v13  ;;  %2993 = vmatpush1.bf16.msra.mxu0 %v4079_v10 }
 0x148   :  { %v2479_v47 = vpop.f32.mrf.mxu0  ;;  %2994 = vmatprep.subr.bf16.mxu0 %v4096_v60 }
 0x149   :  { %v2530_v17 = vpop.f32.mrf.mxu1  ;;  %v2480_v19 = vadd.f32 %v2479_v47, %v5094_v51  ;;  %v5290_v40 = vadd.f32 %v2528_v38, %v2478_v14 }
 0x14a   :  { %v2483_v20 = vpop.f32.mrf.mxu0 }
 0x14b   :  { %2975 = vmatmul.mubr.bf16.gmra.mxu1 %v4825_v57  ;;  %v2534_v49 = vpop.f32.mrf.mxu1  ;;  %v2484_v50 = vadd.f32 %v2483_v20, %v5153_v48  ;;  %v2531_v15 = vadd.f32 %v2530_v17, %v2480_v19  ;;  %2995 = vmatpush1.bf16.msra.mxu0 %v4080_v16  ;;  %v4082_v57 = vld [vmem:[%s5342_s1 + $0xa10] ss:$12 sps:$4 sm:$0xff]  }
 0x14c   :  { %v2485_v21 = vpop.f32.mrf.mxu0  ;;  %2996 = vmatprep.subr.bf16.mxu0 %v4096_v60 }
 0x14d   :  { %v2536_v24 = vpop.f32.mrf.mxu1  ;;  %v2486_v51 = vadd.f32 %v2485_v21, %v5156_v18  ;;  %v2535_v25 = vadd.f32 %v2534_v49, %v2484_v50  ;;  %v4084_v18 = vld [vmem:[%s5342_s1 + $0x9e0] ss:$12 sps:$4 sm:$0xff]  }
 0x14e   :  { %v2487_v26 = vpop.f32.mrf.mxu0 }
 0x14f   :  { %v2538_v34 = vpop.f32.mrf.mxu1  ;;  %v2537_v36 = vadd.f32 %v2536_v24, %v2486_v51  ;;  %2997 = vmatpush1.bf16.msra.mxu0 %v4081_v30 }
 0x150   :  { %3006 = vmatprep.subr.bf16.mxu0 %v4096_v60  ;;  %v2488_v48 = vpop.f32.mrf.mxu0 }
 0x151   :  { %v2539_v39 = vpop.f32.mrf.mxu1 }
 0x153   :  { %3007 = vmatpush2.bf16.msra.mxu0 %v4082_v57  ;;  %v480_v57 = vsub.s32 2, %v4753_v29 }
 0x154   :  { %3008 = vmatprep.subr.bf16.mxu0 %v4096_v60 }
 0x157   :  { %3009 = vmatpush2.bf16.msra.mxu0 %v4083_v41 }
 0x158   :  { %3010 = vmatprep.subr.bf16.mxu0 %v4096_v60 }
 0x15b   :  { %3011 = vmatpush2.bf16.msra.mxu0 %v4084_v18 }
 0x15c   :  { %3012 = vmatprep.subr.bf16.mxu0 %v4096_v60 }
 0x15f   :  { %3013 = vmatpush2.bf16.msra.mxu0 %v4085_v27 }
 0x162   :  { %3015 = vmatmul.mubr.bf16.vlgmr.msra.gmra.mxu0 %v4958_v44 }
 0x163   :  { %3437 = vmatprep.mubr.msk.bf16.mxu0 %vm2330_vm0, %v4984_v58 }
 0x16a   :  { %3023 = vmatmul.mubr.bf16.gmra.mxu0 %v5001_v0 }
 0x182   :  { %v2575_v42 = vpop.f32.mrf.mxu0 }
 0x183   :  { %v2626_v43 = vpop.f32.mrf.mxu1  ;;  %v2576_v46 = vadd.f32 %v2575_v42, %v5280_v22  ;;  %v481_v42 = vrot.slane %v5022_v6, %v480_v57 }
 0x184   :  { %v2577_v32 = vpop.f32.mrf.mxu0 }
 0x185   :  { %v2628_v45 = vpop.f32.mrf.mxu1  ;;  %v2578_v7 = vadd.f32 %v2577_v32, %v5283_v31  ;;  %v2627_v9 = vadd.f32 %v2626_v43, %v2576_v46 }
 0x186   :  { %v2579_v28 = vpop.f32.mrf.mxu0 }
 0x187   :  { %v2630_v52 = vpop.f32.mrf.mxu1  ;;  %v2580_v10 = vadd.f32 %v2579_v28, %v5290_v40  ;;  %v2629_v13 = vadd.f32 %v2628_v45, %v2578_v7 }
 0x188   :  { %v2581_v23 = vpop.f32.mrf.mxu0 }
 0x189   :  { %v2632_v53 = vpop.f32.mrf.mxu1  ;;  %v2582_v61 = vadd.f32 %v2581_v23, %v2531_v15  ;;  %v2631_v14 = vadd.f32 %v2630_v52, %v2580_v10 }
 0x18a   :  { %v2585_v54 = vpop.f32.mrf.mxu0 }
 0x18b   :  { %v2636_v33 = vpop.f32.mrf.mxu1  ;;  %v2586_v16 = vadd.f32 %v2585_v54, %v2535_v25  ;;  %v2633_v17 = vadd.f32 %v2632_v53, %v2582_v61 }
 0x18c   :  { %v2587_v35 = vpop.f32.mrf.mxu0 }
 0x18d   :  { %v2638_v56 = vpop.f32.mrf.mxu1  ;;  %v2588_v20 = vadd.f32 %v2587_v35, %v2537_v36  ;;  %v2637_v31 = vadd.f32 %v2636_v33, %v2586_v16 }
 0x18e   :  { %v2589_v59 = vpop.f32.mrf.mxu0 }
 0x18f   :  { %v2640_v60 = vpop.f32.mrf.mxu1  ;;  %v2639_v40 = vadd.f32 %v2638_v56, %v2588_v20 }
 0x190   :  { %v2590_v44 = vpop.f32.mrf.mxu0 }
 0x191   :  { %v2641_v62 = vpop.f32.mrf.mxu1 }
 0x1a3   :  { %v3466_v63 = vpop.f32.mrf.mxu1 }
 0x1a5   :  { %v3467_v58 = vpop.f32.mrf.mxu1 }
 0x1a6   :  { %v3468_v1 = vadd.f32 %v3467_v58, %v3466_v63 }
 0x1a7   :  { %v3469_v0 = vpop.f32.mrf.mxu1 }
 0x1a8   :  { %v2729_v29 = vadd.f32 %v3468_v1, %v481_v42 }
 0x1a9   :  { %v3470_v2 = vpop.f32.mrf.mxu1 }
 0x1aa   :  { %v3471_v37 = vadd.f32 %v3470_v2, %v3469_v0 }
 0x1ab   :  { %v3472_v3 = vpop.f32.mrf.mxu1 }
 0x1ac   :  { %v2732_v54 = vadd.f32 %v3471_v37, %v481_v42 }
 0x1ad   :  { %v3473_v4 = vpop.f32.mrf.mxu1 }
 0x1ae   :  { %v3474_v5 = vadd.f32 %v3473_v4, %v3472_v3 }
 0x1af   :  { %v3475_v55 = vpop.f32.mrf.mxu1 }
 0x1b0   :  { %v2737_v56 = vadd.f32 %v3474_v5, %v481_v42 }
 0x1b1   :  { %v3476_v8 = vpop.f32.mrf.mxu1 }
 0x1b2   :  { %v2677_v11 = vpop.f32.mrf.mxu0 }
 0x1b3   :  { %v2678_v12 = vadd.f32 %v2677_v11, %v2627_v9 }
 0x1b4   :  { %v2679_v38 = vpop.f32.mrf.mxu0 }
 0x1b5   :  { %v2680_v47 = vadd.f32 %v2679_v38, %v2629_v13  ;;  %v3030_v22 = vmax.f32 %v2678_v12, 0.0 }
 0x1b6   :  { %v2681_v19 = vpop.f32.mrf.mxu0 }
 0x1b7   :  { %v3031_v49 = vmax.f32 %v2680_v47, 0.0  ;;  %v2682_v50 = vadd.f32 %v2681_v19, %v2631_v14 }
 0x1b8   :  { %v2683_v30 = vpop.f32.mrf.mxu0 }
 0x1b9   :  { %v3444_v21 = vpack.c.bf16 %v3031_v49, %v3030_v22  ;;  %v2684_v24 = vadd.f32 %v2683_v30, %v2633_v17  ;;  %v3033_v15 = vmax.f32 %v2682_v50, 0.0 }
 0x1ba   :  { %v2687_v51 = vpop.f32.mrf.mxu0 }
 0x1bb   :  { %3072 = vst [vmem:[%s5345_s3] sm:$0xff] %v3444_v21  ;;  %v3034_v26 = vmax.f32 %v2684_v24, 0.0  ;;  %v2688_v25 = vadd.f32 %v2687_v51, %v2637_v31 }
 0x1bc   :  { %v2689_v34 = vpop.f32.mrf.mxu0 }
 0x1bd   :  { %v3446_v36 = vpack.c.bf16 %v3034_v26, %v3033_v15  ;;  %v2690_v48 = vadd.f32 %v2689_v34, %v2639_v40  ;;  %v3036_v41 = vmax.f32 %v2688_v25, 0.0 }
 0x1be   :  { %v2691_v39 = vpop.f32.mrf.mxu0 }
 0x1bf   :  { %3074 = vst [vmem:[%s5345_s3 + $0xc] sm:$0xff] %v3446_v36  ;;  %v3037_v18 = vmax.f32 %v2690_v48, 0.0 }
 0x1c0   :  { %v2692_v27 = vpop.f32.mrf.mxu0 }
 0x1c1   :  { %v3448_v43 = vpack.c.bf16 %v3037_v18, %v3036_v41 }
 0x1c3   :  { %v3494_v32 = vpop.f32.mrf.mxu1  ;;  %3076 = vst [vmem:[%s5345_s3 + $0x18] sm:$0x11] %v3448_v43 }
 0x1c5   :  { %v3495_v45 = vpop.f32.mrf.mxu1 }
 0x1c6   :  { %v3496_v28 = vadd.f32 %v3495_v45, %v3494_v32 }
 0x1c7   :  { %v3497_v52 = vpop.f32.mrf.mxu1 }
 0x1c8   :  { %v2777_v23 = vadd.f32 %v3496_v28, %v2729_v29 }
 0x1c9   :  { %v3498_v53 = vpop.f32.mrf.mxu1 }
 0x1ca   :  { %v3499_v33 = vadd.f32 %v3498_v53, %v3497_v52 }
 0x1cb   :  { %v3500_v35 = vpop.f32.mrf.mxu1 }
 0x1cc   :  { %v2780_v59 = vadd.f32 %v3499_v33, %v2732_v54 }
 0x1cd   :  { %v3501_v60 = vpop.f32.mrf.mxu1 }
 0x1ce   :  { %v3502_v44 = vadd.f32 %v3501_v60, %v3500_v35 }
 0x1cf   :  { %v3503_v6 = vpop.f32.mrf.mxu1 }
 0x1d0   :  { %v2785_v62 = vadd.f32 %v3502_v44, %v2737_v56 }
 0x1d1   :  { %v3504_v63 = vpop.f32.mrf.mxu1 }
 0x1d2   :  { %v3522_v58 = vpop.f32.mrf.mxu0 }
 0x1d4   :  { %v3523_v0 = vpop.f32.mrf.mxu0 }
 0x1d5   :  { %v3524_v2 = vadd.f32 %v3523_v0, %v3522_v58 }
 0x1d6   :  { %v3525_v3 = vpop.f32.mrf.mxu0 }
 0x1d7   :  { %v2825_v4 = vadd.f32 %v3524_v2, %v2777_v23 }
 0x1d8   :  { %v3526_v1 = vpop.f32.mrf.mxu0 }
 0x1d9   :  { %v3527_v46 = vadd.f32 %v3526_v1, %v3525_v3 }
 0x1da   :  { %v3528_v55 = vpop.f32.mrf.mxu0 }
 0x1db   :  { %v2828_v7 = vadd.f32 %v3527_v46, %v2780_v59 }
 0x1dc   :  { %v3529_v8 = vpop.f32.mrf.mxu0 }
 0x1dd   :  { %v3530_v37 = vadd.f32 %v3529_v8, %v3528_v55 }
 0x1de   :  { %v3531_v9 = vpop.f32.mrf.mxu0 }
 0x1df   :  { %v2833_v10 = vadd.f32 %v3530_v37, %v2785_v62 }
 0x1e0   :  { %v3532_v5 = vpop.f32.mrf.mxu0 }
 0x1e3   :  { %v3550_v61 = vpop.f32.mrf.mxu1 }
 0x1e5   :  { %v3551_v11 = vpop.f32.mrf.mxu1 }
 0x1e6   :  { %v3552_v57 = vadd.f32 %v3551_v11, %v3550_v61 }
 0x1e7   :  { %v3553_v13 = vpop.f32.mrf.mxu1 }
 0x1e8   :  { %v2873_v48 = vadd.f32 %v3552_v57, %v2825_v4 }
 0x1e9   :  { %v3554_v12 = vpop.f32.mrf.mxu1 }
 0x1ea   :  { %v3555_v39 = vadd.f32 %v3554_v12, %v3553_v13 }
 0x1eb   :  { %v3556_v38 = vpop.f32.mrf.mxu1 }
 0x1ec   :  { %v2876_v42 = vadd.f32 %v3555_v39, %v2828_v7 }
 0x1ed   :  { %v3557_v14 = vpop.f32.mrf.mxu1 }
 0x1ee   :  { %v3558_v43 = vadd.f32 %v3557_v14, %v3556_v38 }
 0x1ef   :  { %v3559_v16 = vpop.f32.mrf.mxu1 }
 0x1f0   :  { %v2881_v54 = vadd.f32 %v3558_v43, %v2833_v10 }
 0x1f1   :  { %v3560_v47 = vpop.f32.mrf.mxu1 }
 0x1f2   :  { %v3578_v17 = vpop.f32.mrf.mxu0 }
 0x1f4   :  { %v3579_v19 = vpop.f32.mrf.mxu0 }
 0x1f5   :  { %v3580_v36 = vadd.f32 %v3579_v19, %v3578_v17 }
 0x1f6   :  { %v3581_v20 = vpop.f32.mrf.mxu0 }
 0x1f7   :  { %v2921_v18 = vadd.f32 %v3580_v36, %v2873_v48 }
 0x1f8   :  { %v3582_v22 = vpop.f32.mrf.mxu0 }
 0x1f9   :  { %v3583_v27 = vadd.f32 %v3582_v22, %v3581_v20 }
 0x1fa   :  { %v3584_v49 = vpop.f32.mrf.mxu0 }
 0x1fb   :  { %v2924_v28 = vadd.f32 %v3583_v27, %v2876_v42 }
 0x1fc   :  { %v3585_v50 = vpop.f32.mrf.mxu0 }
 0x1fd   :  { %v3586_v52 = vadd.f32 %v3585_v50, %v3584_v49 }
 0x1fe   :  { %v3587_v30 = vpop.f32.mrf.mxu0 }
 0x1ff   :  { %v2929_v60 = vadd.f32 %v3586_v52, %v2881_v54 }
 0x200   :  { %v3588_v31 = vpop.f32.mrf.mxu0 }
 0x203   :  { %v3606_v21 = vpop.f32.mrf.mxu1 }
 0x205   :  { %v3607_v24 = vpop.f32.mrf.mxu1 }
 0x206   :  { %v3608_v41 = vadd.f32 %v3607_v24, %v3606_v21 }
 0x207   :  { %v3609_v51 = vpop.f32.mrf.mxu1 }
 0x208   :  { %v2969_v45 = vadd.f32 %v3608_v41, %v2921_v18 }
 0x209   :  { %v3610_v40 = vpop.f32.mrf.mxu1 }
 0x20a   :  { %v3611_v32 = vadd.f32 %v3610_v40, %v3609_v51 }
 0x20b   :  { %v3612_v15 = vpop.f32.mrf.mxu1 }
 0x20c   :  { %v2972_v56 = vadd.f32 %v3611_v32, %v2924_v28 }
 0x20d   :  { %v3613_v26 = vpop.f32.mrf.mxu1 }
 0x20e   :  { %v3614_v33 = vadd.f32 %v3613_v26, %v3612_v15 }
 0x20f   :  { %v3615_v25 = vpop.f32.mrf.mxu1 }
 0x210   :  { %v2977_v58 = vadd.f32 %v3614_v33, %v2929_v60 }
 0x211   :  { %v3616_v34 = vpop.f32.mrf.mxu1 }
 0x222   :  { %v3016_v29 = vpop.f32.mrf.mxu0 }
 0x223   :  { %v3017_v23 = vadd.f32 %v3016_v29, %v2969_v45 }
 0x224   :  { %v3018_v53 = vpop.f32.mrf.mxu0 }
 0x225   :  { %v3032_v35 = vmax.f32 %v3017_v23, 0.0 }
 0x226   :  { %v3019_v59 = vpop.f32.mrf.mxu0 }
 0x227   :  { %v3445_v44 = vpack.c.bf16 %v3032_v35, %v3032_v35  ;;  %v3020_v6 = vadd.f32 %v3019_v59, %v2972_v56 }
 0x228   :  { %v3021_v62 = vpop.f32.mrf.mxu0 }
 0x229   :  { %3073 = vst [vmem:[%s5345_s3 + $0x8] sm:$0xf] %v3445_v44  ;;  %v3035_v63 = vmax.f32 %v3020_v6, 0.0 }
 0x22a   :  { %v3024_v0 = vpop.f32.mrf.mxu0 }
 0x22b   :  { %v3447_v2 = vpack.c.bf16 %v3035_v63, %v3035_v63  ;;  %v3025_v3 = vadd.f32 %v3024_v0, %v2977_v58 }
 0x22c   :  { %v3026_v4 = vpop.f32.mrf.mxu0 }
 0x22d   :  { %3075 = vst [vmem:[%s5345_s3 + $0x14] sm:$0xf] %v3447_v2  ;;  %v3038_v1 = vmax.f32 %v3025_v3, 0.0 }
 0x22e   :  { %v3027_v46 = vpop.f32.mrf.mxu0 }
 0x22f   :  { %v3449_v55 = vpack.c.bf16 %v3038_v1, %v3038_v1 }
 0x230   :  { %v3028_v7 = vpop.f32.mrf.mxu0 }
 0x231   :  { %3077 = vst [vmem:[%s5345_s3 + $0x20] sm:$0x1] %v3449_v55 }

// kernel: mynet_forward.8
= control target key start
LH: loop header
LB: loop body
LE: loop exit
PB: predicated region body
PF: predicated region fallthrough
CT: control target
= control target key end

     0   :  { %s6363_s1 = inlined_call_operand.vmem [shape: bf16[3456,256], index: 1, kind: input, shape index: {}]   ;;  %s6364_s0 = inlined_call_operand.vmem [shape: bf16[18,3456], index: 0, kind: input, shape index: {}]   ;;  %s6365_s2 = inlined_call_operand.vmem [shape: f32[1,256], index: 2, kind: input, shape index: {}]   ;;  %s6366_s3 = inlined_call_operand.vmem [shape: bf16[18,256], index: 3, kind: output, shape index: {}]  }
   0x1   :  { %v4132_v0 = vld [vmem:[%s6363_s1 + $0x74] ss:$8 sps:$4 sm:$0xff]   ;;  %v4134_v1 = vld [vmem:[%s6363_s1 + $0x70] ss:$8 sps:$4 sm:$0xff]   ;;  %v4138_v4 = vld [vmem:[%s6363_s1 + $0x64] ss:$8 sps:$4 sm:$0xff]  }
   0x2   :  { %2892 = vmatprep.subr.bf16.mxu0 %v4132_v0  ;;  %v4135_v2 = vld [vmem:[%s6363_s1 + $0x174] ss:$8 sps:$4 sm:$0xff]   ;;  %v4137_v3 = vld [vmem:[%s6363_s1 + $0x170] ss:$8 sps:$4 sm:$0xff]   ;;  %v4140_v5 = vld [vmem:[%s6363_s1 + $0x60] ss:$8 sps:$4 sm:$0xff]  }
   0x3   :  { %2893 = vmatpush1.bf16.msra.mxu0 %v4134_v1  ;;  %2943 = vmatprep.subr.bf16.mxu1 %v4135_v2  ;;  %v4141_v6 = vld [vmem:[%s6363_s1 + $0x164] ss:$8 sps:$4 sm:$0xff]   ;;  %v4143_v7 = vld [vmem:[%s6363_s1 + $0x160] ss:$8 sps:$4 sm:$0xff]   ;;  %v4144_v8 = vld [vmem:[%s6363_s1 + $0x54] ss:$8 sps:$4 sm:$0xff]  }
   0x4   :  { %2944 = vmatpush1.bf16.msra.mxu1 %v4137_v3  ;;  %2894 = vmatprep.subr.bf16.mxu0 %v4138_v4  ;;  %v4146_v9 = vld [vmem:[%s6363_s1 + $0x50] ss:$8 sps:$4 sm:$0xff]   ;;  %v4147_v10 = vld [vmem:[%s6363_s1 + $0x154] ss:$8 sps:$4 sm:$0xff]   ;;  %v4150_v11 = vld [vmem:[%s6363_s1 + $0x44] ss:$8 sps:$4 sm:$0xff]  }
   0x5   :  { %2945 = vmatprep.subr.bf16.mxu1 %v4141_v6  ;;  %v4149_v12 = vld [vmem:[%s6363_s1 + $0x150] ss:$8 sps:$4 sm:$0xff]   ;;  %v4153_v13 = vld [vmem:[%s6363_s1 + $0x144] ss:$8 sps:$4 sm:$0xff]   ;;  %v4152_v14 = vld [vmem:[%s6363_s1 + $0x40] ss:$8 sps:$4 sm:$0xff]  }
   0x6   :  { %v4156_v15 = vld [vmem:[%s6363_s1 + $0x34] ss:$8 sps:$4 sm:$0xff]   ;;  %v4155_v16 = vld [vmem:[%s6363_s1 + $0x140] ss:$8 sps:$4 sm:$0xff]   ;;  %v4158_v18 = vld [vmem:[%s6363_s1 + $0x30] ss:$8 sps:$4 sm:$0xff]  }
   0x7   :  { %2895 = vmatpush1.bf16.msra.mxu0 %v4140_v5  ;;  %v4159_v17 = vld [vmem:[%s6363_s1 + $0x134] ss:$8 sps:$4 sm:$0xff]   ;;  %v4162_v19 = vld [vmem:[%s6363_s1 + $0x24] ss:$8 sps:$4 sm:$0xff]   ;;  %v4161_v20 = vld [vmem:[%s6363_s1 + $0x130] ss:$8 sps:$4 sm:$0xff]  }
   0x8   :  { %2896 = vmatprep.subr.bf16.mxu0 %v4144_v8  ;;  %2946 = vmatpush1.bf16.msra.mxu1 %v4143_v7  ;;  %v4165_v21 = vld [vmem:[%s6363_s1 + $0x124] ss:$8 sps:$4 sm:$0xff]   ;;  %v4164_v22 = vld [vmem:[%s6363_s1 + $0x20] ss:$8 sps:$4 sm:$0xff]   ;;  %v4168_v23 = vld [vmem:[%s6363_s1 + $0x14] ss:$8 sps:$4 sm:$0xff]  }
   0x9   :  { %2947 = vmatprep.subr.bf16.mxu1 %v4147_v10  ;;  %v4167_v24 = vld [vmem:[%s6363_s1 + $0x120] ss:$8 sps:$4 sm:$0xff]   ;;  %v4171_v25 = vld [vmem:[%s6363_s1 + $0x114] ss:$8 sps:$4 sm:$0xff]   ;;  %v4170_v26 = vld [vmem:[%s6363_s1 + $0x10] ss:$8 sps:$4 sm:$0xff]  }
   0xa   :  { %v4174_v27 = vld [vmem:[%s6363_s1 + $0x4] ss:$8 sps:$4 sm:$0xff]   ;;  %v4173_v28 = vld [vmem:[%s6363_s1 + $0x110] ss:$8 sps:$4 sm:$0xff]   ;;  %v4176_v30 = vld [vmem:[%s6363_s1] ss:$8 sps:$4 sm:$0xff]  }
   0xb   :  { %2897 = vmatpush1.bf16.msra.mxu0 %v4146_v9  ;;  %v4177_v29 = vld [vmem:[%s6363_s1 + $0x104] ss:$8 sps:$4 sm:$0xff]   ;;  %v4180_v31 = vld [vmem:[%s6363_s1 + $0xf4] ss:$8 sps:$4 sm:$0xff]   ;;  %v4179_v32 = vld [vmem:[%s6363_s1 + $0x100] ss:$8 sps:$4 sm:$0xff]  }
   0xc   :  { %2898 = vmatprep.subr.bf16.mxu0 %v4150_v11  ;;  %2948 = vmatpush1.bf16.msra.mxu1 %v4149_v12  ;;  %v4183_v33 = vld [vmem:[%s6363_s1 + $0x1f4] ss:$8 sps:$4 sm:$0xff]   ;;  %v4182_v34 = vld [vmem:[%s6363_s1 + $0xf0] ss:$8 sps:$4 sm:$0xff]   ;;  %v4186_v35 = vld [vmem:[%s6363_s1 + $0xe4] ss:$8 sps:$4 sm:$0xff]  }
   0xd   :  { %2949 = vmatprep.subr.bf16.mxu1 %v4153_v13  ;;  %v4185_v36 = vld [vmem:[%s6363_s1 + $0x1f0] ss:$8 sps:$4 sm:$0xff]   ;;  %v4189_v37 = vld [vmem:[%s6363_s1 + $0x1e4] ss:$8 sps:$4 sm:$0xff]   ;;  %v4188_v38 = vld [vmem:[%s6363_s1 + $0xe0] ss:$8 sps:$4 sm:$0xff]  }
   0xe   :  { %v4192_v39 = vld [vmem:[%s6363_s1 + $0xd4] ss:$8 sps:$4 sm:$0xff]   ;;  %v4191_v40 = vld [vmem:[%s6363_s1 + $0x1e0] ss:$8 sps:$4 sm:$0xff]   ;;  %v4194_v42 = vld [vmem:[%s6363_s1 + $0xd0] ss:$8 sps:$4 sm:$0xff]  }
   0xf   :  { %2899 = vmatpush1.bf16.msra.mxu0 %v4152_v14  ;;  %v4195_v41 = vld [vmem:[%s6363_s1 + $0x1d4] ss:$8 sps:$4 sm:$0xff]   ;;  %v4198_v43 = vld [vmem:[%s6363_s1 + $0xc4] ss:$8 sps:$4 sm:$0xff]   ;;  %v4197_v44 = vld [vmem:[%s6363_s1 + $0x1d0] ss:$8 sps:$4 sm:$0xff]  }
  0x10   :  { %2900 = vmatprep.subr.bf16.mxu0 %v4156_v15  ;;  %2950 = vmatpush1.bf16.msra.mxu1 %v4155_v16  ;;  %v4201_v45 = vld [vmem:[%s6363_s1 + $0x1c4] ss:$8 sps:$4 sm:$0xff]   ;;  %v4200_v46 = vld [vmem:[%s6363_s1 + $0xc0] ss:$8 sps:$4 sm:$0xff]   ;;  %v4204_v48 = vld [vmem:[%s6363_s1 + $0xb4] ss:$8 sps:$4 sm:$0xff]  }
  0x11   :  { %2951 = vmatprep.subr.bf16.mxu1 %v4159_v17  ;;  %v4229_v47 = vld [vmem:[%s6364_s0 + $0x4] ss:$108 sps:$4 sm:$0xff]   ;;  %v4203_v49 = vld [vmem:[%s6363_s1 + $0x1c0] ss:$8 sps:$4 sm:$0xff]   ;;  %v4207_v50 = vld [vmem:[%s6363_s1 + $0x1b4] ss:$8 sps:$4 sm:$0xff]  }
  0x12   :  { %2924 = vmatprep.mubr.bf16.mxu0 %v4229_v47  ;;  %v4236_v51 = vld [vmem:[%s6364_s0 + $0xc] ss:$108 sps:$4 sm:$0xff]   ;;  %v4212_v56 = vld [vmem:[%s6363_s1 + $0xa0] ss:$8 sps:$4 sm:$0xff]   ;;  %v4216_v57 = vld [vmem:[%s6363_s1 + $0x94] ss:$8 sps:$4 sm:$0xff]  }
  0x13   :  { %2901 = vmatpush1.bf16.msra.mxu0 %v4158_v18  ;;  %v4206_v52 = vld [vmem:[%s6363_s1 + $0xb0] ss:$8 sps:$4 sm:$0xff]   ;;  %v4210_v53 = vld [vmem:[%s6363_s1 + $0xa4] ss:$8 sps:$4 sm:$0xff]   ;;  %2975 = vmatprep.mubr.bf16.mxu1 %v4236_v51  ;;  %v4215_v58 = vld [vmem:[%s6363_s1 + $0x1a0] ss:$8 sps:$4 sm:$0xff]  }
  0x14   :  { %2902 = vmatprep.subr.bf16.mxu0 %v4162_v19  ;;  %2952 = vmatpush1.bf16.msra.mxu1 %v4161_v20  ;;  %v4209_v54 = vld [vmem:[%s6363_s1 + $0x1b0] ss:$8 sps:$4 sm:$0xff]   ;;  %v4213_v55 = vld [vmem:[%s6363_s1 + $0x1a4] ss:$8 sps:$4 sm:$0xff]   ;;  %v4219_v59 = vld [vmem:[%s6363_s1 + $0x194] ss:$8 sps:$4 sm:$0xff]  }
  0x15   :  { %2953 = vmatprep.subr.bf16.mxu1 %v4165_v21  ;;  %v4218_v60 = vld [vmem:[%s6363_s1 + $0x90] ss:$8 sps:$4 sm:$0xff]   ;;  %v4222_v61 = vld [vmem:[%s6363_s1 + $0x84] ss:$8 sps:$4 sm:$0xff]   ;;  %v4224_v0 = vld [vmem:[%s6363_s1 + $0x80] ss:$8 sps:$4 sm:$0xff]  }
  0x16   :  { %v4221_v62 = vld [vmem:[%s6363_s1 + $0x190] ss:$8 sps:$4 sm:$0xff]   ;;  %v4225_v63 = vld [vmem:[%s6363_s1 + $0x184] ss:$8 sps:$4 sm:$0xff]   ;;  %v4233_v1 = vld [vmem:[%s6363_s1 + $0x274] ss:$8 sps:$4 sm:$0xff]  }
  0x17   :  { %2903 = vmatpush1.bf16.msra.mxu0 %v4164_v22  ;;  %v4230_v2 = vld [vmem:[%s6363_s1 + $0x180] ss:$8 sps:$4 sm:$0xff]   ;;  %v4239_v4 = vld [vmem:[%s6363_s1 + $0x374] ss:$8 sps:$4 sm:$0xff]   ;;  %v4231_v5 = vld [vmem:[%s6363_s1 + $0x270] ss:$8 sps:$4 sm:$0xff]  }
  0x18   :  { %2904 = vmatprep.subr.bf16.mxu0 %v4168_v23  ;;  %2954 = vmatpush1.bf16.msra.mxu1 %v4167_v24  ;;  %v4227_v3 = vld [vmem:[%s6364_s0] ss:$108 sps:$4 sm:$0xff]   ;;  %v4234_v6 = vld [vmem:[%s6364_s0 + $0x8] ss:$108 sps:$4 sm:$0xff]   ;;  %v4237_v8 = vld [vmem:[%s6363_s1 + $0x370] ss:$8 sps:$4 sm:$0xff]  }
  0x19   :  { %2955 = vmatprep.subr.bf16.mxu1 %v4171_v25  ;;  %v4242_v7 = vld [vmem:[%s6363_s1 + $0x264] ss:$8 sps:$4 sm:$0xff]   ;;  %v4240_v10 = vld [vmem:[%s6363_s1 + $0x260] ss:$8 sps:$4 sm:$0xff]   ;;  %v4248_v11 = vld [vmem:[%s6363_s1 + $0x254] ss:$8 sps:$4 sm:$0xff]  }
  0x1a   :  { %v4245_v9 = vld [vmem:[%s6363_s1 + $0x364] ss:$8 sps:$4 sm:$0xff]   ;;  %v4243_v12 = vld [vmem:[%s6363_s1 + $0x360] ss:$8 sps:$4 sm:$0xff]   ;;  %v4251_v13 = vld [vmem:[%s6363_s1 + $0x354] ss:$8 sps:$4 sm:$0xff]  }
  0x1b   :  { %2905 = vmatpush1.bf16.msra.mxu0 %v4170_v26  ;;  %v4246_v14 = vld [vmem:[%s6363_s1 + $0x250] ss:$8 sps:$4 sm:$0xff]   ;;  %v4254_v15 = vld [vmem:[%s6363_s1 + $0x244] ss:$8 sps:$4 sm:$0xff]   ;;  %v4252_v18 = vld [vmem:[%s6363_s1 + $0x240] ss:$8 sps:$4 sm:$0xff]  }
  0x1c   :  { %2906 = vmatprep.subr.bf16.mxu0 %v4174_v27  ;;  %2956 = vmatpush1.bf16.msra.mxu1 %v4173_v28  ;;  %v4249_v16 = vld [vmem:[%s6363_s1 + $0x350] ss:$8 sps:$4 sm:$0xff]   ;;  %v4257_v17 = vld [vmem:[%s6363_s1 + $0x344] ss:$8 sps:$4 sm:$0xff]   ;;  %v4260_v19 = vld [vmem:[%s6363_s1 + $0x234] ss:$8 sps:$4 sm:$0xff]  }
  0x1d   :  { %2957 = vmatprep.subr.bf16.mxu1 %v4177_v29  ;;  %v4255_v20 = vld [vmem:[%s6363_s1 + $0x340] ss:$8 sps:$4 sm:$0xff]   ;;  %v4263_v21 = vld [vmem:[%s6363_s1 + $0x334] ss:$8 sps:$4 sm:$0xff]   ;;  %v4258_v23 = vld [vmem:[%s6363_s1 + $0x230] ss:$8 sps:$4 sm:$0xff]  }
  0x1e   :  { %v43_v22 = vld [vmem:[%s6364_s0 + $0xd8] sm:$0x11]  ;;  %v4266_v26 = vld [vmem:[%s6363_s1 + $0x224] ss:$8 sps:$4 sm:$0xff]   ;;  %v4264_v28 = vld [vmem:[%s6363_s1 + $0x220] ss:$8 sps:$4 sm:$0xff]  }
  0x1f   :  { %2907 = vmatpush1.bf16.msra.mxu0 %v4176_v30  ;;  %v3667_v24 = vcombine.high %v43_v22, %v43_v22  ;;  %v3666_v25 = vcombine.low %v43_v22, %v43_v22  ;;  %v4261_v27 = vld [vmem:[%s6363_s1 + $0x330] ss:$8 sps:$4 sm:$0xff]   ;;  %v4269_v29 = vld [vmem:[%s6363_s1 + $0x324] ss:$8 sps:$4 sm:$0xff]   ;;  %v4296_v51 = vld [vmem:[%s6363_s1 + $0x2d4] ss:$8 sps:$4 sm:$0xff]  }
  0x20   :  { %2908 = vmatprep.subr.bf16.mxu0 %v4180_v31  ;;  %2958 = vmatpush1.bf16.msra.mxu1 %v4179_v32  ;;  %v44_v30 = vld [vmem:[%s6364_s0 + $0xe0] sm:$0x11]  ;;  %v4272_v31 = vld [vmem:[%s6363_s1 + $0x214] ss:$8 sps:$4 sm:$0xff]  }
  0x21   :  { %2959 = vmatprep.subr.bf16.mxu1 %v4183_v33  ;;  %v3669_v32 = vcombine.high %v44_v30, %v44_v30  ;;  %v3668_v33 = vcombine.low %v44_v30, %v44_v30  ;;  %v4290_v47 = vld [vmem:[%s6363_s1 + $0x2e4] ss:$8 sps:$4 sm:$0xff]  }
  0x22   :  { %v4442_v30 = vld [vmem:[%s6364_s0 + $0x24] ss:$108 sps:$4 sm:$0xff]  }
  0x23   :  { %2909 = vmatpush2.bf16.msra.mxu0 %v4182_v34  ;;  %v4267_v34 = vld [vmem:[%s6363_s1 + $0x320] ss:$8 sps:$4 sm:$0xff]  }
  0x24   :  { %2910 = vmatprep.subr.bf16.mxu0 %v4186_v35  ;;  %2960 = vmatpush2.bf16.msra.mxu1 %v4185_v36  ;;  %v4275_v35 = vld [vmem:[%s6363_s1 + $0x314] ss:$8 sps:$4 sm:$0xff]   ;;  %v4270_v36 = vld [vmem:[%s6363_s1 + $0x210] ss:$8 sps:$4 sm:$0xff]  }
  0x25   :  { %2961 = vmatprep.subr.bf16.mxu1 %v4189_v37  ;;  %v4278_v37 = vld [vmem:[%s6363_s1 + $0x204] ss:$8 sps:$4 sm:$0xff]  }
  0x27   :  { %2911 = vmatpush2.bf16.msra.mxu0 %v4188_v38  ;;  %v4273_v38 = vld [vmem:[%s6363_s1 + $0x310] ss:$8 sps:$4 sm:$0xff]  }
  0x28   :  { %2912 = vmatprep.subr.bf16.mxu0 %v4192_v39  ;;  %2962 = vmatpush2.bf16.msra.mxu1 %v4191_v40  ;;  %v4336_v39 = vld [vmem:[%s6364_s0 + $0x14] ss:$108 sps:$4 sm:$0xff]   ;;  %v4281_v40 = vld [vmem:[%s6363_s1 + $0x304] ss:$8 sps:$4 sm:$0xff]  }
  0x29   :  { %2963 = vmatprep.subr.bf16.mxu1 %v4195_v41  ;;  %v4276_v41 = vld [vmem:[%s6363_s1 + $0x200] ss:$8 sps:$4 sm:$0xff]  }
  0x2b   :  { %2913 = vmatpush2.bf16.msra.mxu0 %v4194_v42  ;;  %v4284_v42 = vld [vmem:[%s6363_s1 + $0x2f4] ss:$8 sps:$4 sm:$0xff]  }
  0x2c   :  { %2914 = vmatprep.subr.bf16.mxu0 %v4198_v43  ;;  %2964 = vmatpush2.bf16.msra.mxu1 %v4197_v44  ;;  %v4342_v43 = vld [vmem:[%s6364_s0 + $0x1c] ss:$108 sps:$4 sm:$0xff]  }
  0x2d   :  { %2965 = vmatprep.subr.bf16.mxu1 %v4201_v45  ;;  %v4279_v44 = vld [vmem:[%s6363_s1 + $0x300] ss:$8 sps:$4 sm:$0xff]   ;;  %v4287_v45 = vld [vmem:[%s6363_s1 + $0x3f4] ss:$8 sps:$4 sm:$0xff]  }
  0x2f   :  { %2915 = vmatpush2.bf16.msra.mxu0 %v4200_v46  ;;  %v4282_v46 = vld [vmem:[%s6363_s1 + $0x2f0] ss:$8 sps:$4 sm:$0xff]  }
  0x30   :  { %2916 = vmatprep.subr.bf16.mxu0 %v4204_v48  ;;  %2966 = vmatpush2.bf16.msra.mxu1 %v4203_v49  ;;  %v4285_v48 = vld [vmem:[%s6363_s1 + $0x3f0] ss:$8 sps:$4 sm:$0xff]   ;;  %v4293_v49 = vld [vmem:[%s6363_s1 + $0x3e4] ss:$8 sps:$4 sm:$0xff]  }
  0x31   :  { %2967 = vmatprep.subr.bf16.mxu1 %v4207_v50  ;;  %v4288_v50 = vld [vmem:[%s6363_s1 + $0x2e0] ss:$8 sps:$4 sm:$0xff]  }
  0x33   :  { %2917 = vmatpush2.bf16.msra.mxu0 %v4206_v52  ;;  %v4291_v52 = vld [vmem:[%s6363_s1 + $0x3e0] ss:$8 sps:$4 sm:$0xff]  }
  0x34   :  { %2918 = vmatprep.subr.bf16.mxu0 %v4210_v53  ;;  %2968 = vmatpush2.bf16.msra.mxu1 %v4209_v54  ;;  %v4299_v53 = vld [vmem:[%s6363_s1 + $0x3d4] ss:$8 sps:$4 sm:$0xff]   ;;  %v4294_v54 = vld [vmem:[%s6363_s1 + $0x2d0] ss:$8 sps:$4 sm:$0xff]  }
  0x35   :  { %2969 = vmatprep.subr.bf16.mxu1 %v4213_v55  ;;  %v4302_v55 = vld [vmem:[%s6363_s1 + $0x2c4] ss:$8 sps:$4 sm:$0xff]  }
  0x37   :  { %2919 = vmatpush2.bf16.msra.mxu0 %v4212_v56  ;;  %v4297_v56 = vld [vmem:[%s6363_s1 + $0x3d0] ss:$8 sps:$4 sm:$0xff]  }
  0x38   :  { %2920 = vmatprep.subr.bf16.mxu0 %v4216_v57  ;;  %2970 = vmatpush2.bf16.msra.mxu1 %v4215_v58  ;;  %v4305_v57 = vld [vmem:[%s6363_s1 + $0x3c4] ss:$8 sps:$4 sm:$0xff]   ;;  %v4300_v58 = vld [vmem:[%s6363_s1 + $0x2c0] ss:$8 sps:$4 sm:$0xff]  }
  0x39   :  { %2971 = vmatprep.subr.bf16.mxu1 %v4219_v59  ;;  %v4308_v59 = vld [vmem:[%s6363_s1 + $0x2b4] ss:$8 sps:$4 sm:$0xff]  }
  0x3b   :  { %2921 = vmatpush2.bf16.msra.mxu0 %v4218_v60  ;;  %v4303_v60 = vld [vmem:[%s6363_s1 + $0x3c0] ss:$8 sps:$4 sm:$0xff]  }
  0x3c   :  { %2922 = vmatprep.subr.bf16.mxu0 %v4222_v61  ;;  %2972 = vmatpush2.bf16.msra.mxu1 %v4221_v62  ;;  %v4312_v61 = vld [vmem:[%s6363_s1 + $0x3b4] ss:$8 sps:$4 sm:$0xff]   ;;  %v4306_v62 = vld [vmem:[%s6363_s1 + $0x2b0] ss:$8 sps:$4 sm:$0xff]  }
  0x3d   :  { %2973 = vmatprep.subr.bf16.mxu1 %v4225_v63  ;;  %v4316_v63 = vld [vmem:[%s6363_s1 + $0x2a4] ss:$8 sps:$4 sm:$0xff]  }
  0x3f   :  { %2923 = vmatpush2.bf16.msra.mxu0 %v4224_v0  ;;  %v4310_v0 = vld [vmem:[%s6363_s1 + $0x3b0] ss:$8 sps:$4 sm:$0xff]  }
  0x40   :  { %2994 = vmatprep.subr.bf16.mxu0 %v4233_v1  ;;  %2974 = vmatpush2.bf16.msra.mxu1 %v4230_v2  ;;  %v4319_v1 = vld [vmem:[%s6363_s1 + $0x3a4] ss:$8 sps:$4 sm:$0xff]   ;;  %v4314_v2 = vld [vmem:[%s6363_s1 + $0x2a0] ss:$8 sps:$4 sm:$0xff]  }
  0x41   :  { %3045 = vmatprep.subr.bf16.mxu1 %v4239_v4  ;;  %v4317_v4 = vld [vmem:[%s6363_s1 + $0x3a0] ss:$8 sps:$4 sm:$0xff]  }
  0x42   :  { %2925 = vmatmul.mubr.bf16.vlgmr.msra.gmra.mxu0 %v4227_v3  ;;  %v4323_v3 = vld [vmem:[%s6363_s1 + $0x294] ss:$8 sps:$4 sm:$0xff]  }
  0x43   :  { %2995 = vmatpush1.bf16.msra.mxu0 %v4231_v5  ;;  %2976 = vmatmul.mubr.bf16.vlgmr.msra.gmra.mxu1 %v4234_v6  ;;  %v4327_v5 = vld [vmem:[%s6363_s1 + $0x394] ss:$8 sps:$4 sm:$0xff]   ;;  %v4321_v6 = vld [vmem:[%s6363_s1 + $0x290] ss:$8 sps:$4 sm:$0xff]  }
  0x44   :  { %2996 = vmatprep.subr.bf16.mxu0 %v4242_v7  ;;  %3046 = vmatpush1.bf16.msra.mxu1 %v4237_v8  ;;  %v4330_v7 = vld [vmem:[%s6363_s1 + $0x284] ss:$8 sps:$4 sm:$0xff]   ;;  %v4325_v8 = vld [vmem:[%s6363_s1 + $0x390] ss:$8 sps:$4 sm:$0xff]  }
  0x45   :  { %3047 = vmatprep.subr.bf16.mxu1 %v4245_v9  ;;  %2934 = vmatprep.mubr.bf16.mxu0 %v3667_v24  ;;  %v4328_v9 = vld [vmem:[%s6363_s1 + $0x280] ss:$8 sps:$4 sm:$0xff]  }
  0x46   :  { %2985 = vmatprep.mubr.bf16.mxu1 %v3669_v32  ;;  %v4346_v24 = vld [vmem:[%s6363_s1 + $0x460] ss:$8 sps:$4 sm:$0xff]   ;;  %v4364_v32 = vld [vmem:[%s6363_s1 + $0x444] ss:$8 sps:$4 sm:$0xff]  }
  0x47   :  { %2997 = vmatpush1.bf16.msra.mxu0 %v4240_v10  ;;  %v4333_v10 = vld [vmem:[%s6363_s1 + $0x384] ss:$8 sps:$4 sm:$0xff]  }
  0x48   :  { %2998 = vmatprep.subr.bf16.mxu0 %v4248_v11  ;;  %3048 = vmatpush1.bf16.msra.mxu1 %v4243_v12  ;;  %v4331_v11 = vld [vmem:[%s6363_s1 + $0x380] ss:$8 sps:$4 sm:$0xff]   ;;  %v4339_v12 = vld [vmem:[%s6363_s1 + $0x474] ss:$8 sps:$4 sm:$0xff]  }
  0x49   :  { %3049 = vmatprep.subr.bf16.mxu1 %v4251_v13  ;;  %v45_v13 = vld [vmem:[%s6364_s0 + $0xe8] sm:$0x11] }
  0x4a   :  { %2935 = vmatmul.mubr.bf16.gmra.mxu0 %v3666_v25  ;;  %v4356_v25 = vld [vmem:[%s6363_s1 + $0x454] ss:$8 sps:$4 sm:$0xff]  }
  0x4b   :  { %2999 = vmatpush1.bf16.msra.mxu0 %v4246_v14  ;;  %2986 = vmatmul.mubr.bf16.gmra.mxu1 %v3668_v33  ;;  %v4334_v14 = vld [vmem:[%s6364_s0 + $0x10] ss:$108 sps:$4 sm:$0xff]  }
  0x4c   :  { %3000 = vmatprep.subr.bf16.mxu0 %v4254_v15  ;;  %3050 = vmatpush1.bf16.msra.mxu1 %v4249_v16  ;;  %v4345_v15 = vld [vmem:[%s6363_s1 + $0x574] ss:$8 sps:$4 sm:$0xff]   ;;  %v4359_v33 = vld [vmem:[%s6363_s1 + $0x550] ss:$8 sps:$4 sm:$0xff]  }
  0x4d   :  { %3051 = vmatprep.subr.bf16.mxu1 %v4257_v17  ;;  %3026 = vmatprep.mubr.bf16.mxu0 %v4336_v39  ;;  %v46_v16 = vld [vmem:[%s6364_s0 + $0xf0] sm:$0x11] }
  0x4e   :  { %3077 = vmatprep.mubr.bf16.mxu1 %v4342_v43  ;;  %v4337_v17 = vld [vmem:[%s6363_s1 + $0x470] ss:$8 sps:$4 sm:$0xff]   ;;  %v3673_v22 = vcombine.high %v46_v16, %v46_v16  ;;  %v4373_v39 = vld [vmem:[%s6363_s1 + $0x534] ss:$8 sps:$4 sm:$0xff]   ;;  %v4379_v43 = vld [vmem:[%s6363_s1 + $0x524] ss:$8 sps:$4 sm:$0xff]  }
  0x4f   :  { %3001 = vmatpush1.bf16.msra.mxu0 %v4252_v18  ;;  %v4340_v18 = vld [vmem:[%s6364_s0 + $0x18] ss:$108 sps:$4 sm:$0xff]  }
  0x50   :  { %3002 = vmatprep.subr.bf16.mxu0 %v4260_v19  ;;  %3052 = vmatpush1.bf16.msra.mxu1 %v4255_v20  ;;  %v3671_v19 = vcombine.high %v45_v13, %v45_v13  ;;  %v4348_v20 = vld [vmem:[%s6363_s1 + $0x464] ss:$8 sps:$4 sm:$0xff]  }
  0x51   :  { %3053 = vmatprep.subr.bf16.mxu1 %v4263_v21  ;;  %v4343_v21 = vld [vmem:[%s6363_s1 + $0x570] ss:$8 sps:$4 sm:$0xff]  }
  0x53   :  { %3003 = vmatpush1.bf16.msra.mxu0 %v4258_v23  ;;  %v4351_v23 = vld [vmem:[%s6363_s1 + $0x564] ss:$8 sps:$4 sm:$0xff]  }
  0x54   :  { %3004 = vmatprep.subr.bf16.mxu0 %v4266_v26  ;;  %3054 = vmatpush1.bf16.msra.mxu1 %v4261_v27  ;;  %v4349_v26 = vld [vmem:[%s6363_s1 + $0x560] ss:$8 sps:$4 sm:$0xff]   ;;  %v3670_v27 = vcombine.low %v45_v13, %v45_v13  ;;  %v4430_v13 = vld [vmem:[%s6363_s1 + $0x494] ss:$8 sps:$4 sm:$0xff]  }
  0x55   :  { %3055 = vmatprep.subr.bf16.mxu1 %v4269_v29  ;;  %v4354_v29 = vld [vmem:[%s6363_s1 + $0x450] ss:$8 sps:$4 sm:$0xff]  }
  0x57   :  { %3005 = vmatpush1.bf16.msra.mxu0 %v4264_v28  ;;  %v4361_v28 = vld [vmem:[%s6363_s1 + $0x554] ss:$8 sps:$4 sm:$0xff]  }
  0x58   :  { %3006 = vmatprep.subr.bf16.mxu0 %v4272_v31  ;;  %3056 = vmatpush1.bf16.msra.mxu1 %v4267_v34  ;;  %v3672_v31 = vcombine.low %v46_v16, %v46_v16  ;;  %v4367_v34 = vld [vmem:[%s6363_s1 + $0x544] ss:$8 sps:$4 sm:$0xff]   ;;  %v4428_v16 = vld [vmem:[%s6363_s1 + $0x490] ss:$8 sps:$4 sm:$0xff]  }
  0x59   :  { %3057 = vmatprep.subr.bf16.mxu1 %v4275_v35  ;;  %v4448_v35 = vld [vmem:[%s6364_s0 + $0x2c] ss:$108 sps:$4 sm:$0xff]  }
  0x5b   :  { %3007 = vmatpush1.bf16.msra.mxu0 %v4270_v36  ;;  %v4362_v36 = vld [vmem:[%s6363_s1 + $0x440] ss:$8 sps:$4 sm:$0xff]  }
  0x5c   :  { %3008 = vmatprep.subr.bf16.mxu0 %v4278_v37  ;;  %3058 = vmatpush1.bf16.msra.mxu1 %v4273_v38  ;;  %v4370_v37 = vld [vmem:[%s6363_s1 + $0x434] ss:$8 sps:$4 sm:$0xff]   ;;  %v4365_v38 = vld [vmem:[%s6363_s1 + $0x540] ss:$8 sps:$4 sm:$0xff]  }
  0x5d   :  { %3059 = vmatprep.subr.bf16.mxu1 %v4281_v40  ;;  %v4368_v40 = vld [vmem:[%s6363_s1 + $0x430] ss:$8 sps:$4 sm:$0xff]  }
  0x5f   :  { %3009 = vmatpush1.bf16.msra.mxu0 %v4276_v41  ;;  %v4376_v41 = vld [vmem:[%s6363_s1 + $0x424] ss:$8 sps:$4 sm:$0xff]  }
  0x60   :  { %3010 = vmatprep.subr.bf16.mxu0 %v4284_v42  ;;  %3060 = vmatpush1.bf16.msra.mxu1 %v4279_v44  ;;  %v4371_v42 = vld [vmem:[%s6363_s1 + $0x530] ss:$8 sps:$4 sm:$0xff]   ;;  %v4374_v44 = vld [vmem:[%s6363_s1 + $0x420] ss:$8 sps:$4 sm:$0xff]  }
  0x61   :  { %3061 = vmatprep.subr.bf16.mxu1 %v4287_v45  ;;  %v4382_v45 = vld [vmem:[%s6363_s1 + $0x414] ss:$8 sps:$4 sm:$0xff]  }
  0x63   :  { %3011 = vmatpush2.bf16.msra.mxu0 %v4282_v46  ;;  %v4377_v46 = vld [vmem:[%s6363_s1 + $0x520] ss:$8 sps:$4 sm:$0xff]  }
  0x64   :  { %3012 = vmatprep.subr.bf16.mxu0 %v4290_v47  ;;  %3062 = vmatpush2.bf16.msra.mxu1 %v4285_v48  ;;  %v4385_v47 = vld [vmem:[%s6363_s1 + $0x514] ss:$8 sps:$4 sm:$0xff]   ;;  %v4380_v48 = vld [vmem:[%s6363_s1 + $0x410] ss:$8 sps:$4 sm:$0xff]  }
  0x65   :  { %3063 = vmatprep.subr.bf16.mxu1 %v4293_v49  ;;  %v4388_v49 = vld [vmem:[%s6363_s1 + $0x404] ss:$8 sps:$4 sm:$0xff]  }
  0x67   :  { %3013 = vmatpush2.bf16.msra.mxu0 %v4288_v50  ;;  %v4383_v50 = vld [vmem:[%s6363_s1 + $0x510] ss:$8 sps:$4 sm:$0xff]  }
  0x68   :  { %3014 = vmatprep.subr.bf16.mxu0 %v4296_v51  ;;  %3064 = vmatpush2.bf16.msra.mxu1 %v4291_v52  ;;  %v4391_v51 = vld [vmem:[%s6363_s1 + $0x504] ss:$8 sps:$4 sm:$0xff]   ;;  %v4386_v52 = vld [vmem:[%s6363_s1 + $0x400] ss:$8 sps:$4 sm:$0xff]  }
  0x69   :  { %3065 = vmatprep.subr.bf16.mxu1 %v4299_v53  ;;  %v4394_v53 = vld [vmem:[%s6363_s1 + $0x4f4] ss:$8 sps:$4 sm:$0xff]  }
  0x6b   :  { %3015 = vmatpush2.bf16.msra.mxu0 %v4294_v54  ;;  %v4389_v54 = vld [vmem:[%s6363_s1 + $0x500] ss:$8 sps:$4 sm:$0xff]  }
  0x6c   :  { %3016 = vmatprep.subr.bf16.mxu0 %v4302_v55  ;;  %3066 = vmatpush2.bf16.msra.mxu1 %v4297_v56  ;;  %v4397_v55 = vld [vmem:[%s6363_s1 + $0x5f4] ss:$8 sps:$4 sm:$0xff]   ;;  %v4392_v56 = vld [vmem:[%s6363_s1 + $0x4f0] ss:$8 sps:$4 sm:$0xff]  }
  0x6d   :  { %3067 = vmatprep.subr.bf16.mxu1 %v4305_v57  ;;  %v4400_v57 = vld [vmem:[%s6363_s1 + $0x4e4] ss:$8 sps:$4 sm:$0xff]  }
  0x6f   :  { %3017 = vmatpush2.bf16.msra.mxu0 %v4300_v58  ;;  %v4395_v58 = vld [vmem:[%s6363_s1 + $0x5f0] ss:$8 sps:$4 sm:$0xff]  }
  0x70   :  { %3018 = vmatprep.subr.bf16.mxu0 %v4308_v59  ;;  %3068 = vmatpush2.bf16.msra.mxu1 %v4303_v60  ;;  %v4403_v59 = vld [vmem:[%s6363_s1 + $0x5e4] ss:$8 sps:$4 sm:$0xff]   ;;  %v4398_v60 = vld [vmem:[%s6363_s1 + $0x4e0] ss:$8 sps:$4 sm:$0xff]  }
  0x71   :  { %3069 = vmatprep.subr.bf16.mxu1 %v4312_v61  ;;  %v4406_v61 = vld [vmem:[%s6363_s1 + $0x4d4] ss:$8 sps:$4 sm:$0xff]  }
  0x73   :  { %3019 = vmatpush2.bf16.msra.mxu0 %v4306_v62  ;;  %v4401_v62 = vld [vmem:[%s6363_s1 + $0x5e0] ss:$8 sps:$4 sm:$0xff]  }
  0x74   :  { %3020 = vmatprep.subr.bf16.mxu0 %v4316_v63  ;;  %3070 = vmatpush2.bf16.msra.mxu1 %v4310_v0  ;;  %v4409_v63 = vld [vmem:[%s6363_s1 + $0x5d4] ss:$8 sps:$4 sm:$0xff]   ;;  %v4404_v0 = vld [vmem:[%s6363_s1 + $0x4d0] ss:$8 sps:$4 sm:$0xff]  }
  0x75   :  { %3071 = vmatprep.subr.bf16.mxu1 %v4319_v1  ;;  %v4412_v1 = vld [vmem:[%s6363_s1 + $0x4c4] ss:$8 sps:$4 sm:$0xff]  }
  0x77   :  { %3021 = vmatpush2.bf16.msra.mxu0 %v4314_v2  ;;  %v4407_v2 = vld [vmem:[%s6363_s1 + $0x5d0] ss:$8 sps:$4 sm:$0xff]  }
  0x78   :  { %3022 = vmatprep.subr.bf16.mxu0 %v4323_v3  ;;  %3072 = vmatpush2.bf16.msra.mxu1 %v4317_v4  ;;  %v4415_v3 = vld [vmem:[%s6363_s1 + $0x5c4] ss:$8 sps:$4 sm:$0xff]   ;;  %v4410_v4 = vld [vmem:[%s6363_s1 + $0x4c0] ss:$8 sps:$4 sm:$0xff]  }
  0x79   :  { %3073 = vmatprep.subr.bf16.mxu1 %v4327_v5  ;;  %v4418_v5 = vld [vmem:[%s6363_s1 + $0x4b4] ss:$8 sps:$4 sm:$0xff]  }
  0x7b   :  { %3023 = vmatpush2.bf16.msra.mxu0 %v4321_v6  ;;  %v4413_v6 = vld [vmem:[%s6363_s1 + $0x5c0] ss:$8 sps:$4 sm:$0xff]  }
  0x7c   :  { %3024 = vmatprep.subr.bf16.mxu0 %v4330_v7  ;;  %3074 = vmatpush2.bf16.msra.mxu1 %v4325_v8  ;;  %v4421_v7 = vld [vmem:[%s6363_s1 + $0x5b4] ss:$8 sps:$4 sm:$0xff]   ;;  %v4416_v8 = vld [vmem:[%s6363_s1 + $0x4b0] ss:$8 sps:$4 sm:$0xff]  }
  0x7d   :  { %3075 = vmatprep.subr.bf16.mxu1 %v4333_v10  ;;  %v4419_v10 = vld [vmem:[%s6363_s1 + $0x5b0] ss:$8 sps:$4 sm:$0xff]  }
  0x7f   :  { %3025 = vmatpush2.bf16.msra.mxu0 %v4328_v9  ;;  %v4424_v9 = vld [vmem:[%s6363_s1 + $0x4a4] ss:$8 sps:$4 sm:$0xff]  }
  0x80   :  { %3096 = vmatprep.subr.bf16.mxu0 %v4339_v12  ;;  %3076 = vmatpush2.bf16.msra.mxu1 %v4331_v11  ;;  %v4427_v11 = vld [vmem:[%s6363_s1 + $0x5a4] ss:$8 sps:$4 sm:$0xff]   ;;  %v4422_v12 = vld [vmem:[%s6363_s1 + $0x4a0] ss:$8 sps:$4 sm:$0xff]  }
  0x81   :  { %3147 = vmatprep.subr.bf16.mxu1 %v4345_v15  ;;  %v4433_v15 = vld [vmem:[%s6363_s1 + $0x594] ss:$8 sps:$4 sm:$0xff]  }
  0x82   :  { %3027 = vmatmul.mubr.bf16.vlgmr.msra.gmra.mxu0 %v4334_v14  ;;  %v4425_v14 = vld [vmem:[%s6363_s1 + $0x5a0] ss:$8 sps:$4 sm:$0xff]  }
  0x83   :  { %3097 = vmatpush1.bf16.msra.mxu0 %v4337_v17  ;;  %3036 = vmatprep.mubr.bf16.mxu0 %v3671_v19  ;;  %v4436_v17 = vld [vmem:[%s6363_s1 + $0x484] ss:$8 sps:$4 sm:$0xff]  }
  0x84   :  { %3078 = vmatmul.mubr.bf16.vlgmr.msra.gmra.mxu1 %v4340_v18  ;;  %3098 = vmatprep.subr.bf16.mxu0 %v4348_v20  ;;  %v4431_v18 = vld [vmem:[%s6363_s1 + $0x590] ss:$8 sps:$4 sm:$0xff]   ;;  %v4439_v19 = vld [vmem:[%s6363_s1 + $0x584] ss:$8 sps:$4 sm:$0xff]   ;;  %v4434_v20 = vld [vmem:[%s6363_s1 + $0x480] ss:$8 sps:$4 sm:$0xff]  }
  0x85   :  { %3148 = vmatpush1.bf16.msra.mxu1 %v4343_v21  ;;  %3087 = vmatprep.mubr.bf16.mxu1 %v3673_v22  ;;  %v4437_v21 = vld [vmem:[%s6363_s1 + $0x580] ss:$8 sps:$4 sm:$0xff]   ;;  %v4445_v22 = vld [vmem:[%s6363_s1 + $0x674] ss:$8 sps:$4 sm:$0xff]  }
  0x86   :  { %3149 = vmatprep.subr.bf16.mxu1 %v4351_v23  ;;  %v47_v23 = vld [vmem:[%s6364_s0 + $0xf8] sm:$0x11] }
  0x87   :  { %3099 = vmatpush1.bf16.msra.mxu0 %v4346_v24  ;;  %v4440_v24 = vld [vmem:[%s6364_s0 + $0x20] ss:$108 sps:$4 sm:$0xff]  }
  0x88   :  { %3100 = vmatprep.subr.bf16.mxu0 %v4356_v25  ;;  %v4443_v25 = vld [vmem:[%s6363_s1 + $0x670] ss:$8 sps:$4 sm:$0xff]  }
  0x89   :  { %3150 = vmatpush1.bf16.msra.mxu1 %v4349_v26  ;;  %v4451_v26 = vld [vmem:[%s6363_s1 + $0x774] ss:$8 sps:$4 sm:$0xff]  }
  0x8a   :  { %3037 = vmatmul.mubr.bf16.gmra.mxu0 %v3670_v27  ;;  %3151 = vmatprep.subr.bf16.mxu1 %v4361_v28  ;;  %v48_v27 = vld [vmem:[%s6364_s0 + $0x100] sm:$0x11]  ;;  %v4446_v28 = vld [vmem:[%s6364_s0 + $0x28] ss:$108 sps:$4 sm:$0xff]  }
  0x8b   :  { %3101 = vmatpush1.bf16.msra.mxu0 %v4354_v29  ;;  %3128 = vmatprep.mubr.bf16.mxu0 %v4442_v30  ;;  %v3675_v29 = vcombine.high %v47_v23, %v47_v23  ;;  %v4454_v30 = vld [vmem:[%s6363_s1 + $0x664] ss:$8 sps:$4 sm:$0xff]  }
  0x8c   :  { %3088 = vmatmul.mubr.bf16.gmra.mxu1 %v3672_v31  ;;  %3102 = vmatprep.subr.bf16.mxu0 %v4364_v32  ;;  %v4449_v31 = vld [vmem:[%s6363_s1 + $0x770] ss:$8 sps:$4 sm:$0xff]   ;;  %v3677_v32 = vcombine.high %v48_v27, %v48_v27 }
  0x8d   :  { %3152 = vmatpush1.bf16.msra.mxu1 %v4359_v33  ;;  %3179 = vmatprep.mubr.bf16.mxu1 %v4448_v35  ;;  %v4457_v33 = vld [vmem:[%s6363_s1 + $0x764] ss:$8 sps:$4 sm:$0xff]   ;;  %v4462_v35 = vld [vmem:[%s6363_s1 + $0x654] ss:$8 sps:$4 sm:$0xff]  }
  0x8e   :  { %3153 = vmatprep.subr.bf16.mxu1 %v4367_v34  ;;  %v4452_v34 = vld [vmem:[%s6363_s1 + $0x660] ss:$8 sps:$4 sm:$0xff]  }
  0x8f   :  { %3103 = vmatpush1.bf16.msra.mxu0 %v4362_v36  ;;  %v4455_v36 = vld [vmem:[%s6363_s1 + $0x760] ss:$8 sps:$4 sm:$0xff]  }
  0x90   :  { %3104 = vmatprep.subr.bf16.mxu0 %v4370_v37  ;;  %v3674_v37 = vcombine.low %v47_v23, %v47_v23  ;;  %v491_v23 = vlaneseq }
  0x91   :  { %3154 = vmatpush1.bf16.msra.mxu1 %v4365_v38  ;;  %v4460_v38 = vld [vmem:[%s6363_s1 + $0x650] ss:$8 sps:$4 sm:$0xff]  }
  0x92   :  { %3155 = vmatprep.subr.bf16.mxu1 %v4373_v39  ;;  %v4467_v39 = vld [vmem:[%s6363_s1 + $0x754] ss:$8 sps:$4 sm:$0xff]  }
  0x93   :  { %3105 = vmatpush1.bf16.msra.mxu0 %v4368_v40  ;;  %v4548_v40 = vld [vmem:[%s6364_s0 + $0x34] ss:$108 sps:$4 sm:$0xff]  }
  0x94   :  { %3106 = vmatprep.subr.bf16.mxu0 %v4376_v41  ;;  %v3676_v41 = vcombine.low %v48_v27, %v48_v27  ;;  %v4534_v27 = vld [vmem:[%s6363_s1 + $0x690] ss:$8 sps:$4 sm:$0xff]  }
  0x95   :  { %3156 = vmatpush1.bf16.msra.mxu1 %v4371_v42  ;;  %v4470_v42 = vld [vmem:[%s6363_s1 + $0x644] ss:$8 sps:$4 sm:$0xff]  }
  0x96   :  { %3157 = vmatprep.subr.bf16.mxu1 %v4379_v43  ;;  %v4465_v43 = vld [vmem:[%s6363_s1 + $0x750] ss:$8 sps:$4 sm:$0xff]  }
  0x97   :  { %3107 = vmatpush1.bf16.msra.mxu0 %v4374_v44  ;;  %v4554_v44 = vld [vmem:[%s6364_s0 + $0x3c] ss:$108 sps:$4 sm:$0xff]  }
  0x98   :  { %3108 = vmatprep.subr.bf16.mxu0 %v4382_v45  ;;  %v4473_v45 = vld [vmem:[%s6363_s1 + $0x744] ss:$8 sps:$4 sm:$0xff]  }
  0x99   :  { %3158 = vmatpush1.bf16.msra.mxu1 %v4377_v46  ;;  %v4468_v46 = vld [vmem:[%s6363_s1 + $0x640] ss:$8 sps:$4 sm:$0xff]  }
  0x9a   :  { %3159 = vmatprep.subr.bf16.mxu1 %v4385_v47  ;;  %v4476_v47 = vld [vmem:[%s6363_s1 + $0x634] ss:$8 sps:$4 sm:$0xff]  }
  0x9b   :  { %3109 = vmatpush1.bf16.msra.mxu0 %v4380_v48  ;;  %v4471_v48 = vld [vmem:[%s6363_s1 + $0x740] ss:$8 sps:$4 sm:$0xff]  }
  0x9c   :  { %3110 = vmatprep.subr.bf16.mxu0 %v4388_v49  ;;  %v4479_v49 = vld [vmem:[%s6363_s1 + $0x734] ss:$8 sps:$4 sm:$0xff]  }
  0x9d   :  { %3160 = vmatpush1.bf16.msra.mxu1 %v4383_v50  ;;  %v4474_v50 = vld [vmem:[%s6363_s1 + $0x630] ss:$8 sps:$4 sm:$0xff]  }
  0x9e   :  { %3161 = vmatprep.subr.bf16.mxu1 %v4391_v51  ;;  %v4482_v51 = vld [vmem:[%s6363_s1 + $0x624] ss:$8 sps:$4 sm:$0xff]  }
  0x9f   :  { %3111 = vmatpush1.bf16.msra.mxu0 %v4386_v52  ;;  %v4477_v52 = vld [vmem:[%s6363_s1 + $0x730] ss:$8 sps:$4 sm:$0xff]  }
  0xa0   :  { %3112 = vmatprep.subr.bf16.mxu0 %v4394_v53  ;;  %v4485_v53 = vld [vmem:[%s6363_s1 + $0x724] ss:$8 sps:$4 sm:$0xff]  }
  0xa1   :  { %3162 = vmatpush1.bf16.msra.mxu1 %v4389_v54  ;;  %v4480_v54 = vld [vmem:[%s6363_s1 + $0x620] ss:$8 sps:$4 sm:$0xff]  }
  0xa2   :  { %3163 = vmatprep.subr.bf16.mxu1 %v4397_v55  ;;  %v4488_v55 = vld [vmem:[%s6363_s1 + $0x614] ss:$8 sps:$4 sm:$0xff]  }
  0xa3   :  { %3113 = vmatpush2.bf16.msra.mxu0 %v4392_v56  ;;  %v4483_v56 = vld [vmem:[%s6363_s1 + $0x720] ss:$8 sps:$4 sm:$0xff]  }
  0xa4   :  { %3114 = vmatprep.subr.bf16.mxu0 %v4400_v57  ;;  %v4491_v57 = vld [vmem:[%s6363_s1 + $0x714] ss:$8 sps:$4 sm:$0xff]  }
  0xa5   :  { %3164 = vmatpush2.bf16.msra.mxu1 %v4395_v58  ;;  %v4486_v58 = vld [vmem:[%s6363_s1 + $0x610] ss:$8 sps:$4 sm:$0xff]  }
  0xa6   :  { %3165 = vmatprep.subr.bf16.mxu1 %v4403_v59  ;;  %v4494_v59 = vld [vmem:[%s6363_s1 + $0x604] ss:$8 sps:$4 sm:$0xff]  }
  0xa7   :  { %3115 = vmatpush2.bf16.msra.mxu0 %v4398_v60  ;;  %v4489_v60 = vld [vmem:[%s6363_s1 + $0x710] ss:$8 sps:$4 sm:$0xff]  }
  0xa8   :  { %3116 = vmatprep.subr.bf16.mxu0 %v4406_v61  ;;  %v4497_v61 = vld [vmem:[%s6363_s1 + $0x704] ss:$8 sps:$4 sm:$0xff]  }
  0xa9   :  { %3166 = vmatpush2.bf16.msra.mxu1 %v4401_v62  ;;  %v4492_v62 = vld [vmem:[%s6363_s1 + $0x600] ss:$8 sps:$4 sm:$0xff]  }
  0xaa   :  { %3167 = vmatprep.subr.bf16.mxu1 %v4409_v63  ;;  %v4500_v63 = vld [vmem:[%s6363_s1 + $0x6f4] ss:$8 sps:$4 sm:$0xff]  }
  0xab   :  { %3117 = vmatpush2.bf16.msra.mxu0 %v4404_v0  ;;  %v4495_v0 = vld [vmem:[%s6363_s1 + $0x700] ss:$8 sps:$4 sm:$0xff]  }
  0xac   :  { %3118 = vmatprep.subr.bf16.mxu0 %v4412_v1  ;;  %v4503_v1 = vld [vmem:[%s6363_s1 + $0x7f4] ss:$8 sps:$4 sm:$0xff]  }
  0xad   :  { %3168 = vmatpush2.bf16.msra.mxu1 %v4407_v2  ;;  %v4498_v2 = vld [vmem:[%s6363_s1 + $0x6f0] ss:$8 sps:$4 sm:$0xff]  }
  0xae   :  { %3169 = vmatprep.subr.bf16.mxu1 %v4415_v3  ;;  %v4506_v3 = vld [vmem:[%s6363_s1 + $0x6e4] ss:$8 sps:$4 sm:$0xff]  }
  0xaf   :  { %3119 = vmatpush2.bf16.msra.mxu0 %v4410_v4  ;;  %v4501_v4 = vld [vmem:[%s6363_s1 + $0x7f0] ss:$8 sps:$4 sm:$0xff]  }
  0xb0   :  { %3120 = vmatprep.subr.bf16.mxu0 %v4418_v5  ;;  %v4509_v5 = vld [vmem:[%s6363_s1 + $0x7e4] ss:$8 sps:$4 sm:$0xff]  }
  0xb1   :  { %3170 = vmatpush2.bf16.msra.mxu1 %v4413_v6  ;;  %v4504_v6 = vld [vmem:[%s6363_s1 + $0x6e0] ss:$8 sps:$4 sm:$0xff]  }
  0xb2   :  { %3171 = vmatprep.subr.bf16.mxu1 %v4421_v7  ;;  %v4512_v7 = vld [vmem:[%s6363_s1 + $0x6d4] ss:$8 sps:$4 sm:$0xff]  }
  0xb3   :  { %3121 = vmatpush2.bf16.msra.mxu0 %v4416_v8  ;;  %v4507_v8 = vld [vmem:[%s6363_s1 + $0x7e0] ss:$8 sps:$4 sm:$0xff]  }
  0xb4   :  { %3122 = vmatprep.subr.bf16.mxu0 %v4424_v9  ;;  %v4515_v9 = vld [vmem:[%s6363_s1 + $0x7d4] ss:$8 sps:$4 sm:$0xff]  }
  0xb5   :  { %3172 = vmatpush2.bf16.msra.mxu1 %v4419_v10  ;;  %v4510_v10 = vld [vmem:[%s6363_s1 + $0x6d0] ss:$8 sps:$4 sm:$0xff]  }
  0xb6   :  { %3173 = vmatprep.subr.bf16.mxu1 %v4427_v11  ;;  %v4518_v11 = vld [vmem:[%s6363_s1 + $0x6c4] ss:$8 sps:$4 sm:$0xff]  }
  0xb7   :  { %3123 = vmatpush2.bf16.msra.mxu0 %v4422_v12  ;;  %v4513_v12 = vld [vmem:[%s6363_s1 + $0x7d0] ss:$8 sps:$4 sm:$0xff]  }
  0xb8   :  { %3124 = vmatprep.subr.bf16.mxu0 %v4430_v13  ;;  %v4521_v13 = vld [vmem:[%s6363_s1 + $0x7c4] ss:$8 sps:$4 sm:$0xff]  }
  0xb9   :  { %3174 = vmatpush2.bf16.msra.mxu1 %v4425_v14  ;;  %v4516_v14 = vld [vmem:[%s6363_s1 + $0x6c0] ss:$8 sps:$4 sm:$0xff]  }
  0xba   :  { %3175 = vmatprep.subr.bf16.mxu1 %v4433_v15  ;;  %v4524_v15 = vld [vmem:[%s6363_s1 + $0x6b4] ss:$8 sps:$4 sm:$0xff]  }
  0xbb   :  { %3125 = vmatpush2.bf16.msra.mxu0 %v4428_v16  ;;  %v4519_v16 = vld [vmem:[%s6363_s1 + $0x7c0] ss:$8 sps:$4 sm:$0xff]  }
  0xbc   :  { %3126 = vmatprep.subr.bf16.mxu0 %v4436_v17  ;;  %v4527_v17 = vld [vmem:[%s6363_s1 + $0x7b4] ss:$8 sps:$4 sm:$0xff]  }
  0xbd   :  { %3176 = vmatpush2.bf16.msra.mxu1 %v4431_v18  ;;  %v4522_v18 = vld [vmem:[%s6363_s1 + $0x6b0] ss:$8 sps:$4 sm:$0xff]  }
  0xbe   :  { %3177 = vmatprep.subr.bf16.mxu1 %v4439_v19  ;;  %v4530_v19 = vld [vmem:[%s6363_s1 + $0x6a4] ss:$8 sps:$4 sm:$0xff]  }
  0xbf   :  { %3127 = vmatpush2.bf16.msra.mxu0 %v4434_v20  ;;  %v4525_v20 = vld [vmem:[%s6363_s1 + $0x7b0] ss:$8 sps:$4 sm:$0xff]  }
  0xc0   :  { %3198 = vmatprep.subr.bf16.mxu0 %v4445_v22  ;;  %v4528_v22 = vld [vmem:[%s6363_s1 + $0x6a0] ss:$8 sps:$4 sm:$0xff]  }
  0xc1   :  { %3178 = vmatpush2.bf16.msra.mxu1 %v4437_v21  ;;  %v4533_v21 = vld [vmem:[%s6363_s1 + $0x7a4] ss:$8 sps:$4 sm:$0xff]  }
  0xc2   :  { %3129 = vmatmul.mubr.bf16.vlgmr.msra.gmra.mxu0 %v4440_v24  ;;  %3249 = vmatprep.subr.bf16.mxu1 %v4451_v26  ;;  %v4536_v24 = vld [vmem:[%s6363_s1 + $0x694] ss:$8 sps:$4 sm:$0xff]  }
  0xc3   :  { %3199 = vmatpush1.bf16.msra.mxu0 %v4443_v25  ;;  %3138 = vmatprep.mubr.bf16.mxu0 %v3675_v29  ;;  %v4531_v25 = vld [vmem:[%s6363_s1 + $0x7a0] ss:$8 sps:$4 sm:$0xff]   ;;  %v4539_v26 = vld [vmem:[%s6363_s1 + $0x794] ss:$8 sps:$4 sm:$0xff]   ;;  %v4537_v29 = vld [vmem:[%s6363_s1 + $0x790] ss:$8 sps:$4 sm:$0xff]  }
  0xc4   :  { %3180 = vmatmul.mubr.bf16.vlgmr.msra.gmra.mxu1 %v4446_v28  ;;  %3200 = vmatprep.subr.bf16.mxu0 %v4454_v30  ;;  %v492_v28 = vshrl.u32 %v491_v23, 7  ;;  %v4542_v30 = vld [vmem:[%s6363_s1 + $0x684] ss:$8 sps:$4 sm:$0xff]  }
  0xc5   :  { %3250 = vmatpush1.bf16.msra.mxu1 %v4449_v31  ;;  %3189 = vmatprep.mubr.bf16.mxu1 %v3677_v32  ;;  %v4540_v31 = vld [vmem:[%s6363_s1 + $0x680] ss:$8 sps:$4 sm:$0xff]   ;;  %v4545_v32 = vld [vmem:[%s6363_s1 + $0x784] ss:$8 sps:$4 sm:$0xff]  }
  0xc6   :  { %3251 = vmatprep.subr.bf16.mxu1 %v4457_v33  ;;  %v4543_v33 = vld [vmem:[%s6363_s1 + $0x780] ss:$8 sps:$4 sm:$0xff]  }
  0xc7   :  { %3201 = vmatpush1.bf16.msra.mxu0 %v4452_v34  ;;  %v489_v34 = vld [vmem:[%s6365_s2] sm:$0x3] }
  0xc8   :  { %3202 = vmatprep.subr.bf16.mxu0 %v4462_v35  ;;  %v493_v35 = vsub.s32 0, %v492_v28 }
  0xc9   :  { %3252 = vmatpush1.bf16.msra.mxu1 %v4455_v36  ;;  %v4546_v36 = vld [vmem:[%s6364_s0 + $0x30] ss:$108 sps:$4 sm:$0xff]  }
  0xca   :  { %3139 = vmatmul.mubr.bf16.gmra.mxu0 %v3674_v37  ;;  %3253 = vmatprep.subr.bf16.mxu1 %v4467_v39  ;;  %v4551_v37 = vld [vmem:[%s6363_s1 + $0x874] ss:$8 sps:$4 sm:$0xff]   ;;  %v497_v39 = vsub.s32 1, %v492_v28  ;;  %v4589_v28 = vld [vmem:[%s6363_s1 + $0x920] ss:$8 sps:$4 sm:$0xff]  }
  0xcb   :  { %3203 = vmatpush1.bf16.msra.mxu0 %v4460_v38  ;;  %3230 = vmatprep.mubr.bf16.mxu0 %v4548_v40  ;;  %v49_v38 = vld [vmem:[%s6364_s0 + $0x108] sm:$0x11]  ;;  %v4557_v40 = vld [vmem:[%s6363_s1 + $0x974] ss:$8 sps:$4 sm:$0xff]  }
  0xcc   :  { %3190 = vmatmul.mubr.bf16.gmra.mxu1 %v3676_v41  ;;  %3204 = vmatprep.subr.bf16.mxu0 %v4470_v42  ;;  %v50_v41 = vld [vmem:[%s6364_s0 + $0x110] sm:$0x11]  ;;  %v5714_v42 = vrot.slane %v489_v34, %v493_v35 }
  0xcd   :  { %3254 = vmatpush1.bf16.msra.mxu1 %v4465_v43  ;;  %3281 = vmatprep.mubr.bf16.mxu1 %v4554_v44  ;;  %v4549_v43 = vld [vmem:[%s6363_s1 + $0x870] ss:$8 sps:$4 sm:$0xff]   ;;  %v3679_v44 = vcombine.high %v49_v38, %v49_v38 }
  0xce   :  { %3255 = vmatprep.subr.bf16.mxu1 %v4473_v45  ;;  %v4552_v45 = vld [vmem:[%s6364_s0 + $0x38] ss:$108 sps:$4 sm:$0xff]  }
  0xcf   :  { %3205 = vmatpush1.bf16.msra.mxu0 %v4468_v46  ;;  %v4560_v46 = vld [vmem:[%s6363_s1 + $0x864] ss:$8 sps:$4 sm:$0xff]  }
  0xd0   :  { %3206 = vmatprep.subr.bf16.mxu0 %v4476_v47  ;;  %v5725_v47 = vrot.slane %v489_v34, %v497_v39  ;;  %v4600_v34 = vld [vmem:[%s6363_s1 + $0x804] ss:$8 sps:$4 sm:$0xff]  }
  0xd1   :  { %3256 = vmatpush1.bf16.msra.mxu1 %v4471_v48  ;;  %v4555_v48 = vld [vmem:[%s6363_s1 + $0x970] ss:$8 sps:$4 sm:$0xff]   ;;  %v4603_v39 = vld [vmem:[%s6363_s1 + $0x904] ss:$8 sps:$4 sm:$0xff]  }
  0xd2   :  { %3257 = vmatprep.subr.bf16.mxu1 %v4479_v49  ;;  %v3681_v49 = vcombine.high %v50_v41, %v50_v41 }
  0xd3   :  { %3207 = vmatpush1.bf16.msra.mxu0 %v4474_v50 }
  0xd4   :  { %3208 = vmatprep.subr.bf16.mxu0 %v4482_v51  ;;  %v4563_v51 = vld [vmem:[%s6363_s1 + $0x964] ss:$8 sps:$4 sm:$0xff]  }
  0xd5   :  { %3258 = vmatpush1.bf16.msra.mxu1 %v4477_v52 }
  0xd6   :  { %3259 = vmatprep.subr.bf16.mxu1 %v4485_v53  ;;  %v4558_v53 = vld [vmem:[%s6363_s1 + $0x860] ss:$8 sps:$4 sm:$0xff]  }
  0xd7   :  { %3209 = vmatpush1.bf16.msra.mxu0 %v4480_v54 }
  0xd8   :  { %3210 = vmatprep.subr.bf16.mxu0 %v4488_v55 }
  0xd9   :  { %3260 = vmatpush1.bf16.msra.mxu1 %v4483_v56  ;;  %v4568_v56 = vld [vmem:[%s6363_s1 + $0x854] ss:$8 sps:$4 sm:$0xff]  }
  0xda   :  { %3261 = vmatprep.subr.bf16.mxu1 %v4491_v57 }
  0xdb   :  { %3211 = vmatpush1.bf16.msra.mxu0 %v4486_v58 }
  0xdc   :  { %3212 = vmatprep.subr.bf16.mxu0 %v4494_v59  ;;  %v4561_v59 = vld [vmem:[%s6363_s1 + $0x960] ss:$8 sps:$4 sm:$0xff]  }
  0xdd   :  { %3262 = vmatpush1.bf16.msra.mxu1 %v4489_v60 }
  0xde   :  { %3263 = vmatprep.subr.bf16.mxu1 %v4497_v61 }
  0xdf   :  { %3213 = vmatpush1.bf16.msra.mxu0 %v4492_v62  ;;  %v3678_v62 = vcombine.low %v49_v38, %v49_v38 }
  0xe0   :  { %3214 = vmatprep.subr.bf16.mxu0 %v4500_v63  ;;  %v4573_v63 = vld [vmem:[%s6363_s1 + $0x954] ss:$8 sps:$4 sm:$0xff]  }
  0xe1   :  { %3264 = vmatpush1.bf16.msra.mxu1 %v4495_v0 }
  0xe2   :  { %3265 = vmatprep.subr.bf16.mxu1 %v4503_v1 }
  0xe3   :  { %3215 = vmatpush2.bf16.msra.mxu0 %v4498_v2  ;;  %v4566_v2 = vld [vmem:[%s6363_s1 + $0x850] ss:$8 sps:$4 sm:$0xff]  }
  0xe4   :  { %3216 = vmatprep.subr.bf16.mxu0 %v4506_v3  ;;  %v4654_v3 = vld [vmem:[%s6364_s0 + $0x44] ss:$108 sps:$4 sm:$0xff]  }
  0xe5   :  { %3266 = vmatpush2.bf16.msra.mxu1 %v4501_v4 }
  0xe6   :  { %3267 = vmatprep.subr.bf16.mxu1 %v4509_v5 }
  0xe7   :  { %3217 = vmatpush2.bf16.msra.mxu0 %v4504_v6  ;;  %v3680_v6 = vcombine.low %v50_v41, %v50_v41  ;;  %v4598_v41 = vld [vmem:[%s6363_s1 + $0x800] ss:$8 sps:$4 sm:$0xff]  }
  0xe8   :  { %3218 = vmatprep.subr.bf16.mxu0 %v4512_v7  ;;  %v4571_v7 = vld [vmem:[%s6363_s1 + $0x950] ss:$8 sps:$4 sm:$0xff]  }
  0xe9   :  { %3268 = vmatpush2.bf16.msra.mxu1 %v4507_v8  ;;  %v4576_v8 = vld [vmem:[%s6363_s1 + $0x844] ss:$8 sps:$4 sm:$0xff]  }
  0xea   :  { %3269 = vmatprep.subr.bf16.mxu1 %v4515_v9 }
  0xeb   :  { %3219 = vmatpush2.bf16.msra.mxu0 %v4510_v10 }
  0xec   :  { %3220 = vmatprep.subr.bf16.mxu0 %v4518_v11  ;;  %v4660_v11 = vld [vmem:[%s6364_s0 + $0x4c] ss:$108 sps:$4 sm:$0xff]  }
  0xed   :  { %3270 = vmatpush2.bf16.msra.mxu1 %v4513_v12 }
  0xee   :  { %3271 = vmatprep.subr.bf16.mxu1 %v4521_v13  ;;  %v4579_v13 = vld [vmem:[%s6363_s1 + $0x944] ss:$8 sps:$4 sm:$0xff]  }
  0xef   :  { %3221 = vmatpush2.bf16.msra.mxu0 %v4516_v14 }
  0xf0   :  { %3222 = vmatprep.subr.bf16.mxu0 %v4524_v15  ;;  %v4574_v15 = vld [vmem:[%s6363_s1 + $0x840] ss:$8 sps:$4 sm:$0xff]  }
  0xf1   :  { %3272 = vmatpush2.bf16.msra.mxu1 %v4519_v16  ;;  %v4582_v16 = vld [vmem:[%s6363_s1 + $0x834] ss:$8 sps:$4 sm:$0xff]  }
  0xf2   :  { %3273 = vmatprep.subr.bf16.mxu1 %v4527_v17  ;;  %v4577_v17 = vld [vmem:[%s6363_s1 + $0x940] ss:$8 sps:$4 sm:$0xff]  }
  0xf3   :  { %3223 = vmatpush2.bf16.msra.mxu0 %v4522_v18  ;;  %v4585_v18 = vld [vmem:[%s6363_s1 + $0x934] ss:$8 sps:$4 sm:$0xff]  }
  0xf4   :  { %3224 = vmatprep.subr.bf16.mxu0 %v4530_v19  ;;  %v4580_v19 = vld [vmem:[%s6363_s1 + $0x830] ss:$8 sps:$4 sm:$0xff]  }
  0xf5   :  { %3274 = vmatpush2.bf16.msra.mxu1 %v4525_v20  ;;  %v4588_v20 = vld [vmem:[%s6363_s1 + $0x824] ss:$8 sps:$4 sm:$0xff]  }
  0xf6   :  { %3275 = vmatprep.subr.bf16.mxu1 %v4533_v21  ;;  %v4583_v21 = vld [vmem:[%s6363_s1 + $0x930] ss:$8 sps:$4 sm:$0xff]  }
  0xf7   :  { %3225 = vmatpush2.bf16.msra.mxu0 %v4528_v22  ;;  %v4591_v22 = vld [vmem:[%s6363_s1 + $0x924] ss:$8 sps:$4 sm:$0xff]  }
  0xf8   :  { %3226 = vmatprep.subr.bf16.mxu0 %v4536_v24  ;;  %v4586_v24 = vld [vmem:[%s6363_s1 + $0x820] ss:$8 sps:$4 sm:$0xff]  }
  0xf9   :  { %3276 = vmatpush2.bf16.msra.mxu1 %v4531_v25  ;;  %v4594_v25 = vld [vmem:[%s6363_s1 + $0x814] ss:$8 sps:$4 sm:$0xff]  }
  0xfa   :  { %3277 = vmatprep.subr.bf16.mxu1 %v4539_v26 }
  0xfb   :  { %3227 = vmatpush2.bf16.msra.mxu0 %v4534_v27 }
  0xfc   :  { %3228 = vmatprep.subr.bf16.mxu0 %v4542_v30 }
  0xfd   :  { %3278 = vmatpush2.bf16.msra.mxu1 %v4537_v29  ;;  %v4597_v29 = vld [vmem:[%s6363_s1 + $0x914] ss:$8 sps:$4 sm:$0xff]  }
  0xfe   :  { %3279 = vmatprep.subr.bf16.mxu1 %v4545_v32  ;;  %v4592_v32 = vld [vmem:[%s6363_s1 + $0x810] ss:$8 sps:$4 sm:$0xff]  }
  0xff   :  { %3229 = vmatpush2.bf16.msra.mxu0 %v4540_v31 }
 0x100   :  { %3300 = vmatprep.subr.bf16.mxu0 %v4551_v37  ;;  %v4595_v37 = vld [vmem:[%s6363_s1 + $0x910] ss:$8 sps:$4 sm:$0xff]  }
 0x101   :  { %3280 = vmatpush2.bf16.msra.mxu1 %v4543_v33 }
 0x102   :  { %v2926_v50 = vpop.f32.mrf.mxu0  ;;  %3231 = vmatmul.mubr.bf16.vlgmr.msra.gmra.mxu0 %v4546_v36  ;;  %3351 = vmatprep.subr.bf16.mxu1 %v4557_v40 }
 0x103   :  { %v2927_v52 = vadd.f32 %v2926_v50, %v5714_v42  ;;  %3301 = vmatpush1.bf16.msra.mxu0 %v4549_v43  ;;  %3240 = vmatprep.mubr.bf16.mxu0 %v3679_v44  ;;  %v2977_v55 = vpop.f32.mrf.mxu1  ;;  %v4606_v43 = vld [vmem:[%s6363_s1 + $0x8f4] ss:$8 sps:$4 sm:$0xff]   ;;  %v4601_v44 = vld [vmem:[%s6363_s1 + $0x900] ss:$8 sps:$4 sm:$0xff]   ;;  %v4615_v50 = vld [vmem:[%s6363_s1 + $0x9e4] ss:$8 sps:$4 sm:$0xff]  }
 0x104   :  { %v2928_v54 = vpop.f32.mrf.mxu0  ;;  %3282 = vmatmul.mubr.bf16.vlgmr.msra.gmra.mxu1 %v4552_v45  ;;  %3302 = vmatprep.subr.bf16.mxu0 %v4560_v46  ;;  %v4609_v46 = vld [vmem:[%s6363_s1 + $0x9f4] ss:$8 sps:$4 sm:$0xff]  }
 0x105   :  { %v2929_v57 = vadd.f32 %v2928_v54, %v5725_v47  ;;  %v5741_v58 = vadd.f32 %v2977_v55, %v2927_v52  ;;  %3352 = vmatpush1.bf16.msra.mxu1 %v4555_v48  ;;  %3291 = vmatprep.mubr.bf16.mxu1 %v3681_v49  ;;  %v2979_v61 = vpop.f32.mrf.mxu1  ;;  %v4612_v48 = vld [vmem:[%s6363_s1 + $0x8e4] ss:$8 sps:$4 sm:$0xff]   ;;  %v4607_v49 = vld [vmem:[%s6363_s1 + $0x9f0] ss:$8 sps:$4 sm:$0xff]   ;;  %v4618_v52 = vld [vmem:[%s6363_s1 + $0x8d4] ss:$8 sps:$4 sm:$0xff]  }
 0x106   :  { %v2930_v60 = vpop.f32.mrf.mxu0  ;;  %3353 = vmatprep.subr.bf16.mxu1 %v4563_v51  ;;  %v4610_v51 = vld [vmem:[%s6363_s1 + $0x8e0] ss:$8 sps:$4 sm:$0xff]   ;;  %v4621_v54 = vld [vmem:[%s6363_s1 + $0x9d4] ss:$8 sps:$4 sm:$0xff]   ;;  %v4616_v55 = vld [vmem:[%s6363_s1 + $0x8d0] ss:$8 sps:$4 sm:$0xff]  }
 0x107   :  { %v2931_v0 = vadd.f32 %v2930_v60, %v5714_v42  ;;  %v5750_v1 = vadd.f32 %v2979_v61, %v2929_v57  ;;  %3303 = vmatpush1.bf16.msra.mxu0 %v4558_v53  ;;  %v2981_v5 = vpop.f32.mrf.mxu1  ;;  %v4613_v53 = vld [vmem:[%s6363_s1 + $0x9e0] ss:$8 sps:$4 sm:$0xff]   ;;  %v4624_v57 = vld [vmem:[%s6363_s1 + $0x8c4] ss:$8 sps:$4 sm:$0xff]  }
 0x108   :  { %v2932_v4 = vpop.f32.mrf.mxu0  ;;  %3304 = vmatprep.subr.bf16.mxu0 %v4568_v56  ;;  %v4619_v56 = vld [vmem:[%s6363_s1 + $0x9d0] ss:$8 sps:$4 sm:$0xff]   ;;  %v4622_v60 = vld [vmem:[%s6363_s1 + $0x8c0] ss:$8 sps:$4 sm:$0xff]  }
 0x109   :  { %v2933_v9 = vadd.f32 %v2932_v4, %v5725_v47  ;;  %v5765_v10 = vadd.f32 %v2981_v5, %v2931_v0  ;;  %3354 = vmatpush1.bf16.msra.mxu1 %v4561_v59  ;;  %v2983_v12 = vpop.f32.mrf.mxu1  ;;  %v4627_v59 = vld [vmem:[%s6363_s1 + $0x9c4] ss:$8 sps:$4 sm:$0xff]   ;;  %v4625_v61 = vld [vmem:[%s6363_s1 + $0x9c0] ss:$8 sps:$4 sm:$0xff]   ;;  %v4628_v0 = vld [vmem:[%s6363_s1 + $0x8b0] ss:$8 sps:$4 sm:$0xff]  }
 0x10a   :  { %3241 = vmatmul.mubr.bf16.gmra.mxu0 %v3678_v62  ;;  %3355 = vmatprep.subr.bf16.mxu1 %v4573_v63  ;;  %v2936_v23 = vpop.f32.mrf.mxu0  ;;  %v4630_v62 = vld [vmem:[%s6363_s1 + $0x8b4] ss:$8 sps:$4 sm:$0xff]   ;;  %v4639_v4 = vld [vmem:[%s6363_s1 + $0x9a4] ss:$8 sps:$4 sm:$0xff]   ;;  %v4634_v5 = vld [vmem:[%s6363_s1 + $0x8a0] ss:$8 sps:$4 sm:$0xff]  }
 0x10b   :  { %v5773_v14 = vadd.f32 %v2983_v12, %v2933_v9  ;;  %3305 = vmatpush1.bf16.msra.mxu0 %v4566_v2  ;;  %3332 = vmatprep.mubr.bf16.mxu0 %v4654_v3  ;;  %v2937_v26 = vadd.f32 %v2936_v23, %v5714_v42  ;;  %v2987_v33 = vpop.f32.mrf.mxu1  ;;  %v4633_v63 = vld [vmem:[%s6363_s1 + $0x9b4] ss:$8 sps:$4 sm:$0xff]   ;;  %v4631_v2 = vld [vmem:[%s6363_s1 + $0x9b0] ss:$8 sps:$4 sm:$0xff]   ;;  %v4636_v3 = vld [vmem:[%s6363_s1 + $0x8a4] ss:$8 sps:$4 sm:$0xff]  }
 0x10c   :  { %3292 = vmatmul.mubr.bf16.gmra.mxu1 %v3680_v6  ;;  %3306 = vmatprep.subr.bf16.mxu0 %v4576_v8  ;;  %v2938_v27 = vpop.f32.mrf.mxu0  ;;  %v4642_v6 = vld [vmem:[%s6363_s1 + $0x894] ss:$8 sps:$4 sm:$0xff]   ;;  %v4640_v9 = vld [vmem:[%s6363_s1 + $0x890] ss:$8 sps:$4 sm:$0xff]  }
 0x10d   :  { %3356 = vmatpush1.bf16.msra.mxu1 %v4571_v7  ;;  %3383 = vmatprep.mubr.bf16.mxu1 %v4660_v11  ;;  %v2939_v30 = vadd.f32 %v2938_v27, %v5725_v47  ;;  %v5819_v36 = vadd.f32 %v2987_v33, %v2937_v26  ;;  %v2989_v38 = vpop.f32.mrf.mxu1  ;;  %v4604_v47 = vld [vmem:[%s6363_s1 + $0x8f0] ss:$8 sps:$4 sm:$0xff]   ;;  %v4637_v7 = vld [vmem:[%s6363_s1 + $0x9a0] ss:$8 sps:$4 sm:$0xff]   ;;  %v4645_v8 = vld [vmem:[%s6363_s1 + $0x994] ss:$8 sps:$4 sm:$0xff]  }
 0x10e   :  { %3357 = vmatprep.subr.bf16.mxu1 %v4579_v13  ;;  %v2940_v31 = vpop.f32.mrf.mxu0  ;;  %v4648_v11 = vld [vmem:[%s6363_s1 + $0x884] ss:$8 sps:$4 sm:$0xff]   ;;  %v4643_v12 = vld [vmem:[%s6363_s1 + $0x990] ss:$8 sps:$4 sm:$0xff]  }
 0x10f   :  { %3307 = vmatpush1.bf16.msra.mxu0 %v4574_v15  ;;  %v5827_v40 = vadd.f32 %v2989_v38, %v2939_v30  ;;  %v2991_v42 = vpop.f32.mrf.mxu1  ;;  %v4651_v13 = vld [vmem:[%s6363_s1 + $0x984] ss:$8 sps:$4 sm:$0xff]   ;;  %v4646_v15 = vld [vmem:[%s6363_s1 + $0x880] ss:$8 sps:$4 sm:$0xff]   ;;  %v4661_v26 = vld [vmem:[%s6363_s1 + $0xb70] ss:$8 sps:$4 sm:$0xff]  }
 0x110   :  { %3308 = vmatprep.subr.bf16.mxu0 %v4582_v16  ;;  %v2941_v35 = vpop.f32.mrf.mxu0  ;;  %v4657_v16 = vld [vmem:[%s6363_s1 + $0xa74] ss:$8 sps:$4 sm:$0xff]   ;;  %v4664_v31 = vld [vmem:[%s6363_s1 + $0xa60] ss:$8 sps:$4 sm:$0xff]  }
 0x111   :  { %3358 = vmatpush1.bf16.msra.mxu1 %v4577_v17  ;;  %v2992_v45 = vpop.f32.mrf.mxu1  ;;  %v51_v17 = vld [vmem:[%s6364_s0 + $0x118] sm:$0x11] }
 0x112   :  { %3359 = vmatprep.subr.bf16.mxu1 %v4585_v18  ;;  %v4649_v18 = vld [vmem:[%s6363_s1 + $0x980] ss:$8 sps:$4 sm:$0xff]   ;;  %v3683_v23 = vcombine.high %v51_v17, %v51_v17  ;;  %v4679_v42 = vld [vmem:[%s6363_s1 + $0xb54] ss:$8 sps:$4 sm:$0xff]  }
 0x113   :  { %3309 = vmatpush1.bf16.msra.mxu0 %v4580_v19  ;;  %v4652_v19 = vld [vmem:[%s6364_s0 + $0x40] ss:$108 sps:$4 sm:$0xff]  }
 0x114   :  { %3310 = vmatprep.subr.bf16.mxu0 %v4588_v20  ;;  %v4663_v20 = vld [vmem:[%s6363_s1 + $0xb74] ss:$8 sps:$4 sm:$0xff]  }
 0x115   :  { %3360 = vmatpush1.bf16.msra.mxu1 %v4583_v21  ;;  %v52_v21 = vld [vmem:[%s6364_s0 + $0x120] sm:$0x11] }
 0x116   :  { %3361 = vmatprep.subr.bf16.mxu1 %v4591_v22  ;;  %v4655_v22 = vld [vmem:[%s6363_s1 + $0xa70] ss:$8 sps:$4 sm:$0xff]   ;;  %v3685_v27 = vcombine.high %v52_v21, %v52_v21  ;;  %v4760_v45 = vld [vmem:[%s6364_s0 + $0x54] ss:$108 sps:$4 sm:$0xff]  }
 0x117   :  { %3311 = vmatpush1.bf16.msra.mxu0 %v4586_v24  ;;  %v4658_v24 = vld [vmem:[%s6364_s0 + $0x48] ss:$108 sps:$4 sm:$0xff]  }
 0x118   :  { %3312 = vmatprep.subr.bf16.mxu0 %v4594_v25  ;;  %v4666_v25 = vld [vmem:[%s6363_s1 + $0xa64] ss:$8 sps:$4 sm:$0xff]  }
 0x119   :  { %3362 = vmatpush1.bf16.msra.mxu1 %v4589_v28 }
 0x11a   :  { %3363 = vmatprep.subr.bf16.mxu1 %v4597_v29  ;;  %v4669_v29 = vld [vmem:[%s6363_s1 + $0xb64] ss:$8 sps:$4 sm:$0xff]  }
 0x11b   :  { %3313 = vmatpush1.bf16.msra.mxu0 %v4592_v32 }
 0x11c   :  { %3314 = vmatprep.subr.bf16.mxu0 %v4600_v34  ;;  %v4674_v34 = vld [vmem:[%s6363_s1 + $0xa54] ss:$8 sps:$4 sm:$0xff]  }
 0x11d   :  { %3364 = vmatpush1.bf16.msra.mxu1 %v4595_v37 }
 0x11e   :  { %3365 = vmatprep.subr.bf16.mxu1 %v4603_v39 }
 0x11f   :  { %3315 = vmatpush1.bf16.msra.mxu0 %v4598_v41  ;;  %v3682_v41 = vcombine.low %v51_v17, %v51_v17  ;;  %v4698_v17 = vld [vmem:[%s6363_s1 + $0xa10] ss:$8 sps:$4 sm:$0xff]  }
 0x120   :  { %3316 = vmatprep.subr.bf16.mxu0 %v4606_v43 }
 0x121   :  { %3366 = vmatpush1.bf16.msra.mxu1 %v4601_v44 }
 0x122   :  { %3367 = vmatprep.subr.bf16.mxu1 %v4609_v46 }
 0x123   :  { %3317 = vmatpush2.bf16.msra.mxu0 %v4604_v47 }
 0x124   :  { %3318 = vmatprep.subr.bf16.mxu0 %v4612_v48  ;;  %v3684_v48 = vcombine.low %v52_v21, %v52_v21  ;;  %v4704_v21 = vld [vmem:[%s6363_s1 + $0xa00] ss:$8 sps:$4 sm:$0xff]  }
 0x125   :  { %3368 = vmatpush2.bf16.msra.mxu1 %v4607_v49  ;;  %v4682_v49 = vld [vmem:[%s6363_s1 + $0xa44] ss:$8 sps:$4 sm:$0xff]  }
 0x126   :  { %3369 = vmatprep.subr.bf16.mxu1 %v4615_v50 }
 0x127   :  { %3319 = vmatpush2.bf16.msra.mxu0 %v4610_v51  ;;  %v4677_v51 = vld [vmem:[%s6363_s1 + $0xb50] ss:$8 sps:$4 sm:$0xff]  }
 0x128   :  { %3320 = vmatprep.subr.bf16.mxu0 %v4618_v52  ;;  %v4766_v52 = vld [vmem:[%s6364_s0 + $0x5c] ss:$108 sps:$4 sm:$0xff]  }
 0x129   :  { %3370 = vmatpush2.bf16.msra.mxu1 %v4613_v53 }
 0x12a   :  { %3371 = vmatprep.subr.bf16.mxu1 %v4621_v54 }
 0x12b   :  { %3321 = vmatpush2.bf16.msra.mxu0 %v4616_v55  ;;  %v4685_v55 = vld [vmem:[%s6363_s1 + $0xb44] ss:$8 sps:$4 sm:$0xff]  }
 0x12c   :  { %3322 = vmatprep.subr.bf16.mxu0 %v4624_v57  ;;  %v4680_v57 = vld [vmem:[%s6363_s1 + $0xa40] ss:$8 sps:$4 sm:$0xff]  }
 0x12d   :  { %3372 = vmatpush2.bf16.msra.mxu1 %v4619_v56 }
 0x12e   :  { %3373 = vmatprep.subr.bf16.mxu1 %v4627_v59 }
 0x12f   :  { %3323 = vmatpush2.bf16.msra.mxu0 %v4622_v60 }
 0x130   :  { %3324 = vmatprep.subr.bf16.mxu0 %v4630_v62 }
 0x131   :  { %3374 = vmatpush2.bf16.msra.mxu1 %v4625_v61  ;;  %v4688_v61 = vld [vmem:[%s6363_s1 + $0xa34] ss:$8 sps:$4 sm:$0xff]  }
 0x132   :  { %3375 = vmatprep.subr.bf16.mxu1 %v4633_v63 }
 0x133   :  { %3325 = vmatpush2.bf16.msra.mxu0 %v4628_v0 }
 0x134   :  { %3326 = vmatprep.subr.bf16.mxu0 %v4636_v3 }
 0x135   :  { %3376 = vmatpush2.bf16.msra.mxu1 %v4631_v2  ;;  %v4691_v2 = vld [vmem:[%s6363_s1 + $0xb34] ss:$8 sps:$4 sm:$0xff]  }
 0x136   :  { %3377 = vmatprep.subr.bf16.mxu1 %v4639_v4 }
 0x137   :  { %3327 = vmatpush2.bf16.msra.mxu0 %v4634_v5  ;;  %v4694_v5 = vld [vmem:[%s6363_s1 + $0xa24] ss:$8 sps:$4 sm:$0xff]  }
 0x138   :  { %3328 = vmatprep.subr.bf16.mxu0 %v4642_v6 }
 0x139   :  { %3378 = vmatpush2.bf16.msra.mxu1 %v4637_v7 }
 0x13a   :  { %3379 = vmatprep.subr.bf16.mxu1 %v4645_v8  ;;  %v4689_v8 = vld [vmem:[%s6363_s1 + $0xb30] ss:$8 sps:$4 sm:$0xff]  }
 0x13b   :  { %3329 = vmatpush2.bf16.msra.mxu0 %v4640_v9  ;;  %v4697_v9 = vld [vmem:[%s6363_s1 + $0xb24] ss:$8 sps:$4 sm:$0xff]  }
 0x13c   :  { %3330 = vmatprep.subr.bf16.mxu0 %v4648_v11 }
 0x13d   :  { %3380 = vmatpush2.bf16.msra.mxu1 %v4643_v12  ;;  %v4692_v12 = vld [vmem:[%s6363_s1 + $0xa20] ss:$8 sps:$4 sm:$0xff]  }
 0x13e   :  { %3381 = vmatprep.subr.bf16.mxu1 %v4651_v13  ;;  %v4700_v13 = vld [vmem:[%s6363_s1 + $0xa14] ss:$8 sps:$4 sm:$0xff]  }
 0x13f   :  { %3331 = vmatpush2.bf16.msra.mxu0 %v4646_v15  ;;  %v4695_v15 = vld [vmem:[%s6363_s1 + $0xb20] ss:$8 sps:$4 sm:$0xff]  }
 0x140   :  { %3402 = vmatprep.subr.bf16.mxu0 %v4657_v16  ;;  %v4703_v16 = vld [vmem:[%s6363_s1 + $0xb14] ss:$8 sps:$4 sm:$0xff]  }
 0x141   :  { %3382 = vmatpush2.bf16.msra.mxu1 %v4649_v18  ;;  %v4706_v18 = vld [vmem:[%s6363_s1 + $0xa04] ss:$8 sps:$4 sm:$0xff]  }
 0x142   :  { %v3028_v28 = vpop.f32.mrf.mxu0  ;;  %3333 = vmatmul.mubr.bf16.vlgmr.msra.gmra.mxu0 %v4652_v19  ;;  %3453 = vmatprep.subr.bf16.mxu1 %v4663_v20  ;;  %v4701_v19 = vld [vmem:[%s6363_s1 + $0xb10] ss:$8 sps:$4 sm:$0xff]   ;;  %v4709_v20 = vld [vmem:[%s6363_s1 + $0xb04] ss:$8 sps:$4 sm:$0xff]  }
 0x143   :  { %v3029_v30 = vadd.f32 %v3028_v28, %v5741_v58  ;;  %3403 = vmatpush1.bf16.msra.mxu0 %v4655_v22  ;;  %3342 = vmatprep.mubr.bf16.mxu0 %v3683_v23  ;;  %v4667_v58 = vld [vmem:[%s6363_s1 + $0xb60] ss:$8 sps:$4 sm:$0xff]   ;;  %v4712_v22 = vld [vmem:[%s6363_s1 + $0xaf4] ss:$8 sps:$4 sm:$0xff]   ;;  %v4721_v28 = vld [vmem:[%s6363_s1 + $0xbe4] ss:$8 sps:$4 sm:$0xff]  }
 0x144   :  { %v3030_v32 = vpop.f32.mrf.mxu0  ;;  %v3079_v33 = vpop.f32.mrf.mxu1  ;;  %3384 = vmatmul.mubr.bf16.vlgmr.msra.gmra.mxu1 %v4658_v24  ;;  %3404 = vmatprep.subr.bf16.mxu0 %v4666_v25  ;;  %v4707_v23 = vld [vmem:[%s6363_s1 + $0xb00] ss:$8 sps:$4 sm:$0xff]   ;;  %v4715_v24 = vld [vmem:[%s6363_s1 + $0xbf4] ss:$8 sps:$4 sm:$0xff]   ;;  %v4710_v25 = vld [vmem:[%s6363_s1 + $0xaf0] ss:$8 sps:$4 sm:$0xff]  }
 0x145   :  { %v3031_v35 = vadd.f32 %v3030_v32, %v5750_v1  ;;  %v5969_v37 = vadd.f32 %v3079_v33, %v3029_v30  ;;  %3454 = vmatpush1.bf16.msra.mxu1 %v4661_v26  ;;  %3393 = vmatprep.mubr.bf16.mxu1 %v3685_v27  ;;  %v4672_v1 = vld [vmem:[%s6363_s1 + $0xa50] ss:$8 sps:$4 sm:$0xff]   ;;  %v4718_v26 = vld [vmem:[%s6363_s1 + $0xae4] ss:$8 sps:$4 sm:$0xff]   ;;  %v4724_v30 = vld [vmem:[%s6363_s1 + $0xad4] ss:$8 sps:$4 sm:$0xff]  }
 0x146   :  { %v3032_v38 = vpop.f32.mrf.mxu0  ;;  %v3081_v39 = vpop.f32.mrf.mxu1  ;;  %3455 = vmatprep.subr.bf16.mxu1 %v4669_v29  ;;  %v4713_v27 = vld [vmem:[%s6363_s1 + $0xbf0] ss:$8 sps:$4 sm:$0xff]   ;;  %v4716_v29 = vld [vmem:[%s6363_s1 + $0xae0] ss:$8 sps:$4 sm:$0xff]   ;;  %v4727_v32 = vld [vmem:[%s6363_s1 + $0xbd4] ss:$8 sps:$4 sm:$0xff]  }
 0x147   :  { %v3033_v43 = vadd.f32 %v3032_v38, %v5765_v10  ;;  %v5978_v44 = vadd.f32 %v3081_v39, %v3031_v35  ;;  %3405 = vmatpush1.bf16.msra.mxu0 %v4664_v31  ;;  %v4719_v31 = vld [vmem:[%s6363_s1 + $0xbe0] ss:$8 sps:$4 sm:$0xff]   ;;  %v4722_v33 = vld [vmem:[%s6363_s1 + $0xad0] ss:$8 sps:$4 sm:$0xff]   ;;  %v4736_v39 = vld [vmem:[%s6363_s1 + $0xab4] ss:$8 sps:$4 sm:$0xff]  }
 0x148   :  { %v3034_v46 = vpop.f32.mrf.mxu0  ;;  %v3083_v47 = vpop.f32.mrf.mxu1  ;;  %3406 = vmatprep.subr.bf16.mxu0 %v4674_v34  ;;  %v4730_v34 = vld [vmem:[%s6363_s1 + $0xac4] ss:$8 sps:$4 sm:$0xff]   ;;  %v4725_v35 = vld [vmem:[%s6363_s1 + $0xbd0] ss:$8 sps:$4 sm:$0xff]   ;;  %v4728_v38 = vld [vmem:[%s6363_s1 + $0xac0] ss:$8 sps:$4 sm:$0xff]  }
 0x149   :  { %v3035_v10 = vadd.f32 %v3034_v46, %v5773_v14  ;;  %v5990_v50 = vadd.f32 %v3083_v47, %v3033_v43  ;;  %3456 = vmatpush1.bf16.msra.mxu1 %v4667_v58  ;;  %v4733_v58 = vld [vmem:[%s6363_s1 + $0xbc4] ss:$8 sps:$4 sm:$0xff]   ;;  %v4734_v43 = vld [vmem:[%s6363_s1 + $0xab0] ss:$8 sps:$4 sm:$0xff]   ;;  %v4740_v47 = vld [vmem:[%s6363_s1 + $0xaa0] ss:$8 sps:$4 sm:$0xff]  }
 0x14a   :  { %v3038_v53 = vpop.f32.mrf.mxu0  ;;  %v3085_v54 = vpop.f32.mrf.mxu1  ;;  %3343 = vmatmul.mubr.bf16.gmra.mxu0 %v3682_v41  ;;  %3457 = vmatprep.subr.bf16.mxu1 %v4679_v42  ;;  %v4731_v41 = vld [vmem:[%s6363_s1 + $0xbc0] ss:$8 sps:$4 sm:$0xff]   ;;  %v4739_v42 = vld [vmem:[%s6363_s1 + $0xbb4] ss:$8 sps:$4 sm:$0xff]   ;;  %v4745_v46 = vld [vmem:[%s6363_s1 + $0xba4] ss:$8 sps:$4 sm:$0xff]  }
 0x14b   :  { %v3039_v14 = vadd.f32 %v3038_v53, %v5819_v36  ;;  %v6002_v56 = vadd.f32 %v3085_v54, %v3035_v10  ;;  %3407 = vmatpush1.bf16.msra.mxu0 %v4672_v1  ;;  %3434 = vmatprep.mubr.bf16.mxu0 %v4760_v45  ;;  %v4683_v36 = vld [vmem:[%s6363_s1 + $0xb40] ss:$8 sps:$4 sm:$0xff]   ;;  %v4742_v1 = vld [vmem:[%s6363_s1 + $0xaa4] ss:$8 sps:$4 sm:$0xff]   ;;  %v4737_v45 = vld [vmem:[%s6363_s1 + $0xbb0] ss:$8 sps:$4 sm:$0xff]  }
 0x14c   :  { %v3040_v59 = vpop.f32.mrf.mxu0  ;;  %v3089_v60 = vpop.f32.mrf.mxu1  ;;  %3394 = vmatmul.mubr.bf16.gmra.mxu1 %v3684_v48  ;;  %3408 = vmatprep.subr.bf16.mxu0 %v4682_v49  ;;  %v4748_v48 = vld [vmem:[%s6363_s1 + $0xa94] ss:$8 sps:$4 sm:$0xff]   ;;  %v4743_v49 = vld [vmem:[%s6363_s1 + $0xba0] ss:$8 sps:$4 sm:$0xff]   ;;  %v4749_v53 = vld [vmem:[%s6363_s1 + $0xb90] ss:$8 sps:$4 sm:$0xff]  }
 0x14d   :  { %v3041_v62 = vadd.f32 %v3040_v59, %v5827_v40  ;;  %v6011_v63 = vadd.f32 %v3089_v60, %v3039_v14  ;;  %3458 = vmatpush1.bf16.msra.mxu1 %v4677_v51  ;;  %3485 = vmatprep.mubr.bf16.mxu1 %v4766_v52  ;;  %v4686_v40 = vld [vmem:[%s6363_s1 + $0xa30] ss:$8 sps:$4 sm:$0xff]   ;;  %v4751_v10 = vld [vmem:[%s6363_s1 + $0xb94] ss:$8 sps:$4 sm:$0xff]   ;;  %v4754_v52 = vld [vmem:[%s6363_s1 + $0xa84] ss:$8 sps:$4 sm:$0xff]  }
 0x14e   :  { %v3091_v0 = vpop.f32.mrf.mxu1  ;;  %3459 = vmatprep.subr.bf16.mxu1 %v4685_v55  ;;  %v3042_v3 = vpop.f32.mrf.mxu0  ;;  %v4746_v51 = vld [vmem:[%s6363_s1 + $0xa90] ss:$8 sps:$4 sm:$0xff]   ;;  %v4757_v54 = vld [vmem:[%s6363_s1 + $0xb84] ss:$8 sps:$4 sm:$0xff]   ;;  %v4752_v55 = vld [vmem:[%s6363_s1 + $0xa80] ss:$8 sps:$4 sm:$0xff]  }
 0x14f   :  { %v6019_v4 = vadd.f32 %v3091_v0, %v3041_v62  ;;  %3409 = vmatpush1.bf16.msra.mxu0 %v4680_v57  ;;  %v4763_v14 = vld [vmem:[%s6363_s1 + $0xc74] ss:$8 sps:$4 sm:$0xff]   ;;  %v53_v57 = vld [vmem:[%s6364_s0 + $0x128] sm:$0x11] }
 0x150   :  { %3410 = vmatprep.subr.bf16.mxu0 %v4688_v61  ;;  %v3043_v6 = vpop.f32.mrf.mxu0  ;;  %v3093_v7 = vpop.f32.mrf.mxu1  ;;  %v4755_v59 = vld [vmem:[%s6363_s1 + $0xb80] ss:$8 sps:$4 sm:$0xff]   ;;  %v4758_v60 = vld [vmem:[%s6364_s0 + $0x50] ss:$108 sps:$4 sm:$0xff]   ;;  %v3687_v0 = vcombine.high %v53_v57, %v53_v57  ;;  %v4769_v3 = vld [vmem:[%s6363_s1 + $0xc64] ss:$8 sps:$4 sm:$0xff]  }
 0x151   :  { %3460 = vmatpush1.bf16.msra.mxu1 %v4683_v36  ;;  %v54_v61 = vld [vmem:[%s6364_s0 + $0x130] sm:$0x11]  ;;  %v4800_v7 = vld [vmem:[%s6363_s1 + $0xd64] ss:$8 sps:$4 sm:$0xff]  }
 0x152   :  { %3461 = vmatprep.subr.bf16.mxu1 %v4691_v2  ;;  %v3094_v11 = vpop.f32.mrf.mxu1  ;;  %v4794_v62 = vld [vmem:[%s6363_s1 + $0xd74] ss:$8 sps:$4 sm:$0xff]   ;;  %v4761_v36 = vld [vmem:[%s6363_s1 + $0xc70] ss:$8 sps:$4 sm:$0xff]  }
 0x153   :  { %3411 = vmatpush1.bf16.msra.mxu0 %v4686_v40  ;;  %v4764_v2 = vld [vmem:[%s6364_s0 + $0x58] ss:$108 sps:$4 sm:$0xff]   ;;  %v3689_v40 = vcombine.high %v54_v61, %v54_v61 }
 0x154   :  { %3412 = vmatprep.subr.bf16.mxu0 %v4694_v5  ;;  %v4792_v5 = vld [vmem:[%s6363_s1 + $0xd70] ss:$8 sps:$4 sm:$0xff]  }
 0x155   :  { %3462 = vmatpush1.bf16.msra.mxu1 %v4689_v8 }
 0x156   :  { %3463 = vmatprep.subr.bf16.mxu1 %v4697_v9  ;;  %v4767_v9 = vld [vmem:[%s6363_s1 + $0xc60] ss:$8 sps:$4 sm:$0xff]  }
 0x157   :  { %3413 = vmatpush1.bf16.msra.mxu0 %v4692_v12 }
 0x158   :  { %3414 = vmatprep.subr.bf16.mxu0 %v4700_v13  ;;  %v4774_v13 = vld [vmem:[%s6363_s1 + $0xc54] ss:$8 sps:$4 sm:$0xff]  }
 0x159   :  { %3464 = vmatpush1.bf16.msra.mxu1 %v4695_v15 }
 0x15a   :  { %3465 = vmatprep.subr.bf16.mxu1 %v4703_v16 }
 0x15b   :  { %3415 = vmatpush1.bf16.msra.mxu0 %v4698_v17 }
 0x15c   :  { %3416 = vmatprep.subr.bf16.mxu0 %v4706_v18 }
 0x15d   :  { %3466 = vmatpush1.bf16.msra.mxu1 %v4701_v19  ;;  %v3686_v19 = vcombine.low %v53_v57, %v53_v57  ;;  %v4786_v57 = vld [vmem:[%s6363_s1 + $0xc10] ss:$8 sps:$4 sm:$0xff]  }
 0x15e   :  { %3467 = vmatprep.subr.bf16.mxu1 %v4709_v20  ;;  %v4806_v20 = vld [vmem:[%s6363_s1 + $0xd54] ss:$8 sps:$4 sm:$0xff]  }
 0x15f   :  { %3417 = vmatpush1.bf16.msra.mxu0 %v4704_v21 }
 0x160   :  { %3418 = vmatprep.subr.bf16.mxu0 %v4712_v22 }
 0x161   :  { %3468 = vmatpush1.bf16.msra.mxu1 %v4707_v23  ;;  %v4843_v23 = vld [vmem:[%s6364_s0 + $0x64] ss:$108 sps:$4 sm:$0xff]  }
 0x162   :  { %3469 = vmatprep.subr.bf16.mxu1 %v4715_v24 }
 0x163   :  { %3419 = vmatpush2.bf16.msra.mxu0 %v4710_v25 }
 0x164   :  { %3420 = vmatprep.subr.bf16.mxu0 %v4718_v26  ;;  %v3688_v26 = vcombine.low %v54_v61, %v54_v61  ;;  %v4836_v61 = vld [vmem:[%s6363_s1 + $0xd04] ss:$8 sps:$4 sm:$0xff]  }
 0x165   :  { %3470 = vmatpush2.bf16.msra.mxu1 %v4713_v27  ;;  %v4779_v27 = vld [vmem:[%s6363_s1 + $0xc44] ss:$8 sps:$4 sm:$0xff]  }
 0x166   :  { %3471 = vmatprep.subr.bf16.mxu1 %v4721_v28 }
 0x167   :  { %3421 = vmatpush2.bf16.msra.mxu0 %v4716_v29  ;;  %v4804_v29 = vld [vmem:[%s6363_s1 + $0xd50] ss:$8 sps:$4 sm:$0xff]  }
 0x168   :  { %3422 = vmatprep.subr.bf16.mxu0 %v4724_v30 }
 0x169   :  { %3472 = vmatpush2.bf16.msra.mxu1 %v4719_v31 }
 0x16a   :  { %3473 = vmatprep.subr.bf16.mxu1 %v4727_v32  ;;  %v4812_v32 = vld [vmem:[%s6363_s1 + $0xd44] ss:$8 sps:$4 sm:$0xff]  }
 0x16b   :  { %3423 = vmatpush2.bf16.msra.mxu0 %v4722_v33 }
 0x16c   :  { %3424 = vmatprep.subr.bf16.mxu0 %v4730_v34 }
 0x16d   :  { %3474 = vmatpush2.bf16.msra.mxu1 %v4725_v35 }
 0x16e   :  { %3475 = vmatprep.subr.bf16.mxu1 %v4733_v58 }
 0x16f   :  { %3425 = vmatpush2.bf16.msra.mxu0 %v4728_v38  ;;  %v4782_v38 = vld [vmem:[%s6363_s1 + $0xc34] ss:$8 sps:$4 sm:$0xff]  }
 0x170   :  { %3426 = vmatprep.subr.bf16.mxu0 %v4736_v39 }
 0x171   :  { %3476 = vmatpush2.bf16.msra.mxu1 %v4731_v41 }
 0x172   :  { %3477 = vmatprep.subr.bf16.mxu1 %v4739_v42  ;;  %v4847_v42 = vmov 0  }
 0x173   :  { %3427 = vmatpush2.bf16.msra.mxu0 %v4734_v43 }
 0x174   :  { %3428 = vmatprep.subr.bf16.mxu0 %v4742_v1  ;;  %v4818_v1 = vld [vmem:[%s6363_s1 + $0xd34] ss:$8 sps:$4 sm:$0xff]  }
 0x175   :  { %3478 = vmatpush2.bf16.msra.mxu1 %v4737_v45 }
 0x176   :  { %3479 = vmatprep.subr.bf16.mxu1 %v4745_v46 }
 0x177   :  { %3429 = vmatpush2.bf16.msra.mxu0 %v4740_v47  ;;  %v4785_v47 = vld [vmem:[%s6363_s1 + $0xc24] ss:$8 sps:$4 sm:$0xff]  }
 0x178   :  { %3430 = vmatprep.subr.bf16.mxu0 %v4748_v48 }
 0x179   :  { %3480 = vmatpush2.bf16.msra.mxu1 %v4743_v49 }
 0x17a   :  { %3481 = vmatprep.subr.bf16.mxu1 %v4751_v10  ;;  %v4816_v10 = vld [vmem:[%s6363_s1 + $0xd30] ss:$8 sps:$4 sm:$0xff]  }
 0x17b   :  { %3431 = vmatpush2.bf16.msra.mxu0 %v4746_v51  ;;  %v4824_v51 = vld [vmem:[%s6363_s1 + $0xd24] ss:$8 sps:$4 sm:$0xff]  }
 0x17c   :  { %3432 = vmatprep.subr.bf16.mxu0 %v4754_v52 }
 0x17d   :  { %3482 = vmatpush2.bf16.msra.mxu1 %v4749_v53  ;;  %v4783_v53 = vld [vmem:[%s6363_s1 + $0xc20] ss:$8 sps:$4 sm:$0xff]  }
 0x17e   :  { %3483 = vmatprep.subr.bf16.mxu1 %v4757_v54  ;;  %v4788_v54 = vld [vmem:[%s6363_s1 + $0xc14] ss:$8 sps:$4 sm:$0xff]  }
 0x17f   :  { %3433 = vmatpush2.bf16.msra.mxu0 %v4752_v55  ;;  %v4822_v55 = vld [vmem:[%s6363_s1 + $0xd20] ss:$8 sps:$4 sm:$0xff]  }
 0x180   :  { %3504 = vmatprep.subr.bf16.mxu0 %v4763_v14  ;;  %v4830_v14 = vld [vmem:[%s6363_s1 + $0xd14] ss:$8 sps:$4 sm:$0xff]  }
 0x181   :  { %3484 = vmatpush2.bf16.msra.mxu1 %v4755_v59  ;;  %v4791_v59 = vld [vmem:[%s6363_s1 + $0xc04] ss:$8 sps:$4 sm:$0xff]  }
 0x182   :  { %v3130_v6 = vpop.f32.mrf.mxu0  ;;  %3435 = vmatmul.mubr.bf16.vlgmr.msra.gmra.mxu0 %v4758_v60  ;;  %3555 = vmatprep.subr.bf16.mxu1 %v4794_v62  ;;  %v4828_v60 = vld [vmem:[%s6363_s1 + $0xd10] ss:$8 sps:$4 sm:$0xff]   ;;  %v4789_v62 = vld [vmem:[%s6363_s1 + $0xc00] ss:$8 sps:$4 sm:$0xff]  }
 0x183   :  { %v3131_v8 = vadd.f32 %v3130_v6, %v5969_v37  ;;  %3505 = vmatpush1.bf16.msra.mxu0 %v4761_v36  ;;  %3444 = vmatprep.mubr.bf16.mxu0 %v3687_v0  ;;  %v4798_v37 = vld [vmem:[%s6363_s1 + $0xd60] ss:$8 sps:$4 sm:$0xff]   ;;  %v4797_v36 = vld [vmem:[%s6363_s1 + $0xcf4] ss:$8 sps:$4 sm:$0xff]  }
 0x184   :  { %v3132_v11 = vpop.f32.mrf.mxu0  ;;  %v3181_v12 = vpop.f32.mrf.mxu1  ;;  %3486 = vmatmul.mubr.bf16.vlgmr.msra.gmra.mxu1 %v4764_v2  ;;  %3506 = vmatprep.subr.bf16.mxu0 %v4769_v3  ;;  %v4834_v0 = vld [vmem:[%s6363_s1 + $0xd00] ss:$8 sps:$4 sm:$0xff]   ;;  %v4795_v2 = vld [vmem:[%s6363_s1 + $0xcf0] ss:$8 sps:$4 sm:$0xff]   ;;  %v4803_v3 = vld [vmem:[%s6363_s1 + $0xce4] ss:$8 sps:$4 sm:$0xff]  }
 0x185   :  { %v3133_v15 = vadd.f32 %v3132_v11, %v5978_v44  ;;  %v6197_v16 = vadd.f32 %v3181_v12, %v3131_v8  ;;  %3495 = vmatprep.mubr.bf16.mxu1 %v3689_v40  ;;  %3556 = vmatpush1.bf16.msra.mxu1 %v4792_v5  ;;  %v4772_v44 = vld [vmem:[%s6363_s1 + $0xc50] ss:$8 sps:$4 sm:$0xff]   ;;  %v4840_v40 = vld [vmem:[%s6364_s0 + $0x68] ss:$108 sps:$4 sm:$0xff]   ;;  %v4815_v8 = vld [vmem:[%s6363_s1 + $0xcc4] ss:$8 sps:$4 sm:$0xff]  }
 0x186   :  { %v3134_v17 = vpop.f32.mrf.mxu0  ;;  %v3183_v18 = vpop.f32.mrf.mxu1  ;;  %3557 = vmatprep.subr.bf16.mxu1 %v4800_v7  ;;  %v4801_v5 = vld [vmem:[%s6363_s1 + $0xce0] ss:$8 sps:$4 sm:$0xff]   ;;  %v4809_v6 = vld [vmem:[%s6363_s1 + $0xcd4] ss:$8 sps:$4 sm:$0xff]   ;;  %v4807_v7 = vld [vmem:[%s6363_s1 + $0xcd0] ss:$8 sps:$4 sm:$0xff]  }
 0x187   :  { %v3135_v21 = vadd.f32 %v3134_v17, %v5990_v50  ;;  %v6206_v22 = vadd.f32 %v3183_v18, %v3133_v15  ;;  %3507 = vmatpush1.bf16.msra.mxu0 %v4767_v9  ;;  %v4844_v9 = vld [vmem:[%s6364_s0 + $0x140] ss:$0 sps:$4 sm:$0x11]   ;;  %v4821_v12 = vld [vmem:[%s6363_s1 + $0xcb4] ss:$8 sps:$4 sm:$0xff]  }
 0x188   :  { %v3136_v24 = vpop.f32.mrf.mxu0  ;;  %v3185_v25 = vpop.f32.mrf.mxu1  ;;  %3508 = vmatprep.subr.bf16.mxu0 %v4774_v13  ;;  %v4813_v11 = vld [vmem:[%s6363_s1 + $0xcc0] ss:$8 sps:$4 sm:$0xff]   ;;  %v4819_v13 = vld [vmem:[%s6363_s1 + $0xcb0] ss:$8 sps:$4 sm:$0xff]   ;;  %v4827_v15 = vld [vmem:[%s6363_s1 + $0xca4] ss:$8 sps:$4 sm:$0xff]  }
 0x189   :  { %v3137_v50 = vadd.f32 %v3136_v24, %v6002_v56  ;;  %v6218_v28 = vadd.f32 %v3185_v25, %v3135_v21  ;;  %3558 = vmatpush1.bf16.msra.mxu1 %v4798_v37  ;;  %v4777_v56 = vld [vmem:[%s6363_s1 + $0xc40] ss:$8 sps:$4 sm:$0xff]   ;;  %v4833_v17 = vld [vmem:[%s6363_s1 + $0xc94] ss:$8 sps:$4 sm:$0xff]   ;;  %v4831_v18 = vld [vmem:[%s6363_s1 + $0xc90] ss:$8 sps:$4 sm:$0xff]  }
 0x18a   :  { %v3140_v30 = vpop.f32.mrf.mxu0  ;;  %v3187_v31 = vpop.f32.mrf.mxu1  ;;  %3445 = vmatmul.mubr.bf16.gmra.mxu0 %v3686_v19  ;;  %3559 = vmatprep.subr.bf16.mxu1 %v4806_v20  ;;  %v4825_v37 = vld [vmem:[%s6363_s1 + $0xca0] ss:$8 sps:$4 sm:$0xff]   ;;  %v4839_v19 = vld [vmem:[%s6363_s1 + $0xc84] ss:$8 sps:$4 sm:$0xff]   ;;  %v55_v21 = vld [vmem:[%s6364_s0 + $0x138] sm:$0x11] }
 0x18b   :  { %v3141_v33 = vadd.f32 %v3140_v30, %v6011_v63  ;;  %v6227_v34 = vadd.f32 %v3187_v31, %v3137_v50  ;;  %3509 = vmatpush1.bf16.msra.mxu0 %v4772_v44  ;;  %3536 = vmatprep.mubr.bf16.mxu0 %v4843_v23  ;;  %v4810_v63 = vld [vmem:[%s6363_s1 + $0xd40] ss:$8 sps:$4 sm:$0xff]   ;;  %v3691_v23 = vcombine.high %v55_v21, %v55_v21 }
 0x18c   :  { %v3142_v35 = vpop.f32.mrf.mxu0  ;;  %v3191_v58 = vpop.f32.mrf.mxu1  ;;  %3496 = vmatmul.mubr.bf16.gmra.mxu1 %v3688_v26  ;;  %3510 = vmatprep.subr.bf16.mxu0 %v4779_v27  ;;  %v4837_v20 = vld [vmem:[%s6363_s1 + $0xc80] ss:$8 sps:$4 sm:$0xff]  }
 0x18d   :  { %v3143_v39 = vadd.f32 %v3142_v35, %v6019_v4  ;;  %v6236_v41 = vadd.f32 %v3191_v58, %v3141_v33  ;;  %3560 = vmatpush1.bf16.msra.mxu1 %v4804_v29  ;;  %3587 = vmatprep.mubr.bf16.mxu1 %v4847_v42  ;;  %v4780_v4 = vld [vmem:[%s6363_s1 + $0xc30] ss:$8 sps:$4 sm:$0xff]   ;;  %v4841_v44 = vld [vmem:[%s6364_s0 + $0x60] ss:$108 sps:$4 sm:$0xff]  }
 0x18e   :  { %v3193_v43 = vpop.f32.mrf.mxu1  ;;  %3561 = vmatprep.subr.bf16.mxu1 %v4812_v32  ;;  %v3144_v45 = vpop.f32.mrf.mxu0  ;;  %v3690_v32 = vcombine.low %v55_v21, %v55_v21 }
 0x18f   :  { %v6244_v46 = vadd.f32 %v3193_v43, %v3143_v39  ;;  %3511 = vmatpush1.bf16.msra.mxu0 %v4777_v56 }
 0x190   :  { %3512 = vmatprep.subr.bf16.mxu0 %v4782_v38  ;;  %v3145_v48 = vpop.f32.mrf.mxu0  ;;  %v3195_v49 = vpop.f32.mrf.mxu1 }
 0x191   :  { %3562 = vmatpush1.bf16.msra.mxu1 %v4810_v63 }
 0x192   :  { %3563 = vmatprep.subr.bf16.mxu1 %v4818_v1  ;;  %v3196_v52 = vpop.f32.mrf.mxu1 }
 0x193   :  { %3513 = vmatpush1.bf16.msra.mxu0 %v4780_v4 }
 0x194   :  { %3514 = vmatprep.subr.bf16.mxu0 %v4785_v47 }
 0x195   :  { %3564 = vmatpush1.bf16.msra.mxu1 %v4816_v10 }
 0x196   :  { %3565 = vmatprep.subr.bf16.mxu1 %v4824_v51 }
 0x197   :  { %3515 = vmatpush1.bf16.msra.mxu0 %v4783_v53 }
 0x198   :  { %3516 = vmatprep.subr.bf16.mxu0 %v4788_v54 }
 0x199   :  { %3566 = vmatpush1.bf16.msra.mxu1 %v4822_v55 }
 0x19a   :  { %3567 = vmatprep.subr.bf16.mxu1 %v4830_v14 }
 0x19b   :  { %3517 = vmatpush1.bf16.msra.mxu0 %v4786_v57 }
 0x19c   :  { %3518 = vmatprep.subr.bf16.mxu0 %v4791_v59 }
 0x19d   :  { %3568 = vmatpush1.bf16.msra.mxu1 %v4828_v60 }
 0x19e   :  { %3569 = vmatprep.subr.bf16.mxu1 %v4836_v61 }
 0x19f   :  { %3519 = vmatpush1.bf16.msra.mxu0 %v4789_v62 }
 0x1a0   :  { %3520 = vmatprep.subr.bf16.mxu0 %v4797_v36 }
 0x1a1   :  { %3570 = vmatpush1.bf16.msra.mxu1 %v4834_v0 }
 0x1a3   :  { %3521 = vmatpush2.bf16.msra.mxu0 %v4795_v2 }
 0x1a4   :  { %3522 = vmatprep.subr.bf16.mxu0 %v4803_v3  ;;  %3588 = vmatmul.mubr.bf16.vlgmr.msra.gmra.mxu1 %v4840_v40 }
 0x1a5   :  { %3597 = vmatprep.mubr.bf16.mxu1 %v4847_v42 }
 0x1a7   :  { %3523 = vmatpush2.bf16.msra.mxu0 %v4801_v5 }
 0x1a8   :  { %3524 = vmatprep.subr.bf16.mxu0 %v4809_v6 }
 0x1ab   :  { %3525 = vmatpush2.bf16.msra.mxu0 %v4807_v7 }
 0x1ac   :  { %3526 = vmatprep.subr.bf16.mxu0 %v4815_v8  ;;  %3598 = vmatmul.mubr.bf16.gmra.mxu1 %v4844_v9 }
 0x1af   :  { %3527 = vmatpush2.bf16.msra.mxu0 %v4813_v11 }
 0x1b0   :  { %3528 = vmatprep.subr.bf16.mxu0 %v4821_v12 }
 0x1b3   :  { %3529 = vmatpush2.bf16.msra.mxu0 %v4819_v13 }
 0x1b4   :  { %3530 = vmatprep.subr.bf16.mxu0 %v4827_v15 }
 0x1b7   :  { %3531 = vmatpush2.bf16.msra.mxu0 %v4825_v37 }
 0x1b8   :  { %3532 = vmatprep.subr.bf16.mxu0 %v4833_v17 }
 0x1bb   :  { %3533 = vmatpush2.bf16.msra.mxu0 %v4831_v18 }
 0x1bc   :  { %3534 = vmatprep.subr.bf16.mxu0 %v4839_v19 }
 0x1bf   :  { %3535 = vmatpush2.bf16.msra.mxu0 %v4837_v20 }
 0x1c2   :  { %v3232_v24 = vpop.f32.mrf.mxu0  ;;  %3537 = vmatmul.mubr.bf16.vlgmr.msra.gmra.mxu0 %v4841_v44 }
 0x1c3   :  { %v3233_v25 = vadd.f32 %v3232_v24, %v6197_v16  ;;  %3546 = vmatprep.mubr.bf16.mxu0 %v3691_v23 }
 0x1c4   :  { %v3234_v26 = vpop.f32.mrf.mxu0  ;;  %v3283_v27 = vpop.f32.mrf.mxu1 }
 0x1c5   :  { %v3235_v50 = vadd.f32 %v3234_v26, %v6206_v22  ;;  %v3284_v29 = vadd.f32 %v3283_v27, %v3233_v25 }
 0x1c6   :  { %v3236_v30 = vpop.f32.mrf.mxu0  ;;  %v3285_v31 = vpop.f32.mrf.mxu1 }
 0x1c7   :  { %v3237_v33 = vadd.f32 %v3236_v30, %v6218_v28  ;;  %v3286_v56 = vadd.f32 %v3285_v31, %v3235_v50 }
 0x1c8   :  { %v3238_v35 = vpop.f32.mrf.mxu0  ;;  %v3287_v58 = vpop.f32.mrf.mxu1 }
 0x1c9   :  { %v3239_v38 = vadd.f32 %v3238_v35, %v6227_v34  ;;  %v3288_v39 = vadd.f32 %v3287_v58, %v3237_v33 }
 0x1ca   :  { %v3242_v63 = vpop.f32.mrf.mxu0  ;;  %v3289_v42 = vpop.f32.mrf.mxu1  ;;  %3547 = vmatmul.mubr.bf16.gmra.mxu0 %v3690_v32 }
 0x1cb   :  { %v3243_v16 = vadd.f32 %v3242_v63, %v6236_v41  ;;  %v3290_v43 = vadd.f32 %v3289_v42, %v3239_v38 }
 0x1cc   :  { %v3244_v1 = vpop.f32.mrf.mxu0  ;;  %v3293_v22 = vpop.f32.mrf.mxu1 }
 0x1cd   :  { %v3245_v45 = vadd.f32 %v3244_v1, %v6244_v46  ;;  %v3294_v4 = vadd.f32 %v3293_v22, %v3243_v16 }
 0x1ce   :  { %v3295_v47 = vpop.f32.mrf.mxu1  ;;  %v3246_v48 = vpop.f32.mrf.mxu0 }
 0x1cf   :  { %v3296_v28 = vadd.f32 %v3295_v47, %v3245_v45 }
 0x1d0   :  { %v3247_v49 = vpop.f32.mrf.mxu0  ;;  %v3297_v10 = vpop.f32.mrf.mxu1 }
 0x1d2   :  { %v3298_v51 = vpop.f32.mrf.mxu1 }
 0x202   :  { %v3334_v52 = vpop.f32.mrf.mxu0 }
 0x203   :  { %v3335_v34 = vadd.f32 %v3334_v52, %v3284_v29 }
 0x204   :  { %v3336_v53 = vpop.f32.mrf.mxu0  ;;  %v3385_v54 = vpop.f32.mrf.mxu1 }
 0x205   :  { %v3337_v55 = vadd.f32 %v3336_v53, %v3286_v56  ;;  %v3386_v14 = vadd.f32 %v3385_v54, %v3335_v34 }
 0x206   :  { %v3338_v57 = vpop.f32.mrf.mxu0  ;;  %v3387_v41 = vpop.f32.mrf.mxu1 }
 0x207   :  { %v3339_v59 = vadd.f32 %v3338_v57, %v3288_v39  ;;  %v3388_v60 = vadd.f32 %v3387_v41, %v3337_v55 }
 0x208   :  { %v3340_v61 = vpop.f32.mrf.mxu0  ;;  %v3389_v62 = vpop.f32.mrf.mxu1 }
 0x209   :  { %v3341_v46 = vadd.f32 %v3340_v61, %v3290_v43  ;;  %v3390_v36 = vadd.f32 %v3389_v62, %v3339_v59 }
 0x20a   :  { %v3344_v0 = vpop.f32.mrf.mxu0  ;;  %v3391_v2 = vpop.f32.mrf.mxu1 }
 0x20b   :  { %v3345_v3 = vadd.f32 %v3344_v0, %v3294_v4  ;;  %v3392_v40 = vadd.f32 %v3391_v2, %v3341_v46 }
 0x20c   :  { %v3346_v5 = vpop.f32.mrf.mxu0  ;;  %v3395_v6 = vpop.f32.mrf.mxu1 }
 0x20d   :  { %v3347_v7 = vadd.f32 %v3346_v5, %v3296_v28  ;;  %v3396_v8 = vadd.f32 %v3395_v6, %v3345_v3 }
 0x20e   :  { %v3397_v9 = vpop.f32.mrf.mxu1  ;;  %v3348_v11 = vpop.f32.mrf.mxu0 }
 0x20f   :  { %v3398_v12 = vadd.f32 %v3397_v9, %v3347_v7 }
 0x210   :  { %v3349_v13 = vpop.f32.mrf.mxu0  ;;  %v3399_v15 = vpop.f32.mrf.mxu1 }
 0x212   :  { %v3400_v37 = vpop.f32.mrf.mxu1 }
 0x242   :  { %v3436_v17 = vpop.f32.mrf.mxu0 }
 0x243   :  { %v3437_v16 = vadd.f32 %v3436_v17, %v3386_v14 }
 0x244   :  { %v3438_v18 = vpop.f32.mrf.mxu0  ;;  %v3487_v19 = vpop.f32.mrf.mxu1 }
 0x245   :  { %v3439_v43 = vadd.f32 %v3438_v18, %v3388_v60  ;;  %v3488_v1 = vadd.f32 %v3487_v19, %v3437_v16 }
 0x246   :  { %v3440_v20 = vpop.f32.mrf.mxu0  ;;  %v3489_v21 = vpop.f32.mrf.mxu1 }
 0x247   :  { %v3441_v22 = vadd.f32 %v3440_v20, %v3390_v36  ;;  %v3490_v4 = vadd.f32 %v3489_v21, %v3439_v43 }
 0x248   :  { %v3442_v44 = vpop.f32.mrf.mxu0  ;;  %v3491_v23 = vpop.f32.mrf.mxu1 }
 0x249   :  { %v3443_v47 = vadd.f32 %v3442_v44, %v3392_v40  ;;  %v3492_v10 = vadd.f32 %v3491_v23, %v3441_v22 }
 0x24a   :  { %v3446_v24 = vpop.f32.mrf.mxu0  ;;  %v3493_v25 = vpop.f32.mrf.mxu1 }
 0x24b   :  { %v3447_v28 = vadd.f32 %v3446_v24, %v3396_v8  ;;  %v3494_v53 = vadd.f32 %v3493_v25, %v3443_v47 }
 0x24c   :  { %v3448_v26 = vpop.f32.mrf.mxu0  ;;  %v3497_v27 = vpop.f32.mrf.mxu1 }
 0x24d   :  { %v3449_v54 = vadd.f32 %v3448_v26, %v3398_v12  ;;  %v3498_v41 = vadd.f32 %v3497_v27, %v3447_v28 }
 0x24e   :  { %v3499_v50 = vpop.f32.mrf.mxu1  ;;  %v3450_v29 = vpop.f32.mrf.mxu0 }
 0x24f   :  { %v3500_v36 = vadd.f32 %v3499_v50, %v3449_v54 }
 0x250   :  { %v3451_v30 = vpop.f32.mrf.mxu0  ;;  %v3501_v31 = vpop.f32.mrf.mxu1 }
 0x252   :  { %v3502_v32 = vpop.f32.mrf.mxu1 }
 0x264   :  { %v3589_v33 = vpop.f32.mrf.mxu1 }
 0x266   :  { %v3591_v56 = vpop.f32.mrf.mxu1 }
 0x268   :  { %v3593_v35 = vpop.f32.mrf.mxu1 }
 0x26a   :  { %v3595_v58 = vpop.f32.mrf.mxu1 }
 0x26c   :  { %v3599_v38 = vpop.f32.mrf.mxu1 }
 0x26e   :  { %v3601_v39 = vpop.f32.mrf.mxu1 }
 0x270   :  { %v3603_v63 = vpop.f32.mrf.mxu1 }
 0x272   :  { %v3604_v42 = vpop.f32.mrf.mxu1 }
 0x282   :  { %v3538_v45 = vpop.f32.mrf.mxu0 }
 0x283   :  { %v3539_v48 = vadd.f32 %v3538_v45, %v3488_v1 }
 0x284   :  { %v3540_v49 = vpop.f32.mrf.mxu0 }
 0x285   :  { %v3590_v51 = vadd.f32 %v3589_v33, %v3539_v48  ;;  %v3541_v52 = vadd.f32 %v3540_v49, %v3490_v4 }
 0x286   :  { %v3542_v34 = vpop.f32.mrf.mxu0 }
 0x287   :  { %v3592_v55 = vadd.f32 %v3591_v56, %v3541_v52  ;;  %v3543_v57 = vadd.f32 %v3542_v34, %v3492_v10  ;;  %v3606_v14 = vmax.f32 %v3590_v51, 0.0 }
 0x288   :  { %v3544_v59 = vpop.f32.mrf.mxu0 }
 0x289   :  { %v3607_v60 = vmax.f32 %v3592_v55, 0.0  ;;  %v3594_v61 = vadd.f32 %v3593_v35, %v3543_v57  ;;  %v3545_v62 = vadd.f32 %v3544_v59, %v3494_v53 }
 0x28a   :  { %v3548_v46 = vpop.f32.mrf.mxu0 }
 0x28b   :  { %v4128_v0 = vpack.c.bf16 %v3607_v60, %v3606_v14  ;;  %v3596_v2 = vadd.f32 %v3595_v58, %v3545_v62  ;;  %v3549_v3 = vadd.f32 %v3548_v46, %v3498_v41  ;;  %v3608_v5 = vmax.f32 %v3594_v61, 0.0 }
 0x28c   :  { %v3550_v40 = vpop.f32.mrf.mxu0 }
 0x28d   :  { %3632 = vst [vmem:[%s6366_s3] sm:$0xff] %v4128_v0  ;;  %v3609_v6 = vmax.f32 %v3596_v2, 0.0  ;;  %v3600_v7 = vadd.f32 %v3599_v38, %v3549_v3  ;;  %v3551_v8 = vadd.f32 %v3550_v40, %v3500_v36 }
 0x28e   :  { %v3552_v9 = vpop.f32.mrf.mxu0 }
 0x28f   :  { %v4129_v11 = vpack.c.bf16 %v3609_v6, %v3608_v5  ;;  %v3602_v12 = vadd.f32 %v3601_v39, %v3551_v8  ;;  %v3610_v15 = vmax.f32 %v3600_v7, 0.0 }
 0x290   :  { %v3553_v13 = vpop.f32.mrf.mxu0 }
 0x291   :  { %3633 = vst [vmem:[%s6366_s3 + $0x8] sm:$0xff] %v4129_v11  ;;  %v3611_v37 = vmax.f32 %v3602_v12, 0.0 }
 0x293   :  { %v4130_v17 = vpack.c.bf16 %v3611_v37, %v3610_v15 }
 0x295   :  { %3634 = vst [vmem:[%s6366_s3 + $0x10] sm:$0x11] %v4130_v17 }

// kernel: mynet_forward.9
= control target key start
LH: loop header
LB: loop body
LE: loop exit
PB: predicated region body
PF: predicated region fallthrough
CT: control target
= control target key end

     0   :  { %s4262_s1 = inlined_call_operand.vmem [shape: bf16[2304,256], index: 1, kind: input, shape index: {}]   ;;  %s4263_s0 = inlined_call_operand.vmem [shape: bf16[18,2304], index: 0, kind: input, shape index: {}]   ;;  %s4264_s2 = inlined_call_operand.vmem [shape: f32[1,256], index: 2, kind: input, shape index: {}]   ;;  %s4265_s3 = inlined_call_operand.vmem [shape: f32[18,256], index: 3, kind: output, shape index: {}]  }
   0x1   :  { %v2765_v0 = vld [vmem:[%s4262_s1 + $0x74] ss:$8 sps:$4 sm:$0xff]   ;;  %v2769_v2 = vld [vmem:[%s4262_s1 + $0x70] ss:$8 sps:$4 sm:$0xff]   ;;  %v2771_v4 = vld [vmem:[%s4262_s1 + $0x64] ss:$8 sps:$4 sm:$0xff]  }
   0x2   :  { %v2767_v1 = vld [vmem:[%s4262_s1 + $0x174] ss:$8 sps:$4 sm:$0xff]   ;;  %1934 = vmatprep.subr.bf16.mxu0 %v2765_v0  ;;  %v2770_v3 = vld [vmem:[%s4262_s1 + $0x170] ss:$8 sps:$4 sm:$0xff]   ;;  %v2773_v5 = vld [vmem:[%s4262_s1 + $0x164] ss:$8 sps:$4 sm:$0xff]  }
   0x3   :  { %1985 = vmatprep.subr.bf16.mxu1 %v2767_v1  ;;  %1935 = vmatpush1.bf16.msra.mxu0 %v2769_v2  ;;  %v2775_v6 = vld [vmem:[%s4262_s1 + $0x60] ss:$8 sps:$4 sm:$0xff]   ;;  %v2777_v8 = vld [vmem:[%s4262_s1 + $0x54] ss:$8 sps:$4 sm:$0xff]   ;;  %v2781_v10 = vld [vmem:[%s4262_s1 + $0x50] ss:$8 sps:$4 sm:$0xff]  }
   0x4   :  { %1986 = vmatpush1.bf16.msra.mxu1 %v2770_v3  ;;  %1936 = vmatprep.subr.bf16.mxu0 %v2771_v4  ;;  %v2776_v7 = vld [vmem:[%s4262_s1 + $0x160] ss:$8 sps:$4 sm:$0xff]   ;;  %v2779_v9 = vld [vmem:[%s4262_s1 + $0x154] ss:$8 sps:$4 sm:$0xff]   ;;  %v2782_v11 = vld [vmem:[%s4262_s1 + $0x150] ss:$8 sps:$4 sm:$0xff]  }
   0x5   :  { %1987 = vmatprep.subr.bf16.mxu1 %v2773_v5  ;;  %v2783_v12 = vld [vmem:[%s4262_s1 + $0x44] ss:$8 sps:$4 sm:$0xff]   ;;  %v2787_v14 = vld [vmem:[%s4262_s1 + $0x40] ss:$8 sps:$4 sm:$0xff]   ;;  %v2789_v16 = vld [vmem:[%s4262_s1 + $0x34] ss:$8 sps:$4 sm:$0xff]  }
   0x6   :  { %v2785_v13 = vld [vmem:[%s4262_s1 + $0x144] ss:$8 sps:$4 sm:$0xff]   ;;  %v2788_v15 = vld [vmem:[%s4262_s1 + $0x140] ss:$8 sps:$4 sm:$0xff]   ;;  %v2791_v17 = vld [vmem:[%s4262_s1 + $0x134] ss:$8 sps:$4 sm:$0xff]  }
   0x7   :  { %1937 = vmatpush1.bf16.msra.mxu0 %v2775_v6  ;;  %v2793_v18 = vld [vmem:[%s4262_s1 + $0x30] ss:$8 sps:$4 sm:$0xff]   ;;  %v2795_v20 = vld [vmem:[%s4262_s1 + $0x24] ss:$8 sps:$4 sm:$0xff]   ;;  %v2799_v22 = vld [vmem:[%s4262_s1 + $0x20] ss:$8 sps:$4 sm:$0xff]  }
   0x8   :  { %1988 = vmatpush1.bf16.msra.mxu1 %v2776_v7  ;;  %1938 = vmatprep.subr.bf16.mxu0 %v2777_v8  ;;  %v2794_v19 = vld [vmem:[%s4262_s1 + $0x130] ss:$8 sps:$4 sm:$0xff]   ;;  %v2797_v21 = vld [vmem:[%s4262_s1 + $0x124] ss:$8 sps:$4 sm:$0xff]   ;;  %v2800_v23 = vld [vmem:[%s4262_s1 + $0x120] ss:$8 sps:$4 sm:$0xff]  }
   0x9   :  { %1989 = vmatprep.subr.bf16.mxu1 %v2779_v9  ;;  %v2801_v24 = vld [vmem:[%s4262_s1 + $0x14] ss:$8 sps:$4 sm:$0xff]   ;;  %v2805_v26 = vld [vmem:[%s4262_s1 + $0x10] ss:$8 sps:$4 sm:$0xff]   ;;  %v2807_v28 = vld [vmem:[%s4262_s1 + $0x4] ss:$8 sps:$4 sm:$0xff]  }
   0xa   :  { %v2803_v25 = vld [vmem:[%s4262_s1 + $0x114] ss:$8 sps:$4 sm:$0xff]   ;;  %v2806_v27 = vld [vmem:[%s4262_s1 + $0x110] ss:$8 sps:$4 sm:$0xff]   ;;  %v2809_v29 = vld [vmem:[%s4262_s1 + $0x104] ss:$8 sps:$4 sm:$0xff]  }
   0xb   :  { %1939 = vmatpush1.bf16.msra.mxu0 %v2781_v10  ;;  %v2811_v30 = vld [vmem:[%s4262_s1] ss:$8 sps:$4 sm:$0xff]   ;;  %v2813_v32 = vld [vmem:[%s4262_s1 + $0xf4] ss:$8 sps:$4 sm:$0xff]   ;;  %v2817_v34 = vld [vmem:[%s4262_s1 + $0xf0] ss:$8 sps:$4 sm:$0xff]  }
   0xc   :  { %1990 = vmatpush1.bf16.msra.mxu1 %v2782_v11  ;;  %1940 = vmatprep.subr.bf16.mxu0 %v2783_v12  ;;  %v2812_v31 = vld [vmem:[%s4262_s1 + $0x100] ss:$8 sps:$4 sm:$0xff]   ;;  %v2815_v33 = vld [vmem:[%s4262_s1 + $0x1f4] ss:$8 sps:$4 sm:$0xff]   ;;  %v2818_v35 = vld [vmem:[%s4262_s1 + $0x1f0] ss:$8 sps:$4 sm:$0xff]  }
   0xd   :  { %1991 = vmatprep.subr.bf16.mxu1 %v2785_v13  ;;  %v2819_v36 = vld [vmem:[%s4262_s1 + $0xe4] ss:$8 sps:$4 sm:$0xff]   ;;  %v2823_v38 = vld [vmem:[%s4262_s1 + $0xe0] ss:$8 sps:$4 sm:$0xff]   ;;  %v2825_v40 = vld [vmem:[%s4262_s1 + $0xd4] ss:$8 sps:$4 sm:$0xff]  }
   0xe   :  { %v2821_v37 = vld [vmem:[%s4262_s1 + $0x1e4] ss:$8 sps:$4 sm:$0xff]   ;;  %v2824_v39 = vld [vmem:[%s4262_s1 + $0x1e0] ss:$8 sps:$4 sm:$0xff]   ;;  %v2827_v41 = vld [vmem:[%s4262_s1 + $0x1d4] ss:$8 sps:$4 sm:$0xff]  }
   0xf   :  { %1941 = vmatpush1.bf16.msra.mxu0 %v2787_v14  ;;  %v2829_v42 = vld [vmem:[%s4262_s1 + $0xd0] ss:$8 sps:$4 sm:$0xff]   ;;  %v2831_v44 = vld [vmem:[%s4262_s1 + $0xc4] ss:$8 sps:$4 sm:$0xff]   ;;  %v2835_v46 = vld [vmem:[%s4262_s1 + $0xc0] ss:$8 sps:$4 sm:$0xff]  }
  0x10   :  { %1992 = vmatpush1.bf16.msra.mxu1 %v2788_v15  ;;  %1942 = vmatprep.subr.bf16.mxu0 %v2789_v16  ;;  %v2830_v43 = vld [vmem:[%s4262_s1 + $0x1d0] ss:$8 sps:$4 sm:$0xff]   ;;  %v2833_v45 = vld [vmem:[%s4262_s1 + $0x1c4] ss:$8 sps:$4 sm:$0xff]   ;;  %v2836_v47 = vld [vmem:[%s4262_s1 + $0x1c0] ss:$8 sps:$4 sm:$0xff]  }
  0x11   :  { %1993 = vmatprep.subr.bf16.mxu1 %v2791_v17  ;;  %v2837_v48 = vld [vmem:[%s4262_s1 + $0xb4] ss:$8 sps:$4 sm:$0xff]   ;;  %v2863_v49 = vld [vmem:[%s4263_s0 + $0x4] ss:$72 sps:$4 sm:$0xff]   ;;  %v2841_v52 = vld [vmem:[%s4262_s1 + $0xb0] ss:$8 sps:$4 sm:$0xff]  }
  0x12   :  { %v2839_v50 = vld [vmem:[%s4262_s1 + $0x1b4] ss:$8 sps:$4 sm:$0xff]   ;;  %1966 = vmatprep.mubr.bf16.mxu0 %v2863_v49  ;;  %v2842_v53 = vld [vmem:[%s4262_s1 + $0x1b0] ss:$8 sps:$4 sm:$0xff]   ;;  %v2843_v54 = vld [vmem:[%s4262_s1 + $0xa4] ss:$8 sps:$4 sm:$0xff]  }
  0x13   :  { %1943 = vmatpush1.bf16.msra.mxu0 %v2793_v18  ;;  %v2866_v51 = vld [vmem:[%s4263_s0 + $0xc] ss:$72 sps:$4 sm:$0xff]   ;;  %v2847_v56 = vld [vmem:[%s4262_s1 + $0xa0] ss:$8 sps:$4 sm:$0xff]   ;;  %v2853_v60 = vld [vmem:[%s4262_s1 + $0x90] ss:$8 sps:$4 sm:$0xff]  }
  0x14   :  { %1994 = vmatpush1.bf16.msra.mxu1 %v2794_v19  ;;  %1944 = vmatprep.subr.bf16.mxu0 %v2795_v20  ;;  %v2845_v55 = vld [vmem:[%s4262_s1 + $0x1a4] ss:$8 sps:$4 sm:$0xff]   ;;  %v2848_v57 = vld [vmem:[%s4262_s1 + $0x1a0] ss:$8 sps:$4 sm:$0xff]   ;;  %v2849_v58 = vld [vmem:[%s4262_s1 + $0x94] ss:$8 sps:$4 sm:$0xff]  }
  0x15   :  { %1995 = vmatprep.subr.bf16.mxu1 %v2797_v21  ;;  %2017 = vmatprep.mubr.bf16.mxu1 %v2866_v51  ;;  %v2851_v59 = vld [vmem:[%s4262_s1 + $0x194] ss:$8 sps:$4 sm:$0xff]   ;;  %v2854_v61 = vld [vmem:[%s4262_s1 + $0x190] ss:$8 sps:$4 sm:$0xff]   ;;  %v2855_v62 = vld [vmem:[%s4262_s1 + $0x84] ss:$8 sps:$4 sm:$0xff]  }
  0x16   :  { %v2857_v63 = vld [vmem:[%s4262_s1 + $0x184] ss:$8 sps:$4 sm:$0xff]   ;;  %v2859_v0 = vld [vmem:[%s4262_s1 + $0x80] ss:$8 sps:$4 sm:$0xff]   ;;  %v2869_v2 = vld [vmem:[%s4262_s1 + $0x274] ss:$8 sps:$4 sm:$0xff]  }
  0x17   :  { %1945 = vmatpush1.bf16.msra.mxu0 %v2799_v22  ;;  %v2860_v1 = vld [vmem:[%s4262_s1 + $0x180] ss:$8 sps:$4 sm:$0xff]   ;;  %v2872_v3 = vld [vmem:[%s4262_s1 + $0x374] ss:$8 sps:$4 sm:$0xff]   ;;  %v2867_v6 = vld [vmem:[%s4262_s1 + $0x270] ss:$8 sps:$4 sm:$0xff]  }
  0x18   :  { %1996 = vmatpush1.bf16.msra.mxu1 %v2800_v23  ;;  %1946 = vmatprep.subr.bf16.mxu0 %v2801_v24  ;;  %v2861_v4 = vld [vmem:[%s4263_s0] ss:$72 sps:$4 sm:$0xff]   ;;  %v2870_v7 = vld [vmem:[%s4262_s1 + $0x370] ss:$8 sps:$4 sm:$0xff]   ;;  %v2875_v8 = vld [vmem:[%s4262_s1 + $0x264] ss:$8 sps:$4 sm:$0xff]  }
  0x19   :  { %1997 = vmatprep.subr.bf16.mxu1 %v2803_v25  ;;  %v2864_v5 = vld [vmem:[%s4263_s0 + $0x8] ss:$72 sps:$4 sm:$0xff]   ;;  %v2878_v9 = vld [vmem:[%s4262_s1 + $0x364] ss:$8 sps:$4 sm:$0xff]   ;;  %v2881_v12 = vld [vmem:[%s4262_s1 + $0x254] ss:$8 sps:$4 sm:$0xff]  }
  0x1a   :  { %v2873_v10 = vld [vmem:[%s4262_s1 + $0x260] ss:$8 sps:$4 sm:$0xff]   ;;  %v2884_v13 = vld [vmem:[%s4262_s1 + $0x354] ss:$8 sps:$4 sm:$0xff]   ;;  %v2879_v14 = vld [vmem:[%s4262_s1 + $0x250] ss:$8 sps:$4 sm:$0xff]  }
  0x1b   :  { %1947 = vmatpush1.bf16.msra.mxu0 %v2805_v26  ;;  %v2876_v11 = vld [vmem:[%s4262_s1 + $0x360] ss:$8 sps:$4 sm:$0xff]   ;;  %v2882_v15 = vld [vmem:[%s4262_s1 + $0x350] ss:$8 sps:$4 sm:$0xff]   ;;  %v2887_v16 = vld [vmem:[%s4262_s1 + $0x244] ss:$8 sps:$4 sm:$0xff]  }
  0x1c   :  { %1998 = vmatpush1.bf16.msra.mxu1 %v2806_v27  ;;  %1948 = vmatprep.subr.bf16.mxu0 %v2807_v28  ;;  %v2890_v17 = vld [vmem:[%s4262_s1 + $0x344] ss:$8 sps:$4 sm:$0xff]   ;;  %v2885_v18 = vld [vmem:[%s4262_s1 + $0x240] ss:$8 sps:$4 sm:$0xff]   ;;  %v2893_v20 = vld [vmem:[%s4262_s1 + $0x234] ss:$8 sps:$4 sm:$0xff]  }
  0x1d   :  { %1999 = vmatprep.subr.bf16.mxu1 %v2809_v29  ;;  %v2888_v19 = vld [vmem:[%s4262_s1 + $0x340] ss:$8 sps:$4 sm:$0xff]   ;;  %v2896_v21 = vld [vmem:[%s4262_s1 + $0x334] ss:$8 sps:$4 sm:$0xff]   ;;  %v2891_v22 = vld [vmem:[%s4262_s1 + $0x230] ss:$8 sps:$4 sm:$0xff]  }
  0x1e   :  { %v2894_v23 = vld [vmem:[%s4262_s1 + $0x330] ss:$8 sps:$4 sm:$0xff]   ;;  %v2899_v25 = vld [vmem:[%s4262_s1 + $0x224] ss:$8 sps:$4 sm:$0xff]   ;;  %v2924_v51 = vld [vmem:[%s4262_s1 + $0x3e0] ss:$8 sps:$4 sm:$0xff]  }
  0x1f   :  { %1949 = vmatpush1.bf16.msra.mxu0 %v2811_v30  ;;  %v32_v24 = vld [vmem:[%s4263_s0 + $0x90] sm:$0x11]  ;;  %v2902_v26 = vld [vmem:[%s4262_s1 + $0x324] ss:$8 sps:$4 sm:$0xff]   ;;  %v33_v29 = vld [vmem:[%s4263_s0 + $0x98] sm:$0x11] }
  0x20   :  { %2000 = vmatpush1.bf16.msra.mxu1 %v2812_v31  ;;  %1950 = vmatprep.subr.bf16.mxu0 %v2813_v32  ;;  %v2428_v27 = vcombine.high %v32_v24, %v32_v24  ;;  %v2427_v28 = vcombine.low %v32_v24, %v32_v24  ;;  %v2897_v30 = vld [vmem:[%s4262_s1 + $0x220] ss:$8 sps:$4 sm:$0xff]   ;;  %v2430_v32 = vcombine.high %v33_v29, %v33_v29  ;;  %v2926_v49 = vld [vmem:[%s4262_s1 + $0x3e4] ss:$8 sps:$4 sm:$0xff]  }
  0x21   :  { %2001 = vmatprep.subr.bf16.mxu1 %v2815_v33  ;;  %v2900_v31 = vld [vmem:[%s4262_s1 + $0x320] ss:$8 sps:$4 sm:$0xff]   ;;  %v2429_v33 = vcombine.low %v33_v29, %v33_v29  ;;  %v2987_v29 = vld [vmem:[%s4262_s1 + $0x450] ss:$8 sps:$4 sm:$0xff]  }
  0x22   :  { %v2979_v24 = vld [vmem:[%s4262_s1 + $0x460] ss:$8 sps:$4 sm:$0xff]  }
  0x23   :  { %1951 = vmatpush2.bf16.msra.mxu0 %v2817_v34  ;;  %v2905_v34 = vld [vmem:[%s4262_s1 + $0x214] ss:$8 sps:$4 sm:$0xff]  }
  0x24   :  { %2002 = vmatpush2.bf16.msra.mxu1 %v2818_v35  ;;  %1952 = vmatprep.subr.bf16.mxu0 %v2819_v36  ;;  %v2908_v35 = vld [vmem:[%s4262_s1 + $0x314] ss:$8 sps:$4 sm:$0xff]   ;;  %v2903_v36 = vld [vmem:[%s4262_s1 + $0x210] ss:$8 sps:$4 sm:$0xff]  }
  0x25   :  { %2003 = vmatprep.subr.bf16.mxu1 %v2821_v37  ;;  %v2906_v37 = vld [vmem:[%s4262_s1 + $0x310] ss:$8 sps:$4 sm:$0xff]  }
  0x27   :  { %1953 = vmatpush2.bf16.msra.mxu0 %v2823_v38  ;;  %v2911_v38 = vld [vmem:[%s4262_s1 + $0x204] ss:$8 sps:$4 sm:$0xff]  }
  0x28   :  { %2004 = vmatpush2.bf16.msra.mxu1 %v2824_v39  ;;  %1954 = vmatprep.subr.bf16.mxu0 %v2825_v40  ;;  %v2914_v39 = vld [vmem:[%s4262_s1 + $0x304] ss:$8 sps:$4 sm:$0xff]   ;;  %v2969_v40 = vld [vmem:[%s4263_s0 + $0x14] ss:$72 sps:$4 sm:$0xff]  }
  0x29   :  { %2005 = vmatprep.subr.bf16.mxu1 %v2827_v41  ;;  %v2972_v41 = vld [vmem:[%s4263_s0 + $0x1c] ss:$72 sps:$4 sm:$0xff]  }
  0x2b   :  { %1955 = vmatpush2.bf16.msra.mxu0 %v2829_v42  ;;  %v2909_v42 = vld [vmem:[%s4262_s1 + $0x200] ss:$8 sps:$4 sm:$0xff]  }
  0x2c   :  { %2006 = vmatpush2.bf16.msra.mxu1 %v2830_v43  ;;  %1956 = vmatprep.subr.bf16.mxu0 %v2831_v44  ;;  %v2912_v43 = vld [vmem:[%s4262_s1 + $0x300] ss:$8 sps:$4 sm:$0xff]   ;;  %v2917_v44 = vld [vmem:[%s4262_s1 + $0x2f4] ss:$8 sps:$4 sm:$0xff]  }
  0x2d   :  { %2007 = vmatprep.subr.bf16.mxu1 %v2833_v45  ;;  %v2920_v45 = vld [vmem:[%s4262_s1 + $0x3f4] ss:$8 sps:$4 sm:$0xff]  }
  0x2f   :  { %1957 = vmatpush2.bf16.msra.mxu0 %v2835_v46  ;;  %v2915_v46 = vld [vmem:[%s4262_s1 + $0x2f0] ss:$8 sps:$4 sm:$0xff]  }
  0x30   :  { %2008 = vmatpush2.bf16.msra.mxu1 %v2836_v47  ;;  %1958 = vmatprep.subr.bf16.mxu0 %v2837_v48  ;;  %v2918_v47 = vld [vmem:[%s4262_s1 + $0x3f0] ss:$8 sps:$4 sm:$0xff]   ;;  %v2923_v48 = vld [vmem:[%s4262_s1 + $0x2e4] ss:$8 sps:$4 sm:$0xff]  }
  0x31   :  { %2009 = vmatprep.subr.bf16.mxu1 %v2839_v50  ;;  %v2921_v50 = vld [vmem:[%s4262_s1 + $0x2e0] ss:$8 sps:$4 sm:$0xff]  }
  0x33   :  { %1959 = vmatpush2.bf16.msra.mxu0 %v2841_v52  ;;  %v2929_v52 = vld [vmem:[%s4262_s1 + $0x2d4] ss:$8 sps:$4 sm:$0xff]  }
  0x34   :  { %2010 = vmatpush2.bf16.msra.mxu1 %v2842_v53  ;;  %1960 = vmatprep.subr.bf16.mxu0 %v2843_v54  ;;  %v2932_v53 = vld [vmem:[%s4262_s1 + $0x3d4] ss:$8 sps:$4 sm:$0xff]   ;;  %v2927_v54 = vld [vmem:[%s4262_s1 + $0x2d0] ss:$8 sps:$4 sm:$0xff]  }
  0x35   :  { %2011 = vmatprep.subr.bf16.mxu1 %v2845_v55  ;;  %v2930_v55 = vld [vmem:[%s4262_s1 + $0x3d0] ss:$8 sps:$4 sm:$0xff]  }
  0x37   :  { %1961 = vmatpush2.bf16.msra.mxu0 %v2847_v56  ;;  %v2935_v56 = vld [vmem:[%s4262_s1 + $0x2c4] ss:$8 sps:$4 sm:$0xff]  }
  0x38   :  { %2012 = vmatpush2.bf16.msra.mxu1 %v2848_v57  ;;  %1962 = vmatprep.subr.bf16.mxu0 %v2849_v58  ;;  %v2938_v57 = vld [vmem:[%s4262_s1 + $0x3c4] ss:$8 sps:$4 sm:$0xff]   ;;  %v2933_v58 = vld [vmem:[%s4262_s1 + $0x2c0] ss:$8 sps:$4 sm:$0xff]  }
  0x39   :  { %2013 = vmatprep.subr.bf16.mxu1 %v2851_v59  ;;  %v2936_v59 = vld [vmem:[%s4262_s1 + $0x3c0] ss:$8 sps:$4 sm:$0xff]  }
  0x3b   :  { %1963 = vmatpush2.bf16.msra.mxu0 %v2853_v60  ;;  %v2941_v60 = vld [vmem:[%s4262_s1 + $0x2b4] ss:$8 sps:$4 sm:$0xff]  }
  0x3c   :  { %2014 = vmatpush2.bf16.msra.mxu1 %v2854_v61  ;;  %1964 = vmatprep.subr.bf16.mxu0 %v2855_v62  ;;  %v2944_v61 = vld [vmem:[%s4262_s1 + $0x3b4] ss:$8 sps:$4 sm:$0xff]   ;;  %v2939_v62 = vld [vmem:[%s4262_s1 + $0x2b0] ss:$8 sps:$4 sm:$0xff]  }
  0x3d   :  { %2015 = vmatprep.subr.bf16.mxu1 %v2857_v63  ;;  %v2942_v63 = vld [vmem:[%s4262_s1 + $0x3b0] ss:$8 sps:$4 sm:$0xff]  }
  0x3f   :  { %1965 = vmatpush2.bf16.msra.mxu0 %v2859_v0  ;;  %v2949_v0 = vld [vmem:[%s4262_s1 + $0x2a4] ss:$8 sps:$4 sm:$0xff]  }
  0x40   :  { %2016 = vmatpush2.bf16.msra.mxu1 %v2860_v1  ;;  %2036 = vmatprep.subr.bf16.mxu0 %v2869_v2  ;;  %v2952_v1 = vld [vmem:[%s4262_s1 + $0x3a4] ss:$8 sps:$4 sm:$0xff]   ;;  %v2947_v2 = vld [vmem:[%s4262_s1 + $0x2a0] ss:$8 sps:$4 sm:$0xff]  }
  0x41   :  { %2087 = vmatprep.subr.bf16.mxu1 %v2872_v3  ;;  %v2950_v3 = vld [vmem:[%s4262_s1 + $0x3a0] ss:$8 sps:$4 sm:$0xff]  }
  0x42   :  { %1967 = vmatmul.mubr.bf16.vlgmr.msra.gmra.mxu0 %v2861_v4  ;;  %v2957_v4 = vld [vmem:[%s4262_s1 + $0x294] ss:$8 sps:$4 sm:$0xff]  }
  0x43   :  { %2018 = vmatmul.mubr.bf16.vlgmr.msra.gmra.mxu1 %v2864_v5  ;;  %2037 = vmatpush1.bf16.msra.mxu0 %v2867_v6  ;;  %v2960_v5 = vld [vmem:[%s4262_s1 + $0x394] ss:$8 sps:$4 sm:$0xff]   ;;  %v2955_v6 = vld [vmem:[%s4262_s1 + $0x290] ss:$8 sps:$4 sm:$0xff]  }
  0x44   :  { %2088 = vmatpush1.bf16.msra.mxu1 %v2870_v7  ;;  %2038 = vmatprep.subr.bf16.mxu0 %v2875_v8  ;;  %v2958_v7 = vld [vmem:[%s4262_s1 + $0x390] ss:$8 sps:$4 sm:$0xff]   ;;  %v2963_v8 = vld [vmem:[%s4262_s1 + $0x284] ss:$8 sps:$4 sm:$0xff]  }
  0x45   :  { %2089 = vmatprep.subr.bf16.mxu1 %v2878_v9  ;;  %1976 = vmatprep.mubr.bf16.mxu0 %v2428_v27  ;;  %v2966_v9 = vld [vmem:[%s4262_s1 + $0x384] ss:$8 sps:$4 sm:$0xff]   ;;  %v2992_v27 = vld [vmem:[%s4262_s1 + $0x554] ss:$8 sps:$4 sm:$0xff]  }
  0x46   :  { %2027 = vmatprep.mubr.bf16.mxu1 %v2430_v32  ;;  %v2997_v32 = vld [vmem:[%s4262_s1 + $0x444] ss:$8 sps:$4 sm:$0xff]  }
  0x47   :  { %2039 = vmatpush1.bf16.msra.mxu0 %v2873_v10  ;;  %v2961_v10 = vld [vmem:[%s4262_s1 + $0x280] ss:$8 sps:$4 sm:$0xff]  }
  0x48   :  { %2090 = vmatpush1.bf16.msra.mxu1 %v2876_v11  ;;  %2040 = vmatprep.subr.bf16.mxu0 %v2881_v12  ;;  %v2964_v11 = vld [vmem:[%s4262_s1 + $0x380] ss:$8 sps:$4 sm:$0xff]   ;;  %v2975_v12 = vld [vmem:[%s4262_s1 + $0x474] ss:$8 sps:$4 sm:$0xff]  }
  0x49   :  { %2091 = vmatprep.subr.bf16.mxu1 %v2884_v13  ;;  %v2967_v13 = vld [vmem:[%s4263_s0 + $0x10] ss:$72 sps:$4 sm:$0xff]  }
  0x4a   :  { %1977 = vmatmul.mubr.bf16.gmra.mxu0 %v2427_v28 }
  0x4b   :  { %2041 = vmatpush1.bf16.msra.mxu0 %v2879_v14  ;;  %2028 = vmatmul.mubr.bf16.gmra.mxu1 %v2429_v33  ;;  %v2970_v14 = vld [vmem:[%s4263_s0 + $0x18] ss:$72 sps:$4 sm:$0xff]   ;;  %v3000_v33 = vld [vmem:[%s4262_s1 + $0x544] ss:$8 sps:$4 sm:$0xff]  }
  0x4c   :  { %2092 = vmatpush1.bf16.msra.mxu1 %v2882_v15  ;;  %2042 = vmatprep.subr.bf16.mxu0 %v2887_v16  ;;  %v2978_v15 = vld [vmem:[%s4262_s1 + $0x574] ss:$8 sps:$4 sm:$0xff]   ;;  %v2973_v16 = vld [vmem:[%s4262_s1 + $0x470] ss:$8 sps:$4 sm:$0xff]  }
  0x4d   :  { %2093 = vmatprep.subr.bf16.mxu1 %v2890_v17  ;;  %2068 = vmatprep.mubr.bf16.mxu0 %v2969_v40  ;;  %v2976_v17 = vld [vmem:[%s4262_s1 + $0x570] ss:$8 sps:$4 sm:$0xff]  }
  0x4e   :  { %2119 = vmatprep.mubr.bf16.mxu1 %v2972_v41  ;;  %v3001_v40 = vld [vmem:[%s4262_s1 + $0x430] ss:$8 sps:$4 sm:$0xff]  }
  0x4f   :  { %2043 = vmatpush1.bf16.msra.mxu0 %v2885_v18  ;;  %v34_v18 = vld [vmem:[%s4263_s0 + $0xa0] sm:$0x11]  ;;  %v3004_v41 = vld [vmem:[%s4262_s1 + $0x530] ss:$8 sps:$4 sm:$0xff]  }
  0x50   :  { %2094 = vmatpush1.bf16.msra.mxu1 %v2888_v19  ;;  %2044 = vmatprep.subr.bf16.mxu0 %v2893_v20  ;;  %v35_v19 = vld [vmem:[%s4263_s0 + $0xa8] sm:$0x11]  ;;  %v2431_v28 = vcombine.low %v34_v18, %v34_v18 }
  0x51   :  { %2095 = vmatprep.subr.bf16.mxu1 %v2896_v21  ;;  %v2981_v20 = vld [vmem:[%s4262_s1 + $0x464] ss:$8 sps:$4 sm:$0xff]  }
  0x52   :  { %v2984_v21 = vld [vmem:[%s4262_s1 + $0x564] ss:$8 sps:$4 sm:$0xff]  }
  0x53   :  { %2045 = vmatpush1.bf16.msra.mxu0 %v2891_v22  ;;  %v2432_v22 = vcombine.high %v34_v18, %v34_v18  ;;  %v3069_v18 = vld [vmem:[%s4262_s1 + $0x484] ss:$8 sps:$4 sm:$0xff]  }
  0x54   :  { %2096 = vmatpush1.bf16.msra.mxu1 %v2894_v23  ;;  %2046 = vmatprep.subr.bf16.mxu0 %v2899_v25  ;;  %v2434_v23 = vcombine.high %v35_v19, %v35_v19  ;;  %v2982_v25 = vld [vmem:[%s4262_s1 + $0x560] ss:$8 sps:$4 sm:$0xff]  }
  0x55   :  { %2097 = vmatprep.subr.bf16.mxu1 %v2902_v26  ;;  %v2989_v26 = vld [vmem:[%s4262_s1 + $0x454] ss:$8 sps:$4 sm:$0xff]  }
  0x57   :  { %2047 = vmatpush1.bf16.msra.mxu0 %v2897_v30  ;;  %v2990_v30 = vld [vmem:[%s4262_s1 + $0x550] ss:$8 sps:$4 sm:$0xff]  }
  0x58   :  { %2098 = vmatpush1.bf16.msra.mxu1 %v2900_v31  ;;  %2048 = vmatprep.subr.bf16.mxu0 %v2905_v34  ;;  %v2433_v31 = vcombine.low %v35_v19, %v35_v19  ;;  %v3075_v34 = vld [vmem:[%s4263_s0 + $0x24] ss:$72 sps:$4 sm:$0xff]  }
  0x59   :  { %2099 = vmatprep.subr.bf16.mxu1 %v2908_v35  ;;  %v3078_v35 = vld [vmem:[%s4263_s0 + $0x2c] ss:$72 sps:$4 sm:$0xff]  }
  0x5a   :  { %v3072_v19 = vld [vmem:[%s4262_s1 + $0x584] ss:$8 sps:$4 sm:$0xff]  }
  0x5b   :  { %2049 = vmatpush1.bf16.msra.mxu0 %v2903_v36  ;;  %v2995_v36 = vld [vmem:[%s4262_s1 + $0x440] ss:$8 sps:$4 sm:$0xff]  }
  0x5c   :  { %2100 = vmatpush1.bf16.msra.mxu1 %v2906_v37  ;;  %2050 = vmatprep.subr.bf16.mxu0 %v2911_v38  ;;  %v2998_v37 = vld [vmem:[%s4262_s1 + $0x540] ss:$8 sps:$4 sm:$0xff]   ;;  %v3003_v38 = vld [vmem:[%s4262_s1 + $0x434] ss:$8 sps:$4 sm:$0xff]  }
  0x5d   :  { %2101 = vmatprep.subr.bf16.mxu1 %v2914_v39  ;;  %v3006_v39 = vld [vmem:[%s4262_s1 + $0x534] ss:$8 sps:$4 sm:$0xff]  }
  0x5f   :  { %2051 = vmatpush1.bf16.msra.mxu0 %v2909_v42  ;;  %v3009_v42 = vld [vmem:[%s4262_s1 + $0x424] ss:$8 sps:$4 sm:$0xff]  }
  0x60   :  { %2102 = vmatpush1.bf16.msra.mxu1 %v2912_v43  ;;  %2052 = vmatprep.subr.bf16.mxu0 %v2917_v44  ;;  %v3012_v43 = vld [vmem:[%s4262_s1 + $0x524] ss:$8 sps:$4 sm:$0xff]   ;;  %v3007_v44 = vld [vmem:[%s4262_s1 + $0x420] ss:$8 sps:$4 sm:$0xff]  }
  0x61   :  { %2103 = vmatprep.subr.bf16.mxu1 %v2920_v45  ;;  %v3010_v45 = vld [vmem:[%s4262_s1 + $0x520] ss:$8 sps:$4 sm:$0xff]  }
  0x63   :  { %2053 = vmatpush2.bf16.msra.mxu0 %v2915_v46  ;;  %v3015_v46 = vld [vmem:[%s4262_s1 + $0x414] ss:$8 sps:$4 sm:$0xff]  }
  0x64   :  { %2104 = vmatpush2.bf16.msra.mxu1 %v2918_v47  ;;  %2054 = vmatprep.subr.bf16.mxu0 %v2923_v48  ;;  %v3018_v47 = vld [vmem:[%s4262_s1 + $0x514] ss:$8 sps:$4 sm:$0xff]   ;;  %v3013_v48 = vld [vmem:[%s4262_s1 + $0x410] ss:$8 sps:$4 sm:$0xff]  }
  0x65   :  { %2105 = vmatprep.subr.bf16.mxu1 %v2926_v49  ;;  %v3016_v49 = vld [vmem:[%s4262_s1 + $0x510] ss:$8 sps:$4 sm:$0xff]  }
  0x67   :  { %2055 = vmatpush2.bf16.msra.mxu0 %v2921_v50  ;;  %v3021_v50 = vld [vmem:[%s4262_s1 + $0x404] ss:$8 sps:$4 sm:$0xff]  }
  0x68   :  { %2106 = vmatpush2.bf16.msra.mxu1 %v2924_v51  ;;  %2056 = vmatprep.subr.bf16.mxu0 %v2929_v52  ;;  %v3024_v51 = vld [vmem:[%s4262_s1 + $0x504] ss:$8 sps:$4 sm:$0xff]   ;;  %v3019_v52 = vld [vmem:[%s4262_s1 + $0x400] ss:$8 sps:$4 sm:$0xff]  }
  0x69   :  { %2107 = vmatprep.subr.bf16.mxu1 %v2932_v53  ;;  %v3022_v53 = vld [vmem:[%s4262_s1 + $0x500] ss:$8 sps:$4 sm:$0xff]  }
  0x6b   :  { %2057 = vmatpush2.bf16.msra.mxu0 %v2927_v54  ;;  %v3027_v54 = vld [vmem:[%s4262_s1 + $0x4f4] ss:$8 sps:$4 sm:$0xff]  }
  0x6c   :  { %2108 = vmatpush2.bf16.msra.mxu1 %v2930_v55  ;;  %2058 = vmatprep.subr.bf16.mxu0 %v2935_v56  ;;  %v3030_v55 = vld [vmem:[%s4262_s1 + $0x5f4] ss:$8 sps:$4 sm:$0xff]   ;;  %v3025_v56 = vld [vmem:[%s4262_s1 + $0x4f0] ss:$8 sps:$4 sm:$0xff]  }
  0x6d   :  { %2109 = vmatprep.subr.bf16.mxu1 %v2938_v57  ;;  %v3028_v57 = vld [vmem:[%s4262_s1 + $0x5f0] ss:$8 sps:$4 sm:$0xff]  }
  0x6f   :  { %2059 = vmatpush2.bf16.msra.mxu0 %v2933_v58  ;;  %v3033_v58 = vld [vmem:[%s4262_s1 + $0x4e4] ss:$8 sps:$4 sm:$0xff]  }
  0x70   :  { %2110 = vmatpush2.bf16.msra.mxu1 %v2936_v59  ;;  %2060 = vmatprep.subr.bf16.mxu0 %v2941_v60  ;;  %v3036_v59 = vld [vmem:[%s4262_s1 + $0x5e4] ss:$8 sps:$4 sm:$0xff]   ;;  %v3031_v60 = vld [vmem:[%s4262_s1 + $0x4e0] ss:$8 sps:$4 sm:$0xff]  }
  0x71   :  { %2111 = vmatprep.subr.bf16.mxu1 %v2944_v61  ;;  %v3034_v61 = vld [vmem:[%s4262_s1 + $0x5e0] ss:$8 sps:$4 sm:$0xff]  }
  0x73   :  { %2061 = vmatpush2.bf16.msra.mxu0 %v2939_v62  ;;  %v3039_v62 = vld [vmem:[%s4262_s1 + $0x4d4] ss:$8 sps:$4 sm:$0xff]  }
  0x74   :  { %2112 = vmatpush2.bf16.msra.mxu1 %v2942_v63  ;;  %2062 = vmatprep.subr.bf16.mxu0 %v2949_v0  ;;  %v3042_v63 = vld [vmem:[%s4262_s1 + $0x5d4] ss:$8 sps:$4 sm:$0xff]   ;;  %v3037_v0 = vld [vmem:[%s4262_s1 + $0x4d0] ss:$8 sps:$4 sm:$0xff]  }
  0x75   :  { %2113 = vmatprep.subr.bf16.mxu1 %v2952_v1  ;;  %v3040_v1 = vld [vmem:[%s4262_s1 + $0x5d0] ss:$8 sps:$4 sm:$0xff]  }
  0x77   :  { %2063 = vmatpush2.bf16.msra.mxu0 %v2947_v2  ;;  %v3045_v2 = vld [vmem:[%s4262_s1 + $0x4c4] ss:$8 sps:$4 sm:$0xff]  }
  0x78   :  { %2114 = vmatpush2.bf16.msra.mxu1 %v2950_v3  ;;  %2064 = vmatprep.subr.bf16.mxu0 %v2957_v4  ;;  %v3048_v3 = vld [vmem:[%s4262_s1 + $0x5c4] ss:$8 sps:$4 sm:$0xff]   ;;  %v3043_v4 = vld [vmem:[%s4262_s1 + $0x4c0] ss:$8 sps:$4 sm:$0xff]  }
  0x79   :  { %2115 = vmatprep.subr.bf16.mxu1 %v2960_v5  ;;  %v3046_v5 = vld [vmem:[%s4262_s1 + $0x5c0] ss:$8 sps:$4 sm:$0xff]  }
  0x7b   :  { %2065 = vmatpush2.bf16.msra.mxu0 %v2955_v6  ;;  %v3051_v6 = vld [vmem:[%s4262_s1 + $0x4b4] ss:$8 sps:$4 sm:$0xff]  }
  0x7c   :  { %2116 = vmatpush2.bf16.msra.mxu1 %v2958_v7  ;;  %2066 = vmatprep.subr.bf16.mxu0 %v2963_v8  ;;  %v3054_v7 = vld [vmem:[%s4262_s1 + $0x5b4] ss:$8 sps:$4 sm:$0xff]   ;;  %v3049_v8 = vld [vmem:[%s4262_s1 + $0x4b0] ss:$8 sps:$4 sm:$0xff]  }
  0x7d   :  { %2117 = vmatprep.subr.bf16.mxu1 %v2966_v9  ;;  %v3052_v9 = vld [vmem:[%s4262_s1 + $0x5b0] ss:$8 sps:$4 sm:$0xff]  }
  0x7f   :  { %2067 = vmatpush2.bf16.msra.mxu0 %v2961_v10  ;;  %v3057_v10 = vld [vmem:[%s4262_s1 + $0x4a4] ss:$8 sps:$4 sm:$0xff]  }
  0x80   :  { %2118 = vmatpush2.bf16.msra.mxu1 %v2964_v11  ;;  %2138 = vmatprep.subr.bf16.mxu0 %v2975_v12  ;;  %v3060_v11 = vld [vmem:[%s4262_s1 + $0x5a4] ss:$8 sps:$4 sm:$0xff]   ;;  %v3055_v12 = vld [vmem:[%s4262_s1 + $0x4a0] ss:$8 sps:$4 sm:$0xff]  }
  0x81   :  { %2189 = vmatprep.subr.bf16.mxu1 %v2978_v15  ;;  %v3066_v15 = vld [vmem:[%s4262_s1 + $0x594] ss:$8 sps:$4 sm:$0xff]  }
  0x82   :  { %2069 = vmatmul.mubr.bf16.vlgmr.msra.gmra.mxu0 %v2967_v13  ;;  %v3058_v13 = vld [vmem:[%s4262_s1 + $0x5a0] ss:$8 sps:$4 sm:$0xff]  }
  0x83   :  { %2120 = vmatmul.mubr.bf16.vlgmr.msra.gmra.mxu1 %v2970_v14  ;;  %2139 = vmatpush1.bf16.msra.mxu0 %v2973_v16  ;;  %v3063_v14 = vld [vmem:[%s4262_s1 + $0x494] ss:$8 sps:$4 sm:$0xff]   ;;  %v3061_v16 = vld [vmem:[%s4262_s1 + $0x490] ss:$8 sps:$4 sm:$0xff]  }
  0x84   :  { %2190 = vmatpush1.bf16.msra.mxu1 %v2976_v17  ;;  %2140 = vmatprep.subr.bf16.mxu0 %v2981_v20  ;;  %v3064_v17 = vld [vmem:[%s4262_s1 + $0x590] ss:$8 sps:$4 sm:$0xff]   ;;  %v3067_v20 = vld [vmem:[%s4262_s1 + $0x480] ss:$8 sps:$4 sm:$0xff]  }
  0x85   :  { %2191 = vmatprep.subr.bf16.mxu1 %v2984_v21  ;;  %2078 = vmatprep.mubr.bf16.mxu0 %v2432_v22  ;;  %v3070_v21 = vld [vmem:[%s4262_s1 + $0x580] ss:$8 sps:$4 sm:$0xff]  }
  0x86   :  { %2129 = vmatprep.mubr.bf16.mxu1 %v2434_v23  ;;  %v3073_v22 = vld [vmem:[%s4263_s0 + $0x20] ss:$72 sps:$4 sm:$0xff]  }
  0x87   :  { %2141 = vmatpush1.bf16.msra.mxu0 %v2979_v24  ;;  %v3076_v23 = vld [vmem:[%s4263_s0 + $0x28] ss:$72 sps:$4 sm:$0xff]   ;;  %v3081_v24 = vld [vmem:[%s4262_s1 + $0x674] ss:$8 sps:$4 sm:$0xff]  }
  0x88   :  { %2192 = vmatpush1.bf16.msra.mxu1 %v2982_v25  ;;  %2142 = vmatprep.subr.bf16.mxu0 %v2989_v26  ;;  %v3084_v25 = vld [vmem:[%s4262_s1 + $0x774] ss:$8 sps:$4 sm:$0xff]   ;;  %v3079_v26 = vld [vmem:[%s4262_s1 + $0x670] ss:$8 sps:$4 sm:$0xff]  }
  0x89   :  { %2193 = vmatprep.subr.bf16.mxu1 %v2992_v27  ;;  %v36_v27 = vld [vmem:[%s4263_s0 + $0xb0] sm:$0x11] }
  0x8a   :  { %2079 = vmatmul.mubr.bf16.gmra.mxu0 %v2431_v28  ;;  %v37_v28 = vld [vmem:[%s4263_s0 + $0xb8] sm:$0x11] }
  0x8b   :  { %2130 = vmatmul.mubr.bf16.gmra.mxu1 %v2433_v31  ;;  %2143 = vmatpush1.bf16.msra.mxu0 %v2987_v29  ;;  %v3082_v29 = vld [vmem:[%s4262_s1 + $0x770] ss:$8 sps:$4 sm:$0xff]   ;;  %v3090_v31 = vld [vmem:[%s4262_s1 + $0x764] ss:$8 sps:$4 sm:$0xff]  }
  0x8c   :  { %2194 = vmatpush1.bf16.msra.mxu1 %v2990_v30  ;;  %2144 = vmatprep.subr.bf16.mxu0 %v2997_v32  ;;  %v3087_v30 = vld [vmem:[%s4262_s1 + $0x664] ss:$8 sps:$4 sm:$0xff]   ;;  %v2436_v32 = vcombine.high %v36_v27, %v36_v27 }
  0x8d   :  { %2195 = vmatprep.subr.bf16.mxu1 %v3000_v33  ;;  %2170 = vmatprep.mubr.bf16.mxu0 %v3075_v34  ;;  %v2438_v33 = vcombine.high %v37_v28, %v37_v28  ;;  %v3085_v34 = vld [vmem:[%s4262_s1 + $0x660] ss:$8 sps:$4 sm:$0xff]  }
  0x8e   :  { %2221 = vmatprep.mubr.bf16.mxu1 %v3078_v35  ;;  %v3088_v35 = vld [vmem:[%s4262_s1 + $0x760] ss:$8 sps:$4 sm:$0xff]  }
  0x8f   :  { %2145 = vmatpush1.bf16.msra.mxu0 %v2995_v36  ;;  %v3095_v36 = vld [vmem:[%s4262_s1 + $0x654] ss:$8 sps:$4 sm:$0xff]  }
  0x90   :  { %2196 = vmatpush1.bf16.msra.mxu1 %v2998_v37  ;;  %2146 = vmatprep.subr.bf16.mxu0 %v3003_v38  ;;  %v3098_v37 = vld [vmem:[%s4262_s1 + $0x754] ss:$8 sps:$4 sm:$0xff]   ;;  %v2435_v38 = vcombine.low %v36_v27, %v36_v27  ;;  %v3167_v27 = vld [vmem:[%s4262_s1 + $0x690] ss:$8 sps:$4 sm:$0xff]  }
  0x91   :  { %2197 = vmatprep.subr.bf16.mxu1 %v3006_v39  ;;  %v3093_v39 = vld [vmem:[%s4262_s1 + $0x650] ss:$8 sps:$4 sm:$0xff]  }
  0x93   :  { %2147 = vmatpush1.bf16.msra.mxu0 %v3001_v40  ;;  %v2437_v40 = vcombine.low %v37_v28, %v37_v28  ;;  %v3170_v28 = vld [vmem:[%s4262_s1 + $0x790] ss:$8 sps:$4 sm:$0xff]  }
  0x94   :  { %2198 = vmatpush1.bf16.msra.mxu1 %v3004_v41  ;;  %2148 = vmatprep.subr.bf16.mxu0 %v3009_v42  ;;  %v3096_v41 = vld [vmem:[%s4262_s1 + $0x750] ss:$8 sps:$4 sm:$0xff]   ;;  %v3103_v42 = vld [vmem:[%s4262_s1 + $0x644] ss:$8 sps:$4 sm:$0xff]  }
  0x95   :  { %2199 = vmatprep.subr.bf16.mxu1 %v3012_v43  ;;  %v3106_v43 = vld [vmem:[%s4262_s1 + $0x744] ss:$8 sps:$4 sm:$0xff]  }
  0x97   :  { %2149 = vmatpush1.bf16.msra.mxu0 %v3007_v44  ;;  %v3181_v44 = vld [vmem:[%s4263_s0 + $0x34] ss:$72 sps:$4 sm:$0xff]  }
  0x98   :  { %2200 = vmatpush1.bf16.msra.mxu1 %v3010_v45  ;;  %2150 = vmatprep.subr.bf16.mxu0 %v3015_v46  ;;  %v3184_v45 = vld [vmem:[%s4263_s0 + $0x3c] ss:$72 sps:$4 sm:$0xff]   ;;  %v3101_v46 = vld [vmem:[%s4262_s1 + $0x640] ss:$8 sps:$4 sm:$0xff]  }
  0x99   :  { %2201 = vmatprep.subr.bf16.mxu1 %v3018_v47  ;;  %v3104_v47 = vld [vmem:[%s4262_s1 + $0x740] ss:$8 sps:$4 sm:$0xff]  }
  0x9b   :  { %2151 = vmatpush1.bf16.msra.mxu0 %v3013_v48  ;;  %v3109_v48 = vld [vmem:[%s4262_s1 + $0x634] ss:$8 sps:$4 sm:$0xff]  }
  0x9c   :  { %2202 = vmatpush1.bf16.msra.mxu1 %v3016_v49  ;;  %2152 = vmatprep.subr.bf16.mxu0 %v3021_v50  ;;  %v3112_v49 = vld [vmem:[%s4262_s1 + $0x734] ss:$8 sps:$4 sm:$0xff]   ;;  %v3107_v50 = vld [vmem:[%s4262_s1 + $0x630] ss:$8 sps:$4 sm:$0xff]  }
  0x9d   :  { %2203 = vmatprep.subr.bf16.mxu1 %v3024_v51  ;;  %v3110_v51 = vld [vmem:[%s4262_s1 + $0x730] ss:$8 sps:$4 sm:$0xff]  }
  0x9f   :  { %2153 = vmatpush1.bf16.msra.mxu0 %v3019_v52  ;;  %v3115_v52 = vld [vmem:[%s4262_s1 + $0x624] ss:$8 sps:$4 sm:$0xff]  }
  0xa0   :  { %2204 = vmatpush1.bf16.msra.mxu1 %v3022_v53  ;;  %2154 = vmatprep.subr.bf16.mxu0 %v3027_v54  ;;  %v3118_v53 = vld [vmem:[%s4262_s1 + $0x724] ss:$8 sps:$4 sm:$0xff]   ;;  %v3113_v54 = vld [vmem:[%s4262_s1 + $0x620] ss:$8 sps:$4 sm:$0xff]  }
  0xa1   :  { %2205 = vmatprep.subr.bf16.mxu1 %v3030_v55  ;;  %v3116_v55 = vld [vmem:[%s4262_s1 + $0x720] ss:$8 sps:$4 sm:$0xff]  }
  0xa3   :  { %2155 = vmatpush2.bf16.msra.mxu0 %v3025_v56  ;;  %v3121_v56 = vld [vmem:[%s4262_s1 + $0x614] ss:$8 sps:$4 sm:$0xff]  }
  0xa4   :  { %2206 = vmatpush2.bf16.msra.mxu1 %v3028_v57  ;;  %2156 = vmatprep.subr.bf16.mxu0 %v3033_v58  ;;  %v3124_v57 = vld [vmem:[%s4262_s1 + $0x714] ss:$8 sps:$4 sm:$0xff]   ;;  %v3119_v58 = vld [vmem:[%s4262_s1 + $0x610] ss:$8 sps:$4 sm:$0xff]  }
  0xa5   :  { %2207 = vmatprep.subr.bf16.mxu1 %v3036_v59  ;;  %v3122_v59 = vld [vmem:[%s4262_s1 + $0x710] ss:$8 sps:$4 sm:$0xff]  }
  0xa7   :  { %2157 = vmatpush2.bf16.msra.mxu0 %v3031_v60  ;;  %v3127_v60 = vld [vmem:[%s4262_s1 + $0x604] ss:$8 sps:$4 sm:$0xff]  }
  0xa8   :  { %2208 = vmatpush2.bf16.msra.mxu1 %v3034_v61  ;;  %2158 = vmatprep.subr.bf16.mxu0 %v3039_v62  ;;  %v3130_v61 = vld [vmem:[%s4262_s1 + $0x704] ss:$8 sps:$4 sm:$0xff]   ;;  %v3125_v62 = vld [vmem:[%s4262_s1 + $0x600] ss:$8 sps:$4 sm:$0xff]  }
  0xa9   :  { %2209 = vmatprep.subr.bf16.mxu1 %v3042_v63  ;;  %v3128_v63 = vld [vmem:[%s4262_s1 + $0x700] ss:$8 sps:$4 sm:$0xff]  }
  0xab   :  { %2159 = vmatpush2.bf16.msra.mxu0 %v3037_v0  ;;  %v3133_v0 = vld [vmem:[%s4262_s1 + $0x6f4] ss:$8 sps:$4 sm:$0xff]  }
  0xac   :  { %2210 = vmatpush2.bf16.msra.mxu1 %v3040_v1  ;;  %2160 = vmatprep.subr.bf16.mxu0 %v3045_v2  ;;  %v3136_v1 = vld [vmem:[%s4262_s1 + $0x7f4] ss:$8 sps:$4 sm:$0xff]   ;;  %v3131_v2 = vld [vmem:[%s4262_s1 + $0x6f0] ss:$8 sps:$4 sm:$0xff]  }
  0xad   :  { %2211 = vmatprep.subr.bf16.mxu1 %v3048_v3  ;;  %v3134_v3 = vld [vmem:[%s4262_s1 + $0x7f0] ss:$8 sps:$4 sm:$0xff]  }
  0xaf   :  { %2161 = vmatpush2.bf16.msra.mxu0 %v3043_v4  ;;  %v3139_v4 = vld [vmem:[%s4262_s1 + $0x6e4] ss:$8 sps:$4 sm:$0xff]  }
  0xb0   :  { %2212 = vmatpush2.bf16.msra.mxu1 %v3046_v5  ;;  %2162 = vmatprep.subr.bf16.mxu0 %v3051_v6  ;;  %v3142_v5 = vld [vmem:[%s4262_s1 + $0x7e4] ss:$8 sps:$4 sm:$0xff]   ;;  %v3137_v6 = vld [vmem:[%s4262_s1 + $0x6e0] ss:$8 sps:$4 sm:$0xff]  }
  0xb1   :  { %2213 = vmatprep.subr.bf16.mxu1 %v3054_v7  ;;  %v3140_v7 = vld [vmem:[%s4262_s1 + $0x7e0] ss:$8 sps:$4 sm:$0xff]  }
  0xb3   :  { %2163 = vmatpush2.bf16.msra.mxu0 %v3049_v8  ;;  %v3145_v8 = vld [vmem:[%s4262_s1 + $0x6d4] ss:$8 sps:$4 sm:$0xff]  }
  0xb4   :  { %2214 = vmatpush2.bf16.msra.mxu1 %v3052_v9  ;;  %2164 = vmatprep.subr.bf16.mxu0 %v3057_v10  ;;  %v3148_v9 = vld [vmem:[%s4262_s1 + $0x7d4] ss:$8 sps:$4 sm:$0xff]   ;;  %v3143_v10 = vld [vmem:[%s4262_s1 + $0x6d0] ss:$8 sps:$4 sm:$0xff]  }
  0xb5   :  { %2215 = vmatprep.subr.bf16.mxu1 %v3060_v11  ;;  %v3146_v11 = vld [vmem:[%s4262_s1 + $0x7d0] ss:$8 sps:$4 sm:$0xff]  }
  0xb7   :  { %2165 = vmatpush2.bf16.msra.mxu0 %v3055_v12  ;;  %v3151_v12 = vld [vmem:[%s4262_s1 + $0x6c4] ss:$8 sps:$4 sm:$0xff]  }
  0xb8   :  { %2216 = vmatpush2.bf16.msra.mxu1 %v3058_v13  ;;  %2166 = vmatprep.subr.bf16.mxu0 %v3063_v14  ;;  %v3154_v13 = vld [vmem:[%s4262_s1 + $0x7c4] ss:$8 sps:$4 sm:$0xff]   ;;  %v3149_v14 = vld [vmem:[%s4262_s1 + $0x6c0] ss:$8 sps:$4 sm:$0xff]  }
  0xb9   :  { %2217 = vmatprep.subr.bf16.mxu1 %v3066_v15  ;;  %v3152_v15 = vld [vmem:[%s4262_s1 + $0x7c0] ss:$8 sps:$4 sm:$0xff]  }
  0xbb   :  { %2167 = vmatpush2.bf16.msra.mxu0 %v3061_v16  ;;  %v3157_v16 = vld [vmem:[%s4262_s1 + $0x6b4] ss:$8 sps:$4 sm:$0xff]  }
  0xbc   :  { %2218 = vmatpush2.bf16.msra.mxu1 %v3064_v17  ;;  %2168 = vmatprep.subr.bf16.mxu0 %v3069_v18  ;;  %v3160_v17 = vld [vmem:[%s4262_s1 + $0x7b4] ss:$8 sps:$4 sm:$0xff]   ;;  %v3155_v18 = vld [vmem:[%s4262_s1 + $0x6b0] ss:$8 sps:$4 sm:$0xff]  }
  0xbd   :  { %2219 = vmatprep.subr.bf16.mxu1 %v3072_v19  ;;  %v3158_v19 = vld [vmem:[%s4262_s1 + $0x7b0] ss:$8 sps:$4 sm:$0xff]  }
  0xbf   :  { %2169 = vmatpush2.bf16.msra.mxu0 %v3067_v20  ;;  %v3163_v20 = vld [vmem:[%s4262_s1 + $0x6a4] ss:$8 sps:$4 sm:$0xff]  }
  0xc0   :  { %2220 = vmatpush2.bf16.msra.mxu1 %v3070_v21  ;;  %2240 = vmatprep.subr.bf16.mxu0 %v3081_v24  ;;  %v3166_v21 = vld [vmem:[%s4262_s1 + $0x7a4] ss:$8 sps:$4 sm:$0xff]   ;;  %v331_v24 = vlaneseq }
  0xc1   :  { %2291 = vmatprep.subr.bf16.mxu1 %v3084_v25  ;;  %v3169_v25 = vld [vmem:[%s4262_s1 + $0x694] ss:$8 sps:$4 sm:$0xff]  }
  0xc2   :  { %2171 = vmatmul.mubr.bf16.vlgmr.msra.gmra.mxu0 %v3073_v22  ;;  %v3161_v22 = vld [vmem:[%s4262_s1 + $0x6a0] ss:$8 sps:$4 sm:$0xff]  }
  0xc3   :  { %2222 = vmatmul.mubr.bf16.vlgmr.msra.gmra.mxu1 %v3076_v23  ;;  %2241 = vmatpush1.bf16.msra.mxu0 %v3079_v26  ;;  %v3164_v23 = vld [vmem:[%s4262_s1 + $0x7a0] ss:$8 sps:$4 sm:$0xff]   ;;  %v3172_v26 = vld [vmem:[%s4262_s1 + $0x794] ss:$8 sps:$4 sm:$0xff]  }
  0xc4   :  { %2292 = vmatpush1.bf16.msra.mxu1 %v3082_v29  ;;  %2242 = vmatprep.subr.bf16.mxu0 %v3087_v30  ;;  %v332_v29 = vshrl.u32 %v331_v24, 7  ;;  %v3175_v30 = vld [vmem:[%s4262_s1 + $0x684] ss:$8 sps:$4 sm:$0xff]  }
  0xc5   :  { %2293 = vmatprep.subr.bf16.mxu1 %v3090_v31  ;;  %2180 = vmatprep.mubr.bf16.mxu0 %v2436_v32  ;;  %v3178_v31 = vld [vmem:[%s4262_s1 + $0x784] ss:$8 sps:$4 sm:$0xff]   ;;  %v3173_v32 = vld [vmem:[%s4262_s1 + $0x680] ss:$8 sps:$4 sm:$0xff]  }
  0xc6   :  { %2231 = vmatprep.mubr.bf16.mxu1 %v2438_v33  ;;  %v3176_v33 = vld [vmem:[%s4262_s1 + $0x780] ss:$8 sps:$4 sm:$0xff]  }
  0xc7   :  { %2243 = vmatpush1.bf16.msra.mxu0 %v3085_v34  ;;  %v333_v34 = vsub.s32 0, %v332_v29 }
  0xc8   :  { %2294 = vmatpush1.bf16.msra.mxu1 %v3088_v35  ;;  %2244 = vmatprep.subr.bf16.mxu0 %v3095_v36  ;;  %v329_v35 = vld [vmem:[%s4264_s2] sm:$0x3]  ;;  %v3187_v36 = vld [vmem:[%s4262_s1 + $0x874] ss:$8 sps:$4 sm:$0xff]  }
  0xc9   :  { %2295 = vmatprep.subr.bf16.mxu1 %v3098_v37  ;;  %v3179_v37 = vld [vmem:[%s4263_s0 + $0x30] ss:$72 sps:$4 sm:$0xff]  }
  0xca   :  { %2181 = vmatmul.mubr.bf16.gmra.mxu0 %v2435_v38  ;;  %v337_v38 = vsub.s32 1, %v332_v29  ;;  %v3215_v29 = vld [vmem:[%s4262_s1 + $0x8f4] ss:$8 sps:$4 sm:$0xff]  }
  0xcb   :  { %2232 = vmatmul.mubr.bf16.gmra.mxu1 %v2437_v40  ;;  %2245 = vmatpush1.bf16.msra.mxu0 %v3093_v39  ;;  %v3182_v39 = vld [vmem:[%s4263_s0 + $0x38] ss:$72 sps:$4 sm:$0xff]  }
  0xcc   :  { %2296 = vmatpush1.bf16.msra.mxu1 %v3096_v41  ;;  %2246 = vmatprep.subr.bf16.mxu0 %v3103_v42  ;;  %v38_v40 = vld [vmem:[%s4263_s0 + $0xc0] sm:$0x11]  ;;  %v39_v41 = vld [vmem:[%s4263_s0 + $0xc8] sm:$0x11]  ;;  %v4108_v42 = vrot.slane %v329_v35, %v333_v34  ;;  %v3221_v34 = vld [vmem:[%s4262_s1 + $0x8d4] ss:$8 sps:$4 sm:$0xff]  }
  0xcd   :  { %2297 = vmatprep.subr.bf16.mxu1 %v3106_v43  ;;  %2272 = vmatprep.mubr.bf16.mxu0 %v3181_v44  ;;  %v3185_v43 = vld [vmem:[%s4262_s1 + $0x870] ss:$8 sps:$4 sm:$0xff]   ;;  %v3190_v44 = vld [vmem:[%s4262_s1 + $0x864] ss:$8 sps:$4 sm:$0xff]  }
  0xce   :  { %2323 = vmatprep.mubr.bf16.mxu1 %v3184_v45  ;;  %v4116_v45 = vrot.slane %v329_v35, %v337_v38  ;;  %v3219_v35 = vld [vmem:[%s4262_s1 + $0x8d0] ss:$8 sps:$4 sm:$0xff]   ;;  %v3227_v38 = vld [vmem:[%s4262_s1 + $0x8b4] ss:$8 sps:$4 sm:$0xff]  }
  0xcf   :  { %2247 = vmatpush1.bf16.msra.mxu0 %v3101_v46  ;;  %v2440_v46 = vcombine.high %v38_v40, %v38_v40 }
  0xd0   :  { %2298 = vmatpush1.bf16.msra.mxu1 %v3104_v47  ;;  %2248 = vmatprep.subr.bf16.mxu0 %v3109_v48  ;;  %v2442_v47 = vcombine.high %v39_v41, %v39_v41 }
  0xd1   :  { %2299 = vmatprep.subr.bf16.mxu1 %v3112_v49 }
  0xd3   :  { %2249 = vmatpush1.bf16.msra.mxu0 %v3107_v50 }
  0xd4   :  { %2300 = vmatpush1.bf16.msra.mxu1 %v3110_v51  ;;  %2250 = vmatprep.subr.bf16.mxu0 %v3115_v52  ;;  %v3188_v51 = vld [vmem:[%s4262_s1 + $0x860] ss:$8 sps:$4 sm:$0xff]  }
  0xd5   :  { %2301 = vmatprep.subr.bf16.mxu1 %v3118_v53 }
  0xd7   :  { %2251 = vmatpush1.bf16.msra.mxu0 %v3113_v54  ;;  %v3195_v54 = vld [vmem:[%s4262_s1 + $0x854] ss:$8 sps:$4 sm:$0xff]  }
  0xd8   :  { %2302 = vmatpush1.bf16.msra.mxu1 %v3116_v55  ;;  %2252 = vmatprep.subr.bf16.mxu0 %v3121_v56 }
  0xd9   :  { %2303 = vmatprep.subr.bf16.mxu1 %v3124_v57 }
  0xdb   :  { %2253 = vmatpush1.bf16.msra.mxu0 %v3119_v58 }
  0xdc   :  { %2304 = vmatpush1.bf16.msra.mxu1 %v3122_v59  ;;  %2254 = vmatprep.subr.bf16.mxu0 %v3127_v60  ;;  %v2439_v59 = vcombine.low %v38_v40, %v38_v40  ;;  %v2441_v60 = vcombine.low %v39_v41, %v39_v41  ;;  %v3230_v40 = vld [vmem:[%s4262_s1 + $0x8a4] ss:$8 sps:$4 sm:$0xff]   ;;  %v3228_v41 = vld [vmem:[%s4262_s1 + $0x8a0] ss:$8 sps:$4 sm:$0xff]  }
  0xdd   :  { %2305 = vmatprep.subr.bf16.mxu1 %v3130_v61  ;;  %v4131_v61 = vld [vmem:[%s4263_s0 + $0xd0] sm:$0x11] }
  0xdf   :  { %2255 = vmatpush1.bf16.msra.mxu0 %v3125_v62 }
  0xe0   :  { %2306 = vmatpush1.bf16.msra.mxu1 %v3128_v63  ;;  %2256 = vmatprep.subr.bf16.mxu0 %v3133_v0  ;;  %v3193_v0 = vld [vmem:[%s4262_s1 + $0x850] ss:$8 sps:$4 sm:$0xff]  }
  0xe1   :  { %2307 = vmatprep.subr.bf16.mxu1 %v3136_v1 }
  0xe3   :  { %2257 = vmatpush2.bf16.msra.mxu0 %v3131_v2  ;;  %v3200_v2 = vld [vmem:[%s4262_s1 + $0x844] ss:$8 sps:$4 sm:$0xff]  }
  0xe4   :  { %2308 = vmatpush2.bf16.msra.mxu1 %v3134_v3  ;;  %2258 = vmatprep.subr.bf16.mxu0 %v3139_v4 }
  0xe5   :  { %2309 = vmatprep.subr.bf16.mxu1 %v3142_v5  ;;  %v3239_v5 = vld [vmem:[%s4263_s0 + $0x44] ss:$72 sps:$4 sm:$0xff]  }
  0xe7   :  { %2259 = vmatpush2.bf16.msra.mxu0 %v3137_v6  ;;  %v2444_v6 = vcombine.high %v4131_v61, %v4131_v61 }
  0xe8   :  { %2310 = vmatpush2.bf16.msra.mxu1 %v3140_v7  ;;  %2260 = vmatprep.subr.bf16.mxu0 %v3145_v8 }
  0xe9   :  { %2311 = vmatprep.subr.bf16.mxu1 %v3148_v9  ;;  %v3198_v9 = vld [vmem:[%s4262_s1 + $0x840] ss:$8 sps:$4 sm:$0xff]  }
  0xeb   :  { %2261 = vmatpush2.bf16.msra.mxu0 %v3143_v10  ;;  %v3203_v10 = vld [vmem:[%s4262_s1 + $0x834] ss:$8 sps:$4 sm:$0xff]  }
  0xec   :  { %2312 = vmatpush2.bf16.msra.mxu1 %v3146_v11  ;;  %2262 = vmatprep.subr.bf16.mxu0 %v3151_v12  ;;  %v3201_v11 = vld [vmem:[%s4262_s1 + $0x830] ss:$8 sps:$4 sm:$0xff]   ;;  %v3206_v12 = vld [vmem:[%s4262_s1 + $0x824] ss:$8 sps:$4 sm:$0xff]  }
  0xed   :  { %2313 = vmatprep.subr.bf16.mxu1 %v3154_v13  ;;  %v3204_v13 = vld [vmem:[%s4262_s1 + $0x820] ss:$8 sps:$4 sm:$0xff]  }
  0xef   :  { %2263 = vmatpush2.bf16.msra.mxu0 %v3149_v14  ;;  %v3209_v14 = vld [vmem:[%s4262_s1 + $0x814] ss:$8 sps:$4 sm:$0xff]  }
  0xf0   :  { %2314 = vmatpush2.bf16.msra.mxu1 %v3152_v15  ;;  %2264 = vmatprep.subr.bf16.mxu0 %v3157_v16 }
  0xf1   :  { %2315 = vmatprep.subr.bf16.mxu1 %v3160_v17 }
  0xf3   :  { %2265 = vmatpush2.bf16.msra.mxu0 %v3155_v18  ;;  %v3207_v18 = vld [vmem:[%s4262_s1 + $0x810] ss:$8 sps:$4 sm:$0xff]  }
  0xf4   :  { %2316 = vmatpush2.bf16.msra.mxu1 %v3158_v19  ;;  %2266 = vmatprep.subr.bf16.mxu0 %v3163_v20  ;;  %v3212_v20 = vld [vmem:[%s4262_s1 + $0x804] ss:$8 sps:$4 sm:$0xff]  }
  0xf5   :  { %2317 = vmatprep.subr.bf16.mxu1 %v3166_v21 }
  0xf7   :  { %2267 = vmatpush2.bf16.msra.mxu0 %v3161_v22 }
  0xf8   :  { %2318 = vmatpush2.bf16.msra.mxu1 %v3164_v23  ;;  %2268 = vmatprep.subr.bf16.mxu0 %v3169_v25 }
  0xf9   :  { %2319 = vmatprep.subr.bf16.mxu1 %v3172_v26 }
  0xfb   :  { %2269 = vmatpush2.bf16.msra.mxu0 %v3167_v27  ;;  %v3210_v27 = vld [vmem:[%s4262_s1 + $0x800] ss:$8 sps:$4 sm:$0xff]  }
  0xfc   :  { %2320 = vmatpush2.bf16.msra.mxu1 %v3170_v28  ;;  %2270 = vmatprep.subr.bf16.mxu0 %v3175_v30 }
  0xfd   :  { %2321 = vmatprep.subr.bf16.mxu1 %v3178_v31  ;;  %v3213_v31 = vld [vmem:[%s4262_s1 + $0x8f0] ss:$8 sps:$4 sm:$0xff]  }
  0xff   :  { %2271 = vmatpush2.bf16.msra.mxu0 %v3173_v32  ;;  %v3218_v32 = vld [vmem:[%s4262_s1 + $0x8e4] ss:$8 sps:$4 sm:$0xff]  }
 0x100   :  { %2322 = vmatpush2.bf16.msra.mxu1 %v3176_v33  ;;  %2342 = vmatprep.subr.bf16.mxu0 %v3187_v36  ;;  %v3216_v33 = vld [vmem:[%s4262_s1 + $0x8e0] ss:$8 sps:$4 sm:$0xff]  }
 0x101   :  { %2733 = vmatprep.subr.bf16.mxu1 %v3187_v36  ;;  %v3224_v36 = vld [vmem:[%s4262_s1 + $0x8c4] ss:$8 sps:$4 sm:$0xff]  }
 0x102   :  { %v1968_v48 = vpop.f32.mrf.mxu0  ;;  %2273 = vmatmul.mubr.bf16.vlgmr.msra.gmra.mxu0 %v3179_v37  ;;  %v3222_v37 = vld [vmem:[%s4262_s1 + $0x8c0] ss:$8 sps:$4 sm:$0xff]  }
 0x103   :  { %v2019_v49 = vpop.f32.mrf.mxu1  ;;  %2324 = vmatmul.mubr.bf16.vlgmr.msra.gmra.mxu1 %v3182_v39  ;;  %v1969_v50 = vadd.f32 %v1968_v48, %v4108_v42  ;;  %2343 = vmatpush1.bf16.msra.mxu0 %v3185_v43  ;;  %v3225_v39 = vld [vmem:[%s4262_s1 + $0x8b0] ss:$8 sps:$4 sm:$0xff]  }
 0x104   :  { %2749 = vmatpush1.bf16.msra.mxu1 %v3185_v43  ;;  %v1970_v52 = vpop.f32.mrf.mxu0  ;;  %2344 = vmatprep.subr.bf16.mxu0 %v3190_v44  ;;  %v3231_v43 = vld [vmem:[%s4262_s1 + $0x890] ss:$8 sps:$4 sm:$0xff]  }
 0x105   :  { %v2021_v53 = vpop.f32.mrf.mxu1  ;;  %2734 = vmatprep.subr.bf16.mxu1 %v3190_v44  ;;  %v4125_v55 = vadd.f32 %v2019_v49, %v1969_v50  ;;  %v1971_v56 = vadd.f32 %v1970_v52, %v4116_v45  ;;  %2282 = vmatprep.mubr.bf16.mxu0 %v2440_v46  ;;  %v3236_v44 = vld [vmem:[%s4262_s1 + $0x884] ss:$8 sps:$4 sm:$0xff]   ;;  %v3237_v46 = vld [vmem:[%s4263_s0 + $0x40] ss:$72 sps:$4 sm:$0xff]  }
 0x106   :  { %2333 = vmatprep.mubr.bf16.mxu1 %v2442_v47  ;;  %v1972_v57 = vpop.f32.mrf.mxu0  ;;  %v2443_v47 = vcombine.low %v4131_v61, %v4131_v61 }
 0x107   :  { %v2023_v58 = vpop.f32.mrf.mxu1  ;;  %v4133_v62 = vadd.f32 %v2021_v53, %v1971_v56  ;;  %v1973_v63 = vadd.f32 %v1972_v57, %v4108_v42  ;;  %2345 = vmatpush1.bf16.msra.mxu0 %v3188_v51 }
 0x108   :  { %2750 = vmatpush1.bf16.msra.mxu1 %v3188_v51  ;;  %v1974_v1 = vpop.f32.mrf.mxu0  ;;  %2346 = vmatprep.subr.bf16.mxu0 %v3195_v54 }
 0x109   :  { %2735 = vmatprep.subr.bf16.mxu1 %v3195_v54  ;;  %v4142_v3 = vadd.f32 %v2023_v58, %v1973_v63  ;;  %v1975_v4 = vadd.f32 %v1974_v1, %v4116_v45  ;;  %v2025_v7 = vpop.f32.mrf.mxu1 }
 0x10a   :  { %2283 = vmatmul.mubr.bf16.gmra.mxu0 %v2439_v59  ;;  %v1978_v15 = vpop.f32.mrf.mxu0 }
 0x10b   :  { %2334 = vmatmul.mubr.bf16.gmra.mxu1 %v2441_v60  ;;  %v4150_v8 = vadd.f32 %v2025_v7, %v1975_v4  ;;  %2347 = vmatpush1.bf16.msra.mxu0 %v3193_v0  ;;  %v1979_v16 = vadd.f32 %v1978_v15, %v4108_v42  ;;  %v2029_v17 = vpop.f32.mrf.mxu1  ;;  %v3233_v42 = vld [vmem:[%s4262_s1 + $0x894] ss:$8 sps:$4 sm:$0xff]  }
 0x10c   :  { %2751 = vmatpush1.bf16.msra.mxu1 %v3193_v0  ;;  %2348 = vmatprep.subr.bf16.mxu0 %v3200_v2  ;;  %v1980_v19 = vpop.f32.mrf.mxu0 }
 0x10d   :  { %2736 = vmatprep.subr.bf16.mxu1 %v3200_v2  ;;  %2374 = vmatprep.mubr.bf16.mxu0 %v3239_v5  ;;  %v1981_v21 = vadd.f32 %v1980_v19, %v4116_v45  ;;  %v4178_v22 = vadd.f32 %v2029_v17, %v1979_v16  ;;  %v2031_v23 = vpop.f32.mrf.mxu1  ;;  %v3234_v45 = vld [vmem:[%s4262_s1 + $0x880] ss:$8 sps:$4 sm:$0xff]  }
 0x10e   :  { %2384 = vmatprep.mubr.bf16.mxu1 %v2444_v6  ;;  %v1982_v24 = vpop.f32.mrf.mxu0 }
 0x10f   :  { %2349 = vmatpush1.bf16.msra.mxu0 %v3198_v9  ;;  %v4180_v25 = vadd.f32 %v2031_v23, %v1981_v21  ;;  %v2033_v26 = vpop.f32.mrf.mxu1 }
 0x110   :  { %2752 = vmatpush1.bf16.msra.mxu1 %v3198_v9  ;;  %2350 = vmatprep.subr.bf16.mxu0 %v3203_v10  ;;  %v1983_v28 = vpop.f32.mrf.mxu0 }
 0x111   :  { %2737 = vmatprep.subr.bf16.mxu1 %v3203_v10  ;;  %v2034_v30 = vpop.f32.mrf.mxu1 }
 0x113   :  { %2351 = vmatpush1.bf16.msra.mxu0 %v3201_v11 }
 0x114   :  { %2753 = vmatpush1.bf16.msra.mxu1 %v3201_v11  ;;  %2352 = vmatprep.subr.bf16.mxu0 %v3206_v12 }
 0x115   :  { %2738 = vmatprep.subr.bf16.mxu1 %v3206_v12 }
 0x117   :  { %2353 = vmatpush1.bf16.msra.mxu0 %v3204_v13 }
 0x118   :  { %2754 = vmatpush1.bf16.msra.mxu1 %v3204_v13  ;;  %2354 = vmatprep.subr.bf16.mxu0 %v3209_v14 }
 0x119   :  { %2739 = vmatprep.subr.bf16.mxu1 %v3209_v14 }
 0x11b   :  { %2355 = vmatpush1.bf16.msra.mxu0 %v3207_v18 }
 0x11c   :  { %2755 = vmatpush1.bf16.msra.mxu1 %v3207_v18  ;;  %2356 = vmatprep.subr.bf16.mxu0 %v3212_v20 }
 0x11d   :  { %2740 = vmatprep.subr.bf16.mxu1 %v3212_v20 }
 0x11f   :  { %2357 = vmatpush1.bf16.msra.mxu0 %v3210_v27 }
 0x120   :  { %2756 = vmatpush1.bf16.msra.mxu1 %v3210_v27  ;;  %2358 = vmatprep.subr.bf16.mxu0 %v3215_v29 }
 0x121   :  { %2741 = vmatprep.subr.bf16.mxu1 %v3215_v29 }
 0x123   :  { %2359 = vmatpush2.bf16.msra.mxu0 %v3213_v31 }
 0x124   :  { %2757 = vmatpush2.bf16.msra.mxu1 %v3213_v31  ;;  %2360 = vmatprep.subr.bf16.mxu0 %v3218_v32 }
 0x125   :  { %2742 = vmatprep.subr.bf16.mxu1 %v3218_v32 }
 0x127   :  { %2361 = vmatpush2.bf16.msra.mxu0 %v3216_v33 }
 0x128   :  { %2758 = vmatpush2.bf16.msra.mxu1 %v3216_v33  ;;  %2362 = vmatprep.subr.bf16.mxu0 %v3221_v34 }
 0x129   :  { %2743 = vmatprep.subr.bf16.mxu1 %v3221_v34 }
 0x12b   :  { %2363 = vmatpush2.bf16.msra.mxu0 %v3219_v35 }
 0x12c   :  { %2759 = vmatpush2.bf16.msra.mxu1 %v3219_v35  ;;  %2364 = vmatprep.subr.bf16.mxu0 %v3224_v36 }
 0x12d   :  { %2744 = vmatprep.subr.bf16.mxu1 %v3224_v36 }
 0x12f   :  { %2365 = vmatpush2.bf16.msra.mxu0 %v3222_v37 }
 0x130   :  { %2760 = vmatpush2.bf16.msra.mxu1 %v3222_v37  ;;  %2366 = vmatprep.subr.bf16.mxu0 %v3227_v38 }
 0x131   :  { %2745 = vmatprep.subr.bf16.mxu1 %v3227_v38 }
 0x133   :  { %2367 = vmatpush2.bf16.msra.mxu0 %v3225_v39 }
 0x134   :  { %2761 = vmatpush2.bf16.msra.mxu1 %v3225_v39  ;;  %2368 = vmatprep.subr.bf16.mxu0 %v3230_v40 }
 0x135   :  { %2746 = vmatprep.subr.bf16.mxu1 %v3230_v40 }
 0x137   :  { %2369 = vmatpush2.bf16.msra.mxu0 %v3228_v41 }
 0x138   :  { %2762 = vmatpush2.bf16.msra.mxu1 %v3228_v41  ;;  %2370 = vmatprep.subr.bf16.mxu0 %v3233_v42 }
 0x139   :  { %2747 = vmatprep.subr.bf16.mxu1 %v3233_v42 }
 0x13b   :  { %2371 = vmatpush2.bf16.msra.mxu0 %v3231_v43 }
 0x13c   :  { %2763 = vmatpush2.bf16.msra.mxu1 %v3231_v43  ;;  %2372 = vmatprep.subr.bf16.mxu0 %v3236_v44 }
 0x13d   :  { %2748 = vmatprep.subr.bf16.mxu1 %v3236_v44 }
 0x13f   :  { %2373 = vmatpush2.bf16.msra.mxu0 %v3234_v45 }
 0x140   :  { %2764 = vmatpush2.bf16.msra.mxu1 %v3234_v45 }
 0x142   :  { %v2070_v48 = vpop.f32.mrf.mxu0  ;;  %2375 = vmatmul.mubr.bf16.vlgmr.msra.gmra.mxu0 %v3237_v46 }
 0x143   :  { %v2121_v49 = vpop.f32.mrf.mxu1  ;;  %2385 = vmatmul.mubr.bf16.vlgmr.msra.gmra.mxu1 %v2443_v47  ;;  %v2071_v50 = vadd.f32 %v2070_v48, %v4125_v55 }
 0x144   :  { %v2072_v51 = vpop.f32.mrf.mxu0 }
 0x145   :  { %v2123_v52 = vpop.f32.mrf.mxu1  ;;  %v2122_v53 = vadd.f32 %v2121_v49, %v2071_v50  ;;  %v2073_v54 = vadd.f32 %v2072_v51, %v4133_v62 }
 0x146   :  { %v2074_v56 = vpop.f32.mrf.mxu0 }
 0x147   :  { %v2125_v57 = vpop.f32.mrf.mxu1  ;;  %v2124_v58 = vadd.f32 %v2123_v52, %v2073_v54  ;;  %v2075_v59 = vadd.f32 %v2074_v56, %v4142_v3 }
 0x148   :  { %v2076_v60 = vpop.f32.mrf.mxu0 }
 0x149   :  { %v2127_v61 = vpop.f32.mrf.mxu1  ;;  %v2126_v63 = vadd.f32 %v2125_v57, %v2075_v59  ;;  %v2077_v0 = vadd.f32 %v2076_v60, %v4150_v8 }
 0x14a   :  { %v2080_v1 = vpop.f32.mrf.mxu0 }
 0x14b   :  { %v2131_v2 = vpop.f32.mrf.mxu1  ;;  %v2128_v4 = vadd.f32 %v2127_v61, %v2077_v0  ;;  %v2081_v55 = vadd.f32 %v2080_v1, %v4178_v22 }
 0x14c   :  { %v2082_v5 = vpop.f32.mrf.mxu0 }
 0x14d   :  { %v2133_v6 = vpop.f32.mrf.mxu1  ;;  %v2083_v7 = vadd.f32 %v2082_v5, %v4180_v25  ;;  %v2132_v62 = vadd.f32 %v2131_v2, %v2081_v55 }
 0x14e   :  { %v2084_v9 = vpop.f32.mrf.mxu0 }
 0x14f   :  { %v2135_v10 = vpop.f32.mrf.mxu1  ;;  %v2134_v11 = vadd.f32 %v2133_v6, %v2083_v7 }
 0x150   :  { %v2085_v12 = vpop.f32.mrf.mxu0 }
 0x151   :  { %v2136_v3 = vpop.f32.mrf.mxu1 }
 0x182   :  { %v2172_v13 = vpop.f32.mrf.mxu0 }
 0x183   :  { %v2223_v14 = vpop.f32.mrf.mxu1  ;;  %v2173_v15 = vadd.f32 %v2172_v13, %v2122_v53 }
 0x184   :  { %v2174_v16 = vpop.f32.mrf.mxu0 }
 0x185   :  { %v2225_v8 = vpop.f32.mrf.mxu1  ;;  %v2224_v17 = vadd.f32 %v2223_v14, %v2173_v15  ;;  %v2175_v18 = vadd.f32 %v2174_v16, %v2124_v58 }
 0x186   :  { %v2176_v19 = vpop.f32.mrf.mxu0 }
 0x187   :  { %v2227_v20 = vpop.f32.mrf.mxu1  ;;  %v2226_v21 = vadd.f32 %v2225_v8, %v2175_v18  ;;  %v2177_v22 = vadd.f32 %v2176_v19, %v2126_v63 }
 0x188   :  { %v2178_v23 = vpop.f32.mrf.mxu0 }
 0x189   :  { %v2229_v24 = vpop.f32.mrf.mxu1  ;;  %v2228_v25 = vadd.f32 %v2227_v20, %v2177_v22  ;;  %v2179_v26 = vadd.f32 %v2178_v23, %v2128_v4 }
 0x18a   :  { %v2182_v27 = vpop.f32.mrf.mxu0 }
 0x18b   :  { %v2233_v28 = vpop.f32.mrf.mxu1  ;;  %v2230_v29 = vadd.f32 %v2229_v24, %v2179_v26  ;;  %v2183_v30 = vadd.f32 %v2182_v27, %v2132_v62 }
 0x18c   :  { %v2184_v31 = vpop.f32.mrf.mxu0 }
 0x18d   :  { %v2235_v32 = vpop.f32.mrf.mxu1  ;;  %v2185_v33 = vadd.f32 %v2184_v31, %v2134_v11  ;;  %v2234_v34 = vadd.f32 %v2233_v28, %v2183_v30 }
 0x18e   :  { %v2186_v35 = vpop.f32.mrf.mxu0 }
 0x18f   :  { %v2237_v36 = vpop.f32.mrf.mxu1  ;;  %v2236_v37 = vadd.f32 %v2235_v32, %v2185_v33 }
 0x190   :  { %v2187_v38 = vpop.f32.mrf.mxu0 }
 0x191   :  { %v2238_v39 = vpop.f32.mrf.mxu1 }
 0x1c2   :  { %v2274_v40 = vpop.f32.mrf.mxu0 }
 0x1c3   :  { %v2325_v41 = vpop.f32.mrf.mxu1  ;;  %v2275_v57 = vadd.f32 %v2274_v40, %v2224_v17 }
 0x1c4   :  { %v2276_v42 = vpop.f32.mrf.mxu0 }
 0x1c5   :  { %v2327_v43 = vpop.f32.mrf.mxu1  ;;  %v2277_v59 = vadd.f32 %v2276_v42, %v2226_v21  ;;  %v2326_v63 = vadd.f32 %v2325_v41, %v2275_v57 }
 0x1c6   :  { %v2278_v44 = vpop.f32.mrf.mxu0 }
 0x1c7   :  { %v2329_v45 = vpop.f32.mrf.mxu1  ;;  %v2279_v61 = vadd.f32 %v2278_v44, %v2228_v25  ;;  %v2328_v1 = vadd.f32 %v2327_v43, %v2277_v59 }
 0x1c8   :  { %v2280_v46 = vpop.f32.mrf.mxu0 }
 0x1c9   :  { %v2331_v47 = vpop.f32.mrf.mxu1  ;;  %v2281_v55 = vadd.f32 %v2280_v46, %v2230_v29  ;;  %v2330_v62 = vadd.f32 %v2329_v45, %v2279_v61 }
 0x1ca   :  { %v2284_v48 = vpop.f32.mrf.mxu0 }
 0x1cb   :  { %v2335_v49 = vpop.f32.mrf.mxu1  ;;  %v2285_v58 = vadd.f32 %v2284_v48, %v2234_v34  ;;  %v2332_v16 = vadd.f32 %v2331_v47, %v2281_v55 }
 0x1cc   :  { %v2286_v50 = vpop.f32.mrf.mxu0 }
 0x1cd   :  { %v2337_v51 = vpop.f32.mrf.mxu1  ;;  %v2287_v60 = vadd.f32 %v2286_v50, %v2236_v37  ;;  %v2336_v0 = vadd.f32 %v2335_v49, %v2285_v58 }
 0x1ce   :  { %v2288_v52 = vpop.f32.mrf.mxu0 }
 0x1cf   :  { %v2339_v53 = vpop.f32.mrf.mxu1  ;;  %v2338_v5 = vadd.f32 %v2337_v51, %v2287_v60 }
 0x1d0   :  { %v2289_v54 = vpop.f32.mrf.mxu0 }
 0x1d1   :  { %v2340_v56 = vpop.f32.mrf.mxu1 }
 0x202   :  { %v2376_v2 = vpop.f32.mrf.mxu0 }
 0x203   :  { %v2386_v4 = vpop.f32.mrf.mxu1  ;;  %v2377_v6 = vadd.f32 %v2376_v2, %v2326_v63 }
 0x204   :  { %v2387_v7 = vadd.f32 %v2386_v4, %v2336_v0  ;;  %v2378_v9 = vpop.f32.mrf.mxu0 }
 0x205   :  { %v2388_v10 = vpop.f32.mrf.mxu1  ;;  %v2393_v11 = vmax.f32 %v2377_v6, 0.0  ;;  %v2379_v3 = vadd.f32 %v2378_v9, %v2328_v1 }
 0x206   :  { %v2397_v12 = vmax.f32 %v2387_v7, 0.0  ;;  %v2389_v13 = vadd.f32 %v2388_v10, %v2338_v5  ;;  %v2380_v14 = vpop.f32.mrf.mxu0 }
 0x207   :  { %v2390_v15 = vpop.f32.mrf.mxu1  ;;  %2399 = vst [vmem:[%s4265_s3] sm:$0xff] %v2393_v11  ;;  %v2394_v8 = vmax.f32 %v2379_v3, 0.0  ;;  %v2381_v18 = vadd.f32 %v2380_v14, %v2330_v62 }
 0x208   :  { %2403 = vst [vmem:[%s4265_s3 + $0x20] sm:$0x3] %v2397_v12  ;;  %v2398_v17 = vmax.f32 %v2389_v13, 0.0  ;;  %v2382_v19 = vpop.f32.mrf.mxu0 }
 0x209   :  { %v2391_v20 = vpop.f32.mrf.mxu1  ;;  %2400 = vst [vmem:[%s4265_s3 + $0x8] sm:$0xff] %v2394_v8  ;;  %v2395_v21 = vmax.f32 %v2381_v18, 0.0  ;;  %v2383_v22 = vadd.f32 %v2382_v19, %v2332_v16 }
 0x20a   :  { %2404 = vst [vmem:[%s4265_s3 + $0x28] sm:$0x3] %v2398_v17 }
 0x20b   :  { %2401 = vst [vmem:[%s4265_s3 + $0x10] sm:$0xff] %v2395_v21  ;;  %v2396_v23 = vmax.f32 %v2383_v22, 0.0 }
 0x20d   :  { %2402 = vst [vmem:[%s4265_s3 + $0x18] sm:$0xff] %v2396_v23 }

</bundles_post_ra>
